<compile_context>
chip_gen: v7x
topology: tpu7x:2x2x1
jax: 0.10.0
libtpu: 0.0.40
codegen_flags: <defaults>
</compile_context>

<pallas_src>
import functools

import jax
import jax.numpy as jnp
from jax import lax
from jax.experimental import pallas as pl
from jax.experimental.pallas import tpu as pltpu


# ----------------------------------------------------------------------------
# Glue: gather-free PyTorch-exact bilinear x2 upsample + reflection pad
# ----------------------------------------------------------------------------
def _shift_edge(a, axis, direction):
    n = a.shape[axis]
    if direction < 0:                         # previous element, edge-clamped
        head = lax.slice_in_dim(a, 0, 1, axis=axis)
        body = lax.slice_in_dim(a, 0, n - 1, axis=axis)
        return jnp.concatenate([head, body], axis=axis)
    body = lax.slice_in_dim(a, 1, n, axis=axis)   # next element, edge-clamped
    tail = lax.slice_in_dim(a, n - 1, n, axis=axis)
    return jnp.concatenate([body, tail], axis=axis)


def _upsample_x2_axis(a, axis):
    # x2 bilinear, align_corners=False.  For scale factor 2 the weights are a
    # static 0.25/0.75 stencil, so this is pure shifted adds (no XLA gathers):
    #   out[2m]   = 0.25*a[m-1] + 0.75*a[m]    (edge clamped)
    #   out[2m+1] = 0.75*a[m]   + 0.25*a[m+1]  (edge clamped)
    prev_ = _shift_edge(a, axis, -1)
    next_ = _shift_edge(a, axis, +1)
    even = 0.25 * prev_ + 0.75 * a
    odd = 0.75 * a + 0.25 * next_
    inter = jnp.stack([even, odd], axis=axis + 1)
    shape = list(a.shape)
    shape[axis] *= 2
    return inter.reshape(shape)


def _upsample_bilinear_x2_nhwc(x):
    x = _upsample_x2_axis(x, 1)               # H
    x = _upsample_x2_axis(x, 2)               # W
    return x


# ----------------------------------------------------------------------------
# Tile planning
# ----------------------------------------------------------------------------
def _round_up(x, m):
    return (x + m - 1) // m * m


def _plan_tiles(ho, wo, cin, cf):
    """Pick the row-tile size TH (multiple of 8) and a matching VMEM limit."""
    LANE, SUB = 128, 8
    in_row = _round_up(wo + 2, SUB) * _round_up(cin, LANE) * 4   # f32 VMEM bytes/row
    out_row = _round_up(wo, SUB) * _round_up(cf, LANE) * 4
    acc_row = _round_up(wo, SUB) * LANE * 4
    # double-buffered in/out + halo window scratch + accumulator + tap temps
    per_row = 2 * in_row + 2 * out_row + in_row + acc_row + 2 * in_row
    budget = 8 * 1024 * 1024                  # conservative: fits all generations
    th = (budget // max(per_row, 1)) // SUB * SUB
    th = max(SUB, min(th, 256))
    th = min(th, _round_up(ho, SUB))
    est = per_row * th + 2 * 1024 * 1024
    vmem_limit = int(min(100 * 2**20, max(32 * 2**20, int(1.5 * est))))
    return th, vmem_limit


# ----------------------------------------------------------------------------
# Pallas kernel: fused in-VMEM im2col 3x3 conv + ReLU + 1x1 conv + tanh*scale
# ----------------------------------------------------------------------------
def _fused_upconv_predict_kernel(xm_ref, xh_ref, w3_ref, b3_ref, wp_ref, bp_ref,
                                 out_ref, win_ref, *, th, wo, cout, p, scale,
                                 activation):
    # Assemble the (th+2)-row halo window in VMEM (main tile + 2 halo rows).
    win_ref[:th] = xm_ref[0]
    win_ref[th:] = xh_ref[0]
    cin = win_ref.shape[-1]

    # 3x3 conv as 9 accumulated (th*wo, cin) @ (cin, cout) dots; the im2col
    # never exists in HBM, only shifted views of the VMEM window.
    acc = jnp.zeros((th * wo, cout), dtype=jnp.float32)
    for kh in range(3):
        for kw in range(3):
            tap = win_ref[kh:kh + th, kw:kw + wo, :].reshape(th * wo, cin)
            acc = acc + jnp.dot(tap, w3_ref[kh * 3 + kw],
                                preferred_element_type=jnp.float32)

    feat = jnp.maximum(acc + b3_ref[...], 0.0)                    # (th*wo, cout)
    logits = jnp.dot(feat, wp_ref[...],
                     preferred_element_type=jnp.float32) + bp_ref[...]
    if activation == "tanh":
        pred = jnp.tanh(logits) * scale                           # (th*wo, p)
    else:
        pred = jax.nn.sigmoid(logits) * scale

    # Single fused feat||pred output block (channel-minor): the concat in the
    # wrapper becomes a free slice; no separate 2-lane pred HBM buffer.
    out_ref[0, :, :, :cout] = feat.reshape(th, wo, cout).astype(out_ref.dtype)
    out_ref[0, :, :, cout:] = pred.reshape(th, wo, p).astype(out_ref.dtype)


def _run_fused_kernel(xp, w3, b3, wpred, bpred, *, th, scale, activation,
                      vmem_limit):
    n, hp2, wp2, cin = xp.shape
    ho_p, wo = hp2 - 2, wp2 - 2
    cout = w3.shape[-1]
    p = wpred.shape[-1]
    cf = cout + p
    r = ho_p // th

    kernel = functools.partial(_fused_upconv_predict_kernel, th=th, wo=wo,
                               cout=cout, p=p, scale=scale,
                               activation=activation)
    return pl.pallas_call(
        kernel,
        out_shape=jax.ShapeDtypeStruct((n, ho_p, wo, cf), jnp.float32),
        grid=(n, r),
        in_specs=[
            # main row tile (th rows of the padded, upsampled image)
            pl.BlockSpec((1, th, wp2, cin), lambda b, i: (b, i, 0, 0)),
            # 2-row halo: the two rows immediately below the main tile
            pl.BlockSpec((1, 2, wp2, cin),
                         lambda b, i: (b, (i + 1) * (th // 2), 0, 0)),
            # weights/biases stay VMEM-resident (constant index maps)
            pl.BlockSpec((9, cin, cout), lambda b, i: (0, 0, 0)),
            pl.BlockSpec((1, cout), lambda b, i: (0, 0)),
            pl.BlockSpec((cout, p), lambda b, i: (0, 0)),
            pl.BlockSpec((1, p), lambda b, i: (0, 0)),
        ],
        out_specs=pl.BlockSpec((1, th, wo, cf), lambda b, i: (b, i, 0, 0)),
        scratch_shapes=[pltpu.VMEM((th + 2, wp2, cin), jnp.float32)],
        compiler_params=pltpu.CompilerParams(
            dimension_semantics=("parallel", "parallel"),
            vmem_limit_bytes=vmem_limit),
    )(xp, xp, w3, b3, wpred, bpred)


# ----------------------------------------------------------------------------
# Module wrapper (forward pass)
# ----------------------------------------------------------------------------
def init_params(key, in_channels, out_channels, ksize=3, flow_or_depth="flow"):
    assert ksize == 3, "this implementation specializes ksize=3"
    # TODO(synk): do_batch_norm=True (BatchNorm2d) variant not implemented;
    #             only the module's default do_batch_norm=False path.
    pred_ch = 2 if flow_or_depth == "flow" else 1
    k1, k2, k3, k4 = jax.random.split(key, 4)
    fan3 = in_channels * ksize * ksize
    b3_bound = 1.0 / jnp.sqrt(jnp.float32(fan3))
    w3 = jax.random.uniform(k1, (ksize, ksize, in_channels, out_channels),
                            jnp.float32, -b3_bound, b3_bound)       # HWIO
    b3 = jax.random.uniform(k2, (1, out_channels), jnp.float32,
                            -b3_bound, b3_bound)
    fanp = out_channels
    bp_bound = 1.0 / jnp.sqrt(jnp.float32(fanp))
    wp = jax.random.uniform(k3, (out_channels, pred_ch), jnp.float32,
                            -bp_bound, bp_bound)
    bp = jax.random.uniform(k4, (1, pred_ch), jnp.float32,
                            -bp_bound, bp_bound)
    return {"w3": w3, "b3": b3, "wp": wp, "bp": bp}


def upsample_conv2d_and_predict_forward(params, x_nchw, scale=256.0,
                                        flow_or_depth="flow"):
    """Returns (concat([feat, pred], ch), pred), both NCHW — same as PyTorch."""
    n, cin, h, w = x_nchw.shape
    ho, wo = 2 * h, 2 * w
    cout = params["w3"].shape[-1]
    p = params["wp"].shape[-1]
    cf = cout + p
    activation = "tanh" if flow_or_depth == "flow" else "sigmoid"

    x = jnp.transpose(x_nchw, (0, 2, 3, 1)).astype(jnp.float32)     # NHWC
    xu = _upsample_bilinear_x2_nhwc(x)                              # (n,2h,2w,cin)
    xp = jnp.pad(xu, ((0, 0), (1, 1), (1, 1), (0, 0)), mode="reflect")

    th, vmem_limit = _plan_tiles(ho, wo, cin, cf)
    ho_p = _round_up(ho, th)
    if ho_p != ho:                         # pad rows so the grid tiles evenly
        xp = jnp.pad(xp, ((0, 0), (0, ho_p - ho), (0, 0), (0, 0)), mode="edge")

    w3 = params["w3"].reshape(9, cin, cout)                         # tap-major
    out = _run_fused_kernel(xp, w3, params["b3"], params["wp"], params["bp"],
                            th=th, scale=scale, activation=activation,
                            vmem_limit=vmem_limit)
    out = out[:, :ho]                                               # drop row pad
    out_nchw = jnp.transpose(out, (0, 3, 1, 2))                     # (n,cout+p,2h,2w)
    pred = out_nchw[:, cout:]
    return out_nchw, pred


# ----------------------------------------------------------------------------
# Pure-jnp reference (PyTorch-formula upsample, loop conv) for correctness
# ----------------------------------------------------------------------------
def _bilinear_x2_indices(in_size):
    out_size = in_size * 2
    i = jnp.arange(out_size, dtype=jnp.float32)
    src = jnp.maximum((i + 0.5) * 0.5 - 0.5, 0.0)
    i0 = jnp.minimum(jnp.floor(src).astype(jnp.int32), in_size - 1)
    i1 = jnp.minimum(i0 + 1, in_size - 1)
    lam = src - i0.astype(jnp.float32)
    return i0, i1, lam


def _upsample_bilinear_x2_ref(x):
    _, h, w, _ = x.shape
    h0, h1, lh = _bilinear_x2_indices(h)
    xh = (x[:, h0, :, :] * (1.0 - lh)[None, :, None, None]
          + x[:, h1, :, :] * lh[None, :, None, None])
    w0, w1, lw = _bilinear_x2_indices(w)
    return (xh[:, :, w0, :] * (1.0 - lw)[None, None, :, None]
            + xh[:, :, w1, :] * lw[None, None, :, None])


def _reference(params, x_nchw, scale=256.0):
    n, cin, h, w = x_nchw.shape
    ho, wo = 2 * h, 2 * w
    x = jnp.transpose(x_nchw, (0, 2, 3, 1)).astype(jnp.float32)
    xu = _upsample_bilinear_x2_ref(x)
    xp = jnp.pad(xu, ((0, 0), (1, 1), (1, 1), (0, 0)), mode="reflect")
    acc = jnp.zeros((n, ho, wo, params["w3"].shape[-1]), jnp.float32)
    for kh in range(3):
        for kw in range(3):
            acc = acc + jnp.einsum("nhwc,cf->nhwf",
                                   xp[:, kh:kh + ho, kw:kw + wo, :],
                                   params["w3"][kh, kw])
    feat = jnp.maximum(acc + params["b3"][0], 0.0)
    pred = jnp.tanh(jnp.einsum("nhwf,fp->nhwp", feat, params["wp"])
                    + params["bp"][0]) * scale
    feat = feat.transpose(0, 3, 1, 2)
    pred = pred.transpose(0, 3, 1, 2)
    return jnp.concatenate([feat, pred], axis=1), pred


if __name__ == "__main__":
    key = jax.random.PRNGKey(0)
    kx, kp = jax.random.split(key)

    N, Cin, H, W = 2, 4, 16, 16
    Cout = 8
    scale = 256.0

    x = jax.random.normal(kx, (N, Cin, H, W), dtype=jnp.float32)
    params = init_params(kp, Cin, Cout, ksize=3, flow_or_depth="flow")

    fwd = jax.jit(functools.partial(upsample_conv2d_and_predict_forward,
                                    scale=scale))
    out_cat, pred = fwd(params, x)
    out_cat = jax.block_until_ready(out_cat)
    pred = jax.block_until_ready(pred)

    assert out_cat.shape == (N, Cout + 2, 2 * H, 2 * W), out_cat.shape
    assert pred.shape == (N, 2, 2 * H, 2 * W), pred.shape

    ref_cat, ref_pred = _reference(params, x, scale=scale)
    assert jnp.allclose(out_cat, ref_cat, rtol=1e-4, atol=2e-3), \
        float(jnp.max(jnp.abs(out_cat - ref_cat)))
    assert jnp.allclose(pred, ref_pred, rtol=1e-4, atol=2e-3), \
        float(jnp.max(jnp.abs(pred - ref_pred)))

    print("KERNEL_OK")
</pallas_src>

<mosaic_0001>
module attributes {stable_mosaic.version = 11 : i64} {
  func.func @_fused_upconv_predict_kernel(%arg0: i32, %arg1: i32, %arg2: memref<1x32x34x4xf32, #tpu.memory_space<vmem>>, %arg3: memref<1x2x34x4xf32, #tpu.memory_space<vmem>>, %arg4: memref<9x4x8xf32, #tpu.memory_space<vmem>>, %arg5: memref<1x8xf32, #tpu.memory_space<vmem>>, %arg6: memref<8x2xf32, #tpu.memory_space<vmem>>, %arg7: memref<1x2xf32, #tpu.memory_space<vmem>>, %arg8: memref<1x32x32x10xf32, #tpu.memory_space<vmem>>, %arg9: memref<34x34x4xf32, #tpu.memory_space<vmem>>) attributes {dimension_semantics = [#tpu.dimension_semantics<parallel>, #tpu.dimension_semantics<parallel>], iteration_bounds = array<i64: 2, 1>, scalar_prefetch = 0 : i64, scratch_operands = 1 : i64, tpu.core_type = #tpu.core_type<tc>, window_params = [{transform_indices = @transform_0, window_bounds = array<i64: 1, 32, 34, 4>}, {transform_indices = @transform_1, window_bounds = array<i64: 1, 2, 34, 4>}, {pipeline_mode = #tpu.pipeline_mode<synchronous>, transform_indices = @transform_2, window_bounds = array<i64: 9, 4, 8>}, {pipeline_mode = #tpu.pipeline_mode<synchronous>, transform_indices = @transform_3, window_bounds = array<i64: 1, 8>}, {pipeline_mode = #tpu.pipeline_mode<synchronous>, transform_indices = @transform_4, window_bounds = array<i64: 8, 2>}, {pipeline_mode = #tpu.pipeline_mode<synchronous>, transform_indices = @transform_5, window_bounds = array<i64: 1, 2>}, {transform_indices = @transform_6, window_bounds = array<i64: 1, 32, 32, 10>}]} {
    %c0 = arith.constant 0 : index
    %c0_0 = arith.constant 0 : index
    %c0_1 = arith.constant 0 : index
    %c0_2 = arith.constant 0 : index
    %0 = vector.load %arg2[%c0, %c0_0, %c0_1, %c0_2] : memref<1x32x34x4xf32, #tpu.memory_space<vmem>>, vector<1x32x34x4xf32>
    %1 = vector.shape_cast %0 : vector<1x32x34x4xf32> to vector<32x34x4xf32>
    %c0_3 = arith.constant 0 : index
    %c0_4 = arith.constant 0 : index
    %c0_5 = arith.constant 0 : index
    %2 = vector.load %arg9[%c0_3, %c0_4, %c0_5] : memref<34x34x4xf32, #tpu.memory_space<vmem>>, vector<32x34x4xf32>
    tpu.vector_store %arg9[%c0_3, %c0_4, %c0_5], %1 {strides = array<i32>} : memref<34x34x4xf32, #tpu.memory_space<vmem>>, vector<32x34x4xf32>,
    %c0_6 = arith.constant 0 : index
    %c0_7 = arith.constant 0 : index
    %c0_8 = arith.constant 0 : index
    %c0_9 = arith.constant 0 : index
    %3 = vector.load %arg3[%c0_6, %c0_7, %c0_8, %c0_9] : memref<1x2x34x4xf32, #tpu.memory_space<vmem>>, vector<1x2x34x4xf32>
    %4 = vector.shape_cast %3 : vector<1x2x34x4xf32> to vector<2x34x4xf32>
    %c32 = arith.constant 32 : index
    %c0_10 = arith.constant 0 : index
    %c0_11 = arith.constant 0 : index
    %5 = vector.load %arg9[%c32, %c0_10, %c0_11] : memref<34x34x4xf32, #tpu.memory_space<vmem>>, vector<2x34x4xf32>
    tpu.vector_store %arg9[%c32, %c0_10, %c0_11], %4 {strides = array<i32>} : memref<34x34x4xf32, #tpu.memory_space<vmem>>, vector<2x34x4xf32>,
    %cst = arith.constant 0.000000e+00 : f32
    %6 = vector.broadcast %cst : f32 to vector<1024x8xf32>
    %c0_12 = arith.constant 0 : index
    %c0_13 = arith.constant 0 : index
    %c0_14 = arith.constant 0 : index
    %7 = vector.load %arg9[%c0_12, %c0_13, %c0_14] : memref<34x34x4xf32, #tpu.memory_space<vmem>>, vector<32x32x4xf32>
    %8 = vector.shape_cast %7 : vector<32x32x4xf32> to vector<1024x4xf32>
    %c0_15 = arith.constant 0 : index
    %c0_16 = arith.constant 0 : index
    %c0_17 = arith.constant 0 : index
    %9 = vector.load %arg4[%c0_15, %c0_16, %c0_17] : memref<9x4x8xf32, #tpu.memory_space<vmem>>, vector<1x4x8xf32>
    %10 = vector.shape_cast %9 : vector<1x4x8xf32> to vector<4x8xf32>
    %cst_18 = arith.constant dense<0.000000e+00> : vector<1024x8xf32>
    %11 = tpu.matmul %8, %10, %cst_18 {dimension_numbers = #tpu.dot_dimension_numbers<[1], [0], [0], [1], [0, 0, 1, 1], [], []>} : vector<1024x4xf32>, vector<4x8xf32>, vector<1024x8xf32> -> vector<1024x8xf32>
    %12 = arith.addf %6, %11 : vector<1024x8xf32>
    %c0_19 = arith.constant 0 : index
    %c1 = arith.constant 1 : index
    %c0_20 = arith.constant 0 : index
    %13 = vector.load %arg9[%c0_19, %c1, %c0_20] : memref<34x34x4xf32, #tpu.memory_space<vmem>>, vector<32x32x4xf32>
    %14 = vector.shape_cast %13 : vector<32x32x4xf32> to vector<1024x4xf32>
    %c1_21 = arith.constant 1 : index
    %c0_22 = arith.constant 0 : index
    %c0_23 = arith.constant 0 : index
    %15 = vector.load %arg4[%c1_21, %c0_22, %c0_23] : memref<9x4x8xf32, #tpu.memory_space<vmem>>, vector<1x4x8xf32>
    %16 = vector.shape_cast %15 : vector<1x4x8xf32> to vector<4x8xf32>
    %cst_24 = arith.constant dense<0.000000e+00> : vector<1024x8xf32>
    %17 = tpu.matmul %14, %16, %cst_24 {dimension_numbers = #tpu.dot_dimension_numbers<[1], [0], [0], [1], [0, 0, 1, 1], [], []>} : vector<1024x4xf32>, vector<4x8xf32>, vector<1024x8xf32> -> vector<1024x8xf32>
    %18 = arith.addf %12, %17 : vector<1024x8xf32>
    %c0_25 = arith.constant 0 : index
    %c2 = arith.constant 2 : index
    %c0_26 = arith.constant 0 : index
    %19 = vector.load %arg9[%c0_25, %c2, %c0_26] : memref<34x34x4xf32, #tpu.memory_space<vmem>>, vector<32x32x4xf32>
    %20 = vector.shape_cast %19 : vector<32x32x4xf32> to vector<1024x4xf32>
    %c2_27 = arith.constant 2 : index
    %c0_28 = arith.constant 0 : index
    %c0_29 = arith.constant 0 : index
    %21 = vector.load %arg4[%c2_27, %c0_28, %c0_29] : memref<9x4x8xf32, #tpu.memory_space<vmem>>, vector<1x4x8xf32>
    %22 = vector.shape_cast %21 : vector<1x4x8xf32> to vector<4x8xf32>
    %cst_30 = arith.constant dense<0.000000e+00> : vector<1024x8xf32>
    %23 = tpu.matmul %20, %22, %cst_30 {dimension_numbers = #tpu.dot_dimension_numbers<[1], [0], [0], [1], [0, 0, 1, 1], [], []>} : vector<1024x4xf32>, vector<4x8xf32>, vector<1024x8xf32> -> vector<1024x8xf32>
    %24 = arith.addf %18, %23 : vector<1024x8xf32>
    %c1_31 = arith.constant 1 : index
    %c0_32 = arith.constant 0 : index
    %c0_33 = arith.constant 0 : index
    %25 = vector.load %arg9[%c1_31, %c0_32, %c0_33] : memref<34x34x4xf32, #tpu.memory_space<vmem>>, vector<32x32x4xf32>
    %26 = vector.shape_cast %25 : vector<32x32x4xf32> to vector<1024x4xf32>
    %c3 = arith.constant 3 : index
    %c0_34 = arith.constant 0 : index
    %c0_35 = arith.constant 0 : index
    %27 = vector.load %arg4[%c3, %c0_34, %c0_35] : memref<9x4x8xf32, #tpu.memory_space<vmem>>, vector<1x4x8xf32>
    %28 = vector.shape_cast %27 : vector<1x4x8xf32> to vector<4x8xf32>
    %cst_36 = arith.constant dense<0.000000e+00> : vector<1024x8xf32>
    %29 = tpu.matmul %26, %28, %cst_36 {dimension_numbers = #tpu.dot_dimension_numbers<[1], [0], [0], [1], [0, 0, 1, 1], [], []>} : vector<1024x4xf32>, vector<4x8xf32>, vector<1024x8xf32> -> vector<1024x8xf32>
    %30 = arith.addf %24, %29 : vector<1024x8xf32>
    %c1_37 = arith.constant 1 : index
    %c1_38 = arith.constant 1 : index
    %c0_39 = arith.constant 0 : index
    %31 = vector.load %arg9[%c1_37, %c1_38, %c0_39] : memref<34x34x4xf32, #tpu.memory_space<vmem>>, vector<32x32x4xf32>
    %32 = vector.shape_cast %31 : vector<32x32x4xf32> to vector<1024x4xf32>
    %c4 = arith.constant 4 : index
    %c0_40 = arith.constant 0 : index
    %c0_41 = arith.constant 0 : index
    %33 = vector.load %arg4[%c4, %c0_40, %c0_41] : memref<9x4x8xf32, #tpu.memory_space<vmem>>, vector<1x4x8xf32>
    %34 = vector.shape_cast %33 : vector<1x4x8xf32> to vector<4x8xf32>
    %cst_42 = arith.constant dense<0.000000e+00> : vector<1024x8xf32>
    %35 = tpu.matmul %32, %34, %cst_42 {dimension_numbers = #tpu.dot_dimension_numbers<[1], [0], [0], [1], [0, 0, 1, 1], [], []>} : vector<1024x4xf32>, vector<4x8xf32>, vector<1024x8xf32> -> vector<1024x8xf32>
    %36 = arith.addf %30, %35 : vector<1024x8xf32>
    %c1_43 = arith.constant 1 : index
    %c2_44 = arith.constant 2 : index
    %c0_45 = arith.constant 0 : index
    %37 = vector.load %arg9[%c1_43, %c2_44, %c0_45] : memref<34x34x4xf32, #tpu.memory_space<vmem>>, vector<32x32x4xf32>
    %38 = vector.shape_cast %37 : vector<32x32x4xf32> to vector<1024x4xf32>
    %c5 = arith.constant 5 : index
    %c0_46 = arith.constant 0 : index
    %c0_47 = arith.constant 0 : index
    %39 = vector.load %arg4[%c5, %c0_46, %c0_47] : memref<9x4x8xf32, #tpu.memory_space<vmem>>, vector<1x4x8xf32>
    %40 = vector.shape_cast %39 : vector<1x4x8xf32> to vector<4x8xf32>
    %cst_48 = arith.constant dense<0.000000e+00> : vector<1024x8xf32>
    %41 = tpu.matmul %38, %40, %cst_48 {dimension_numbers = #tpu.dot_dimension_numbers<[1], [0], [0], [1], [0, 0, 1, 1], [], []>} : vector<1024x4xf32>, vector<4x8xf32>, vector<1024x8xf32> -> vector<1024x8xf32>
    %42 = arith.addf %36, %41 : vector<1024x8xf32>
    %c2_49 = arith.constant 2 : index
    %c0_50 = arith.constant 0 : index
    %c0_51 = arith.constant 0 : index
    %43 = vector.load %arg9[%c2_49, %c0_50, %c0_51] : memref<34x34x4xf32, #tpu.memory_space<vmem>>, vector<32x32x4xf32>
    %44 = vector.shape_cast %43 : vector<32x32x4xf32> to vector<1024x4xf32>
    %c6 = arith.constant 6 : index
    %c0_52 = arith.constant 0 : index
    %c0_53 = arith.constant 0 : index
    %45 = vector.load %arg4[%c6, %c0_52, %c0_53] : memref<9x4x8xf32, #tpu.memory_space<vmem>>, vector<1x4x8xf32>
    %46 = vector.shape_cast %45 : vector<1x4x8xf32> to vector<4x8xf32>
    %cst_54 = arith.constant dense<0.000000e+00> : vector<1024x8xf32>
    %47 = tpu.matmul %44, %46, %cst_54 {dimension_numbers = #tpu.dot_dimension_numbers<[1], [0], [0], [1], [0, 0, 1, 1], [], []>} : vector<1024x4xf32>, vector<4x8xf32>, vector<1024x8xf32> -> vector<1024x8xf32>
    %48 = arith.addf %42, %47 : vector<1024x8xf32>
    %c2_55 = arith.constant 2 : index
    %c1_56 = arith.constant 1 : index
    %c0_57 = arith.constant 0 : index
    %49 = vector.load %arg9[%c2_55, %c1_56, %c0_57] : memref<34x34x4xf32, #tpu.memory_space<vmem>>, vector<32x32x4xf32>
    %50 = vector.shape_cast %49 : vector<32x32x4xf32> to vector<1024x4xf32>
    %c7 = arith.constant 7 : index
    %c0_58 = arith.constant 0 : index
    %c0_59 = arith.constant 0 : index
    %51 = vector.load %arg4[%c7, %c0_58, %c0_59] : memref<9x4x8xf32, #tpu.memory_space<vmem>>, vector<1x4x8xf32>
    %52 = vector.shape_cast %51 : vector<1x4x8xf32> to vector<4x8xf32>
    %cst_60 = arith.constant dense<0.000000e+00> : vector<1024x8xf32>
    %53 = tpu.matmul %50, %52, %cst_60 {dimension_numbers = #tpu.dot_dimension_numbers<[1], [0], [0], [1], [0, 0, 1, 1], [], []>} : vector<1024x4xf32>, vector<4x8xf32>, vector<1024x8xf32> -> vector<1024x8xf32>
    %54 = arith.addf %48, %53 : vector<1024x8xf32>
    %c2_61 = arith.constant 2 : index
    %c2_62 = arith.constant 2 : index
    %c0_63 = arith.constant 0 : index
    %55 = vector.load %arg9[%c2_61, %c2_62, %c0_63] : memref<34x34x4xf32, #tpu.memory_space<vmem>>, vector<32x32x4xf32>
    %56 = vector.shape_cast %55 : vector<32x32x4xf32> to vector<1024x4xf32>
    %c8 = arith.constant 8 : index
    %c0_64 = arith.constant 0 : index
    %c0_65 = arith.constant 0 : index
    %57 = vector.load %arg4[%c8, %c0_64, %c0_65] : memref<9x4x8xf32, #tpu.memory_space<vmem>>, vector<1x4x8xf32>
    %58 = vector.shape_cast %57 : vector<1x4x8xf32> to vector<4x8xf32>
    %cst_66 = arith.constant dense<0.000000e+00> : vector<1024x8xf32>
    %59 = tpu.matmul %56, %58, %cst_66 {dimension_numbers = #tpu.dot_dimension_numbers<[1], [0], [0], [1], [0, 0, 1, 1], [], []>} : vector<1024x4xf32>, vector<4x8xf32>, vector<1024x8xf32> -> vector<1024x8xf32>
    %60 = arith.addf %54, %59 : vector<1024x8xf32>
    %c0_67 = arith.constant 0 : index
    %c0_68 = arith.constant 0 : index
    %61 = vector.load %arg5[%c0_67, %c0_68] : memref<1x8xf32, #tpu.memory_space<vmem>>, vector<1x8xf32>
    %62 = vector.broadcast %61 : vector<1x8xf32> to vector<1024x8xf32>
    %63 = arith.addf %60, %62 : vector<1024x8xf32>
    %cst_69 = arith.constant 0.000000e+00 : f32
    %64 = vector.broadcast %cst_69 : f32 to vector<1024x8xf32>
    %65 = arith.maximumf %63, %64 : vector<1024x8xf32>
    %c0_70 = arith.constant 0 : index
    %c0_71 = arith.constant 0 : index
    %66 = vector.load %arg6[%c0_70, %c0_71] : memref<8x2xf32, #tpu.memory_space<vmem>>, vector<8x2xf32>
    %cst_72 = arith.constant dense<0.000000e+00> : vector<1024x2xf32>
    %67 = tpu.matmul %65, %66, %cst_72 {dimension_numbers = #tpu.dot_dimension_numbers<[1], [0], [0], [1], [0, 0, 1, 1], [], []>} : vector<1024x8xf32>, vector<8x2xf32>, vector<1024x2xf32> -> vector<1024x2xf32>
    %c0_73 = arith.constant 0 : index
    %c0_74 = arith.constant 0 : index
    %68 = vector.load %arg7[%c0_73, %c0_74] : memref<1x2xf32, #tpu.memory_space<vmem>>, vector<1x2xf32>
    %69 = vector.broadcast %68 : vector<1x2xf32> to vector<1024x2xf32>
    %70 = arith.addf %67, %69 : vector<1024x2xf32>
    %71 = math.tanh %70 : vector<1024x2xf32>
    %cst_75 = arith.constant 2.560000e+02 : f32
    %72 = vector.broadcast %cst_75 : f32 to vector<1024x2xf32>
    %73 = arith.mulf %71, %72 : vector<1024x2xf32>
    %74 = vector.shape_cast %65 : vector<1024x8xf32> to vector<32x32x8xf32>
    %c0_76 = arith.constant 0 : index
    %c0_77 = arith.constant 0 : index
    %c0_78 = arith.constant 0 : index
    %c0_79 = arith.constant 0 : index
    %75 = vector.load %arg8[%c0_76, %c0_77, %c0_78, %c0_79] : memref<1x32x32x10xf32, #tpu.memory_space<vmem>>, vector<1x32x32x8xf32>
    %76 = vector.shape_cast %75 : vector<1x32x32x8xf32> to vector<32x32x8xf32>
    %77 = vector.shape_cast %74 : vector<32x32x8xf32> to vector<1x32x32x8xf32>
    tpu.vector_store %arg8[%c0_76, %c0_77, %c0_78, %c0_79], %77 {strides = array<i32>} : memref<1x32x32x10xf32, #tpu.memory_space<vmem>>, vector<1x32x32x8xf32>,
    %78 = vector.shape_cast %73 : vector<1024x2xf32> to vector<32x32x2xf32>
    %c0_80 = arith.constant 0 : index
    %c0_81 = arith.constant 0 : index
    %c0_82 = arith.constant 0 : index
    %c8_83 = arith.constant 8 : index
    %79 = vector.load %arg8[%c0_80, %c0_81, %c0_82, %c8_83] : memref<1x32x32x10xf32, #tpu.memory_space<vmem>>, vector<1x32x32x2xf32>
    %80 = vector.shape_cast %79 : vector<1x32x32x2xf32> to vector<32x32x2xf32>
    %81 = vector.shape_cast %78 : vector<32x32x2xf32> to vector<1x32x32x2xf32>
    tpu.vector_store %arg8[%c0_80, %c0_81, %c0_82, %c8_83], %81 {strides = array<i32>} : memref<1x32x32x10xf32, #tpu.memory_space<vmem>>, vector<1x32x32x2xf32>,
    return
  }
  func.func @transform_0(%arg0: i32, %arg1: i32) -> (i32, i32, i32, i32) {
    %c0_i32 = arith.constant 0 : i32
    %c0_i32_0 = arith.constant 0 : i32
    %c0_i32_1 = arith.constant 0 : i32
    return %arg0, %arg1, %c0_i32, %c0_i32_0 : i32, i32, i32, i32
  }
  func.func @transform_1(%arg0: i32, %arg1: i32) -> (i32, i32, i32, i32) {
    %c1_i32 = arith.constant 1 : i32
    %0 = arith.addi %arg1, %c1_i32 : i32
    %c16_i32 = arith.constant 16 : i32
    %1 = arith.muli %0, %c16_i32 : i32
    %c0_i32 = arith.constant 0 : i32
    %c0_i32_0 = arith.constant 0 : i32
    %c0_i32_1 = arith.constant 0 : i32
    return %arg0, %1, %c0_i32, %c0_i32_0 : i32, i32, i32, i32
  }
  func.func @transform_2(%arg0: i32, %arg1: i32) -> (i32, i32, i32) {
    %c0_i32 = arith.constant 0 : i32
    %c0_i32_0 = arith.constant 0 : i32
    %c0_i32_1 = arith.constant 0 : i32
    %c0_i32_2 = arith.constant 0 : i32
    return %c0_i32, %c0_i32_0, %c0_i32_1 : i32, i32, i32
  }
  func.func @transform_3(%arg0: i32, %arg1: i32) -> (i32, i32) {
    %c0_i32 = arith.constant 0 : i32
    %c0_i32_0 = arith.constant 0 : i32
    %c0_i32_1 = arith.constant 0 : i32
    return %c0_i32, %c0_i32_0 : i32, i32
  }
  func.func @transform_4(%arg0: i32, %arg1: i32) -> (i32, i32) {
    %c0_i32 = arith.constant 0 : i32
    %c0_i32_0 = arith.constant 0 : i32
    %c0_i32_1 = arith.constant 0 : i32
    return %c0_i32, %c0_i32_0 : i32, i32
  }
  func.func @transform_5(%arg0: i32, %arg1: i32) -> (i32, i32) {
    %c0_i32 = arith.constant 0 : i32
    %c0_i32_0 = arith.constant 0 : i32
    %c0_i32_1 = arith.constant 0 : i32
    return %c0_i32, %c0_i32_0 : i32, i32
  }
  func.func @transform_6(%arg0: i32, %arg1: i32) -> (i32, i32, i32, i32) {
    %c0_i32 = arith.constant 0 : i32
    %c0_i32_0 = arith.constant 0 : i32
    %c0_i32_1 = arith.constant 0 : i32
    return %arg0, %arg1, %c0_i32, %c0_i32_0 : i32, i32, i32, i32
  }
}

</mosaic_0001>

<bundles_post_ra>
// kernel: upsample_conv2d_and_predict_forward.1
= control target key start
LH: loop header
LB: loop body
LE: loop exit
PB: predicated region body
PF: predicated region fallthrough
CT: control target
= control target key end

     0   :  { %s21029_s21 = smov 0   ;;  %s21031_s22 = smov 0   ;;  %s24543_s0 = inlined_call_operand.vmem [shape: f32[2,34,34,4], index: 0, kind: input, shape index: {}, may-alias: {0,1}]   ;;  %s24544_s1 = inlined_call_operand.vmem [shape: f32[2,34,34,4], index: 1, kind: input, shape index: {}, may-alias: {0,1}]   ;;  %s24545_s2 = inlined_call_operand.vmem [shape: f32[9,4,8], index: 2, kind: input, shape index: {}]   ;;  %s24546_s3 = inlined_call_operand.vmem [shape: f32[1,8], index: 3, kind: input, shape index: {}]   ;;  %s24547_s4 = inlined_call_operand.vmem [shape: f32[8,2], index: 4, kind: input, shape index: {}]   ;;  %s24548_s5 = inlined_call_operand.vmem [shape: f32[1,2], index: 5, kind: input, shape index: {}]   ;;  %s24549_s6 = inlined_call_operand.vmem [shape: f32[2,32,32,10], index: 6, kind: output, shape index: {}]  }
   0x1   :  { %s21033_s23 = smov 0  }
   0x2 LB: > { %s28_s24 = sadd.s32 1, %s20987_s22  ;;  %p15120_p0 = scmp.ge.s32.totalorder %s20991_s23, 1  ;;  %s20991_s23 = sphi %s21033_s23, %s16_s23   ;;  %s20987_s22 = sphi %s21031_s22, %s24891_s22   ;;  %s20983_s21 = sphi %s21029_s21, %s24890_s21  }
   0x3   : > { %p30_p1 = scmp.ge.s32.totalorder %s28_s24, 2  ;;  %p270_p2 = scmp.lt.s32.totalorder %s20991_s23, 3 }
   0x5   : > { %s24893_s24 = smov (%p30_p1, %s28_s24), 0  ;;  %p271_p3 = pnand %p15120_p0, %p270_p2 }
   0x7   : > { %274 = sbr.rel (%p271_p3) target bundleno = 1876 (0x754), region = 44 }
   0xe   : > { %vm1360_vm0 = vcmask 1043456   ;;  %v15644_v0 = vld [vmem:[%s24545_s2 + $0x10] sm:$0xf]  ;;  %v15125_v1 = vld [vmem:[%s24545_s2 + $0x4] sm:$0xf]  ;;  %p333_p4 = scmp.lt.s32.totalorder %s20983_s21, 1 }
   0xf   : > { %18495 = vmatprep.subr.msk.mxu0 %vm1360_vm0, %v15644_v0  ;;  %17719 = vmatprep.subr.msk.mxu1 %vm1360_vm0, %v15125_v1  ;;  %v21058_v2 = vld [vmem:[%s24545_s2 + $0x14] sm:$0xf]  ;;  %vm534_vm1 = vcmask 31744   ;;  %vm539_vm2 = vcmask 25600   ;;  %vm12884_vm3 = vcmask 64512   ;;  %s20993_s18 = smov 8  }
  0x10   : > { %18496 = vmatpush3.msk.msra.mxu0 %vm1360_vm0, %v15644_v0  ;;  %17720 = vmatpush3.msk.msra.mxu1 %vm1360_vm0, %v15125_v1  ;;  %s24895_s21 = smov (!%p333_p4, %s20983_s21), 1  ;;  %vm14870_vm4 = vcmask 80960  }
  0x11   : > { %18689 = vmatprep.subr.msk.mxu0 %vm1360_vm0, %v21058_v2  ;;  %s20683_s7 = smul.u32 1360, %s24895_s21  ;;  %s16428_s11 = sshll.u32 %s24895_s21, 10 }
  0x12   : > { %s23349_s14 = scalar_lea.vmem %s24549_s6, %s16428_s11 }
  0x13   : > { %s21072_s10 = scalar_lea.vmem %s24543_s0, %s20683_s7  ;;  %s16427_s13 = sadd.s32 1280, %s20683_s7 }
  0x14   : > { %v374_v3 = vld [vmem:[%s21072_s10] sm:$0xff]  ;;  %v375_v4 = vld [vmem:[%s21072_s10 + $0x8] sm:$0xff]  ;;  %v380_v6 = vld [vmem:[%s21072_s10 + $0x30] sm:$0xff]  ;;  %s21520_s16 = scalar_lea.vmem %s24544_s1, %s16427_s13 }
  0x15   : > { %v379_v5 = vld [vmem:[%s21072_s10 + $0x28] sm:$0xff]  ;;  %535 = vst.msk [vmem:[#allocation2] sm:$0xff] %vm534_vm1, %v374_v3  ;;  %536 = vst.msk [vmem:[#allocation2 + $0x8] sm:$0xff] %vm534_vm1, %v375_v4  ;;  %v376_v7 = vld [vmem:[%s21072_s10 + $0x10] sm:$0xff] }
  0x16   : > { %541 = vst.msk [vmem:[#allocation2 + $0x28] sm:$0xff] %vm534_vm1, %v379_v5  ;;  %v381_v8 = vld [vmem:[%s21072_s10 + $0x38] sm:$0xff]  ;;  %542 = vst.msk [vmem:[#allocation2 + $0x30] sm:$0xff] %vm534_vm1, %v380_v6  ;;  %v382_v10 = vld [vmem:[%s21072_s10 + $0x40] sm:$0xff] }
  0x17   : > { %537 = vst.msk [vmem:[#allocation2 + $0x10] sm:$0xff] %vm534_vm1, %v376_v7  ;;  %543 = vst.msk [vmem:[#allocation2 + $0x38] sm:$0xff] %vm534_vm1, %v381_v8  ;;  %v377_v9 = vld [vmem:[%s21072_s10 + $0x18] sm:$0xff]  ;;  %v378_v11 = vld [vmem:[%s21072_s10 + $0x20] sm:$0x3] }
  0x18   : > { %538 = vst.msk [vmem:[#allocation2 + $0x18] sm:$0xff] %vm534_vm1, %v377_v9  ;;  %544 = vst.msk [vmem:[#allocation2 + $0x40] sm:$0xff] %vm534_vm1, %v382_v10  ;;  %v383_v12 = vld [vmem:[%s21072_s10 + $0x48] sm:$0x3]  ;;  %v384_v13 = vld [vmem:[%s21072_s10 + $0x50] sm:$0xff] }
  0x19   : > { %540 = vst.msk [vmem:[#allocation2 + $0x20] sm:$0x3] %vm539_vm2, %v378_v11  ;;  %v385_v14 = vld [vmem:[%s21072_s10 + $0x58] sm:$0xff]  ;;  %545 = vst.msk [vmem:[#allocation2 + $0x48] sm:$0x3] %vm539_vm2, %v383_v12  ;;  %v386_v15 = vld [vmem:[%s21072_s10 + $0x60] sm:$0xff] }
  0x1a   : > { %546 = vst.msk [vmem:[#allocation2 + $0x50] sm:$0xff] %vm534_vm1, %v384_v13  ;;  %547 = vst.msk [vmem:[#allocation2 + $0x58] sm:$0xff] %vm534_vm1, %v385_v14  ;;  %v387_v16 = vld [vmem:[%s21072_s10 + $0x68] sm:$0xff]  ;;  %v388_v17 = vld [vmem:[%s21072_s10 + $0x70] sm:$0x3] }
  0x1b   : > { %548 = vst.msk [vmem:[#allocation2 + $0x60] sm:$0xff] %vm534_vm1, %v386_v15  ;;  %549 = vst.msk [vmem:[#allocation2 + $0x68] sm:$0xff] %vm534_vm1, %v387_v16  ;;  %v389_v18 = vld [vmem:[%s21072_s10 + $0x78] sm:$0xff]  ;;  %v390_v19 = vld [vmem:[%s21072_s10 + $0x80] sm:$0xff] }
  0x1c   : > { %550 = vst.msk [vmem:[#allocation2 + $0x70] sm:$0x3] %vm539_vm2, %v388_v17  ;;  %v391_v20 = vld [vmem:[%s21072_s10 + $0x88] sm:$0xff]  ;;  %v392_v21 = vld [vmem:[%s21072_s10 + $0x90] sm:$0xff]  ;;  %v393_v22 = vld [vmem:[%s21072_s10 + $0x98] sm:$0x3] }
  0x1d   : > { %551 = vst.msk [vmem:[#allocation2 + $0x78] sm:$0xff] %vm534_vm1, %v389_v18  ;;  %552 = vst.msk [vmem:[#allocation2 + $0x80] sm:$0xff] %vm534_vm1, %v390_v19  ;;  %v394_v23 = vld [vmem:[%s21072_s10 + $0xa0] sm:$0xff]  ;;  %v395_v24 = vld [vmem:[%s21072_s10 + $0xa8] sm:$0xff] }
  0x1e   : > { %553 = vst.msk [vmem:[#allocation2 + $0x88] sm:$0xff] %vm534_vm1, %v391_v20  ;;  %554 = vst.msk [vmem:[#allocation2 + $0x90] sm:$0xff] %vm534_vm1, %v392_v21  ;;  %v396_v25 = vld [vmem:[%s21072_s10 + $0xb0] sm:$0xff]  ;;  %v397_v26 = vld [vmem:[%s21072_s10 + $0xb8] sm:$0xff] }
  0x1f   : > { %555 = vst.msk [vmem:[#allocation2 + $0x98] sm:$0x3] %vm539_vm2, %v393_v22  ;;  %v846_v27 = vld [vmem:[#allocation2 + $0x1] sm:$0xff]  ;;  %v5862_v30 = vld [vmem:[#allocation2 + $0x29] sm:$0xff]  ;;  %v5863_v32 = vld [vmem:[#allocation2 + $0x31] sm:$0xff] }
  0x20   : > { %556 = vst.msk [vmem:[#allocation2 + $0xa0] sm:$0xff] %vm534_vm1, %v394_v23  ;;  %557 = vst.msk [vmem:[#allocation2 + $0xa8] sm:$0xff] %vm534_vm1, %v395_v24  ;;  %v398_v28 = vld [vmem:[%s21072_s10 + $0xc0] sm:$0x3]  ;;  %v399_v29 = vld [vmem:[%s21072_s10 + $0xc8] sm:$0xff]  ;;  %17721 = vmatprep.mubr.msk.f32.mxu1 %vm534_vm1, %v846_v27  ;;  %18497 = vmatprep.mubr.msk.f32.mxu0 %vm534_vm1, %v5862_v30 }
  0x21   : > { %558 = vst.msk [vmem:[#allocation2 + $0xb0] sm:$0xff] %vm534_vm1, %v396_v25  ;;  %559 = vst.msk [vmem:[#allocation2 + $0xb8] sm:$0xff] %vm534_vm1, %v397_v26  ;;  %v847_v31 = vld [vmem:[#allocation2 + $0x9] sm:$0xff]  ;;  %v848_v33 = vld [vmem:[#allocation2 + $0x11] sm:$0xff]  ;;  %18498 = vmatmul.mubr.msk.f32.vlgmr.msra.gmra.mrb[0].mxu0 %vm534_vm1, %v5863_v32 }
  0x22   : > { %560 = vst.msk [vmem:[#allocation2 + $0xc0] sm:$0x3] %vm539_vm2, %v398_v28  ;;  %17722 = vmatmul.mubr.msk.f32.vlgmr.msra.gmra.mrb[0].mxu1 %vm534_vm1, %v847_v31  ;;  %v5864_v34 = vld [vmem:[#allocation2 + $0x39] sm:$0xff]  ;;  %v400_v36 = vld [vmem:[%s21072_s10 + $0xd0] sm:$0xff]  ;;  %18690 = vmatpush3.msk.msra.mxu0 %vm1360_vm0, %v21058_v2  ;;  %v5865_v37 = vld [vmem:[#allocation2 + $0x41] sm:$0xff] }
  0x23   : > { %561 = vst.msk [vmem:[#allocation2 + $0xc8] sm:$0xff] %vm534_vm1, %v399_v29  ;;  %17724 = vmatprep.mubr.msk.f32.mxu1 %vm534_vm1, %v848_v33  ;;  %v849_v35 = vld [vmem:[#allocation2 + $0x19] sm:$0xff]  ;;  %18500 = vmatprep.mubr.msk.f32.mxu0 %vm534_vm1, %v5864_v34  ;;  %562 = vst.msk [vmem:[#allocation2 + $0xd0] sm:$0xff] %vm534_vm1, %v400_v36  ;;  %v5866_v38 = vld [vmem:[#allocation2 + $0x51] sm:$0xff] }
  0x24   : > { %v401_v39 = vld [vmem:[%s21072_s10 + $0xd8] sm:$0xff]  ;;  %v402_v40 = vld [vmem:[%s21072_s10 + $0xe0] sm:$0xff]  ;;  %v403_v43 = vld [vmem:[%s21072_s10 + $0xe8] sm:$0x3] }
  0x25   : > { %563 = vst.msk [vmem:[#allocation2 + $0xd8] sm:$0xff] %vm534_vm1, %v401_v39  ;;  %18501 = vmatmul.mubr.msk.f32.gmra.mrb[2].mxu0 %vm534_vm1, %v5865_v37  ;;  %v5867_v41 = vld [vmem:[#allocation2 + $0x59] sm:$0xff]  ;;  %564 = vst.msk [vmem:[#allocation2 + $0xe0] sm:$0xff] %vm534_vm1, %v402_v40  ;;  %v5868_v42 = vld [vmem:[#allocation2 + $0x61] sm:$0xff] }
  0x26   : > { %17725 = vmatmul.mubr.msk.f32.gmra.mrb[2].mxu1 %vm534_vm1, %v849_v35  ;;  %18503 = vmatprep.mubr.msk.f32.mxu0 %vm534_vm1, %v5866_v38  ;;  %v404_v44 = vld [vmem:[%s21072_s10 + $0xf0] sm:$0xff]  ;;  %565 = vst.msk [vmem:[#allocation2 + $0xe8] sm:$0x3] %vm539_vm2, %v403_v43  ;;  %v405_v45 = vld [vmem:[%s21072_s10 + $0xf8] sm:$0xff]  ;;  %v406_v46 = vld [vmem:[%s21072_s10 + $0x100] sm:$0xff] }
  0x27   : > { %17727 = vmatprep.mubr.msk.f32.mxu1 %vm534_vm1, %v5862_v30  ;;  %566 = vst.msk [vmem:[#allocation2 + $0xf0] sm:$0xff] %vm534_vm1, %v404_v44  ;;  %v407_v47 = vld [vmem:[%s21072_s10 + $0x108] sm:$0xff]  ;;  %567 = vst.msk [vmem:[#allocation2 + $0xf8] sm:$0xff] %vm534_vm1, %v405_v45  ;;  %v408_v48 = vld [vmem:[%s21072_s10 + $0x110] sm:$0x3] }
  0x28   : > { %568 = vst.msk [vmem:[#allocation2 + $0x100] sm:$0xff] %vm534_vm1, %v406_v46  ;;  %569 = vst.msk [vmem:[#allocation2 + $0x108] sm:$0xff] %vm534_vm1, %v407_v47  ;;  %v409_v49 = vld [vmem:[%s21072_s10 + $0x118] sm:$0xff]  ;;  %v410_v50 = vld [vmem:[%s21072_s10 + $0x120] sm:$0xff] }
  0x29   : > { %18504 = vmatmul.mubr.msk.f32.gmra.mrb[4].mxu0 %vm534_vm1, %v5867_v41  ;;  %v5869_v51 = vld [vmem:[#allocation2 + $0x69] sm:$0xff]  ;;  %570 = vst.msk [vmem:[#allocation2 + $0x110] sm:$0x3] %vm539_vm2, %v408_v48  ;;  %v413_v54 = vld [vmem:[%s21072_s10 + $0x138] sm:$0x3]  ;;  %v414_v55 = vld [vmem:[%s21072_s10 + $0x140] sm:$0xff] }
  0x2a   : > { %17728 = vmatmul.mubr.msk.f32.gmra.mrb[4].mxu1 %vm534_vm1, %v5863_v32  ;;  %571 = vst.msk [vmem:[#allocation2 + $0x118] sm:$0xff] %vm534_vm1, %v409_v49  ;;  %572 = vst.msk [vmem:[#allocation2 + $0x120] sm:$0xff] %vm534_vm1, %v410_v50  ;;  %v411_v52 = vld [vmem:[%s21072_s10 + $0x128] sm:$0xff]  ;;  %v412_v53 = vld [vmem:[%s21072_s10 + $0x130] sm:$0xff]  ;;  %18506 = vmatprep.mubr.msk.f32.mxu0 %vm534_vm1, %v5868_v42 }
  0x2b   : > { %17730 = vmatprep.mubr.msk.f32.mxu1 %vm534_vm1, %v5864_v34  ;;  %573 = vst.msk [vmem:[#allocation2 + $0x128] sm:$0xff] %vm534_vm1, %v411_v52  ;;  %574 = vst.msk [vmem:[#allocation2 + $0x130] sm:$0xff] %vm534_vm1, %v412_v53  ;;  %v415_v56 = vld [vmem:[%s21072_s10 + $0x148] sm:$0xff]  ;;  %v5870_v57 = vld [vmem:[#allocation2 + $0x79] sm:$0xff] }
  0x2c   : > { %575 = vst.msk [vmem:[#allocation2 + $0x138] sm:$0x3] %vm539_vm2, %v413_v54  ;;  %v416_v58 = vld [vmem:[%s21072_s10 + $0x150] sm:$0xff]  ;;  %v417_v59 = vld [vmem:[%s21072_s10 + $0x158] sm:$0xff]  ;;  %v418_v60 = vld [vmem:[%s21072_s10 + $0x160] sm:$0x3] }
  0x2d   : > { %576 = vst.msk [vmem:[#allocation2 + $0x140] sm:$0xff] %vm534_vm1, %v414_v55  ;;  %577 = vst.msk [vmem:[#allocation2 + $0x148] sm:$0xff] %vm534_vm1, %v415_v56  ;;  %v419_v61 = vld [vmem:[%s21072_s10 + $0x168] sm:$0xff]  ;;  %18507 = vmatmul.mubr.msk.f32.gmra.mrb[6].mxu0 %vm534_vm1, %v5869_v51  ;;  %v420_v62 = vld [vmem:[%s21072_s10 + $0x170] sm:$0xff] }
  0x2e   : > { %17731 = vmatmul.mubr.msk.f32.gmra.mrb[6].mxu1 %vm534_vm1, %v5865_v37  ;;  %578 = vst.msk [vmem:[#allocation2 + $0x150] sm:$0xff] %vm534_vm1, %v416_v58  ;;  %579 = vst.msk [vmem:[#allocation2 + $0x158] sm:$0xff] %vm534_vm1, %v417_v59  ;;  %v421_v63 = vld [vmem:[%s21072_s10 + $0x178] sm:$0xff]  ;;  %v422_v0 = vld [vmem:[%s21072_s10 + $0x180] sm:$0xff]  ;;  %18509 = vmatprep.mubr.msk.f32.mxu0 %vm534_vm1, %v5870_v57 }
  0x2f   : > { %17733 = vmatprep.mubr.msk.f32.mxu1 %vm534_vm1, %v5866_v38  ;;  %580 = vst.msk [vmem:[#allocation2 + $0x160] sm:$0x3] %vm539_vm2, %v418_v60  ;;  %v5871_v1 = vld [vmem:[#allocation2 + $0x81] sm:$0xff]  ;;  %v424_v3 = vld [vmem:[%s21072_s10 + $0x190] sm:$0xff]  ;;  %v425_v5 = vld [vmem:[%s21072_s10 + $0x198] sm:$0xff] }
  0x30   : > { %581 = vst.msk [vmem:[#allocation2 + $0x168] sm:$0xff] %vm534_vm1, %v419_v61  ;;  %582 = vst.msk [vmem:[#allocation2 + $0x170] sm:$0xff] %vm534_vm1, %v420_v62  ;;  %v423_v2 = vld [vmem:[%s21072_s10 + $0x188] sm:$0x3]  ;;  %v426_v6 = vld [vmem:[%s21072_s10 + $0x1a0] sm:$0xff] }
  0x31   : > { %583 = vst.msk [vmem:[#allocation2 + $0x178] sm:$0xff] %vm534_vm1, %v421_v63  ;;  %584 = vst.msk [vmem:[#allocation2 + $0x180] sm:$0xff] %vm534_vm1, %v422_v0  ;;  %v5872_v4 = vld [vmem:[#allocation2 + $0x89] sm:$0xff]  ;;  %18510 = vmatmul.mubr.msk.f32.gmra.mrb[8].mxu0 %vm534_vm1, %v5871_v1  ;;  %v5873_v7 = vld [vmem:[#allocation2 + $0x91] sm:$0xff] }
  0x32   : > { %585 = vst.msk [vmem:[#allocation2 + $0x188] sm:$0x3] %vm539_vm2, %v423_v2  ;;  %17734 = vmatmul.mubr.msk.f32.gmra.mrb[8].mxu1 %vm534_vm1, %v5867_v41  ;;  %18512 = vmatprep.mubr.msk.f32.mxu0 %vm534_vm1, %v5872_v4  ;;  %v427_v8 = vld [vmem:[%s21072_s10 + $0x1a8] sm:$0xff]  ;;  %v428_v10 = vld [vmem:[%s21072_s10 + $0x1b0] sm:$0x3]  ;;  %v429_v11 = vld [vmem:[%s21072_s10 + $0x1b8] sm:$0xff] }
  0x33   : > { %586 = vst.msk [vmem:[#allocation2 + $0x190] sm:$0xff] %vm534_vm1, %v424_v3  ;;  %17736 = vmatprep.mubr.msk.f32.mxu1 %vm534_vm1, %v5868_v42  ;;  %587 = vst.msk [vmem:[#allocation2 + $0x198] sm:$0xff] %vm534_vm1, %v425_v5  ;;  %v5874_v9 = vld [vmem:[#allocation2 + $0xa1] sm:$0xff]  ;;  %v5875_v13 = vld [vmem:[#allocation2 + $0xa9] sm:$0xff] }
  0x34   : > { %588 = vst.msk [vmem:[#allocation2 + $0x1a0] sm:$0xff] %vm534_vm1, %v426_v6  ;;  %589 = vst.msk [vmem:[#allocation2 + $0x1a8] sm:$0xff] %vm534_vm1, %v427_v8  ;;  %v430_v12 = vld [vmem:[%s21072_s10 + $0x1c0] sm:$0xff]  ;;  %v5876_v14 = vld [vmem:[#allocation2 + $0xb1] sm:$0xff] }
  0x35   : > { %590 = vst.msk [vmem:[#allocation2 + $0x1b0] sm:$0x3] %vm539_vm2, %v428_v10  ;;  %18513 = vmatmul.mubr.msk.f32.gmra.mrb[10].mxu0 %vm534_vm1, %v5873_v7  ;;  %v431_v15 = vld [vmem:[%s21072_s10 + $0x1c8] sm:$0xff]  ;;  %v432_v16 = vld [vmem:[%s21072_s10 + $0x1d0] sm:$0xff]  ;;  %v433_v17 = vld [vmem:[%s21072_s10 + $0x1d8] sm:$0x3] }
  0x36   : > { %17737 = vmatmul.mubr.msk.f32.gmra.mrb[10].mxu1 %vm534_vm1, %v5869_v51  ;;  %591 = vst.msk [vmem:[#allocation2 + $0x1b8] sm:$0xff] %vm534_vm1, %v429_v11  ;;  %592 = vst.msk [vmem:[#allocation2 + $0x1c0] sm:$0xff] %vm534_vm1, %v430_v12  ;;  %18515 = vmatprep.mubr.msk.f32.mxu0 %vm534_vm1, %v5874_v9  ;;  %v434_v18 = vld [vmem:[%s21072_s10 + $0x1e0] sm:$0xff]  ;;  %v435_v19 = vld [vmem:[%s21072_s10 + $0x1e8] sm:$0xff] }
  0x37   : > { %17739 = vmatprep.mubr.msk.f32.mxu1 %vm534_vm1, %v5870_v57  ;;  %593 = vst.msk [vmem:[#allocation2 + $0x1c8] sm:$0xff] %vm534_vm1, %v431_v15  ;;  %594 = vst.msk [vmem:[#allocation2 + $0x1d0] sm:$0xff] %vm534_vm1, %v432_v16  ;;  %v436_v20 = vld [vmem:[%s21072_s10 + $0x1f0] sm:$0xff]  ;;  %v437_v21 = vld [vmem:[%s21072_s10 + $0x1f8] sm:$0xff] }
  0x38   : > { %595 = vst.msk [vmem:[#allocation2 + $0x1d8] sm:$0x3] %vm539_vm2, %v433_v17  ;;  %v438_v22 = vld [vmem:[%s21072_s10 + $0x200] sm:$0x3]  ;;  %v439_v23 = vld [vmem:[%s21072_s10 + $0x208] sm:$0xff]  ;;  %v440_v25 = vld [vmem:[%s21072_s10 + $0x210] sm:$0xff] }
  0x39   : > { %596 = vst.msk [vmem:[#allocation2 + $0x1e0] sm:$0xff] %vm534_vm1, %v434_v18  ;;  %597 = vst.msk [vmem:[#allocation2 + $0x1e8] sm:$0xff] %vm534_vm1, %v435_v19  ;;  %18516 = vmatmul.mubr.msk.f32.gmra.mrb[12].mxu0 %vm534_vm1, %v5875_v13  ;;  %v5877_v24 = vld [vmem:[#allocation2 + $0xb9] sm:$0xff]  ;;  %v5878_v27 = vld [vmem:[#allocation2 + $0xc9] sm:$0xff] }
  0x3a   : > { %17740 = vmatmul.mubr.msk.f32.gmra.mrb[12].mxu1 %vm534_vm1, %v5871_v1  ;;  %598 = vst.msk [vmem:[#allocation2 + $0x1f0] sm:$0xff] %vm534_vm1, %v436_v20  ;;  %599 = vst.msk [vmem:[#allocation2 + $0x1f8] sm:$0xff] %vm534_vm1, %v437_v21  ;;  %18518 = vmatprep.mubr.msk.f32.mxu0 %vm534_vm1, %v5876_v14  ;;  %v441_v26 = vld [vmem:[%s21072_s10 + $0x218] sm:$0xff]  ;;  %v442_v28 = vld [vmem:[%s21072_s10 + $0x220] sm:$0xff] }
  0x3b   : > { %17742 = vmatprep.mubr.msk.f32.mxu1 %vm534_vm1, %v5872_v4  ;;  %600 = vst.msk [vmem:[#allocation2 + $0x200] sm:$0x3] %vm539_vm2, %v438_v22  ;;  %v443_v29 = vld [vmem:[%s21072_s10 + $0x228] sm:$0x3]  ;;  %v444_v30 = vld [vmem:[%s21072_s10 + $0x230] sm:$0xff]  ;;  %v445_v31 = vld [vmem:[%s21072_s10 + $0x238] sm:$0xff] }
  0x3c   : > { %601 = vst.msk [vmem:[#allocation2 + $0x208] sm:$0xff] %vm534_vm1, %v439_v23  ;;  %602 = vst.msk [vmem:[#allocation2 + $0x210] sm:$0xff] %vm534_vm1, %v440_v25  ;;  %v446_v32 = vld [vmem:[%s21072_s10 + $0x240] sm:$0xff]  ;;  %v447_v33 = vld [vmem:[%s21072_s10 + $0x248] sm:$0xff] }
  0x3d   : > { %603 = vst.msk [vmem:[#allocation2 + $0x218] sm:$0xff] %vm534_vm1, %v441_v26  ;;  %604 = vst.msk [vmem:[#allocation2 + $0x220] sm:$0xff] %vm534_vm1, %v442_v28  ;;  %18519 = vmatmul.mubr.msk.f32.gmra.mrb[14].mxu0 %vm534_vm1, %v5877_v24  ;;  %v448_v34 = vld [vmem:[%s21072_s10 + $0x250] sm:$0x3]  ;;  %v449_v36 = vld [vmem:[%s21072_s10 + $0x258] sm:$0xff] }
  0x3e   : > { %17743 = vmatmul.mubr.msk.f32.gmra.mrb[14].mxu1 %vm534_vm1, %v5873_v7  ;;  %605 = vst.msk [vmem:[#allocation2 + $0x228] sm:$0x3] %vm539_vm2, %v443_v29  ;;  %18521 = vmatprep.mubr.msk.f32.mxu0 %vm534_vm1, %v5878_v27  ;;  %v5879_v35 = vld [vmem:[#allocation2 + $0xd1] sm:$0xff]  ;;  %610 = vst.msk [vmem:[#allocation2 + $0x250] sm:$0x3] %vm539_vm2, %v448_v34  ;;  %v5880_v37 = vld [vmem:[#allocation2 + $0xd9] sm:$0xff] }
  0x3f   : > { %17745 = vmatprep.mubr.msk.f32.mxu1 %vm534_vm1, %v5874_v9  ;;  %606 = vst.msk [vmem:[#allocation2 + $0x230] sm:$0xff] %vm534_vm1, %v444_v30  ;;  %607 = vst.msk [vmem:[#allocation2 + $0x238] sm:$0xff] %vm534_vm1, %v445_v31  ;;  %v450_v38 = vld [vmem:[%s21072_s10 + $0x260] sm:$0xff]  ;;  %v451_v39 = vld [vmem:[%s21072_s10 + $0x268] sm:$0xff] }
  0x40   : > { %608 = vst.msk [vmem:[#allocation2 + $0x240] sm:$0xff] %vm534_vm1, %v446_v32  ;;  %609 = vst.msk [vmem:[#allocation2 + $0x248] sm:$0xff] %vm534_vm1, %v447_v33  ;;  %v452_v40 = vld [vmem:[%s21072_s10 + $0x270] sm:$0xff]  ;;  %v453_v41 = vld [vmem:[%s21072_s10 + $0x278] sm:$0x3] }
  0x41   : > { %611 = vst.msk [vmem:[#allocation2 + $0x258] sm:$0xff] %vm534_vm1, %v449_v36  ;;  %612 = vst.msk [vmem:[#allocation2 + $0x260] sm:$0xff] %vm534_vm1, %v450_v38  ;;  %18522 = vmatmul.mubr.msk.f32.gmra.mrb[16].mxu0 %vm534_vm1, %v5879_v35  ;;  %v5881_v42 = vld [vmem:[#allocation2 + $0xe1] sm:$0xff]  ;;  %v5882_v44 = vld [vmem:[#allocation2 + $0xf1] sm:$0xff] }
  0x42   : > { %17746 = vmatmul.mubr.msk.f32.gmra.mrb[16].mxu1 %vm534_vm1, %v5875_v13  ;;  %613 = vst.msk [vmem:[#allocation2 + $0x268] sm:$0xff] %vm534_vm1, %v451_v39  ;;  %18524 = vmatprep.mubr.msk.f32.mxu0 %vm534_vm1, %v5880_v37  ;;  %614 = vst.msk [vmem:[#allocation2 + $0x270] sm:$0xff] %vm534_vm1, %v452_v40  ;;  %v454_v43 = vld [vmem:[%s21072_s10 + $0x280] sm:$0xff]  ;;  %v455_v45 = vld [vmem:[%s21072_s10 + $0x288] sm:$0xff] }
  0x43   : > { %17748 = vmatprep.mubr.msk.f32.mxu1 %vm534_vm1, %v5876_v14  ;;  %615 = vst.msk [vmem:[#allocation2 + $0x278] sm:$0x3] %vm539_vm2, %v453_v41  ;;  %v456_v46 = vld [vmem:[%s21072_s10 + $0x290] sm:$0xff]  ;;  %v457_v47 = vld [vmem:[%s21072_s10 + $0x298] sm:$0xff]  ;;  %v458_v49 = vld [vmem:[%s21072_s10 + $0x2a0] sm:$0x3] }
  0x44   : > { %616 = vst.msk [vmem:[#allocation2 + $0x280] sm:$0xff] %vm534_vm1, %v454_v43  ;;  %617 = vst.msk [vmem:[#allocation2 + $0x288] sm:$0xff] %vm534_vm1, %v455_v45  ;;  %v5883_v48 = vld [vmem:[#allocation2 + $0xf9] sm:$0xff]  ;;  %v459_v50 = vld [vmem:[%s21072_s10 + $0x2a8] sm:$0xff] }
  0x45   : > { %18525 = vmatmul.mubr.msk.f32.gmra.mrb[18].mxu0 %vm534_vm1, %v5881_v42  ;;  %618 = vst.msk [vmem:[#allocation2 + $0x290] sm:$0xff] %vm534_vm1, %v456_v46  ;;  %619 = vst.msk [vmem:[#allocation2 + $0x298] sm:$0xff] %vm534_vm1, %v457_v47  ;;  %v460_v51 = vld [vmem:[%s21072_s10 + $0x2b0] sm:$0xff]  ;;  %v5884_v52 = vld [vmem:[#allocation2 + $0x101] sm:$0xff] }
  0x46   : > { %17749 = vmatmul.mubr.msk.f32.gmra.mrb[18].mxu1 %vm534_vm1, %v5877_v24  ;;  %18527 = vmatprep.mubr.msk.f32.mxu0 %vm534_vm1, %v5882_v44  ;;  %620 = vst.msk [vmem:[#allocation2 + $0x2a0] sm:$0x3] %vm539_vm2, %v458_v49  ;;  %v461_v53 = vld [vmem:[%s21072_s10 + $0x2b8] sm:$0xff]  ;;  %v462_v54 = vld [vmem:[%s21072_s10 + $0x2c0] sm:$0xff]  ;;  %v463_v55 = vld [vmem:[%s21072_s10 + $0x2c8] sm:$0x3] }
  0x47   : > { %17751 = vmatprep.mubr.msk.f32.mxu1 %vm534_vm1, %v5878_v27  ;;  %621 = vst.msk [vmem:[#allocation2 + $0x2a8] sm:$0xff] %vm534_vm1, %v459_v50  ;;  %622 = vst.msk [vmem:[#allocation2 + $0x2b0] sm:$0xff] %vm534_vm1, %v460_v51  ;;  %v464_v56 = vld [vmem:[%s21072_s10 + $0x2d0] sm:$0xff]  ;;  %v465_v58 = vld [vmem:[%s21072_s10 + $0x2d8] sm:$0xff] }
  0x48   : > { %623 = vst.msk [vmem:[#allocation2 + $0x2b8] sm:$0xff] %vm534_vm1, %v461_v53  ;;  %624 = vst.msk [vmem:[#allocation2 + $0x2c0] sm:$0xff] %vm534_vm1, %v462_v54  ;;  %v5885_v57 = vld [vmem:[#allocation2 + $0x109] sm:$0xff]  ;;  %v466_v59 = vld [vmem:[%s21072_s10 + $0x2e0] sm:$0xff] }
  0x49   : > { %18528 = vmatmul.mubr.msk.f32.gmra.mrb[20].mxu0 %vm534_vm1, %v5883_v48  ;;  %625 = vst.msk [vmem:[#allocation2 + $0x2c8] sm:$0x3] %vm539_vm2, %v463_v55  ;;  %v467_v60 = vld [vmem:[%s21072_s10 + $0x2e8] sm:$0xff]  ;;  %v468_v61 = vld [vmem:[%s21072_s10 + $0x2f0] sm:$0x3]  ;;  %v5886_v62 = vld [vmem:[#allocation2 + $0x119] sm:$0xff] }
  0x4a   : > { %17752 = vmatmul.mubr.msk.f32.gmra.mrb[20].mxu1 %vm534_vm1, %v5879_v35  ;;  %626 = vst.msk [vmem:[#allocation2 + $0x2d0] sm:$0xff] %vm534_vm1, %v464_v56  ;;  %18530 = vmatprep.mubr.msk.f32.mxu0 %vm534_vm1, %v5884_v52  ;;  %627 = vst.msk [vmem:[#allocation2 + $0x2d8] sm:$0xff] %vm534_vm1, %v465_v58  ;;  %v469_v63 = vld [vmem:[%s21072_s10 + $0x2f8] sm:$0xff]  ;;  %v470_v0 = vld [vmem:[%s21072_s10 + $0x300] sm:$0xff] }
  0x4b   : > { %17754 = vmatprep.mubr.msk.f32.mxu1 %vm534_vm1, %v5880_v37  ;;  %628 = vst.msk [vmem:[#allocation2 + $0x2e0] sm:$0xff] %vm534_vm1, %v466_v59  ;;  %629 = vst.msk [vmem:[#allocation2 + $0x2e8] sm:$0xff] %vm534_vm1, %v467_v60  ;;  %v471_v1 = vld [vmem:[%s21072_s10 + $0x308] sm:$0xff]  ;;  %v472_v2 = vld [vmem:[%s21072_s10 + $0x310] sm:$0xff] }
  0x4c   : > { %630 = vst.msk [vmem:[#allocation2 + $0x2f0] sm:$0x3] %vm539_vm2, %v468_v61  ;;  %v473_v3 = vld [vmem:[%s21072_s10 + $0x318] sm:$0x3]  ;;  %v474_v4 = vld [vmem:[%s21072_s10 + $0x320] sm:$0xff]  ;;  %v475_v6 = vld [vmem:[%s21072_s10 + $0x328] sm:$0xff] }
  0x4d   : > { %631 = vst.msk [vmem:[#allocation2 + $0x2f8] sm:$0xff] %vm534_vm1, %v469_v63  ;;  %632 = vst.msk [vmem:[#allocation2 + $0x300] sm:$0xff] %vm534_vm1, %v470_v0  ;;  %18531 = vmatmul.mubr.msk.f32.gmra.mrb[22].mxu0 %vm534_vm1, %v5885_v57  ;;  %v5887_v5 = vld [vmem:[#allocation2 + $0x121] sm:$0xff]  ;;  %v5888_v7 = vld [vmem:[#allocation2 + $0x129] sm:$0xff] }
  0x4e   : > { %17755 = vmatmul.mubr.msk.f32.gmra.mrb[22].mxu1 %vm534_vm1, %v5881_v42  ;;  %633 = vst.msk [vmem:[#allocation2 + $0x308] sm:$0xff] %vm534_vm1, %v471_v1  ;;  %18533 = vmatprep.mubr.msk.f32.mxu0 %vm534_vm1, %v5886_v62  ;;  %634 = vst.msk [vmem:[#allocation2 + $0x310] sm:$0xff] %vm534_vm1, %v472_v2  ;;  %v476_v8 = vld [vmem:[%s21072_s10 + $0x330] sm:$0xff]  ;;  %v477_v9 = vld [vmem:[%s21072_s10 + $0x338] sm:$0xff] }
  0x4f   : > { %17757 = vmatprep.mubr.msk.f32.mxu1 %vm534_vm1, %v5882_v44  ;;  %635 = vst.msk [vmem:[#allocation2 + $0x318] sm:$0x3] %vm539_vm2, %v473_v3  ;;  %v478_v10 = vld [vmem:[%s21072_s10 + $0x340] sm:$0x3]  ;;  %v479_v11 = vld [vmem:[%s21072_s10 + $0x348] sm:$0xff]  ;;  %v480_v12 = vld [vmem:[%s21072_s10 + $0x350] sm:$0xff] }
  0x50   : > { %636 = vst.msk [vmem:[#allocation2 + $0x320] sm:$0xff] %vm534_vm1, %v474_v4  ;;  %637 = vst.msk [vmem:[#allocation2 + $0x328] sm:$0xff] %vm534_vm1, %v475_v6  ;;  %v5889_v13 = vld [vmem:[#allocation2 + $0x131] sm:$0xff]  ;;  %v5890_v14 = vld [vmem:[#allocation2 + $0x141] sm:$0xff] }
  0x51   : > { %638 = vst.msk [vmem:[#allocation2 + $0x330] sm:$0xff] %vm534_vm1, %v476_v8  ;;  %18534 = vmatmul.mubr.msk.f32.gmra.mrb[24].mxu0 %vm534_vm1, %v5887_v5  ;;  %639 = vst.msk [vmem:[#allocation2 + $0x338] sm:$0xff] %vm534_vm1, %v477_v9  ;;  %v481_v15 = vld [vmem:[%s21072_s10 + $0x358] sm:$0xff]  ;;  %v482_v16 = vld [vmem:[%s21072_s10 + $0x360] sm:$0xff] }
  0x52   : > { %17758 = vmatmul.mubr.msk.f32.gmra.mrb[24].mxu1 %vm534_vm1, %v5883_v48  ;;  %640 = vst.msk [vmem:[#allocation2 + $0x340] sm:$0x3] %vm539_vm2, %v478_v10  ;;  %18536 = vmatprep.mubr.msk.f32.mxu0 %vm534_vm1, %v5888_v7  ;;  %v483_v17 = vld [vmem:[%s21072_s10 + $0x368] sm:$0x3]  ;;  %v484_v18 = vld [vmem:[%s21072_s10 + $0x370] sm:$0xff]  ;;  %v485_v19 = vld [vmem:[%s21072_s10 + $0x378] sm:$0xff] }
  0x53   : > { %17760 = vmatprep.mubr.msk.f32.mxu1 %vm534_vm1, %v5884_v52  ;;  %641 = vst.msk [vmem:[#allocation2 + $0x348] sm:$0xff] %vm534_vm1, %v479_v11  ;;  %642 = vst.msk [vmem:[#allocation2 + $0x350] sm:$0xff] %vm534_vm1, %v480_v12  ;;  %v5891_v20 = vld [vmem:[#allocation2 + $0x149] sm:$0xff]  ;;  %v486_v21 = vld [vmem:[%s21072_s10 + $0x380] sm:$0xff] }
  0x54   : > { %643 = vst.msk [vmem:[#allocation2 + $0x358] sm:$0xff] %vm534_vm1, %v481_v15  ;;  %644 = vst.msk [vmem:[#allocation2 + $0x360] sm:$0xff] %vm534_vm1, %v482_v16  ;;  %v487_v22 = vld [vmem:[%s21072_s10 + $0x388] sm:$0xff]  ;;  %v5892_v23 = vld [vmem:[#allocation2 + $0x151] sm:$0xff] }
  0x55   : > { %18537 = vmatmul.mubr.msk.f32.gmra.mrb[26].mxu0 %vm534_vm1, %v5889_v13  ;;  %645 = vst.msk [vmem:[#allocation2 + $0x368] sm:$0x3] %vm539_vm2, %v483_v17  ;;  %v488_v24 = vld [vmem:[%s21072_s10 + $0x390] sm:$0x3]  ;;  %v489_v25 = vld [vmem:[%s21072_s10 + $0x398] sm:$0xff]  ;;  %v490_v26 = vld [vmem:[%s21072_s10 + $0x3a0] sm:$0xff] }
  0x56   : > { %17761 = vmatmul.mubr.msk.f32.gmra.mrb[26].mxu1 %vm534_vm1, %v5885_v57  ;;  %646 = vst.msk [vmem:[#allocation2 + $0x370] sm:$0xff] %vm534_vm1, %v484_v18  ;;  %18539 = vmatprep.mubr.msk.f32.mxu0 %vm534_vm1, %v5890_v14  ;;  %647 = vst.msk [vmem:[#allocation2 + $0x378] sm:$0xff] %vm534_vm1, %v485_v19  ;;  %v5893_v27 = vld [vmem:[#allocation2 + $0x159] sm:$0xff]  ;;  %v491_v28 = vld [vmem:[%s21072_s10 + $0x3a8] sm:$0xff] }
  0x57   : > { %17763 = vmatprep.mubr.msk.f32.mxu1 %vm534_vm1, %v5886_v62  ;;  %648 = vst.msk [vmem:[#allocation2 + $0x380] sm:$0xff] %vm534_vm1, %v486_v21  ;;  %649 = vst.msk [vmem:[#allocation2 + $0x388] sm:$0xff] %vm534_vm1, %v487_v22  ;;  %v492_v29 = vld [vmem:[%s21072_s10 + $0x3b0] sm:$0xff]  ;;  %v493_v30 = vld [vmem:[%s21072_s10 + $0x3b8] sm:$0x3] }
  0x58   : > { %650 = vst.msk [vmem:[#allocation2 + $0x390] sm:$0x3] %vm539_vm2, %v488_v24  ;;  %v494_v31 = vld [vmem:[%s21072_s10 + $0x3c0] sm:$0xff]  ;;  %v495_v32 = vld [vmem:[%s21072_s10 + $0x3c8] sm:$0xff]  ;;  %655 = vst.msk [vmem:[#allocation2 + $0x3b8] sm:$0x3] %vm539_vm2, %v493_v30 }
  0x59   : > { %651 = vst.msk [vmem:[#allocation2 + $0x398] sm:$0xff] %vm534_vm1, %v489_v25  ;;  %18540 = vmatmul.mubr.msk.f32.gmra.mrb[28].mxu0 %vm534_vm1, %v5891_v20  ;;  %652 = vst.msk [vmem:[#allocation2 + $0x3a0] sm:$0xff] %vm534_vm1, %v490_v26  ;;  %v5894_v33 = vld [vmem:[#allocation2 + $0x169] sm:$0xff]  ;;  %v497_v35 = vld [vmem:[%s21072_s10 + $0x3d8] sm:$0xff] }
  0x5a   : > { %17764 = vmatmul.mubr.msk.f32.gmra.mrb[28].mxu1 %vm534_vm1, %v5887_v5  ;;  %18542 = vmatprep.mubr.msk.f32.mxu0 %vm534_vm1, %v5892_v23  ;;  %653 = vst.msk [vmem:[#allocation2 + $0x3a8] sm:$0xff] %vm534_vm1, %v491_v28  ;;  %654 = vst.msk [vmem:[#allocation2 + $0x3b0] sm:$0xff] %vm534_vm1, %v492_v29  ;;  %v496_v34 = vld [vmem:[%s21072_s10 + $0x3d0] sm:$0xff]  ;;  %v498_v36 = vld [vmem:[%s21072_s10 + $0x3e0] sm:$0x3] }
  0x5b   : > { %17766 = vmatprep.mubr.msk.f32.mxu1 %vm534_vm1, %v5888_v7  ;;  %656 = vst.msk [vmem:[#allocation2 + $0x3c0] sm:$0xff] %vm534_vm1, %v494_v31  ;;  %657 = vst.msk [vmem:[#allocation2 + $0x3c8] sm:$0xff] %vm534_vm1, %v495_v32  ;;  %v499_v37 = vld [vmem:[%s21072_s10 + $0x3e8] sm:$0xff]  ;;  %v500_v38 = vld [vmem:[%s21072_s10 + $0x3f0] sm:$0xff] }
  0x5c   : > { %658 = vst.msk [vmem:[#allocation2 + $0x3d0] sm:$0xff] %vm534_vm1, %v496_v34  ;;  %659 = vst.msk [vmem:[#allocation2 + $0x3d8] sm:$0xff] %vm534_vm1, %v497_v35  ;;  %v5895_v39 = vld [vmem:[#allocation2 + $0x171] sm:$0xff]  ;;  %v5896_v41 = vld [vmem:[#allocation2 + $0x179] sm:$0xff] }
  0x5d   : > { %18543 = vmatmul.mubr.msk.f32.gmra.mrb[30].mxu0 %vm534_vm1, %v5893_v27  ;;  %660 = vst.msk [vmem:[#allocation2 + $0x3e0] sm:$0x3] %vm539_vm2, %v498_v36  ;;  %v501_v40 = vld [vmem:[%s21072_s10 + $0x3f8] sm:$0xff]  ;;  %v502_v42 = vld [vmem:[%s21072_s10 + $0x400] sm:$0xff]  ;;  %v503_v43 = vld [vmem:[%s21072_s10 + $0x408] sm:$0x3] }
  0x5e   : > { %17767 = vmatmul.mubr.msk.f32.gmra.mrb[30].mxu1 %vm534_vm1, %v5889_v13  ;;  %18545 = vmatprep.mubr.msk.f32.mxu0 %vm534_vm1, %v5894_v33  ;;  %661 = vst.msk [vmem:[#allocation2 + $0x3e8] sm:$0xff] %vm534_vm1, %v499_v37  ;;  %662 = vst.msk [vmem:[#allocation2 + $0x3f0] sm:$0xff] %vm534_vm1, %v500_v38  ;;  %v504_v44 = vld [vmem:[%s21072_s10 + $0x410] sm:$0xff]  ;;  %v505_v45 = vld [vmem:[%s21072_s10 + $0x418] sm:$0xff] }
  0x5f   : > { %17769 = vmatprep.mubr.msk.f32.mxu1 %vm534_vm1, %v5890_v14  ;;  %663 = vst.msk [vmem:[#allocation2 + $0x3f8] sm:$0xff] %vm534_vm1, %v501_v40  ;;  %664 = vst.msk [vmem:[#allocation2 + $0x400] sm:$0xff] %vm534_vm1, %v502_v42  ;;  %v506_v46 = vld [vmem:[%s21072_s10 + $0x420] sm:$0xff]  ;;  %v5898_v48 = vld [vmem:[#allocation2 + $0x191] sm:$0xff] }
  0x60   : > { %665 = vst.msk [vmem:[#allocation2 + $0x408] sm:$0x3] %vm539_vm2, %v503_v43  ;;  %v5897_v47 = vld [vmem:[#allocation2 + $0x181] sm:$0xff]  ;;  %v508_v50 = vld [vmem:[%s21072_s10 + $0x430] sm:$0x3]  ;;  %v5899_v51 = vld [vmem:[#allocation2 + $0x199] sm:$0xff] }
  0x61   : > { %18546 = vmatmul.mubr.msk.f32.gmra.mrb[32].mxu0 %vm534_vm1, %v5895_v39  ;;  %666 = vst.msk [vmem:[#allocation2 + $0x410] sm:$0xff] %vm534_vm1, %v504_v44  ;;  %667 = vst.msk [vmem:[#allocation2 + $0x418] sm:$0xff] %vm534_vm1, %v505_v45  ;;  %v507_v49 = vld [vmem:[%s21072_s10 + $0x428] sm:$0xff]  ;;  %v509_v53 = vld [vmem:[%s21072_s10 + $0x438] sm:$0xff] }
  0x62   : > { %17770 = vmatmul.mubr.msk.f32.gmra.mrb[32].mxu1 %vm534_vm1, %v5891_v20  ;;  %18548 = vmatprep.mubr.msk.f32.mxu0 %vm534_vm1, %v5896_v41  ;;  %668 = vst.msk [vmem:[#allocation2 + $0x420] sm:$0xff] %vm534_vm1, %v506_v46  ;;  %669 = vst.msk [vmem:[#allocation2 + $0x428] sm:$0xff] %vm534_vm1, %v507_v49  ;;  %v5900_v52 = vld [vmem:[#allocation2 + $0x1a1] sm:$0xff]  ;;  %v5901_v56 = vld [vmem:[#allocation2 + $0x1a9] sm:$0xff] }
  0x63   : > { %17772 = vmatprep.mubr.msk.f32.mxu1 %vm534_vm1, %v5892_v23  ;;  %670 = vst.msk [vmem:[#allocation2 + $0x430] sm:$0x3] %vm539_vm2, %v508_v50  ;;  %v510_v54 = vld [vmem:[%s21072_s10 + $0x440] sm:$0xff]  ;;  %v511_v55 = vld [vmem:[%s21072_s10 + $0x448] sm:$0xff]  ;;  %v512_v58 = vld [vmem:[%s21072_s10 + $0x450] sm:$0xff] }
  0x64   : > { %671 = vst.msk [vmem:[#allocation2 + $0x438] sm:$0xff] %vm534_vm1, %v509_v53  ;;  %672 = vst.msk [vmem:[#allocation2 + $0x440] sm:$0xff] %vm534_vm1, %v510_v54  ;;  %v5902_v57 = vld [vmem:[#allocation2 + $0x1b9] sm:$0xff]  ;;  %v5903_v60 = vld [vmem:[#allocation2 + $0x1c1] sm:$0xff] }
  0x65   : > { %18549 = vmatmul.mubr.msk.f32.gmra.mrb[34].mxu0 %vm534_vm1, %v5897_v47  ;;  %673 = vst.msk [vmem:[#allocation2 + $0x448] sm:$0xff] %vm534_vm1, %v511_v55  ;;  %674 = vst.msk [vmem:[#allocation2 + $0x450] sm:$0xff] %vm534_vm1, %v512_v58  ;;  %v513_v59 = vld [vmem:[%s21072_s10 + $0x458] sm:$0x3]  ;;  %v5904_v61 = vld [vmem:[#allocation2 + $0x1c9] sm:$0xff] }
  0x66   : > { %17773 = vmatmul.mubr.msk.f32.gmra.mrb[34].mxu1 %vm534_vm1, %v5893_v27  ;;  %18551 = vmatprep.mubr.msk.f32.mxu0 %vm534_vm1, %v5898_v48  ;;  %675 = vst.msk [vmem:[#allocation2 + $0x458] sm:$0x3] %vm539_vm2, %v513_v59  ;;  %v514_v62 = vld [vmem:[%s21072_s10 + $0x460] sm:$0xff]  ;;  %v515_v63 = vld [vmem:[%s21072_s10 + $0x468] sm:$0xff]  ;;  %v516_v0 = vld [vmem:[%s21072_s10 + $0x470] sm:$0xff] }
  0x67   : > { %17775 = vmatprep.mubr.msk.f32.mxu1 %vm534_vm1, %v5894_v33  ;;  %676 = vst.msk [vmem:[#allocation2 + $0x460] sm:$0xff] %vm534_vm1, %v514_v62  ;;  %677 = vst.msk [vmem:[#allocation2 + $0x468] sm:$0xff] %vm534_vm1, %v515_v63  ;;  %v5905_v1 = vld [vmem:[#allocation2 + $0x1d1] sm:$0xff]  ;;  %v5906_v2 = vld [vmem:[#allocation2 + $0x1e1] sm:$0xff] }
  0x68   : > { %678 = vst.msk [vmem:[#allocation2 + $0x470] sm:$0xff] %vm534_vm1, %v516_v0  ;;  %v517_v3 = vld [vmem:[%s21072_s10 + $0x478] sm:$0xff]  ;;  %v518_v4 = vld [vmem:[%s21072_s10 + $0x480] sm:$0x3]  ;;  %v5907_v5 = vld [vmem:[#allocation2 + $0x1e9] sm:$0xff] }
  0x69   : > { %18552 = vmatmul.mubr.msk.f32.gmra.mrb[36].mxu0 %vm534_vm1, %v5899_v51  ;;  %679 = vst.msk [vmem:[#allocation2 + $0x478] sm:$0xff] %vm534_vm1, %v517_v3  ;;  %v5908_v6 = vld [vmem:[#allocation2 + $0x1f1] sm:$0xff]  ;;  %v519_v7 = vld [vmem:[%s21072_s10 + $0x488] sm:$0xff]  ;;  %v845_v10 = vld [vmem:[%s24545_s2] sm:$0xf] }
  0x6a   : > { %17776 = vmatmul.mubr.msk.f32.gmra.mrb[36].mxu1 %vm534_vm1, %v5895_v39  ;;  %18554 = vmatprep.mubr.msk.f32.mxu0 %vm534_vm1, %v5900_v52  ;;  %680 = vst.msk [vmem:[#allocation2 + $0x480] sm:$0x3] %vm539_vm2, %v518_v4  ;;  %v520_v8 = vld [vmem:[%s21072_s10 + $0x490] sm:$0xff]  ;;  %v521_v9 = vld [vmem:[%s21072_s10 + $0x498] sm:$0xff]  ;;  %v522_v13 = vld [vmem:[%s21072_s10 + $0x4a0] sm:$0xff] }
  0x6b   : > { %17778 = vmatprep.mubr.msk.f32.mxu1 %vm534_vm1, %v5896_v41  ;;  %681 = vst.msk [vmem:[#allocation2 + $0x488] sm:$0xff] %vm534_vm1, %v519_v7  ;;  %682 = vst.msk [vmem:[#allocation2 + $0x490] sm:$0xff] %vm534_vm1, %v520_v8  ;;  %v5909_v11 = vld [vmem:[#allocation2 + $0x1f9] sm:$0xff]  ;;  %17913 = vmatprep.subr.msk.mxu1 %vm1360_vm0, %v845_v10  ;;  %v5910_v12 = vld [vmem:[#allocation2 + $0x209] sm:$0xff] }
  0x6c   : > { %683 = vst.msk [vmem:[#allocation2 + $0x498] sm:$0xff] %vm534_vm1, %v521_v9  ;;  %17914 = vmatpush3.msk.msra.mxu1 %vm1360_vm0, %v845_v10  ;;  %684 = vst.msk [vmem:[#allocation2 + $0x4a0] sm:$0xff] %vm534_vm1, %v522_v13  ;;  %v523_v14 = vld [vmem:[%s21072_s10 + $0x4a8] sm:$0x3]  ;;  %v5911_v15 = vld [vmem:[#allocation2 + $0x211] sm:$0xff] }
  0x6d   : > { %18555 = vmatmul.mubr.msk.f32.gmra.mrb[38].mxu0 %vm534_vm1, %v5901_v56  ;;  %685 = vst.msk [vmem:[#allocation2 + $0x4a8] sm:$0x3] %vm539_vm2, %v523_v14  ;;  %v5912_v16 = vld [vmem:[#allocation2 + $0x219] sm:$0xff]  ;;  %v524_v17 = vld [vmem:[%s21072_s10 + $0x4b0] sm:$0xff]  ;;  %v5913_v20 = vld [vmem:[#allocation2 + $0x221] sm:$0xff] }
  0x6e   : > { %17779 = vmatmul.mubr.msk.f32.gmra.mrb[38].mxu1 %vm534_vm1, %v5897_v47  ;;  %18557 = vmatprep.mubr.msk.f32.mxu0 %vm534_vm1, %v5902_v57  ;;  %v525_v18 = vld [vmem:[%s21072_s10 + $0x4b8] sm:$0xff]  ;;  %686 = vst.msk [vmem:[#allocation2 + $0x4b0] sm:$0xff] %vm534_vm1, %v524_v17  ;;  %v526_v19 = vld [vmem:[%s21072_s10 + $0x4c0] sm:$0xff]  ;;  %v527_v22 = vld [vmem:[%s21072_s10 + $0x4c8] sm:$0xff] }
  0x6f   : > { %17781 = vmatprep.mubr.msk.f32.mxu1 %vm534_vm1, %v5898_v48  ;;  %687 = vst.msk [vmem:[#allocation2 + $0x4b8] sm:$0xff] %vm534_vm1, %v525_v18  ;;  %688 = vst.msk [vmem:[#allocation2 + $0x4c0] sm:$0xff] %vm534_vm1, %v526_v19  ;;  %v5914_v21 = vld [vmem:[#allocation2 + $0x231] sm:$0xff]  ;;  %v5915_v24 = vld [vmem:[#allocation2 + $0x239] sm:$0xff] }
  0x70   : > { %689 = vst.msk [vmem:[#allocation2 + $0x4c8] sm:$0xff] %vm534_vm1, %v527_v22  ;;  %v528_v23 = vld [vmem:[%s21072_s10 + $0x4d0] sm:$0x3]  ;;  %v5916_v25 = vld [vmem:[#allocation2 + $0x241] sm:$0xff]  ;;  %v529_v26 = vld [vmem:[%s21072_s10 + $0x4d8] sm:$0xff] }
  0x71   : > { %18558 = vmatmul.mubr.msk.f32.gmra.mrb[40].mxu0 %vm534_vm1, %v5903_v60  ;;  %690 = vst.msk [vmem:[#allocation2 + $0x4d0] sm:$0x3] %vm539_vm2, %v528_v23  ;;  %v530_v27 = vld [vmem:[%s21072_s10 + $0x4e0] sm:$0xff]  ;;  %v531_v28 = vld [vmem:[%s21072_s10 + $0x4e8] sm:$0xff]  ;;  %v532_v31 = vld [vmem:[%s21072_s10 + $0x4f0] sm:$0xff] }
  0x72   : > { %17782 = vmatmul.mubr.msk.f32.gmra.mrb[40].mxu1 %vm534_vm1, %v5899_v51  ;;  %18560 = vmatprep.mubr.msk.f32.mxu0 %vm534_vm1, %v5904_v61  ;;  %691 = vst.msk [vmem:[#allocation2 + $0x4d8] sm:$0xff] %vm534_vm1, %v529_v26  ;;  %692 = vst.msk [vmem:[#allocation2 + $0x4e0] sm:$0xff] %vm534_vm1, %v530_v27  ;;  %v5917_v29 = vld [vmem:[#allocation2 + $0x249] sm:$0xff]  ;;  %v5918_v30 = vld [vmem:[#allocation2 + $0x259] sm:$0xff] }
  0x73   : > { %17784 = vmatprep.mubr.msk.f32.mxu1 %vm534_vm1, %v5900_v52  ;;  %693 = vst.msk [vmem:[#allocation2 + $0x4e8] sm:$0xff] %vm534_vm1, %v531_v28  ;;  %694 = vst.msk [vmem:[#allocation2 + $0x4f0] sm:$0xff] %vm534_vm1, %v532_v31  ;;  %v533_v32 = vld [vmem:[%s21072_s10 + $0x4f8] sm:$0x3]  ;;  %v5919_v33 = vld [vmem:[#allocation2 + $0x261] sm:$0xff] }
  0x74   : > { %695 = vst.msk [vmem:[#allocation2 + $0x4f8] sm:$0x3] %vm539_vm2, %v533_v32  ;;  %v5920_v34 = vld [vmem:[#allocation2 + $0x269] sm:$0xff]  ;;  %v696_v35 = vld [vmem:[%s21520_s16] sm:$0xff]  ;;  %v5921_v38 = vld [vmem:[#allocation2 + $0x271] sm:$0xff] }
  0x75   : > { %18561 = vmatmul.mubr.msk.f32.gmra.mrb[42].mxu0 %vm534_vm1, %v5905_v1  ;;  %v697_v36 = vld [vmem:[%s21520_s16 + $0x8] sm:$0xff]  ;;  %707 = vst.msk [vmem:[#allocation2 + $0x500] sm:$0xff] %vm534_vm1, %v696_v35  ;;  %v698_v37 = vld [vmem:[%s21520_s16 + $0x10] sm:$0xff]  ;;  %v699_v40 = vld [vmem:[%s21520_s16 + $0x18] sm:$0xff] }
  0x76   : > { %17785 = vmatmul.mubr.msk.f32.gmra.mrb[42].mxu1 %vm534_vm1, %v5901_v56  ;;  %18563 = vmatprep.mubr.msk.f32.mxu0 %vm534_vm1, %v5906_v2  ;;  %708 = vst.msk [vmem:[#allocation2 + $0x508] sm:$0xff] %vm534_vm1, %v697_v36  ;;  %709 = vst.msk [vmem:[#allocation2 + $0x510] sm:$0xff] %vm534_vm1, %v698_v37  ;;  %v5922_v39 = vld [vmem:[#allocation2 + $0x281] sm:$0xff]  ;;  %v5923_v42 = vld [vmem:[#allocation2 + $0x289] sm:$0xff] }
  0x77   : > { %17787 = vmatprep.mubr.msk.f32.mxu1 %vm534_vm1, %v5902_v57  ;;  %710 = vst.msk [vmem:[#allocation2 + $0x518] sm:$0xff] %vm534_vm1, %v699_v40  ;;  %v700_v41 = vld [vmem:[%s21520_s16 + $0x20] sm:$0x3]  ;;  %v5924_v43 = vld [vmem:[#allocation2 + $0x291] sm:$0xff]  ;;  %v5926_v45 = vld [vmem:[#allocation2 + $0x2a9] sm:$0xff] }
  0x78   : > { %711 = vst.msk [vmem:[#allocation2 + $0x520] sm:$0x3] %vm539_vm2, %v700_v41  ;;  %v5925_v44 = vld [vmem:[#allocation2 + $0x299] sm:$0xff]  ;;  %v5927_v46 = vld [vmem:[#allocation2 + $0x2b1] sm:$0xff]  ;;  %v5929_v49 = vld [vmem:[#allocation2 + $0x2c1] sm:$0xff] }
  0x79   : > { %18564 = vmatmul.mubr.msk.f32.gmra.mrb[44].mxu0 %vm534_vm1, %v5907_v5  ;;  %v21551_v47 = vld [vmem:[%s24545_s2 + $0x18] sm:$0xf]  ;;  %v5932_v52 = vld [vmem:[#allocation2 + $0x2e1] sm:$0xff]  ;;  %v5933_v53 = vld [vmem:[#allocation2 + $0x2e9] sm:$0xff] }
  0x7a   : > { %17788 = vmatmul.mubr.msk.f32.gmra.mrb[44].mxu1 %vm534_vm1, %v5903_v60  ;;  %18566 = vmatprep.mubr.msk.f32.mxu0 %vm534_vm1, %v5908_v6  ;;  %v5928_v48 = vld [vmem:[#allocation2 + $0x2b9] sm:$0xff]  ;;  %v5930_v50 = vld [vmem:[#allocation2 + $0x2d1] sm:$0xff]  ;;  %v5935_v55 = vld [vmem:[#allocation2 + $0x301] sm:$0xff] }
  0x7b   : > { %17790 = vmatprep.mubr.msk.f32.mxu1 %vm534_vm1, %v5904_v61  ;;  %18883 = vmatprep.subr.msk.mxu0 %vm1360_vm0, %v21551_v47  ;;  %v5931_v51 = vld [vmem:[#allocation2 + $0x2d9] sm:$0xff]  ;;  %v5936_v56 = vld [vmem:[#allocation2 + $0x309] sm:$0xff]  ;;  %v5937_v57 = vld [vmem:[#allocation2 + $0x311] sm:$0xff] }
  0x7c   : > { %v5934_v54 = vld [vmem:[#allocation2 + $0x2f9] sm:$0xff]  ;;  %v5938_v58 = vld [vmem:[#allocation2 + $0x321] sm:$0xff]  ;;  %v5939_v59 = vld [vmem:[#allocation2 + $0x329] sm:$0xff] }
  0x7d   : > { %18567 = vmatmul.mubr.msk.f32.gmra.mrb[46].mxu0 %vm534_vm1, %v5909_v11  ;;  %v5940_v60 = vld [vmem:[#allocation2 + $0x331] sm:$0xff]  ;;  %v5941_v61 = vld [vmem:[#allocation2 + $0x339] sm:$0xff]  ;;  %v5942_v62 = vld [vmem:[#allocation2 + $0x349] sm:$0xff] }
  0x7e   : > { %17791 = vmatmul.mubr.msk.f32.gmra.mrb[46].mxu1 %vm534_vm1, %v5905_v1  ;;  %18569 = vmatprep.mubr.msk.f32.mxu0 %vm534_vm1, %v5910_v12  ;;  %v5943_v63 = vld [vmem:[#allocation2 + $0x351] sm:$0xff]  ;;  %v5944_v0 = vld [vmem:[#allocation2 + $0x359] sm:$0xff]  ;;  %v5945_v1 = vld [vmem:[#allocation2 + $0x361] sm:$0xff] }
  0x7f   : > { %17793 = vmatprep.mubr.msk.f32.mxu1 %vm534_vm1, %v5906_v2  ;;  %v5946_v2 = vld [vmem:[#allocation2 + $0x371] sm:$0xff]  ;;  %v5947_v3 = vld [vmem:[#allocation2 + $0x379] sm:$0xff]  ;;  %v5948_v4 = vld [vmem:[#allocation2 + $0x381] sm:$0xff] }
  0x80   : > { %v5951_v7 = vld [vmem:[#allocation2 + $0x3a1] sm:$0xff]  ;;  %v5952_v8 = vld [vmem:[#allocation2 + $0x3a9] sm:$0xff]  ;;  %v5953_v9 = vld [vmem:[#allocation2 + $0x3b1] sm:$0xff] }
  0x81   : > { %18570 = vmatmul.mubr.msk.f32.gmra.mrb[48].mxu0 %vm534_vm1, %v5911_v15  ;;  %v5954_v10 = vld [vmem:[#allocation2 + $0x3c1] sm:$0xff]  ;;  %v5957_v13 = vld [vmem:[#allocation2 + $0x3d9] sm:$0xff]  ;;  %v5958_v14 = vld [vmem:[#allocation2 + $0x3e9] sm:$0xff] }
  0x82   : > { %17794 = vmatmul.mubr.msk.f32.gmra.mrb[48].mxu1 %vm534_vm1, %v5907_v5  ;;  %18572 = vmatprep.mubr.msk.f32.mxu0 %vm534_vm1, %v5912_v16  ;;  %v5949_v5 = vld [vmem:[#allocation2 + $0x389] sm:$0xff]  ;;  %v5961_v17 = vld [vmem:[#allocation2 + $0x401] sm:$0xff]  ;;  %v5962_v18 = vld [vmem:[#allocation2 + $0x411] sm:$0xff] }
  0x83   : > { %17796 = vmatprep.mubr.msk.f32.mxu1 %vm534_vm1, %v5908_v6  ;;  %v5950_v6 = vld [vmem:[#allocation2 + $0x399] sm:$0xff]  ;;  %v5967_v23 = vld [vmem:[#allocation2 + $0x441] sm:$0xff]  ;;  %v5971_v27 = vld [vmem:[#allocation2 + $0x469] sm:$0xff] }
  0x84   : > { %v5963_v19 = vld [vmem:[#allocation2 + $0x419] sm:$0xff]  ;;  %v5970_v26 = vld [vmem:[#allocation2 + $0x461] sm:$0xff]  ;;  %v5972_v28 = vld [vmem:[#allocation2 + $0x471] sm:$0xff] }
  0x85   : > { %18573 = vmatmul.mubr.msk.f32.gmra.mrb[50].mxu0 %vm534_vm1, %v5913_v20  ;;  %v5966_v22 = vld [vmem:[#allocation2 + $0x439] sm:$0xff]  ;;  %v5975_v31 = vld [vmem:[#allocation2 + $0x491] sm:$0xff]  ;;  %v5980_v36 = vld [vmem:[#allocation2 + $0x4c1] sm:$0xff] }
  0x86   : > { %17797 = vmatmul.mubr.msk.f32.gmra.mrb[50].mxu1 %vm534_vm1, %v5909_v11  ;;  %18575 = vmatprep.mubr.msk.f32.mxu0 %vm534_vm1, %v5914_v21  ;;  %v5955_v11 = vld [vmem:[#allocation2 + $0x3c9] sm:$0xff]  ;;  %v5976_v32 = vld [vmem:[#allocation2 + $0x499] sm:$0xff]  ;;  %v5985_v41 = vld [vmem:[#allocation2 + $0x4f1] sm:$0xff] }
  0x87   : > { %17799 = vmatprep.mubr.msk.f32.mxu1 %vm534_vm1, %v5910_v12  ;;  %v5956_v12 = vld [vmem:[#allocation2 + $0x3d1] sm:$0xff]  ;;  %v5979_v35 = vld [vmem:[#allocation2 + $0x4b9] sm:$0xff]  ;;  %v5981_v37 = vld [vmem:[#allocation2 + $0x4c9] sm:$0xff] }
  0x88   : > { %v5984_v40 = vld [vmem:[#allocation2 + $0x4e9] sm:$0xff] }
  0x89   : > { %18576 = vmatmul.mubr.msk.f32.gmra.mrb[52].mxu0 %vm534_vm1, %v5915_v24 }
  0x8a   : > { %17800 = vmatmul.mubr.msk.f32.gmra.mrb[52].mxu1 %vm534_vm1, %v5911_v15  ;;  %18578 = vmatprep.mubr.msk.f32.mxu0 %vm534_vm1, %v5916_v25  ;;  %v5959_v15 = vld [vmem:[#allocation2 + $0x3f1] sm:$0xff] }
  0x8b   : > { %17802 = vmatprep.mubr.msk.f32.mxu1 %vm534_vm1, %v5912_v16  ;;  %v5960_v16 = vld [vmem:[#allocation2 + $0x3f9] sm:$0xff] }
  0x8d   : > { %18579 = vmatmul.mubr.msk.f32.gmra.mrb[54].mxu0 %vm534_vm1, %v5917_v29 }
  0x8e   : > { %17803 = vmatmul.mubr.msk.f32.gmra.mrb[54].mxu1 %vm534_vm1, %v5913_v20  ;;  %18581 = vmatprep.mubr.msk.f32.mxu0 %vm534_vm1, %v5918_v30  ;;  %v5964_v20 = vld [vmem:[#allocation2 + $0x421] sm:$0xff] }
  0x8f   : > { %17805 = vmatprep.mubr.msk.f32.mxu1 %vm534_vm1, %v5914_v21  ;;  %v5965_v21 = vld [vmem:[#allocation2 + $0x429] sm:$0xff] }
  0x91   : > { %18582 = vmatmul.mubr.msk.f32.gmra.mrb[56].mxu0 %vm534_vm1, %v5919_v33 }
  0x92   : > { %17806 = vmatmul.mubr.msk.f32.gmra.mrb[56].mxu1 %vm534_vm1, %v5915_v24  ;;  %18584 = vmatprep.mubr.msk.f32.mxu0 %vm534_vm1, %v5920_v34  ;;  %v5968_v24 = vld [vmem:[#allocation2 + $0x449] sm:$0xff] }
  0x93   : > { %17808 = vmatprep.mubr.msk.f32.mxu1 %vm534_vm1, %v5916_v25  ;;  %v5969_v25 = vld [vmem:[#allocation2 + $0x451] sm:$0xff] }
  0x95   : > { %18585 = vmatmul.mubr.msk.f32.gmra.mrb[58].mxu0 %vm534_vm1, %v5921_v38 }
  0x96   : > { %17809 = vmatmul.mubr.msk.f32.gmra.mrb[58].mxu1 %vm534_vm1, %v5917_v29  ;;  %18587 = vmatprep.mubr.msk.f32.mxu0 %vm534_vm1, %v5922_v39  ;;  %v5973_v29 = vld [vmem:[#allocation2 + $0x479] sm:$0xff] }
  0x97   : > { %17811 = vmatprep.mubr.msk.f32.mxu1 %vm534_vm1, %v5918_v30  ;;  %v5974_v30 = vld [vmem:[#allocation2 + $0x489] sm:$0xff] }
  0x99   : > { %18588 = vmatmul.mubr.msk.f32.gmra.mrb[60].mxu0 %vm534_vm1, %v5923_v42 }
  0x9a   : > { %17812 = vmatmul.mubr.msk.f32.gmra.mrb[60].mxu1 %vm534_vm1, %v5919_v33  ;;  %18590 = vmatprep.mubr.msk.f32.mxu0 %vm534_vm1, %v5924_v43  ;;  %v5977_v33 = vld [vmem:[#allocation2 + $0x4a1] sm:$0xff] }
  0x9b   : > { %17814 = vmatprep.mubr.msk.f32.mxu1 %vm534_vm1, %v5920_v34  ;;  %v5978_v34 = vld [vmem:[#allocation2 + $0x4b1] sm:$0xff] }
  0x9d   : > { %18591 = vmatmul.mubr.msk.f32.gmra.mrb[62].mxu0 %vm534_vm1, %v5925_v44 }
  0x9e   : > { %17815 = vmatmul.mubr.msk.f32.gmra.mrb[62].mxu1 %vm534_vm1, %v5921_v38  ;;  %18593 = vmatprep.mubr.msk.f32.mxu0 %vm534_vm1, %v5926_v45  ;;  %v5982_v38 = vld [vmem:[#allocation2 + $0x4d9] sm:$0xff] }
  0x9f   : > { %17817 = vmatprep.mubr.msk.f32.mxu1 %vm534_vm1, %v5922_v39  ;;  %v5983_v39 = vld [vmem:[#allocation2 + $0x4e1] sm:$0xff] }
  0xa1   : > { %18594 = vmatmul.mubr.msk.f32.gmra.mrb[64].mxu0 %vm534_vm1, %v5927_v46 }
  0xa2   : > { %17818 = vmatmul.mubr.msk.f32.gmra.mrb[64].mxu1 %vm534_vm1, %v5923_v42  ;;  %18596 = vmatprep.mubr.msk.f32.mxu0 %vm534_vm1, %v5928_v48  ;;  %v5986_v42 = vld [vmem:[#allocation2 + $0x501] sm:$0xff] }
  0xa3   : > { %17820 = vmatprep.mubr.msk.f32.mxu1 %vm534_vm1, %v5924_v43  ;;  %v5987_v43 = vld [vmem:[#allocation2 + $0x509] sm:$0xff] }
  0xa5   : > { %18597 = vmatmul.mubr.msk.f32.gmra.mrb[66].mxu0 %vm534_vm1, %v5929_v49 }
  0xa6   : > { %17821 = vmatmul.mubr.msk.f32.gmra.mrb[66].mxu1 %vm534_vm1, %v5925_v44  ;;  %18599 = vmatprep.mubr.msk.f32.mxu0 %vm534_vm1, %v5930_v50  ;;  %v5988_v44 = vld [vmem:[#allocation2 + $0x511] sm:$0xff] }
  0xa7   : > { %17823 = vmatprep.mubr.msk.f32.mxu1 %vm534_vm1, %v5926_v45  ;;  %v5989_v45 = vld [vmem:[#allocation2 + $0x519] sm:$0xff] }
  0xa9   : > { %18600 = vmatmul.mubr.msk.f32.gmra.mrb[68].mxu0 %vm534_vm1, %v5931_v51 }
  0xaa   : > { %17824 = vmatmul.mubr.msk.f32.gmra.mrb[68].mxu1 %vm534_vm1, %v5927_v46  ;;  %18602 = vmatprep.mubr.msk.f32.mxu0 %vm534_vm1, %v5932_v52  ;;  %v717_v46 = vld [vmem:[#allocation2] sm:$0xff] }
  0xab   : > { %17826 = vmatprep.mubr.msk.f32.mxu1 %vm534_vm1, %v5928_v48  ;;  %v7212_v48 = vld [vmem:[#allocation2 + $0x2a] sm:$0xff] }
  0xad   : > { %18603 = vmatmul.mubr.msk.f32.gmra.mrb[70].mxu0 %vm534_vm1, %v5933_v53 }
  0xae   : > { %17827 = vmatmul.mubr.msk.f32.gmra.mrb[70].mxu1 %vm534_vm1, %v5929_v49  ;;  %18605 = vmatprep.mubr.msk.f32.mxu0 %vm534_vm1, %v5934_v54  ;;  %v718_v49 = vld [vmem:[#allocation2 + $0x8] sm:$0xff] }
  0xaf   : > { %17829 = vmatprep.mubr.msk.f32.mxu1 %vm534_vm1, %v5930_v50  ;;  %v7213_v50 = vld [vmem:[#allocation2 + $0x32] sm:$0xff] }
  0xb1   : > { %18606 = vmatmul.mubr.msk.f32.gmra.mrb[72].mxu0 %vm534_vm1, %v5935_v55 }
  0xb2   : > { %17830 = vmatmul.mubr.msk.f32.gmra.mrb[72].mxu1 %vm534_vm1, %v5931_v51  ;;  %18608 = vmatprep.mubr.msk.f32.mxu0 %vm534_vm1, %v5936_v56  ;;  %v719_v51 = vld [vmem:[#allocation2 + $0x10] sm:$0xff] }
  0xb3   : > { %17832 = vmatprep.mubr.msk.f32.mxu1 %vm534_vm1, %v5932_v52  ;;  %v7214_v52 = vld [vmem:[#allocation2 + $0x3a] sm:$0xff] }
  0xb5   : > { %18609 = vmatmul.mubr.msk.f32.gmra.mrb[74].mxu0 %vm534_vm1, %v5937_v57 }
  0xb6   : > { %17833 = vmatmul.mubr.msk.f32.gmra.mrb[74].mxu1 %vm534_vm1, %v5933_v53  ;;  %18611 = vmatprep.mubr.msk.f32.mxu0 %vm534_vm1, %v5938_v58  ;;  %v720_v53 = vld [vmem:[#allocation2 + $0x18] sm:$0xff] }
  0xb7   : > { %17835 = vmatprep.mubr.msk.f32.mxu1 %vm534_vm1, %v5934_v54  ;;  %v7215_v54 = vld [vmem:[#allocation2 + $0x42] sm:$0xff] }
  0xb9   : > { %18612 = vmatmul.mubr.msk.f32.gmra.mrb[76].mxu0 %vm534_vm1, %v5939_v59 }
  0xba   : > { %17836 = vmatmul.mubr.msk.f32.gmra.mrb[76].mxu1 %vm534_vm1, %v5935_v55  ;;  %18614 = vmatprep.mubr.msk.f32.mxu0 %vm534_vm1, %v5940_v60  ;;  %v721_v55 = vld [vmem:[#allocation2 + $0x28] sm:$0xff] }
  0xbb   : > { %17838 = vmatprep.mubr.msk.f32.mxu1 %vm534_vm1, %v5936_v56  ;;  %v7216_v56 = vld [vmem:[#allocation2 + $0x52] sm:$0xff] }
  0xbd   : > { %18615 = vmatmul.mubr.msk.f32.gmra.mrb[78].mxu0 %vm534_vm1, %v5941_v61 }
  0xbe   : > { %17839 = vmatmul.mubr.msk.f32.gmra.mrb[78].mxu1 %vm534_vm1, %v5937_v57  ;;  %18617 = vmatprep.mubr.msk.f32.mxu0 %vm534_vm1, %v5942_v62  ;;  %v722_v57 = vld [vmem:[#allocation2 + $0x30] sm:$0xff] }
  0xbf   : > { %17841 = vmatprep.mubr.msk.f32.mxu1 %vm534_vm1, %v5938_v58  ;;  %v7217_v58 = vld [vmem:[#allocation2 + $0x5a] sm:$0xff] }
  0xc1   : > { %18618 = vmatmul.mubr.msk.f32.gmra.mrb[80].mxu0 %vm534_vm1, %v5943_v63 }
  0xc2   : > { %17842 = vmatmul.mubr.msk.f32.gmra.mrb[80].mxu1 %vm534_vm1, %v5939_v59  ;;  %18620 = vmatprep.mubr.msk.f32.mxu0 %vm534_vm1, %v5944_v0  ;;  %v723_v59 = vld [vmem:[#allocation2 + $0x38] sm:$0xff] }
  0xc3   : > { %17844 = vmatprep.mubr.msk.f32.mxu1 %vm534_vm1, %v5940_v60  ;;  %v7218_v60 = vld [vmem:[#allocation2 + $0x62] sm:$0xff] }
  0xc5   : > { %18621 = vmatmul.mubr.msk.f32.gmra.mrb[82].mxu0 %vm534_vm1, %v5945_v1 }
  0xc6   : > { %17845 = vmatmul.mubr.msk.f32.gmra.mrb[82].mxu1 %vm534_vm1, %v5941_v61  ;;  %18623 = vmatprep.mubr.msk.f32.mxu0 %vm534_vm1, %v5946_v2  ;;  %v7219_v61 = vld [vmem:[#allocation2 + $0x6a] sm:$0xff] }
  0xc7   : > { %17847 = vmatprep.mubr.msk.f32.mxu1 %vm534_vm1, %v5942_v62  ;;  %v21697_v62 = vld [vmem:[#allocation2 + $0x50] sm:$0xff] }
  0xc9   : > { %18624 = vmatmul.mubr.msk.f32.gmra.mrb[84].mxu0 %vm534_vm1, %v5947_v3 }
  0xca   : > { %17848 = vmatmul.mubr.msk.f32.gmra.mrb[84].mxu1 %vm534_vm1, %v5943_v63  ;;  %18626 = vmatprep.mubr.msk.f32.mxu0 %vm534_vm1, %v5948_v4  ;;  %v7220_v63 = vld [vmem:[#allocation2 + $0x7a] sm:$0xff] }
  0xcb   : > { %17850 = vmatprep.mubr.msk.f32.mxu1 %vm534_vm1, %v5944_v0  ;;  %v21703_v0 = vld [vmem:[#allocation2 + $0x58] sm:$0xff] }
  0xcd   : > { %18627 = vmatmul.mubr.msk.f32.gmra.mrb[86].mxu0 %vm534_vm1, %v5949_v5 }
  0xce   : > { %17851 = vmatmul.mubr.msk.f32.gmra.mrb[86].mxu1 %vm534_vm1, %v5945_v1  ;;  %18629 = vmatprep.mubr.msk.f32.mxu0 %vm534_vm1, %v5950_v6  ;;  %v7221_v1 = vld [vmem:[#allocation2 + $0x82] sm:$0xff] }
  0xcf   : > { %17853 = vmatprep.mubr.msk.f32.mxu1 %vm534_vm1, %v5946_v2  ;;  %v21706_v2 = vld [vmem:[#allocation2 + $0x60] sm:$0xff] }
  0xd1   : > { %18630 = vmatmul.mubr.msk.f32.gmra.mrb[88].mxu0 %vm534_vm1, %v5951_v7 }
  0xd2   : > { %17854 = vmatmul.mubr.msk.f32.gmra.mrb[88].mxu1 %vm534_vm1, %v5947_v3  ;;  %18632 = vmatprep.mubr.msk.f32.mxu0 %vm534_vm1, %v5952_v8  ;;  %v7222_v3 = vld [vmem:[#allocation2 + $0x8a] sm:$0xff] }
  0xd3   : > { %17856 = vmatprep.mubr.msk.f32.mxu1 %vm534_vm1, %v5948_v4  ;;  %v21713_v4 = vld [vmem:[#allocation2 + $0x68] sm:$0xff] }
  0xd5   : > { %18633 = vmatmul.mubr.msk.f32.gmra.mrb[90].mxu0 %vm534_vm1, %v5953_v9 }
  0xd6   : > { %17857 = vmatmul.mubr.msk.f32.gmra.mrb[90].mxu1 %vm534_vm1, %v5949_v5  ;;  %18635 = vmatprep.mubr.msk.f32.mxu0 %vm534_vm1, %v5954_v10  ;;  %v7223_v5 = vld [vmem:[#allocation2 + $0x92] sm:$0xff] }
  0xd7   : > { %17859 = vmatprep.mubr.msk.f32.mxu1 %vm534_vm1, %v5950_v6  ;;  %v21716_v6 = vld [vmem:[#allocation2 + $0x78] sm:$0xff] }
  0xd9   : > { %18636 = vmatmul.mubr.msk.f32.gmra.mrb[92].mxu0 %vm534_vm1, %v5955_v11 }
  0xda   : > { %17860 = vmatmul.mubr.msk.f32.gmra.mrb[92].mxu1 %vm534_vm1, %v5951_v7  ;;  %18638 = vmatprep.mubr.msk.f32.mxu0 %vm534_vm1, %v5956_v12  ;;  %v7224_v7 = vld [vmem:[#allocation2 + $0xa2] sm:$0xff] }
  0xdb   : > { %17862 = vmatprep.mubr.msk.f32.mxu1 %vm534_vm1, %v5952_v8  ;;  %v21723_v8 = vld [vmem:[#allocation2 + $0x80] sm:$0xff] }
  0xdd   : > { %18639 = vmatmul.mubr.msk.f32.gmra.mrb[94].mxu0 %vm534_vm1, %v5957_v13 }
  0xde   : > { %17863 = vmatmul.mubr.msk.f32.gmra.mrb[94].mxu1 %vm534_vm1, %v5953_v9  ;;  %18641 = vmatprep.mubr.msk.f32.mxu0 %vm534_vm1, %v5958_v14  ;;  %v7225_v9 = vld [vmem:[#allocation2 + $0xaa] sm:$0xff] }
  0xdf   : > { %17865 = vmatprep.mubr.msk.f32.mxu1 %vm534_vm1, %v5954_v10  ;;  %v21726_v10 = vld [vmem:[#allocation2 + $0x88] sm:$0xff] }
  0xe1   : > { %18642 = vmatmul.mubr.msk.f32.gmra.mrb[96].mxu0 %vm534_vm1, %v5959_v15 }
  0xe2   : > { %17866 = vmatmul.mubr.msk.f32.gmra.mrb[96].mxu1 %vm534_vm1, %v5955_v11  ;;  %18644 = vmatprep.mubr.msk.f32.mxu0 %vm534_vm1, %v5960_v16  ;;  %v7226_v11 = vld [vmem:[#allocation2 + $0xb2] sm:$0xff] }
  0xe3   : > { %17868 = vmatprep.mubr.msk.f32.mxu1 %vm534_vm1, %v5956_v12  ;;  %v21733_v12 = vld [vmem:[#allocation2 + $0x90] sm:$0xff] }
  0xe5   : > { %18645 = vmatmul.mubr.msk.f32.gmra.mrb[98].mxu0 %vm534_vm1, %v5961_v17 }
  0xe6   : > { %17869 = vmatmul.mubr.msk.f32.gmra.mrb[98].mxu1 %vm534_vm1, %v5957_v13  ;;  %18647 = vmatprep.mubr.msk.f32.mxu0 %vm534_vm1, %v5962_v18  ;;  %v7227_v13 = vld [vmem:[#allocation2 + $0xba] sm:$0xff] }
  0xe7   : > { %17871 = vmatprep.mubr.msk.f32.mxu1 %vm534_vm1, %v5958_v14  ;;  %v21736_v14 = vld [vmem:[#allocation2 + $0xa0] sm:$0xff] }
  0xe9   : > { %18648 = vmatmul.mubr.msk.f32.gmra.mrb[100].mxu0 %vm534_vm1, %v5963_v19 }
  0xea   : > { %17872 = vmatmul.mubr.msk.f32.gmra.mrb[100].mxu1 %vm534_vm1, %v5959_v15  ;;  %18650 = vmatprep.mubr.msk.f32.mxu0 %vm534_vm1, %v5964_v20  ;;  %v7228_v15 = vld [vmem:[#allocation2 + $0xca] sm:$0xff] }
  0xeb   : > { %17874 = vmatprep.mubr.msk.f32.mxu1 %vm534_vm1, %v5960_v16  ;;  %v21743_v16 = vld [vmem:[#allocation2 + $0xa8] sm:$0xff] }
  0xed   : > { %18651 = vmatmul.mubr.msk.f32.gmra.mrb[102].mxu0 %vm534_vm1, %v5965_v21 }
  0xee   : > { %17875 = vmatmul.mubr.msk.f32.gmra.mrb[102].mxu1 %vm534_vm1, %v5961_v17  ;;  %18653 = vmatprep.mubr.msk.f32.mxu0 %vm534_vm1, %v5966_v22  ;;  %v7229_v17 = vld [vmem:[#allocation2 + $0xd2] sm:$0xff] }
  0xef   : > { %17877 = vmatprep.mubr.msk.f32.mxu1 %vm534_vm1, %v5962_v18  ;;  %v21746_v18 = vld [vmem:[#allocation2 + $0xb0] sm:$0xff] }
  0xf1   : > { %18654 = vmatmul.mubr.msk.f32.gmra.mrb[104].mxu0 %vm534_vm1, %v5967_v23 }
  0xf2   : > { %17878 = vmatmul.mubr.msk.f32.gmra.mrb[104].mxu1 %vm534_vm1, %v5963_v19  ;;  %18656 = vmatprep.mubr.msk.f32.mxu0 %vm534_vm1, %v5968_v24  ;;  %v7230_v19 = vld [vmem:[#allocation2 + $0xda] sm:$0xff] }
  0xf3   : > { %17880 = vmatprep.mubr.msk.f32.mxu1 %vm534_vm1, %v5964_v20  ;;  %v21753_v20 = vld [vmem:[#allocation2 + $0xb8] sm:$0xff] }
  0xf5   : > { %18657 = vmatmul.mubr.msk.f32.gmra.mrb[106].mxu0 %vm534_vm1, %v5969_v25 }
  0xf6   : > { %17881 = vmatmul.mubr.msk.f32.gmra.mrb[106].mxu1 %vm534_vm1, %v5965_v21  ;;  %18659 = vmatprep.mubr.msk.f32.mxu0 %vm534_vm1, %v5970_v26  ;;  %v7231_v21 = vld [vmem:[#allocation2 + $0xe2] sm:$0xff] }
  0xf7   : > { %17883 = vmatprep.mubr.msk.f32.mxu1 %vm534_vm1, %v5966_v22  ;;  %v21756_v22 = vld [vmem:[#allocation2 + $0xc8] sm:$0xff] }
  0xf9   : > { %18660 = vmatmul.mubr.msk.f32.gmra.mrb[108].mxu0 %vm534_vm1, %v5971_v27 }
  0xfa   : > { %17884 = vmatmul.mubr.msk.f32.gmra.mrb[108].mxu1 %vm534_vm1, %v5967_v23  ;;  %18662 = vmatprep.mubr.msk.f32.mxu0 %vm534_vm1, %v5972_v28  ;;  %v7232_v23 = vld [vmem:[#allocation2 + $0xf2] sm:$0xff] }
  0xfb   : > { %17886 = vmatprep.mubr.msk.f32.mxu1 %vm534_vm1, %v5968_v24  ;;  %v21763_v24 = vld [vmem:[#allocation2 + $0xd0] sm:$0xff] }
  0xfd   : > { %18663 = vmatmul.mubr.msk.f32.gmra.mrb[110].mxu0 %vm534_vm1, %v5973_v29 }
  0xfe   : > { %17887 = vmatmul.mubr.msk.f32.gmra.mrb[110].mxu1 %vm534_vm1, %v5969_v25  ;;  %18665 = vmatprep.mubr.msk.f32.mxu0 %vm534_vm1, %v5974_v30  ;;  %v7233_v25 = vld [vmem:[#allocation2 + $0xfa] sm:$0xff] }
  0xff   : > { %17889 = vmatprep.mubr.msk.f32.mxu1 %vm534_vm1, %v5970_v26  ;;  %v21766_v26 = vld [vmem:[#allocation2 + $0xd8] sm:$0xff] }
 0x101   : > { %18666 = vmatmul.mubr.msk.f32.gmra.mrb[112].mxu0 %vm534_vm1, %v5975_v31 }
 0x102   : > { %17890 = vmatmul.mubr.msk.f32.gmra.mrb[112].mxu1 %vm534_vm1, %v5971_v27  ;;  %18668 = vmatprep.mubr.msk.f32.mxu0 %vm534_vm1, %v5976_v32  ;;  %v7234_v27 = vld [vmem:[#allocation2 + $0x102] sm:$0xff] }
 0x103   : > { %17892 = vmatprep.mubr.msk.f32.mxu1 %vm534_vm1, %v5972_v28  ;;  %v21773_v28 = vld [vmem:[#allocation2 + $0xe0] sm:$0xff] }
 0x105   : > { %18669 = vmatmul.mubr.msk.f32.gmra.mrb[114].mxu0 %vm534_vm1, %v5977_v33 }
 0x106   : > { %17893 = vmatmul.mubr.msk.f32.gmra.mrb[114].mxu1 %vm534_vm1, %v5973_v29  ;;  %18671 = vmatprep.mubr.msk.f32.mxu0 %vm534_vm1, %v5978_v34  ;;  %v7235_v29 = vld [vmem:[#allocation2 + $0x10a] sm:$0xff] }
 0x107   : > { %17895 = vmatprep.mubr.msk.f32.mxu1 %vm534_vm1, %v5974_v30  ;;  %v21776_v30 = vld [vmem:[#allocation2 + $0xf0] sm:$0xff] }
 0x109   : > { %18672 = vmatmul.mubr.msk.f32.gmra.mrb[116].mxu0 %vm534_vm1, %v5979_v35 }
 0x10a   : > { %17896 = vmatmul.mubr.msk.f32.gmra.mrb[116].mxu1 %vm534_vm1, %v5975_v31  ;;  %18674 = vmatprep.mubr.msk.f32.mxu0 %vm534_vm1, %v5980_v36  ;;  %v7236_v31 = vld [vmem:[#allocation2 + $0x11a] sm:$0xff] }
 0x10b   : > { %17898 = vmatprep.mubr.msk.f32.mxu1 %vm534_vm1, %v5976_v32  ;;  %v21783_v32 = vld [vmem:[#allocation2 + $0xf8] sm:$0xff] }
 0x10d   : > { %18675 = vmatmul.mubr.msk.f32.gmra.mrb[118].mxu0 %vm534_vm1, %v5981_v37 }
 0x10e   : > { %17899 = vmatmul.mubr.msk.f32.gmra.mrb[118].mxu1 %vm534_vm1, %v5977_v33  ;;  %18677 = vmatprep.mubr.msk.f32.mxu0 %vm534_vm1, %v5982_v38  ;;  %v7237_v33 = vld [vmem:[#allocation2 + $0x122] sm:$0xff] }
 0x10f   : > { %17901 = vmatprep.mubr.msk.f32.mxu1 %vm534_vm1, %v5978_v34  ;;  %v21786_v34 = vld [vmem:[#allocation2 + $0x100] sm:$0xff] }
 0x111   : > { %18678 = vmatmul.mubr.msk.f32.gmra.mrb[120].mxu0 %vm534_vm1, %v5983_v39 }
 0x112   : > { %17902 = vmatmul.mubr.msk.f32.gmra.mrb[120].mxu1 %vm534_vm1, %v5979_v35  ;;  %18680 = vmatprep.mubr.msk.f32.mxu0 %vm534_vm1, %v5984_v40  ;;  %v7238_v35 = vld [vmem:[#allocation2 + $0x12a] sm:$0xff] }
 0x113   : > { %17904 = vmatprep.mubr.msk.f32.mxu1 %vm534_vm1, %v5980_v36  ;;  %v21793_v36 = vld [vmem:[#allocation2 + $0x108] sm:$0xff] }
 0x115   : > { %18681 = vmatmul.mubr.msk.f32.gmra.mrb[122].mxu0 %vm534_vm1, %v5985_v41 }
 0x116   : > { %17905 = vmatmul.mubr.msk.f32.gmra.mrb[122].mxu1 %vm534_vm1, %v5981_v37  ;;  %18683 = vmatprep.mubr.msk.f32.mxu0 %vm534_vm1, %v5986_v42  ;;  %v7239_v37 = vld [vmem:[#allocation2 + $0x132] sm:$0xff]  ;;  %v21806_v42 = vld [vmem:[#allocation2 + $0x128] sm:$0xff] }
 0x117   : > { %17907 = vmatprep.mubr.msk.f32.mxu1 %vm534_vm1, %v5982_v38  ;;  %v21796_v38 = vld [vmem:[#allocation2 + $0x118] sm:$0xff] }
 0x119   : > { %18684 = vmatmul.mubr.msk.f32.gmra.mrb[124].mxu0 %vm534_vm1, %v5987_v43  ;;  %v7242_v43 = vld [vmem:[#allocation2 + $0x152] sm:$0xff] }
 0x11a   : > { %17908 = vmatmul.mubr.msk.f32.gmra.mrb[124].mxu1 %vm534_vm1, %v5983_v39  ;;  %18686 = vmatprep.mubr.msk.f32.mxu0 %vm534_vm1, %v5988_v44  ;;  %v7240_v39 = vld [vmem:[#allocation2 + $0x142] sm:$0xff]  ;;  %v21813_v44 = vld [vmem:[#allocation2 + $0x130] sm:$0xff] }
 0x11b   : > { %17910 = vmatprep.mubr.msk.f32.mxu1 %vm534_vm1, %v5984_v40  ;;  %v21803_v40 = vld [vmem:[#allocation2 + $0x120] sm:$0xff] }
 0x11d   : > { %18687 = vmatmul.mubr.msk.f32.gmra.mrb[126].mxu0 %vm534_vm1, %v5989_v45  ;;  %v7243_v45 = vld [vmem:[#allocation2 + $0x15a] sm:$0xff] }
 0x11e   : > { %17911 = vmatmul.mubr.msk.f32.gmra.mrb[126].mxu1 %vm534_vm1, %v5985_v41  ;;  %18691 = vmatprep.mubr.msk.f32.mxu0 %vm534_vm1, %v7212_v48  ;;  %v7241_v41 = vld [vmem:[#allocation2 + $0x14a] sm:$0xff] }
 0x11f   : > { %17915 = vmatprep.mubr.msk.f32.mxu1 %vm534_vm1, %v717_v46  ;;  %v21816_v46 = vld [vmem:[#allocation2 + $0x140] sm:$0xff]  ;;  %v7244_v48 = vld [vmem:[#allocation2 + $0x16a] sm:$0xff] }
 0x121   : > { %18692 = vmatmul.mubr.msk.f32.vlgmr.msra.gmra.mrb[0].mxu0 %vm534_vm1, %v7213_v50  ;;  %v7245_v50 = vld [vmem:[#allocation2 + $0x172] sm:$0xff] }
 0x122   : > { %17916 = vmatmul.mubr.msk.f32.vlgmr.msra.gmra.mrb[0].mxu1 %vm534_vm1, %v718_v49  ;;  %18884 = vmatpush3.msk.msra.mxu0 %vm1360_vm0, %v21551_v47  ;;  %v724_v47 = vld [vmem:[#allocation2 + $0x40] sm:$0xff]  ;;  %v21823_v49 = vld [vmem:[#allocation2 + $0x148] sm:$0xff] }
 0x123   : > { %17918 = vmatprep.mubr.msk.f32.mxu1 %vm534_vm1, %v719_v51  ;;  %18694 = vmatprep.mubr.msk.f32.mxu0 %vm534_vm1, %v7214_v52  ;;  %v21826_v51 = vld [vmem:[#allocation2 + $0x150] sm:$0xff]  ;;  %v7246_v52 = vld [vmem:[#allocation2 + $0x17a] sm:$0xff] }
 0x125   : > { %18695 = vmatmul.mubr.msk.f32.gmra.mrb[2].mxu0 %vm534_vm1, %v7215_v54  ;;  %v7247_v54 = vld [vmem:[#allocation2 + $0x182] sm:$0xff] }
 0x126   : > { %17919 = vmatmul.mubr.msk.f32.gmra.mrb[2].mxu1 %vm534_vm1, %v720_v53  ;;  %18697 = vmatprep.mubr.msk.f32.mxu0 %vm534_vm1, %v7216_v56  ;;  %v21833_v53 = vld [vmem:[#allocation2 + $0x158] sm:$0xff] }
 0x127   : > { %17921 = vmatprep.mubr.msk.f32.mxu1 %vm534_vm1, %v721_v55  ;;  %v21836_v55 = vld [vmem:[#allocation2 + $0x168] sm:$0xff]  ;;  %v7248_v56 = vld [vmem:[#allocation2 + $0x192] sm:$0xff] }
 0x129   : > { %18698 = vmatmul.mubr.msk.f32.gmra.mrb[4].mxu0 %vm534_vm1, %v7217_v58  ;;  %v7249_v58 = vld [vmem:[#allocation2 + $0x19a] sm:$0xff] }
 0x12a   : > { %17922 = vmatmul.mubr.msk.f32.gmra.mrb[4].mxu1 %vm534_vm1, %v722_v57  ;;  %18700 = vmatprep.mubr.msk.f32.mxu0 %vm534_vm1, %v7218_v60  ;;  %v21843_v57 = vld [vmem:[#allocation2 + $0x170] sm:$0xff]  ;;  %v7250_v60 = vld [vmem:[#allocation2 + $0x1a2] sm:$0xff] }
 0x12b   : > { %17924 = vmatprep.mubr.msk.f32.mxu1 %vm534_vm1, %v723_v59  ;;  %v21846_v59 = vld [vmem:[#allocation2 + $0x178] sm:$0xff] }
 0x12d   : > { %18701 = vmatmul.mubr.msk.f32.gmra.mrb[6].mxu0 %vm534_vm1, %v7219_v61  ;;  %v7251_v61 = vld [vmem:[#allocation2 + $0x1aa] sm:$0xff] }
 0x12e   : > { %17925 = vmatmul.mubr.msk.f32.gmra.mrb[6].mxu1 %vm534_vm1, %v724_v47  ;;  %18703 = vmatprep.mubr.msk.f32.mxu0 %vm534_vm1, %v7220_v63  ;;  %v21853_v47 = vld [vmem:[#allocation2 + $0x180] sm:$0xff]  ;;  %v21856_v63 = vld [vmem:[#allocation2 + $0x190] sm:$0xff] }
 0x12f   : > { %17927 = vmatprep.mubr.msk.f32.mxu1 %vm534_vm1, %v21697_v62 }
 0x131   : > { %18704 = vmatmul.mubr.msk.f32.gmra.mrb[8].mxu0 %vm534_vm1, %v7221_v1  ;;  %v7252_v1 = vld [vmem:[#allocation2 + $0x1ba] sm:$0xff] }
 0x132   : > { %17928 = vmatmul.mubr.msk.f32.gmra.mrb[8].mxu1 %vm534_vm1, %v21703_v0  ;;  %18706 = vmatprep.mubr.msk.f32.mxu0 %vm534_vm1, %v7222_v3  ;;  %v21863_v3 = vld [vmem:[#allocation2 + $0x198] sm:$0xff] }
 0x133   : > { %17930 = vmatprep.mubr.msk.f32.mxu1 %vm534_vm1, %v21706_v2 }
 0x135   : > { %18707 = vmatmul.mubr.msk.f32.gmra.mrb[10].mxu0 %vm534_vm1, %v7223_v5  ;;  %v7253_v5 = vld [vmem:[#allocation2 + $0x1c2] sm:$0xff] }
 0x136   : > { %17931 = vmatmul.mubr.msk.f32.gmra.mrb[10].mxu1 %vm534_vm1, %v21713_v4  ;;  %18709 = vmatprep.mubr.msk.f32.mxu0 %vm534_vm1, %v7224_v7  ;;  %v21866_v7 = vld [vmem:[#allocation2 + $0x1a0] sm:$0xff] }
 0x137   : > { %17933 = vmatprep.mubr.msk.f32.mxu1 %vm534_vm1, %v21716_v6 }
 0x139   : > { %18710 = vmatmul.mubr.msk.f32.gmra.mrb[12].mxu0 %vm534_vm1, %v7225_v9  ;;  %v7254_v9 = vld [vmem:[#allocation2 + $0x1ca] sm:$0xff] }
 0x13a   : > { %17934 = vmatmul.mubr.msk.f32.gmra.mrb[12].mxu1 %vm534_vm1, %v21723_v8  ;;  %18712 = vmatprep.mubr.msk.f32.mxu0 %vm534_vm1, %v7226_v11  ;;  %v21873_v11 = vld [vmem:[#allocation2 + $0x1a8] sm:$0xff] }
 0x13b   : > { %17936 = vmatprep.mubr.msk.f32.mxu1 %vm534_vm1, %v21726_v10 }
 0x13d   : > { %18713 = vmatmul.mubr.msk.f32.gmra.mrb[14].mxu0 %vm534_vm1, %v7227_v13  ;;  %v7255_v13 = vld [vmem:[#allocation2 + $0x1d2] sm:$0xff] }
 0x13e   : > { %17937 = vmatmul.mubr.msk.f32.gmra.mrb[14].mxu1 %vm534_vm1, %v21733_v12  ;;  %18715 = vmatprep.mubr.msk.f32.mxu0 %vm534_vm1, %v7228_v15  ;;  %v21876_v15 = vld [vmem:[#allocation2 + $0x1b8] sm:$0xff] }
 0x13f   : > { %17939 = vmatprep.mubr.msk.f32.mxu1 %vm534_vm1, %v21736_v14 }
 0x141   : > { %18716 = vmatmul.mubr.msk.f32.gmra.mrb[16].mxu0 %vm534_vm1, %v7229_v17  ;;  %v7256_v17 = vld [vmem:[#allocation2 + $0x1e2] sm:$0xff] }
 0x142   : > { %17940 = vmatmul.mubr.msk.f32.gmra.mrb[16].mxu1 %vm534_vm1, %v21743_v16  ;;  %18718 = vmatprep.mubr.msk.f32.mxu0 %vm534_vm1, %v7230_v19  ;;  %v21883_v19 = vld [vmem:[#allocation2 + $0x1c0] sm:$0xff] }
 0x143   : > { %17942 = vmatprep.mubr.msk.f32.mxu1 %vm534_vm1, %v21746_v18 }
 0x145   : > { %18719 = vmatmul.mubr.msk.f32.gmra.mrb[18].mxu0 %vm534_vm1, %v7231_v21  ;;  %v7257_v21 = vld [vmem:[#allocation2 + $0x1ea] sm:$0xff] }
 0x146   : > { %17943 = vmatmul.mubr.msk.f32.gmra.mrb[18].mxu1 %vm534_vm1, %v21753_v20  ;;  %18721 = vmatprep.mubr.msk.f32.mxu0 %vm534_vm1, %v7232_v23  ;;  %v21886_v23 = vld [vmem:[#allocation2 + $0x1c8] sm:$0xff] }
 0x147   : > { %17945 = vmatprep.mubr.msk.f32.mxu1 %vm534_vm1, %v21756_v22 }
 0x149   : > { %18722 = vmatmul.mubr.msk.f32.gmra.mrb[20].mxu0 %vm534_vm1, %v7233_v25  ;;  %v7258_v25 = vld [vmem:[#allocation2 + $0x1f2] sm:$0xff] }
 0x14a   : > { %17946 = vmatmul.mubr.msk.f32.gmra.mrb[20].mxu1 %vm534_vm1, %v21763_v24  ;;  %18724 = vmatprep.mubr.msk.f32.mxu0 %vm534_vm1, %v7234_v27  ;;  %v21893_v27 = vld [vmem:[#allocation2 + $0x1d0] sm:$0xff] }
 0x14b   : > { %17948 = vmatprep.mubr.msk.f32.mxu1 %vm534_vm1, %v21766_v26 }
 0x14d   : > { %18725 = vmatmul.mubr.msk.f32.gmra.mrb[22].mxu0 %vm534_vm1, %v7235_v29  ;;  %v15384_v29 = vld [vmem:[%s24545_s2 + $0x8] sm:$0xf] }
 0x14e   : > { %17949 = vmatmul.mubr.msk.f32.gmra.mrb[22].mxu1 %vm534_vm1, %v21773_v28  ;;  %18727 = vmatprep.mubr.msk.f32.mxu0 %vm534_vm1, %v7236_v31  ;;  %v7259_v31 = vld [vmem:[#allocation2 + $0x1fa] sm:$0xff] }
 0x14f   : > { %17951 = vmatprep.mubr.msk.f32.mxu1 %vm534_vm1, %v21776_v30  ;;  %18107 = vmatprep.subr.msk.mxu1 %vm1360_vm0, %v15384_v29 }
 0x150   : > { %18108 = vmatpush3.msk.msra.mxu1 %vm1360_vm0, %v15384_v29  ;;  %v21958_v29 = vld [vmem:[#allocation2 + $0x248] sm:$0xff] }
 0x151   : > { %18728 = vmatmul.mubr.msk.f32.gmra.mrb[24].mxu0 %vm534_vm1, %v7237_v33  ;;  %v21899_v33 = vld [vmem:[#allocation2 + $0x1e0] sm:$0xff] }
 0x152   : > { %17952 = vmatmul.mubr.msk.f32.gmra.mrb[24].mxu1 %vm534_vm1, %v21783_v32  ;;  %18730 = vmatprep.mubr.msk.f32.mxu0 %vm534_vm1, %v7238_v35  ;;  %v7260_v35 = vld [vmem:[#allocation2 + $0x20a] sm:$0xff] }
 0x153   : > { %17954 = vmatprep.mubr.msk.f32.mxu1 %vm534_vm1, %v21786_v34 }
 0x155   : > { %18731 = vmatmul.mubr.msk.f32.gmra.mrb[26].mxu0 %vm534_vm1, %v7239_v37  ;;  %v21908_v37 = vld [vmem:[#allocation2 + $0x1e8] sm:$0xff] }
 0x156   : > { %17955 = vmatmul.mubr.msk.f32.gmra.mrb[26].mxu1 %vm534_vm1, %v21793_v36  ;;  %18733 = vmatprep.mubr.msk.f32.mxu0 %vm534_vm1, %v7240_v39  ;;  %v7261_v39 = vld [vmem:[#allocation2 + $0x212] sm:$0xff] }
 0x157   : > { %17957 = vmatprep.mubr.msk.f32.mxu1 %vm534_vm1, %v21796_v38 }
 0x159   : > { %18734 = vmatmul.mubr.msk.f32.gmra.mrb[28].mxu0 %vm534_vm1, %v7241_v41  ;;  %v21911_v41 = vld [vmem:[#allocation2 + $0x1f0] sm:$0xff] }
 0x15a   : > { %17958 = vmatmul.mubr.msk.f32.gmra.mrb[28].mxu1 %vm534_vm1, %v21803_v40  ;;  %18736 = vmatprep.mubr.msk.f32.mxu0 %vm534_vm1, %v7242_v43  ;;  %v7262_v43 = vld [vmem:[#allocation2 + $0x21a] sm:$0xff] }
 0x15b   : > { %17960 = vmatprep.mubr.msk.f32.mxu1 %vm534_vm1, %v21806_v42 }
 0x15d   : > { %18737 = vmatmul.mubr.msk.f32.gmra.mrb[30].mxu0 %vm534_vm1, %v7243_v45  ;;  %v21918_v45 = vld [vmem:[#allocation2 + $0x1f8] sm:$0xff] }
 0x15e   : > { %17961 = vmatmul.mubr.msk.f32.gmra.mrb[30].mxu1 %vm534_vm1, %v21813_v44  ;;  %18739 = vmatprep.mubr.msk.f32.mxu0 %vm534_vm1, %v7244_v48  ;;  %v7263_v48 = vld [vmem:[#allocation2 + $0x222] sm:$0xff] }
 0x15f   : > { %17963 = vmatprep.mubr.msk.f32.mxu1 %vm534_vm1, %v21816_v46 }
 0x161   : > { %18740 = vmatmul.mubr.msk.f32.gmra.mrb[32].mxu0 %vm534_vm1, %v7245_v50  ;;  %v21921_v50 = vld [vmem:[#allocation2 + $0x208] sm:$0xff] }
 0x162   : > { %17964 = vmatmul.mubr.msk.f32.gmra.mrb[32].mxu1 %vm534_vm1, %v21823_v49  ;;  %18742 = vmatprep.mubr.msk.f32.mxu0 %vm534_vm1, %v7246_v52  ;;  %v7264_v52 = vld [vmem:[#allocation2 + $0x232] sm:$0xff] }
 0x163   : > { %17966 = vmatprep.mubr.msk.f32.mxu1 %vm534_vm1, %v21826_v51 }
 0x165   : > { %18743 = vmatmul.mubr.msk.f32.gmra.mrb[34].mxu0 %vm534_vm1, %v7247_v54  ;;  %v21928_v54 = vld [vmem:[#allocation2 + $0x210] sm:$0xff] }
 0x166   : > { %17967 = vmatmul.mubr.msk.f32.gmra.mrb[34].mxu1 %vm534_vm1, %v21833_v53  ;;  %18745 = vmatprep.mubr.msk.f32.mxu0 %vm534_vm1, %v7248_v56  ;;  %v7265_v56 = vld [vmem:[#allocation2 + $0x23a] sm:$0xff] }
 0x167   : > { %17969 = vmatprep.mubr.msk.f32.mxu1 %vm534_vm1, %v21836_v55 }
 0x169   : > { %18746 = vmatmul.mubr.msk.f32.gmra.mrb[36].mxu0 %vm534_vm1, %v7249_v58  ;;  %v21931_v58 = vld [vmem:[#allocation2 + $0x218] sm:$0xff] }
 0x16a   : > { %17970 = vmatmul.mubr.msk.f32.gmra.mrb[36].mxu1 %vm534_vm1, %v21843_v57  ;;  %18748 = vmatprep.mubr.msk.f32.mxu0 %vm534_vm1, %v7250_v60  ;;  %v7266_v60 = vld [vmem:[#allocation2 + $0x242] sm:$0xff] }
 0x16b   : > { %17972 = vmatprep.mubr.msk.f32.mxu1 %vm534_vm1, %v21846_v59 }
 0x16d   : > { %18749 = vmatmul.mubr.msk.f32.gmra.mrb[38].mxu0 %vm534_vm1, %v7251_v61  ;;  %v21938_v61 = vld [vmem:[#allocation2 + $0x220] sm:$0xff] }
 0x16e   : > { %17973 = vmatmul.mubr.msk.f32.gmra.mrb[38].mxu1 %vm534_vm1, %v21853_v47  ;;  %18751 = vmatprep.mubr.msk.f32.mxu0 %vm534_vm1, %v7252_v1  ;;  %v7267_v1 = vld [vmem:[#allocation2 + $0x24a] sm:$0xff] }
 0x16f   : > { %17975 = vmatprep.mubr.msk.f32.mxu1 %vm534_vm1, %v21856_v63 }
 0x171   : > { %18752 = vmatmul.mubr.msk.f32.gmra.mrb[40].mxu0 %vm534_vm1, %v7253_v5  ;;  %v21941_v5 = vld [vmem:[#allocation2 + $0x230] sm:$0xff] }
 0x172   : > { %17976 = vmatmul.mubr.msk.f32.gmra.mrb[40].mxu1 %vm534_vm1, %v21863_v3  ;;  %18754 = vmatprep.mubr.msk.f32.mxu0 %vm534_vm1, %v7254_v9  ;;  %v7268_v9 = vld [vmem:[#allocation2 + $0x25a] sm:$0xff] }
 0x173   : > { %17978 = vmatprep.mubr.msk.f32.mxu1 %vm534_vm1, %v21866_v7 }
 0x175   : > { %18755 = vmatmul.mubr.msk.f32.gmra.mrb[42].mxu0 %vm534_vm1, %v7255_v13  ;;  %v21948_v13 = vld [vmem:[#allocation2 + $0x238] sm:$0xff] }
 0x176   : > { %17979 = vmatmul.mubr.msk.f32.gmra.mrb[42].mxu1 %vm534_vm1, %v21873_v11  ;;  %18757 = vmatprep.mubr.msk.f32.mxu0 %vm534_vm1, %v7256_v17  ;;  %v7269_v17 = vld [vmem:[#allocation2 + $0x262] sm:$0xff] }
 0x177   : > { %17981 = vmatprep.mubr.msk.f32.mxu1 %vm534_vm1, %v21876_v15 }
 0x179   : > { %18758 = vmatmul.mubr.msk.f32.gmra.mrb[44].mxu0 %vm534_vm1, %v7257_v21  ;;  %v21951_v21 = vld [vmem:[#allocation2 + $0x240] sm:$0xff] }
 0x17a   : > { %17982 = vmatmul.mubr.msk.f32.gmra.mrb[44].mxu1 %vm534_vm1, %v21883_v19  ;;  %18760 = vmatprep.mubr.msk.f32.mxu0 %vm534_vm1, %v7258_v25  ;;  %v7270_v25 = vld [vmem:[#allocation2 + $0x26a] sm:$0xff] }
 0x17b   : > { %17984 = vmatprep.mubr.msk.f32.mxu1 %vm534_vm1, %v21886_v23 }
 0x17d   : > { %18761 = vmatmul.mubr.msk.f32.gmra.mrb[46].mxu0 %vm534_vm1, %v7259_v31  ;;  %v7271_v31 = vld [vmem:[#allocation2 + $0x272] sm:$0xff] }
 0x17e   : > { %17985 = vmatmul.mubr.msk.f32.gmra.mrb[46].mxu1 %vm534_vm1, %v21893_v27  ;;  %18763 = vmatprep.mubr.msk.f32.mxu0 %vm534_vm1, %v7260_v35  ;;  %v21961_v35 = vld [vmem:[#allocation2 + $0x258] sm:$0xff] }
 0x17f   : > { %17987 = vmatprep.mubr.msk.f32.mxu1 %vm534_vm1, %v21899_v33 }
 0x181   : > { %18764 = vmatmul.mubr.msk.f32.gmra.mrb[48].mxu0 %vm534_vm1, %v7261_v39  ;;  %v7272_v39 = vld [vmem:[#allocation2 + $0x282] sm:$0xff] }
 0x182   : > { %17988 = vmatmul.mubr.msk.f32.gmra.mrb[48].mxu1 %vm534_vm1, %v21908_v37  ;;  %18766 = vmatprep.mubr.msk.f32.mxu0 %vm534_vm1, %v7262_v43  ;;  %v21968_v43 = vld [vmem:[#allocation2 + $0x260] sm:$0xff] }
 0x183   : > { %17990 = vmatprep.mubr.msk.f32.mxu1 %vm534_vm1, %v21911_v41 }
 0x185   : > { %18767 = vmatmul.mubr.msk.f32.gmra.mrb[50].mxu0 %vm534_vm1, %v7263_v48  ;;  %v7273_v48 = vld [vmem:[#allocation2 + $0x28a] sm:$0xff] }
 0x186   : > { %17991 = vmatmul.mubr.msk.f32.gmra.mrb[50].mxu1 %vm534_vm1, %v21918_v45  ;;  %18769 = vmatprep.mubr.msk.f32.mxu0 %vm534_vm1, %v7264_v52  ;;  %v21971_v52 = vld [vmem:[#allocation2 + $0x268] sm:$0xff] }
 0x187   : > { %17993 = vmatprep.mubr.msk.f32.mxu1 %vm534_vm1, %v21921_v50 }
 0x189   : > { %18770 = vmatmul.mubr.msk.f32.gmra.mrb[52].mxu0 %vm534_vm1, %v7265_v56  ;;  %v7274_v56 = vld [vmem:[#allocation2 + $0x292] sm:$0xff] }
 0x18a   : > { %17994 = vmatmul.mubr.msk.f32.gmra.mrb[52].mxu1 %vm534_vm1, %v21928_v54  ;;  %18772 = vmatprep.mubr.msk.f32.mxu0 %vm534_vm1, %v7266_v60  ;;  %v21978_v60 = vld [vmem:[#allocation2 + $0x270] sm:$0xff] }
 0x18b   : > { %17996 = vmatprep.mubr.msk.f32.mxu1 %vm534_vm1, %v21931_v58  ;;  %24612 = vst [vmem:[#allocation3_spill] sm:$0xff] %v21978_v60 }
 0x18d   : > { %18773 = vmatmul.mubr.msk.f32.gmra.mrb[54].mxu0 %vm534_vm1, %v7267_v1  ;;  %v7275_v1 = vld [vmem:[#allocation2 + $0x29a] sm:$0xff] }
 0x18e   : > { %17997 = vmatmul.mubr.msk.f32.gmra.mrb[54].mxu1 %vm534_vm1, %v21938_v61  ;;  %18775 = vmatprep.mubr.msk.f32.mxu0 %vm534_vm1, %v7268_v9  ;;  %v21981_v9 = vld [vmem:[#allocation2 + $0x280] sm:$0xff] }
 0x18f   : > { %17999 = vmatprep.mubr.msk.f32.mxu1 %vm534_vm1, %v21941_v5  ;;  %24613 = vst [vmem:[#allocation4_spill] sm:$0xff] %v21981_v9 }
 0x191   : > { %18776 = vmatmul.mubr.msk.f32.gmra.mrb[56].mxu0 %vm534_vm1, %v7269_v17  ;;  %v7276_v17 = vld [vmem:[#allocation2 + $0x2aa] sm:$0xff] }
 0x192   : > { %18000 = vmatmul.mubr.msk.f32.gmra.mrb[56].mxu1 %vm534_vm1, %v21948_v13  ;;  %18778 = vmatprep.mubr.msk.f32.mxu0 %vm534_vm1, %v7270_v25  ;;  %v21988_v25 = vld [vmem:[#allocation2 + $0x288] sm:$0xff] }
 0x193   : > { %18002 = vmatprep.mubr.msk.f32.mxu1 %vm534_vm1, %v21951_v21  ;;  %24614 = vst [vmem:[#allocation5_spill] sm:$0xff] %v21988_v25 }
 0x195   : > { %18779 = vmatmul.mubr.msk.f32.gmra.mrb[58].mxu0 %vm534_vm1, %v7271_v31  ;;  %v7277_v31 = vld [vmem:[#allocation2 + $0x2b2] sm:$0xff] }
 0x196   : > { %18003 = vmatmul.mubr.msk.f32.gmra.mrb[58].mxu1 %vm534_vm1, %v21958_v29  ;;  %18781 = vmatprep.mubr.msk.f32.mxu0 %vm534_vm1, %v7272_v39  ;;  %v21991_v39 = vld [vmem:[#allocation2 + $0x290] sm:$0xff] }
 0x197   : > { %18005 = vmatprep.mubr.msk.f32.mxu1 %vm534_vm1, %v21961_v35  ;;  %24615 = vst [vmem:[#allocation6_spill] sm:$0xff] %v21991_v39 }
 0x199   : > { %18782 = vmatmul.mubr.msk.f32.gmra.mrb[60].mxu0 %vm534_vm1, %v7273_v48  ;;  %v21996_v48 = vld [vmem:[%s24545_s2 + $0x1c] sm:$0xf] }
 0x19a   : > { %18006 = vmatmul.mubr.msk.f32.gmra.mrb[60].mxu1 %vm534_vm1, %v21968_v43  ;;  %18784 = vmatprep.mubr.msk.f32.mxu0 %vm534_vm1, %v7274_v56  ;;  %v7278_v56 = vld [vmem:[#allocation2 + $0x2ba] sm:$0xff] }
 0x19b   : > { %18008 = vmatprep.mubr.msk.f32.mxu1 %vm534_vm1, %v21971_v52  ;;  %19077 = vmatprep.subr.msk.mxu0 %vm1360_vm0, %v21996_v48 }
 0x19d   : > { %18785 = vmatmul.mubr.msk.f32.gmra.mrb[62].mxu0 %vm534_vm1, %v7275_v1  ;;  %v22005_v1 = vld [vmem:[#allocation2 + $0x298] sm:$0xff] }
 0x19e   : > { %18009 = vmatmul.mubr.msk.f32.gmra.mrb[62].mxu1 %vm534_vm1, %v21978_v60  ;;  %18787 = vmatprep.mubr.msk.f32.mxu0 %vm534_vm1, %v7276_v17  ;;  %24616 = vst [vmem:[#allocation7_spill] sm:$0xff] %v22005_v1  ;;  %v7279_v17 = vld [vmem:[#allocation2 + $0x2c2] sm:$0xff]  ;;  %v7280_v60 = vld [vmem:[#allocation2 + $0x2d2] sm:$0xff] }
 0x19f   : > { %18011 = vmatprep.mubr.msk.f32.mxu1 %vm534_vm1, %v21981_v9  ;;  %v22008_v9 = vld [vmem:[#allocation2 + $0x2a8] sm:$0xff] }
 0x1a0   : > { %24617 = vst [vmem:[#allocation8_spill] sm:$0xff] %v22008_v9 }
 0x1a1   : > { %18788 = vmatmul.mubr.msk.f32.gmra.mrb[64].mxu0 %vm534_vm1, %v7277_v31  ;;  %v22015_v31 = vld [vmem:[#allocation2 + $0x2b0] sm:$0xff] }
 0x1a2   : > { %18012 = vmatmul.mubr.msk.f32.gmra.mrb[64].mxu1 %vm534_vm1, %v21988_v25  ;;  %18790 = vmatprep.mubr.msk.f32.mxu0 %vm534_vm1, %v7278_v56  ;;  %24618 = vst [vmem:[#allocation9_spill] sm:$0xff] %v22015_v31  ;;  %v22018_v25 = vld [vmem:[#allocation2 + $0x2b8] sm:$0xff]  ;;  %v7282_v56 = vld [vmem:[#allocation2 + $0x2e2] sm:$0xff] }
 0x1a3   : > { %18014 = vmatprep.mubr.msk.f32.mxu1 %vm534_vm1, %v21991_v39  ;;  %v7281_v39 = vld [vmem:[#allocation2 + $0x2da] sm:$0xff]  ;;  %24619 = vst [vmem:[#allocation10_spill] sm:$0xff] %v22018_v25 }
 0x1a5   : > { %18791 = vmatmul.mubr.msk.f32.gmra.mrb[66].mxu0 %vm534_vm1, %v7279_v17  ;;  %v22025_v17 = vld [vmem:[#allocation2 + $0x2c0] sm:$0xff] }
 0x1a6   : > { %18015 = vmatmul.mubr.msk.f32.gmra.mrb[66].mxu1 %vm534_vm1, %v22005_v1  ;;  %18793 = vmatprep.mubr.msk.f32.mxu0 %vm534_vm1, %v7280_v60  ;;  %24620 = vst [vmem:[#allocation11_spill] sm:$0xff] %v22025_v17  ;;  %v22028_v1 = vld [vmem:[#allocation2 + $0x2d0] sm:$0xff]  ;;  %v7284_v60 = vld [vmem:[#allocation2 + $0x2fa] sm:$0xff] }
 0x1a7   : > { %18017 = vmatprep.mubr.msk.f32.mxu1 %vm534_vm1, %v22008_v9  ;;  %v7283_v9 = vld [vmem:[#allocation2 + $0x2ea] sm:$0xff]  ;;  %24621 = vst [vmem:[#allocation12_spill] sm:$0xff] %v22028_v1 }
 0x1a9   : > { %18794 = vmatmul.mubr.msk.f32.gmra.mrb[68].mxu0 %vm534_vm1, %v7281_v39  ;;  %v22035_v39 = vld [vmem:[#allocation2 + $0x2d8] sm:$0xff] }
 0x1aa   : > { %18018 = vmatmul.mubr.msk.f32.gmra.mrb[68].mxu1 %vm534_vm1, %v22015_v31  ;;  %18796 = vmatprep.mubr.msk.f32.mxu0 %vm534_vm1, %v7282_v56  ;;  %24622 = vst [vmem:[#allocation13_spill] sm:$0xff] %v22035_v39  ;;  %v22038_v31 = vld [vmem:[#allocation2 + $0x2e0] sm:$0xff]  ;;  %v7286_v56 = vld [vmem:[#allocation2 + $0x30a] sm:$0xff] }
 0x1ab   : > { %18020 = vmatprep.mubr.msk.f32.mxu1 %vm534_vm1, %v22018_v25  ;;  %v7285_v25 = vld [vmem:[#allocation2 + $0x302] sm:$0xff]  ;;  %24623 = vst [vmem:[#allocation14_spill] sm:$0xff] %v22038_v31 }
 0x1ad   : > { %18797 = vmatmul.mubr.msk.f32.gmra.mrb[70].mxu0 %vm534_vm1, %v7283_v9  ;;  %v22045_v9 = vld [vmem:[#allocation2 + $0x2e8] sm:$0xff] }
 0x1ae   : > { %18021 = vmatmul.mubr.msk.f32.gmra.mrb[70].mxu1 %vm534_vm1, %v22025_v17  ;;  %18799 = vmatprep.mubr.msk.f32.mxu0 %vm534_vm1, %v7284_v60  ;;  %24624 = vst [vmem:[#allocation15_spill] sm:$0xff] %v22045_v9  ;;  %v22048_v17 = vld [vmem:[#allocation2 + $0x2f8] sm:$0xff]  ;;  %v7288_v60 = vld [vmem:[#allocation2 + $0x322] sm:$0xff] }
 0x1af   : > { %18023 = vmatprep.mubr.msk.f32.mxu1 %vm534_vm1, %v22028_v1  ;;  %v7287_v1 = vld [vmem:[#allocation2 + $0x312] sm:$0xff]  ;;  %24625 = vst [vmem:[#allocation16_spill] sm:$0xff] %v22048_v17 }
 0x1b1   : > { %18800 = vmatmul.mubr.msk.f32.gmra.mrb[72].mxu0 %vm534_vm1, %v7285_v25  ;;  %v22055_v25 = vld [vmem:[#allocation2 + $0x300] sm:$0xff] }
 0x1b2   : > { %18024 = vmatmul.mubr.msk.f32.gmra.mrb[72].mxu1 %vm534_vm1, %v22035_v39  ;;  %18802 = vmatprep.mubr.msk.f32.mxu0 %vm534_vm1, %v7286_v56  ;;  %24626 = vst [vmem:[#allocation17_spill] sm:$0xff] %v22055_v25  ;;  %v22058_v39 = vld [vmem:[#allocation2 + $0x308] sm:$0xff]  ;;  %v7290_v56 = vld [vmem:[#allocation2 + $0x332] sm:$0xff] }
 0x1b3   : > { %18026 = vmatprep.mubr.msk.f32.mxu1 %vm534_vm1, %v22038_v31  ;;  %v7289_v31 = vld [vmem:[#allocation2 + $0x32a] sm:$0xff]  ;;  %24627 = vst [vmem:[#allocation18_spill] sm:$0xff] %v22058_v39 }
 0x1b5   : > { %18803 = vmatmul.mubr.msk.f32.gmra.mrb[74].mxu0 %vm534_vm1, %v7287_v1  ;;  %v22065_v1 = vld [vmem:[#allocation2 + $0x310] sm:$0xff] }
 0x1b6   : > { %18027 = vmatmul.mubr.msk.f32.gmra.mrb[74].mxu1 %vm534_vm1, %v22045_v9  ;;  %18805 = vmatprep.mubr.msk.f32.mxu0 %vm534_vm1, %v7288_v60  ;;  %24628 = vst [vmem:[#allocation19_spill] sm:$0xff] %v22065_v1  ;;  %v22068_v9 = vld [vmem:[#allocation2 + $0x320] sm:$0xff]  ;;  %v7292_v60 = vld [vmem:[#allocation2 + $0x34a] sm:$0xff] }
 0x1b7   : > { %18029 = vmatprep.mubr.msk.f32.mxu1 %vm534_vm1, %v22048_v17  ;;  %v7291_v17 = vld [vmem:[#allocation2 + $0x33a] sm:$0xff]  ;;  %24629 = vst [vmem:[#allocation20_spill] sm:$0xff] %v22068_v9 }
 0x1b9   : > { %18806 = vmatmul.mubr.msk.f32.gmra.mrb[76].mxu0 %vm534_vm1, %v7289_v31  ;;  %v22075_v31 = vld [vmem:[#allocation2 + $0x328] sm:$0xff] }
 0x1ba   : > { %18030 = vmatmul.mubr.msk.f32.gmra.mrb[76].mxu1 %vm534_vm1, %v22055_v25  ;;  %18808 = vmatprep.mubr.msk.f32.mxu0 %vm534_vm1, %v7290_v56  ;;  %24630 = vst [vmem:[#allocation21_spill] sm:$0xff] %v22075_v31  ;;  %v22078_v25 = vld [vmem:[#allocation2 + $0x330] sm:$0xff]  ;;  %v7294_v56 = vld [vmem:[#allocation2 + $0x35a] sm:$0xff] }
 0x1bb   : > { %18032 = vmatprep.mubr.msk.f32.mxu1 %vm534_vm1, %v22058_v39  ;;  %v7293_v39 = vld [vmem:[#allocation2 + $0x352] sm:$0xff]  ;;  %24631 = vst [vmem:[#allocation22_spill] sm:$0xff] %v22078_v25 }
 0x1bd   : > { %18809 = vmatmul.mubr.msk.f32.gmra.mrb[78].mxu0 %vm534_vm1, %v7291_v17  ;;  %v22085_v17 = vld [vmem:[#allocation2 + $0x338] sm:$0xff] }
 0x1be   : > { %18033 = vmatmul.mubr.msk.f32.gmra.mrb[78].mxu1 %vm534_vm1, %v22065_v1  ;;  %18811 = vmatprep.mubr.msk.f32.mxu0 %vm534_vm1, %v7292_v60  ;;  %24632 = vst [vmem:[#allocation23_spill] sm:$0xff] %v22085_v17  ;;  %v22088_v1 = vld [vmem:[#allocation2 + $0x348] sm:$0xff]  ;;  %v7296_v60 = vld [vmem:[#allocation2 + $0x372] sm:$0xff] }
 0x1bf   : > { %18035 = vmatprep.mubr.msk.f32.mxu1 %vm534_vm1, %v22068_v9  ;;  %v7295_v9 = vld [vmem:[#allocation2 + $0x362] sm:$0xff]  ;;  %24633 = vst [vmem:[#allocation24_spill] sm:$0xff] %v22088_v1 }
 0x1c1   : > { %18812 = vmatmul.mubr.msk.f32.gmra.mrb[80].mxu0 %vm534_vm1, %v7293_v39  ;;  %v22095_v39 = vld [vmem:[#allocation2 + $0x350] sm:$0xff] }
 0x1c2   : > { %18036 = vmatmul.mubr.msk.f32.gmra.mrb[80].mxu1 %vm534_vm1, %v22075_v31  ;;  %18814 = vmatprep.mubr.msk.f32.mxu0 %vm534_vm1, %v7294_v56  ;;  %24634 = vst [vmem:[#allocation25_spill] sm:$0xff] %v22095_v39  ;;  %v22098_v31 = vld [vmem:[#allocation2 + $0x358] sm:$0xff]  ;;  %v7298_v56 = vld [vmem:[#allocation2 + $0x382] sm:$0xff] }
 0x1c3   : > { %18038 = vmatprep.mubr.msk.f32.mxu1 %vm534_vm1, %v22078_v25  ;;  %v7297_v25 = vld [vmem:[#allocation2 + $0x37a] sm:$0xff]  ;;  %24635 = vst [vmem:[#allocation26_spill] sm:$0xff] %v22098_v31 }
 0x1c5   : > { %18815 = vmatmul.mubr.msk.f32.gmra.mrb[82].mxu0 %vm534_vm1, %v7295_v9  ;;  %v22105_v9 = vld [vmem:[#allocation2 + $0x360] sm:$0xff] }
 0x1c6   : > { %18039 = vmatmul.mubr.msk.f32.gmra.mrb[82].mxu1 %vm534_vm1, %v22085_v17  ;;  %18817 = vmatprep.mubr.msk.f32.mxu0 %vm534_vm1, %v7296_v60  ;;  %24636 = vst [vmem:[#allocation27_spill] sm:$0xff] %v22105_v9  ;;  %v22108_v17 = vld [vmem:[#allocation2 + $0x370] sm:$0xff]  ;;  %v7300_v60 = vld [vmem:[#allocation2 + $0x39a] sm:$0xff] }
 0x1c7   : > { %18041 = vmatprep.mubr.msk.f32.mxu1 %vm534_vm1, %v22088_v1  ;;  %v7299_v1 = vld [vmem:[#allocation2 + $0x38a] sm:$0xff]  ;;  %24637 = vst [vmem:[#allocation28_spill] sm:$0xff] %v22108_v17 }
 0x1c9   : > { %18818 = vmatmul.mubr.msk.f32.gmra.mrb[84].mxu0 %vm534_vm1, %v7297_v25  ;;  %v22115_v25 = vld [vmem:[#allocation2 + $0x378] sm:$0xff] }
 0x1ca   : > { %18042 = vmatmul.mubr.msk.f32.gmra.mrb[84].mxu1 %vm534_vm1, %v22095_v39  ;;  %18820 = vmatprep.mubr.msk.f32.mxu0 %vm534_vm1, %v7298_v56  ;;  %24638 = vst [vmem:[#allocation29_spill] sm:$0xff] %v22115_v25  ;;  %v22118_v39 = vld [vmem:[#allocation2 + $0x380] sm:$0xff]  ;;  %v7302_v56 = vld [vmem:[#allocation2 + $0x3aa] sm:$0xff] }
 0x1cb   : > { %18044 = vmatprep.mubr.msk.f32.mxu1 %vm534_vm1, %v22098_v31  ;;  %v7301_v31 = vld [vmem:[#allocation2 + $0x3a2] sm:$0xff]  ;;  %24639 = vst [vmem:[#allocation30_spill] sm:$0xff] %v22118_v39 }
 0x1cd   : > { %18821 = vmatmul.mubr.msk.f32.gmra.mrb[86].mxu0 %vm534_vm1, %v7299_v1  ;;  %v22125_v1 = vld [vmem:[#allocation2 + $0x388] sm:$0xff] }
 0x1ce   : > { %18045 = vmatmul.mubr.msk.f32.gmra.mrb[86].mxu1 %vm534_vm1, %v22105_v9  ;;  %18823 = vmatprep.mubr.msk.f32.mxu0 %vm534_vm1, %v7300_v60  ;;  %24640 = vst [vmem:[#allocation31_spill] sm:$0xff] %v22125_v1  ;;  %v22128_v9 = vld [vmem:[#allocation2 + $0x398] sm:$0xff]  ;;  %v7304_v60 = vld [vmem:[#allocation2 + $0x3c2] sm:$0xff] }
 0x1cf   : > { %18047 = vmatprep.mubr.msk.f32.mxu1 %vm534_vm1, %v22108_v17  ;;  %v7303_v17 = vld [vmem:[#allocation2 + $0x3b2] sm:$0xff]  ;;  %24641 = vst [vmem:[#allocation32_spill] sm:$0xff] %v22128_v9 }
 0x1d1   : > { %18824 = vmatmul.mubr.msk.f32.gmra.mrb[88].mxu0 %vm534_vm1, %v7301_v31  ;;  %v22135_v31 = vld [vmem:[#allocation2 + $0x3a0] sm:$0xff] }
 0x1d2   : > { %18048 = vmatmul.mubr.msk.f32.gmra.mrb[88].mxu1 %vm534_vm1, %v22115_v25  ;;  %18826 = vmatprep.mubr.msk.f32.mxu0 %vm534_vm1, %v7302_v56  ;;  %24642 = vst [vmem:[#allocation33_spill] sm:$0xff] %v22135_v31  ;;  %v22138_v25 = vld [vmem:[#allocation2 + $0x3a8] sm:$0xff]  ;;  %v7306_v56 = vld [vmem:[#allocation2 + $0x3d2] sm:$0xff] }
 0x1d3   : > { %18050 = vmatprep.mubr.msk.f32.mxu1 %vm534_vm1, %v22118_v39  ;;  %v7305_v39 = vld [vmem:[#allocation2 + $0x3ca] sm:$0xff]  ;;  %24643 = vst [vmem:[#allocation34_spill] sm:$0xff] %v22138_v25 }
 0x1d5   : > { %18827 = vmatmul.mubr.msk.f32.gmra.mrb[90].mxu0 %vm534_vm1, %v7303_v17  ;;  %v22145_v17 = vld [vmem:[#allocation2 + $0x3b0] sm:$0xff] }
 0x1d6   : > { %18051 = vmatmul.mubr.msk.f32.gmra.mrb[90].mxu1 %vm534_vm1, %v22125_v1  ;;  %18829 = vmatprep.mubr.msk.f32.mxu0 %vm534_vm1, %v7304_v60  ;;  %24644 = vst [vmem:[#allocation35_spill] sm:$0xff] %v22145_v17  ;;  %v22148_v1 = vld [vmem:[#allocation2 + $0x3c0] sm:$0xff]  ;;  %v7308_v60 = vld [vmem:[#allocation2 + $0x3ea] sm:$0xff] }
 0x1d7   : > { %18053 = vmatprep.mubr.msk.f32.mxu1 %vm534_vm1, %v22128_v9  ;;  %v7307_v9 = vld [vmem:[#allocation2 + $0x3da] sm:$0xff]  ;;  %24645 = vst [vmem:[#allocation36_spill] sm:$0xff] %v22148_v1 }
 0x1d9   : > { %18830 = vmatmul.mubr.msk.f32.gmra.mrb[92].mxu0 %vm534_vm1, %v7305_v39  ;;  %v22155_v39 = vld [vmem:[#allocation2 + $0x3c8] sm:$0xff] }
 0x1da   : > { %18054 = vmatmul.mubr.msk.f32.gmra.mrb[92].mxu1 %vm534_vm1, %v22135_v31  ;;  %18832 = vmatprep.mubr.msk.f32.mxu0 %vm534_vm1, %v7306_v56  ;;  %24646 = vst [vmem:[#allocation37_spill] sm:$0xff] %v22155_v39  ;;  %v22158_v31 = vld [vmem:[#allocation2 + $0x3d0] sm:$0xff]  ;;  %v7310_v56 = vld [vmem:[#allocation2 + $0x3fa] sm:$0xff] }
 0x1db   : > { %18056 = vmatprep.mubr.msk.f32.mxu1 %vm534_vm1, %v22138_v25  ;;  %v7309_v25 = vld [vmem:[#allocation2 + $0x3f2] sm:$0xff]  ;;  %24647 = vst [vmem:[#allocation38_spill] sm:$0xff] %v22158_v31 }
 0x1dd   : > { %18833 = vmatmul.mubr.msk.f32.gmra.mrb[94].mxu0 %vm534_vm1, %v7307_v9  ;;  %v22165_v9 = vld [vmem:[#allocation2 + $0x3d8] sm:$0xff] }
 0x1de   : > { %18057 = vmatmul.mubr.msk.f32.gmra.mrb[94].mxu1 %vm534_vm1, %v22145_v17  ;;  %18835 = vmatprep.mubr.msk.f32.mxu0 %vm534_vm1, %v7308_v60  ;;  %24648 = vst [vmem:[#allocation39_spill] sm:$0xff] %v22165_v9  ;;  %v22168_v17 = vld [vmem:[#allocation2 + $0x3e8] sm:$0xff]  ;;  %v7312_v60 = vld [vmem:[#allocation2 + $0x412] sm:$0xff] }
 0x1df   : > { %18059 = vmatprep.mubr.msk.f32.mxu1 %vm534_vm1, %v22148_v1  ;;  %v7311_v1 = vld [vmem:[#allocation2 + $0x402] sm:$0xff]  ;;  %24649 = vst [vmem:[#allocation40_spill] sm:$0xff] %v22168_v17 }
 0x1e1   : > { %18836 = vmatmul.mubr.msk.f32.gmra.mrb[96].mxu0 %vm534_vm1, %v7309_v25  ;;  %v22175_v25 = vld [vmem:[#allocation2 + $0x3f0] sm:$0xff] }
 0x1e2   : > { %18060 = vmatmul.mubr.msk.f32.gmra.mrb[96].mxu1 %vm534_vm1, %v22155_v39  ;;  %18838 = vmatprep.mubr.msk.f32.mxu0 %vm534_vm1, %v7310_v56  ;;  %24650 = vst [vmem:[#allocation41_spill] sm:$0xff] %v22175_v25  ;;  %v22178_v39 = vld [vmem:[#allocation2 + $0x3f8] sm:$0xff]  ;;  %v7314_v56 = vld [vmem:[#allocation2 + $0x422] sm:$0xff] }
 0x1e3   : > { %18062 = vmatprep.mubr.msk.f32.mxu1 %vm534_vm1, %v22158_v31  ;;  %v7313_v31 = vld [vmem:[#allocation2 + $0x41a] sm:$0xff]  ;;  %24651 = vst [vmem:[#allocation42_spill] sm:$0xff] %v22178_v39 }
 0x1e5   : > { %18839 = vmatmul.mubr.msk.f32.gmra.mrb[98].mxu0 %vm534_vm1, %v7311_v1  ;;  %v22185_v1 = vld [vmem:[#allocation2 + $0x400] sm:$0xff] }
 0x1e6   : > { %18063 = vmatmul.mubr.msk.f32.gmra.mrb[98].mxu1 %vm534_vm1, %v22165_v9  ;;  %18841 = vmatprep.mubr.msk.f32.mxu0 %vm534_vm1, %v7312_v60  ;;  %24652 = vst [vmem:[#allocation43_spill] sm:$0xff] %v22185_v1  ;;  %v22188_v9 = vld [vmem:[#allocation2 + $0x410] sm:$0xff]  ;;  %v7316_v60 = vld [vmem:[#allocation2 + $0x43a] sm:$0xff] }
 0x1e7   : > { %18065 = vmatprep.mubr.msk.f32.mxu1 %vm534_vm1, %v22168_v17  ;;  %v7315_v17 = vld [vmem:[#allocation2 + $0x42a] sm:$0xff]  ;;  %24653 = vst [vmem:[#allocation44_spill] sm:$0xff] %v22188_v9 }
 0x1e9   : > { %18842 = vmatmul.mubr.msk.f32.gmra.mrb[100].mxu0 %vm534_vm1, %v7313_v31  ;;  %v22195_v31 = vld [vmem:[#allocation2 + $0x418] sm:$0xff] }
 0x1ea   : > { %18066 = vmatmul.mubr.msk.f32.gmra.mrb[100].mxu1 %vm534_vm1, %v22175_v25  ;;  %18844 = vmatprep.mubr.msk.f32.mxu0 %vm534_vm1, %v7314_v56  ;;  %24654 = vst [vmem:[#allocation45_spill] sm:$0xff] %v22195_v31  ;;  %v22198_v25 = vld [vmem:[#allocation2 + $0x420] sm:$0xff]  ;;  %v7318_v56 = vld [vmem:[#allocation2 + $0x44a] sm:$0xff] }
 0x1eb   : > { %18068 = vmatprep.mubr.msk.f32.mxu1 %vm534_vm1, %v22178_v39  ;;  %v7317_v39 = vld [vmem:[#allocation2 + $0x442] sm:$0xff]  ;;  %24655 = vst [vmem:[#allocation46_spill] sm:$0xff] %v22198_v25 }
 0x1ed   : > { %18845 = vmatmul.mubr.msk.f32.gmra.mrb[102].mxu0 %vm534_vm1, %v7315_v17  ;;  %v22205_v17 = vld [vmem:[#allocation2 + $0x428] sm:$0xff] }
 0x1ee   : > { %18069 = vmatmul.mubr.msk.f32.gmra.mrb[102].mxu1 %vm534_vm1, %v22185_v1  ;;  %18847 = vmatprep.mubr.msk.f32.mxu0 %vm534_vm1, %v7316_v60  ;;  %24656 = vst [vmem:[#allocation47_spill] sm:$0xff] %v22205_v17  ;;  %v22208_v1 = vld [vmem:[#allocation2 + $0x438] sm:$0xff]  ;;  %v7320_v60 = vld [vmem:[#allocation2 + $0x462] sm:$0xff] }
 0x1ef   : > { %18071 = vmatprep.mubr.msk.f32.mxu1 %vm534_vm1, %v22188_v9  ;;  %v7319_v9 = vld [vmem:[#allocation2 + $0x452] sm:$0xff]  ;;  %24657 = vst [vmem:[#allocation48_spill] sm:$0xff] %v22208_v1 }
 0x1f1   : > { %18848 = vmatmul.mubr.msk.f32.gmra.mrb[104].mxu0 %vm534_vm1, %v7317_v39  ;;  %v22215_v39 = vld [vmem:[#allocation2 + $0x440] sm:$0xff] }
 0x1f2   : > { %18072 = vmatmul.mubr.msk.f32.gmra.mrb[104].mxu1 %vm534_vm1, %v22195_v31  ;;  %18850 = vmatprep.mubr.msk.f32.mxu0 %vm534_vm1, %v7318_v56  ;;  %24658 = vst [vmem:[#allocation49_spill] sm:$0xff] %v22215_v39  ;;  %v22218_v31 = vld [vmem:[#allocation2 + $0x448] sm:$0xff]  ;;  %v7322_v56 = vld [vmem:[#allocation2 + $0x472] sm:$0xff] }
 0x1f3   : > { %18074 = vmatprep.mubr.msk.f32.mxu1 %vm534_vm1, %v22198_v25  ;;  %v7321_v25 = vld [vmem:[#allocation2 + $0x46a] sm:$0xff]  ;;  %24659 = vst [vmem:[#allocation50_spill] sm:$0xff] %v22218_v31 }
 0x1f5   : > { %18851 = vmatmul.mubr.msk.f32.gmra.mrb[106].mxu0 %vm534_vm1, %v7319_v9  ;;  %v22225_v9 = vld [vmem:[#allocation2 + $0x450] sm:$0xff] }
 0x1f6   : > { %18075 = vmatmul.mubr.msk.f32.gmra.mrb[106].mxu1 %vm534_vm1, %v22205_v17  ;;  %18853 = vmatprep.mubr.msk.f32.mxu0 %vm534_vm1, %v7320_v60  ;;  %24660 = vst [vmem:[#allocation51_spill] sm:$0xff] %v22225_v9  ;;  %v22228_v17 = vld [vmem:[#allocation2 + $0x460] sm:$0xff]  ;;  %v7324_v60 = vld [vmem:[#allocation2 + $0x48a] sm:$0xff] }
 0x1f7   : > { %18077 = vmatprep.mubr.msk.f32.mxu1 %vm534_vm1, %v22208_v1  ;;  %v7323_v1 = vld [vmem:[#allocation2 + $0x47a] sm:$0xff]  ;;  %24661 = vst [vmem:[#allocation52_spill] sm:$0xff] %v22228_v17 }
 0x1f9   : > { %18854 = vmatmul.mubr.msk.f32.gmra.mrb[108].mxu0 %vm534_vm1, %v7321_v25  ;;  %v22235_v25 = vld [vmem:[#allocation2 + $0x468] sm:$0xff] }
 0x1fa   : > { %18078 = vmatmul.mubr.msk.f32.gmra.mrb[108].mxu1 %vm534_vm1, %v22215_v39  ;;  %18856 = vmatprep.mubr.msk.f32.mxu0 %vm534_vm1, %v7322_v56  ;;  %24662 = vst [vmem:[#allocation53_spill] sm:$0xff] %v22235_v25  ;;  %v22238_v39 = vld [vmem:[#allocation2 + $0x470] sm:$0xff]  ;;  %v7326_v56 = vld [vmem:[#allocation2 + $0x49a] sm:$0xff] }
 0x1fb   : > { %18080 = vmatprep.mubr.msk.f32.mxu1 %vm534_vm1, %v22218_v31  ;;  %v7325_v31 = vld [vmem:[#allocation2 + $0x492] sm:$0xff]  ;;  %24663 = vst [vmem:[#allocation54_spill] sm:$0xff] %v22238_v39 }
 0x1fd   : > { %18857 = vmatmul.mubr.msk.f32.gmra.mrb[110].mxu0 %vm534_vm1, %v7323_v1  ;;  %v22245_v1 = vld [vmem:[#allocation2 + $0x478] sm:$0xff] }
 0x1fe   : > { %18081 = vmatmul.mubr.msk.f32.gmra.mrb[110].mxu1 %vm534_vm1, %v22225_v9  ;;  %18859 = vmatprep.mubr.msk.f32.mxu0 %vm534_vm1, %v7324_v60  ;;  %24664 = vst [vmem:[#allocation55_spill] sm:$0xff] %v22245_v1  ;;  %v22248_v9 = vld [vmem:[#allocation2 + $0x488] sm:$0xff]  ;;  %v7328_v60 = vld [vmem:[#allocation2 + $0x4b2] sm:$0xff] }
 0x1ff   : > { %18083 = vmatprep.mubr.msk.f32.mxu1 %vm534_vm1, %v22228_v17  ;;  %v7327_v17 = vld [vmem:[#allocation2 + $0x4a2] sm:$0xff]  ;;  %24665 = vst [vmem:[#allocation56_spill] sm:$0xff] %v22248_v9 }
 0x201   : > { %18860 = vmatmul.mubr.msk.f32.gmra.mrb[112].mxu0 %vm534_vm1, %v7325_v31  ;;  %v22255_v31 = vld [vmem:[#allocation2 + $0x490] sm:$0xff] }
 0x202   : > { %18084 = vmatmul.mubr.msk.f32.gmra.mrb[112].mxu1 %vm534_vm1, %v22235_v25  ;;  %18862 = vmatprep.mubr.msk.f32.mxu0 %vm534_vm1, %v7326_v56  ;;  %24666 = vst [vmem:[#allocation57_spill] sm:$0xff] %v22255_v31  ;;  %v22258_v25 = vld [vmem:[#allocation2 + $0x498] sm:$0xff]  ;;  %v7330_v56 = vld [vmem:[#allocation2 + $0x4c2] sm:$0xff] }
 0x203   : > { %18086 = vmatprep.mubr.msk.f32.mxu1 %vm534_vm1, %v22238_v39  ;;  %v7329_v39 = vld [vmem:[#allocation2 + $0x4ba] sm:$0xff]  ;;  %24667 = vst [vmem:[#allocation58_spill] sm:$0xff] %v22258_v25 }
 0x205   : > { %18863 = vmatmul.mubr.msk.f32.gmra.mrb[114].mxu0 %vm534_vm1, %v7327_v17  ;;  %v22265_v17 = vld [vmem:[#allocation2 + $0x4a0] sm:$0xff] }
 0x206   : > { %18087 = vmatmul.mubr.msk.f32.gmra.mrb[114].mxu1 %vm534_vm1, %v22245_v1  ;;  %18865 = vmatprep.mubr.msk.f32.mxu0 %vm534_vm1, %v7328_v60  ;;  %24668 = vst [vmem:[#allocation59_spill] sm:$0xff] %v22265_v17  ;;  %v22268_v1 = vld [vmem:[#allocation2 + $0x4b0] sm:$0xff]  ;;  %v7332_v60 = vld [vmem:[#allocation2 + $0x4da] sm:$0xff] }
 0x207   : > { %18089 = vmatprep.mubr.msk.f32.mxu1 %vm534_vm1, %v22248_v9  ;;  %v7331_v9 = vld [vmem:[#allocation2 + $0x4ca] sm:$0xff]  ;;  %24669 = vst [vmem:[#allocation60_spill] sm:$0xff] %v22268_v1 }
 0x209   : > { %18866 = vmatmul.mubr.msk.f32.gmra.mrb[116].mxu0 %vm534_vm1, %v7329_v39  ;;  %v22275_v39 = vld [vmem:[#allocation2 + $0x4b8] sm:$0xff] }
 0x20a   : > { %18090 = vmatmul.mubr.msk.f32.gmra.mrb[116].mxu1 %vm534_vm1, %v22255_v31  ;;  %18868 = vmatprep.mubr.msk.f32.mxu0 %vm534_vm1, %v7330_v56  ;;  %24670 = vst [vmem:[#allocation61_spill] sm:$0xff] %v22275_v39  ;;  %v22278_v31 = vld [vmem:[#allocation2 + $0x4c0] sm:$0xff]  ;;  %v7334_v56 = vld [vmem:[#allocation2 + $0x4ea] sm:$0xff] }
 0x20b   : > { %18092 = vmatprep.mubr.msk.f32.mxu1 %vm534_vm1, %v22258_v25  ;;  %v7333_v25 = vld [vmem:[#allocation2 + $0x4e2] sm:$0xff]  ;;  %24671 = vst [vmem:[#allocation62_spill] sm:$0xff] %v22278_v31 }
 0x20d   : > { %18869 = vmatmul.mubr.msk.f32.gmra.mrb[118].mxu0 %vm534_vm1, %v7331_v9  ;;  %v22285_v9 = vld [vmem:[#allocation2 + $0x4c8] sm:$0xff] }
 0x20e   : > { %18093 = vmatmul.mubr.msk.f32.gmra.mrb[118].mxu1 %vm534_vm1, %v22265_v17  ;;  %18871 = vmatprep.mubr.msk.f32.mxu0 %vm534_vm1, %v7332_v60  ;;  %24672 = vst [vmem:[#allocation63_spill] sm:$0xff] %v22285_v9  ;;  %v22288_v17 = vld [vmem:[#allocation2 + $0x4d8] sm:$0xff]  ;;  %v7336_v60 = vld [vmem:[#allocation2 + $0x502] sm:$0xff] }
 0x20f   : > { %18095 = vmatprep.mubr.msk.f32.mxu1 %vm534_vm1, %v22268_v1  ;;  %v7335_v1 = vld [vmem:[#allocation2 + $0x4f2] sm:$0xff]  ;;  %24673 = vst [vmem:[#allocation64_spill] sm:$0xff] %v22288_v17 }
 0x211   : > { %18872 = vmatmul.mubr.msk.f32.gmra.mrb[120].mxu0 %vm534_vm1, %v7333_v25  ;;  %v22295_v25 = vld [vmem:[#allocation2 + $0x4e0] sm:$0xff] }
 0x212   : > { %18096 = vmatmul.mubr.msk.f32.gmra.mrb[120].mxu1 %vm534_vm1, %v22275_v39  ;;  %18874 = vmatprep.mubr.msk.f32.mxu0 %vm534_vm1, %v7334_v56  ;;  %v22298_v39 = vld [vmem:[#allocation2 + $0x4e8] sm:$0xff]  ;;  %v7338_v56 = vld [vmem:[#allocation2 + $0x512] sm:$0xff] }
 0x213   : > { %18098 = vmatprep.mubr.msk.f32.mxu1 %vm534_vm1, %v22278_v31  ;;  %v7337_v31 = vld [vmem:[#allocation2 + $0x50a] sm:$0xff] }
 0x215   : > { %18875 = vmatmul.mubr.msk.f32.gmra.mrb[122].mxu0 %vm534_vm1, %v7335_v1  ;;  %v22305_v1 = vld [vmem:[#allocation2 + $0x4f0] sm:$0xff] }
 0x216   : > { %18099 = vmatmul.mubr.msk.f32.gmra.mrb[122].mxu1 %vm534_vm1, %v22285_v9  ;;  %18877 = vmatprep.mubr.msk.f32.mxu0 %vm534_vm1, %v7336_v60  ;;  %v3161_v9 = vld [vmem:[#allocation2 + $0x2] sm:$0xff]  ;;  %v3162_v60 = vld [vmem:[#allocation2 + $0xa] sm:$0xff] }
 0x217   : > { %18101 = vmatprep.mubr.msk.f32.mxu1 %vm534_vm1, %v22288_v17  ;;  %v7339_v17 = vld [vmem:[#allocation2 + $0x51a] sm:$0xff] }
 0x219   : > { %18878 = vmatmul.mubr.msk.f32.gmra.mrb[124].mxu0 %vm534_vm1, %v7337_v31  ;;  %v3163_v31 = vld [vmem:[#allocation2 + $0x12] sm:$0xff] }
 0x21a   : > { %18102 = vmatmul.mubr.msk.f32.gmra.mrb[124].mxu1 %vm534_vm1, %v22295_v25  ;;  %18880 = vmatprep.mubr.msk.f32.mxu0 %vm534_vm1, %v7338_v56  ;;  %v3164_v56 = vld [vmem:[#allocation2 + $0x1a] sm:$0xff] }
 0x21b   : > { %18104 = vmatprep.mubr.msk.f32.mxu1 %vm534_vm1, %v22298_v39 }
 0x21d   : > { %18881 = vmatmul.mubr.msk.f32.gmra.mrb[126].mxu0 %vm534_vm1, %v7339_v17  ;;  %v3165_v17 = vld [vmem:[#allocation2 + $0x2a] sm:$0xff] }
 0x21e   : > { %18105 = vmatmul.mubr.msk.f32.gmra.mrb[126].mxu1 %vm534_vm1, %v22305_v1  ;;  %18885 = vmatprep.mubr.msk.f32.mxu0 %vm534_vm1, %v21697_v62  ;;  %v3166_v62 = vld [vmem:[#allocation2 + $0x32] sm:$0xff] }
 0x21f   : > { %18109 = vmatprep.mubr.msk.f32.mxu1 %vm534_vm1, %v3161_v9  ;;  %v3213_v9 = vld [vmem:[#allocation2 + $0x20a] sm:$0xff] }
 0x221   : > { %18886 = vmatmul.mubr.msk.f32.vlgmr.msra.gmra.mrb[0].mxu0 %vm534_vm1, %v21703_v0  ;;  %v3167_v0 = vld [vmem:[#allocation2 + $0x3a] sm:$0xff] }
 0x222   : > { %18110 = vmatmul.mubr.msk.f32.vlgmr.msra.gmra.mrb[0].mxu1 %vm534_vm1, %v3162_v60  ;;  %19078 = vmatpush3.msk.msra.mxu0 %vm1360_vm0, %v21996_v48  ;;  %v3169_v48 = vld [vmem:[#allocation2 + $0x52] sm:$0xff] }
 0x223   : > { %18112 = vmatprep.mubr.msk.f32.mxu1 %vm534_vm1, %v3163_v31  ;;  %18888 = vmatprep.mubr.msk.f32.mxu0 %vm534_vm1, %v21706_v2  ;;  %v3168_v2 = vld [vmem:[#allocation2 + $0x42] sm:$0xff]  ;;  %v24675_v60 = vld [vmem:[#allocation4_spill] sm:$0xff] }
 0x224   : > { %v701_v31 = vld [vmem:[%s21520_s16 + $0x28] sm:$0xff] }
 0x225   : > { %18889 = vmatmul.mubr.msk.f32.gmra.mrb[2].mxu0 %vm534_vm1, %v21713_v4  ;;  %v3170_v4 = vld [vmem:[#allocation2 + $0x5a] sm:$0xff]  ;;  %712 = vst.msk [vmem:[#allocation2 + $0x528] sm:$0xff] %vm534_vm1, %v701_v31 }
 0x226   : > { %18113 = vmatmul.mubr.msk.f32.gmra.mrb[2].mxu1 %vm534_vm1, %v3164_v56  ;;  %18891 = vmatprep.mubr.msk.f32.mxu0 %vm534_vm1, %v21716_v6  ;;  %v3171_v6 = vld [vmem:[#allocation2 + $0x62] sm:$0xff] }
 0x227   : > { %18115 = vmatprep.mubr.msk.f32.mxu1 %vm534_vm1, %v3165_v17  ;;  %v24676_v56 = vld [vmem:[#allocation5_spill] sm:$0xff]  ;;  %v3220_v17 = vld [vmem:[#allocation2 + $0x24a] sm:$0xff] }
 0x228   : > { %v24704_v31 = vld [vmem:[#allocation33_spill] sm:$0xff] }
 0x229   : > { %18892 = vmatmul.mubr.msk.f32.gmra.mrb[4].mxu0 %vm534_vm1, %v21723_v8  ;;  %v3172_v8 = vld [vmem:[#allocation2 + $0x6a] sm:$0xff] }
 0x22a   : > { %18116 = vmatmul.mubr.msk.f32.gmra.mrb[4].mxu1 %vm534_vm1, %v3166_v62  ;;  %18894 = vmatprep.mubr.msk.f32.mxu0 %vm534_vm1, %v21726_v10  ;;  %v3173_v10 = vld [vmem:[#allocation2 + $0x7a] sm:$0xff]  ;;  %v24677_v62 = vld [vmem:[#allocation6_spill] sm:$0xff] }
 0x22b   : > { %18118 = vmatprep.mubr.msk.f32.mxu1 %vm534_vm1, %v3167_v0  ;;  %v3221_v0 = vld [vmem:[#allocation2 + $0x25a] sm:$0xff] }
 0x22d   : > { %18895 = vmatmul.mubr.msk.f32.gmra.mrb[6].mxu0 %vm534_vm1, %v21733_v12  ;;  %v3174_v12 = vld [vmem:[#allocation2 + $0x82] sm:$0xff] }
 0x22e   : > { %18119 = vmatmul.mubr.msk.f32.gmra.mrb[6].mxu1 %vm534_vm1, %v3168_v2  ;;  %18897 = vmatprep.mubr.msk.f32.mxu0 %vm534_vm1, %v21736_v14  ;;  %v3175_v14 = vld [vmem:[#allocation2 + $0x8a] sm:$0xff]  ;;  %v703_v2 = vld [vmem:[%s21520_s16 + $0x38] sm:$0xff] }
 0x22f   : > { %18121 = vmatprep.mubr.msk.f32.mxu1 %vm534_vm1, %v3169_v48  ;;  %714 = vst.msk [vmem:[#allocation2 + $0x538] sm:$0xff] %vm534_vm1, %v703_v2  ;;  %v704_v48 = vld [vmem:[%s21520_s16 + $0x40] sm:$0xff]  ;;  %v24707_v2 = vld [vmem:[#allocation36_spill] sm:$0xff] }
 0x230   : > { %715 = vst.msk [vmem:[#allocation2 + $0x540] sm:$0xff] %vm534_vm1, %v704_v48  ;;  %v3251_v48 = vld [vmem:[#allocation2 + $0x382] sm:$0xff] }
 0x231   : > { %18898 = vmatmul.mubr.msk.f32.gmra.mrb[8].mxu0 %vm534_vm1, %v21743_v16  ;;  %v3176_v16 = vld [vmem:[#allocation2 + $0x92] sm:$0xff] }
 0x232   : > { %18122 = vmatmul.mubr.msk.f32.gmra.mrb[8].mxu1 %vm534_vm1, %v3170_v4  ;;  %18900 = vmatprep.mubr.msk.f32.mxu0 %vm534_vm1, %v21746_v18  ;;  %v3177_v18 = vld [vmem:[#allocation2 + $0xa2] sm:$0xff]  ;;  %v24678_v4 = vld [vmem:[#allocation7_spill] sm:$0xff] }
 0x233   : > { %18124 = vmatprep.mubr.msk.f32.mxu1 %vm534_vm1, %v3171_v6  ;;  %v3222_v6 = vld [vmem:[#allocation2 + $0x262] sm:$0xff] }
 0x235   : > { %18901 = vmatmul.mubr.msk.f32.gmra.mrb[10].mxu0 %vm534_vm1, %v21753_v20  ;;  %v3178_v20 = vld [vmem:[#allocation2 + $0xaa] sm:$0xff] }
 0x236   : > { %18125 = vmatmul.mubr.msk.f32.gmra.mrb[10].mxu1 %vm534_vm1, %v3172_v8  ;;  %18903 = vmatprep.mubr.msk.f32.mxu0 %vm534_vm1, %v21756_v22  ;;  %v3179_v22 = vld [vmem:[#allocation2 + $0xb2] sm:$0xff] }
 0x237   : > { %18127 = vmatprep.mubr.msk.f32.mxu1 %vm534_vm1, %v3173_v10  ;;  %v24679_v8 = vld [vmem:[#allocation8_spill] sm:$0xff]  ;;  %v3223_v10 = vld [vmem:[#allocation2 + $0x26a] sm:$0xff] }
 0x239   : > { %18904 = vmatmul.mubr.msk.f32.gmra.mrb[12].mxu0 %vm534_vm1, %v21763_v24  ;;  %v3180_v24 = vld [vmem:[#allocation2 + $0xba] sm:$0xff] }
 0x23a   : > { %18128 = vmatmul.mubr.msk.f32.gmra.mrb[12].mxu1 %vm534_vm1, %v3174_v12  ;;  %18906 = vmatprep.mubr.msk.f32.mxu0 %vm534_vm1, %v21766_v26  ;;  %v3181_v26 = vld [vmem:[#allocation2 + $0xca] sm:$0xff]  ;;  %v24680_v12 = vld [vmem:[#allocation9_spill] sm:$0xff] }
 0x23b   : > { %18130 = vmatprep.mubr.msk.f32.mxu1 %vm534_vm1, %v3175_v14  ;;  %v3224_v14 = vld [vmem:[#allocation2 + $0x272] sm:$0xff] }
 0x23d   : > { %18907 = vmatmul.mubr.msk.f32.gmra.mrb[14].mxu0 %vm534_vm1, %v21773_v28  ;;  %v3182_v28 = vld [vmem:[#allocation2 + $0xd2] sm:$0xff] }
 0x23e   : > { %18131 = vmatmul.mubr.msk.f32.gmra.mrb[14].mxu1 %vm534_vm1, %v3176_v16  ;;  %18909 = vmatprep.mubr.msk.f32.mxu0 %vm534_vm1, %v21776_v30  ;;  %v3183_v30 = vld [vmem:[#allocation2 + $0xda] sm:$0xff]  ;;  %v24681_v16 = vld [vmem:[#allocation10_spill] sm:$0xff] }
 0x23f   : > { %18133 = vmatprep.mubr.msk.f32.mxu1 %vm534_vm1, %v3177_v18  ;;  %v3225_v18 = vld [vmem:[#allocation2 + $0x282] sm:$0xff] }
 0x241   : > { %18910 = vmatmul.mubr.msk.f32.gmra.mrb[16].mxu0 %vm534_vm1, %v21783_v32  ;;  %v3184_v32 = vld [vmem:[#allocation2 + $0xe2] sm:$0xff] }
 0x242   : > { %18134 = vmatmul.mubr.msk.f32.gmra.mrb[16].mxu1 %vm534_vm1, %v3178_v20  ;;  %18912 = vmatprep.mubr.msk.f32.mxu0 %vm534_vm1, %v21786_v34  ;;  %v3185_v34 = vld [vmem:[#allocation2 + $0xf2] sm:$0xff] }
 0x243   : > { %18136 = vmatprep.mubr.msk.f32.mxu1 %vm534_vm1, %v3179_v22  ;;  %v24682_v20 = vld [vmem:[#allocation11_spill] sm:$0xff] }
 0x244   : > { %v3226_v22 = vld [vmem:[#allocation2 + $0x28a] sm:$0xff] }
 0x245   : > { %18913 = vmatmul.mubr.msk.f32.gmra.mrb[18].mxu0 %vm534_vm1, %v21793_v36  ;;  %v3186_v36 = vld [vmem:[#allocation2 + $0xfa] sm:$0xff] }
 0x246   : > { %18137 = vmatmul.mubr.msk.f32.gmra.mrb[18].mxu1 %vm534_vm1, %v3180_v24  ;;  %18915 = vmatprep.mubr.msk.f32.mxu0 %vm534_vm1, %v21796_v38  ;;  %v3187_v38 = vld [vmem:[#allocation2 + $0x102] sm:$0xff]  ;;  %v24683_v24 = vld [vmem:[#allocation12_spill] sm:$0xff] }
 0x247   : > { %18139 = vmatprep.mubr.msk.f32.mxu1 %vm534_vm1, %v3181_v26  ;;  %v3227_v26 = vld [vmem:[#allocation2 + $0x292] sm:$0xff] }
 0x249   : > { %18916 = vmatmul.mubr.msk.f32.gmra.mrb[20].mxu0 %vm534_vm1, %v21803_v40  ;;  %v3188_v40 = vld [vmem:[#allocation2 + $0x10a] sm:$0xff] }
 0x24a   : > { %18140 = vmatmul.mubr.msk.f32.gmra.mrb[20].mxu1 %vm534_vm1, %v3182_v28  ;;  %18918 = vmatprep.mubr.msk.f32.mxu0 %vm534_vm1, %v21806_v42  ;;  %v3189_v42 = vld [vmem:[#allocation2 + $0x11a] sm:$0xff] }
 0x24b   : > { %18142 = vmatprep.mubr.msk.f32.mxu1 %vm534_vm1, %v3183_v30  ;;  %v22524_v28 = vld [vmem:[%s24545_s2 + $0x20] sm:$0xf] }
 0x24c   : > { %19271 = vmatprep.subr.msk.mxu0 %vm1360_vm0, %v22524_v28  ;;  %v24684_v30 = vld [vmem:[#allocation13_spill] sm:$0xff] }
 0x24d   : > { %18919 = vmatmul.mubr.msk.f32.gmra.mrb[22].mxu0 %vm534_vm1, %v21813_v44  ;;  %v3190_v44 = vld [vmem:[#allocation2 + $0x122] sm:$0xff] }
 0x24e   : > { %18143 = vmatmul.mubr.msk.f32.gmra.mrb[22].mxu1 %vm534_vm1, %v3184_v32  ;;  %18921 = vmatprep.mubr.msk.f32.mxu0 %vm534_vm1, %v21816_v46  ;;  %v3191_v46 = vld [vmem:[#allocation2 + $0x12a] sm:$0xff]  ;;  %v3228_v32 = vld [vmem:[#allocation2 + $0x29a] sm:$0xff] }
 0x24f   : > { %18145 = vmatprep.mubr.msk.f32.mxu1 %vm534_vm1, %v3185_v34  ;;  %v24685_v34 = vld [vmem:[#allocation14_spill] sm:$0xff] }
 0x251   : > { %18922 = vmatmul.mubr.msk.f32.gmra.mrb[24].mxu0 %vm534_vm1, %v21823_v49  ;;  %v3192_v49 = vld [vmem:[#allocation2 + $0x132] sm:$0xff] }
 0x252   : > { %18146 = vmatmul.mubr.msk.f32.gmra.mrb[24].mxu1 %vm534_vm1, %v3186_v36  ;;  %18924 = vmatprep.mubr.msk.f32.mxu0 %vm534_vm1, %v21826_v51  ;;  %v3193_v51 = vld [vmem:[#allocation2 + $0x142] sm:$0xff]  ;;  %v3229_v36 = vld [vmem:[#allocation2 + $0x2aa] sm:$0xff] }
 0x253   : > { %18148 = vmatprep.mubr.msk.f32.mxu1 %vm534_vm1, %v3187_v38  ;;  %v24686_v38 = vld [vmem:[#allocation15_spill] sm:$0xff] }
 0x255   : > { %18925 = vmatmul.mubr.msk.f32.gmra.mrb[26].mxu0 %vm534_vm1, %v21833_v53  ;;  %v3194_v53 = vld [vmem:[#allocation2 + $0x14a] sm:$0xff] }
 0x256   : > { %18149 = vmatmul.mubr.msk.f32.gmra.mrb[26].mxu1 %vm534_vm1, %v3188_v40  ;;  %18927 = vmatprep.mubr.msk.f32.mxu0 %vm534_vm1, %v21836_v55  ;;  %v3195_v55 = vld [vmem:[#allocation2 + $0x152] sm:$0xff] }
 0x257   : > { %18151 = vmatprep.mubr.msk.f32.mxu1 %vm534_vm1, %v3189_v42  ;;  %v3230_v40 = vld [vmem:[#allocation2 + $0x2b2] sm:$0xff] }
 0x258   : > { %v24687_v42 = vld [vmem:[#allocation16_spill] sm:$0xff] }
 0x259   : > { %18928 = vmatmul.mubr.msk.f32.gmra.mrb[28].mxu0 %vm534_vm1, %v21843_v57  ;;  %v3196_v57 = vld [vmem:[#allocation2 + $0x15a] sm:$0xff] }
 0x25a   : > { %18152 = vmatmul.mubr.msk.f32.gmra.mrb[28].mxu1 %vm534_vm1, %v3190_v44  ;;  %18930 = vmatprep.mubr.msk.f32.mxu0 %vm534_vm1, %v21846_v59  ;;  %v3197_v59 = vld [vmem:[#allocation2 + $0x16a] sm:$0xff]  ;;  %v3231_v44 = vld [vmem:[#allocation2 + $0x2ba] sm:$0xff] }
 0x25b   : > { %18154 = vmatprep.mubr.msk.f32.mxu1 %vm534_vm1, %v3191_v46  ;;  %v24688_v46 = vld [vmem:[#allocation17_spill] sm:$0xff] }
 0x25d   : > { %18931 = vmatmul.mubr.msk.f32.gmra.mrb[30].mxu0 %vm534_vm1, %v21853_v47  ;;  %v3198_v47 = vld [vmem:[#allocation2 + $0x172] sm:$0xff] }
 0x25e   : > { %18155 = vmatmul.mubr.msk.f32.gmra.mrb[30].mxu1 %vm534_vm1, %v3192_v49  ;;  %18933 = vmatprep.mubr.msk.f32.mxu0 %vm534_vm1, %v21856_v63  ;;  %v3199_v63 = vld [vmem:[#allocation2 + $0x17a] sm:$0xff]  ;;  %v3232_v49 = vld [vmem:[#allocation2 + $0x2c2] sm:$0xff] }
 0x25f   : > { %18157 = vmatprep.mubr.msk.f32.mxu1 %vm534_vm1, %v3193_v51  ;;  %v24689_v51 = vld [vmem:[#allocation18_spill] sm:$0xff] }
 0x261   : > { %18934 = vmatmul.mubr.msk.f32.gmra.mrb[32].mxu0 %vm534_vm1, %v21863_v3  ;;  %v3200_v3 = vld [vmem:[#allocation2 + $0x182] sm:$0xff] }
 0x262   : > { %18158 = vmatmul.mubr.msk.f32.gmra.mrb[32].mxu1 %vm534_vm1, %v3194_v53  ;;  %18936 = vmatprep.mubr.msk.f32.mxu0 %vm534_vm1, %v21866_v7  ;;  %v3201_v7 = vld [vmem:[#allocation2 + $0x192] sm:$0xff] }
 0x263   : > { %18160 = vmatprep.mubr.msk.f32.mxu1 %vm534_vm1, %v3195_v55  ;;  %v3233_v53 = vld [vmem:[#allocation2 + $0x2d2] sm:$0xff] }
 0x264   : > { %v24690_v55 = vld [vmem:[#allocation19_spill] sm:$0xff] }
 0x265   : > { %18937 = vmatmul.mubr.msk.f32.gmra.mrb[34].mxu0 %vm534_vm1, %v21873_v11  ;;  %v3202_v11 = vld [vmem:[#allocation2 + $0x19a] sm:$0xff] }
 0x266   : > { %18161 = vmatmul.mubr.msk.f32.gmra.mrb[34].mxu1 %vm534_vm1, %v3196_v57  ;;  %18939 = vmatprep.mubr.msk.f32.mxu0 %vm534_vm1, %v21876_v15  ;;  %v3203_v15 = vld [vmem:[#allocation2 + $0x1a2] sm:$0xff]  ;;  %v3234_v57 = vld [vmem:[#allocation2 + $0x2da] sm:$0xff] }
 0x267   : > { %18163 = vmatprep.mubr.msk.f32.mxu1 %vm534_vm1, %v3197_v59  ;;  %v24691_v59 = vld [vmem:[#allocation20_spill] sm:$0xff] }
 0x269   : > { %18940 = vmatmul.mubr.msk.f32.gmra.mrb[36].mxu0 %vm534_vm1, %v21883_v19  ;;  %v3204_v19 = vld [vmem:[#allocation2 + $0x1aa] sm:$0xff] }
 0x26a   : > { %18164 = vmatmul.mubr.msk.f32.gmra.mrb[36].mxu1 %vm534_vm1, %v3198_v47  ;;  %18942 = vmatprep.mubr.msk.f32.mxu0 %vm534_vm1, %v21886_v23  ;;  %v3205_v23 = vld [vmem:[#allocation2 + $0x1ba] sm:$0xff]  ;;  %v3235_v47 = vld [vmem:[#allocation2 + $0x2e2] sm:$0xff] }
 0x26b   : > { %18166 = vmatprep.mubr.msk.f32.mxu1 %vm534_vm1, %v3199_v63  ;;  %v24692_v63 = vld [vmem:[#allocation21_spill] sm:$0xff] }
 0x26d   : > { %18943 = vmatmul.mubr.msk.f32.gmra.mrb[38].mxu0 %vm534_vm1, %v21893_v27  ;;  %v3206_v27 = vld [vmem:[#allocation2 + $0x1c2] sm:$0xff] }
 0x26e   : > { %18167 = vmatmul.mubr.msk.f32.gmra.mrb[38].mxu1 %vm534_vm1, %v3200_v3  ;;  %18945 = vmatprep.mubr.msk.f32.mxu0 %vm534_vm1, %v21899_v33  ;;  %v3207_v33 = vld [vmem:[#allocation2 + $0x1ca] sm:$0xff] }
 0x26f   : > { %18169 = vmatprep.mubr.msk.f32.mxu1 %vm534_vm1, %v3201_v7  ;;  %v3236_v3 = vld [vmem:[#allocation2 + $0x2ea] sm:$0xff] }
 0x270   : > { %v24693_v7 = vld [vmem:[#allocation22_spill] sm:$0xff] }
 0x271   : > { %18946 = vmatmul.mubr.msk.f32.gmra.mrb[40].mxu0 %vm534_vm1, %v21908_v37  ;;  %v3208_v37 = vld [vmem:[#allocation2 + $0x1d2] sm:$0xff] }
 0x272   : > { %18170 = vmatmul.mubr.msk.f32.gmra.mrb[40].mxu1 %vm534_vm1, %v3202_v11  ;;  %18948 = vmatprep.mubr.msk.f32.mxu0 %vm534_vm1, %v21911_v41  ;;  %v15514_v41 = vld [vmem:[%s24545_s2 + $0xc] sm:$0xf]  ;;  %v3237_v11 = vld [vmem:[#allocation2 + $0x2fa] sm:$0xff] }
 0x273   : > { %18172 = vmatprep.mubr.msk.f32.mxu1 %vm534_vm1, %v3203_v15  ;;  %18301 = vmatprep.subr.msk.mxu1 %vm1360_vm0, %v15514_v41  ;;  %v24694_v15 = vld [vmem:[#allocation23_spill] sm:$0xff] }
 0x274   : > { %18302 = vmatpush3.msk.msra.mxu1 %vm1360_vm0, %v15514_v41  ;;  %v24697_v41 = vld [vmem:[#allocation26_spill] sm:$0xff] }
 0x275   : > { %18949 = vmatmul.mubr.msk.f32.gmra.mrb[42].mxu0 %vm534_vm1, %v21918_v45  ;;  %v3209_v45 = vld [vmem:[#allocation2 + $0x1e2] sm:$0xff] }
 0x276   : > { %18173 = vmatmul.mubr.msk.f32.gmra.mrb[42].mxu1 %vm534_vm1, %v3204_v19  ;;  %18951 = vmatprep.mubr.msk.f32.mxu0 %vm534_vm1, %v21921_v50  ;;  %v3210_v50 = vld [vmem:[#allocation2 + $0x1ea] sm:$0xff]  ;;  %v3238_v19 = vld [vmem:[#allocation2 + $0x302] sm:$0xff] }
 0x277   : > { %18175 = vmatprep.mubr.msk.f32.mxu1 %vm534_vm1, %v3205_v23  ;;  %v24695_v23 = vld [vmem:[#allocation24_spill] sm:$0xff] }
 0x279   : > { %18952 = vmatmul.mubr.msk.f32.gmra.mrb[44].mxu0 %vm534_vm1, %v21928_v54  ;;  %v3211_v54 = vld [vmem:[#allocation2 + $0x1f2] sm:$0xff] }
 0x27a   : > { %18176 = vmatmul.mubr.msk.f32.gmra.mrb[44].mxu1 %vm534_vm1, %v3206_v27  ;;  %18954 = vmatprep.mubr.msk.f32.mxu0 %vm534_vm1, %v21931_v58  ;;  %v3212_v58 = vld [vmem:[#allocation2 + $0x1fa] sm:$0xff]  ;;  %v3239_v27 = vld [vmem:[#allocation2 + $0x30a] sm:$0xff] }
 0x27b   : > { %18178 = vmatprep.mubr.msk.f32.mxu1 %vm534_vm1, %v3207_v33  ;;  %v24696_v33 = vld [vmem:[#allocation25_spill] sm:$0xff] }
 0x27d   : > { %18955 = vmatmul.mubr.msk.f32.gmra.mrb[46].mxu0 %vm534_vm1, %v21938_v61  ;;  %v3214_v61 = vld [vmem:[#allocation2 + $0x212] sm:$0xff] }
 0x27e   : > { %18179 = vmatmul.mubr.msk.f32.gmra.mrb[46].mxu1 %vm534_vm1, %v3208_v37  ;;  %18957 = vmatprep.mubr.msk.f32.mxu0 %vm534_vm1, %v21941_v5  ;;  %v3215_v5 = vld [vmem:[#allocation2 + $0x21a] sm:$0xff]  ;;  %v3240_v37 = vld [vmem:[#allocation2 + $0x312] sm:$0xff] }
 0x27f   : > { %18181 = vmatprep.mubr.msk.f32.mxu1 %vm534_vm1, %v3209_v45  ;;  %v3241_v45 = vld [vmem:[#allocation2 + $0x322] sm:$0xff] }
 0x281   : > { %18958 = vmatmul.mubr.msk.f32.gmra.mrb[48].mxu0 %vm534_vm1, %v21948_v13  ;;  %v3216_v13 = vld [vmem:[#allocation2 + $0x222] sm:$0xff] }
 0x282   : > { %18182 = vmatmul.mubr.msk.f32.gmra.mrb[48].mxu1 %vm534_vm1, %v3210_v50  ;;  %18960 = vmatprep.mubr.msk.f32.mxu0 %vm534_vm1, %v21951_v21  ;;  %v3217_v21 = vld [vmem:[#allocation2 + $0x232] sm:$0xff] }
 0x283   : > { %18184 = vmatprep.mubr.msk.f32.mxu1 %vm534_vm1, %v3211_v54  ;;  %v24698_v50 = vld [vmem:[#allocation27_spill] sm:$0xff] }
 0x284   : > { %v3242_v54 = vld [vmem:[#allocation2 + $0x32a] sm:$0xff] }
 0x285   : > { %18961 = vmatmul.mubr.msk.f32.gmra.mrb[50].mxu0 %vm534_vm1, %v21958_v29  ;;  %v24674_v29 = vld [vmem:[#allocation3_spill] sm:$0xff] }
 0x286   : > { %18185 = vmatmul.mubr.msk.f32.gmra.mrb[50].mxu1 %vm534_vm1, %v3212_v58  ;;  %18963 = vmatprep.mubr.msk.f32.mxu0 %vm534_vm1, %v21961_v35  ;;  %v3218_v35 = vld [vmem:[#allocation2 + $0x23a] sm:$0xff] }
 0x287   : > { %18187 = vmatprep.mubr.msk.f32.mxu1 %vm534_vm1, %v3213_v9  ;;  %v24699_v58 = vld [vmem:[#allocation28_spill] sm:$0xff] }
 0x288   : > { %v3243_v9 = vld [vmem:[#allocation2 + $0x332] sm:$0xff] }
 0x289   : > { %18964 = vmatmul.mubr.msk.f32.gmra.mrb[52].mxu0 %vm534_vm1, %v21968_v43  ;;  %v3219_v43 = vld [vmem:[#allocation2 + $0x242] sm:$0xff] }
 0x28a   : > { %18188 = vmatmul.mubr.msk.f32.gmra.mrb[52].mxu1 %vm534_vm1, %v3214_v61  ;;  %18966 = vmatprep.mubr.msk.f32.mxu0 %vm534_vm1, %v21971_v52  ;;  %v702_v52 = vld [vmem:[%s21520_s16 + $0x30] sm:$0xff]  ;;  %v24700_v61 = vld [vmem:[#allocation29_spill] sm:$0xff] }
 0x28b   : > { %18190 = vmatprep.mubr.msk.f32.mxu1 %vm534_vm1, %v3215_v5  ;;  %713 = vst.msk [vmem:[#allocation2 + $0x530] sm:$0xff] %vm534_vm1, %v702_v52  ;;  %v3244_v5 = vld [vmem:[#allocation2 + $0x33a] sm:$0xff]  ;;  %v3248_v52 = vld [vmem:[#allocation2 + $0x362] sm:$0xff] }
 0x28d   : > { %18967 = vmatmul.mubr.msk.f32.gmra.mrb[54].mxu0 %vm534_vm1, %v24674_v29  ;;  %v24702_v29 = vld [vmem:[#allocation31_spill] sm:$0xff] }
 0x28e   : > { %18191 = vmatmul.mubr.msk.f32.gmra.mrb[54].mxu1 %vm534_vm1, %v3216_v13  ;;  %18969 = vmatprep.mubr.msk.f32.mxu0 %vm534_vm1, %v24675_v60  ;;  %v24701_v13 = vld [vmem:[#allocation30_spill] sm:$0xff]  ;;  %v24703_v60 = vld [vmem:[#allocation32_spill] sm:$0xff] }
 0x28f   : > { %18193 = vmatprep.mubr.msk.f32.mxu1 %vm534_vm1, %v3217_v21  ;;  %v3245_v21 = vld [vmem:[#allocation2 + $0x34a] sm:$0xff] }
 0x291   : > { %18970 = vmatmul.mubr.msk.f32.gmra.mrb[56].mxu0 %vm534_vm1, %v24676_v56  ;;  %v24705_v56 = vld [vmem:[#allocation34_spill] sm:$0xff] }
 0x292   : > { %18194 = vmatmul.mubr.msk.f32.gmra.mrb[56].mxu1 %vm534_vm1, %v3218_v35  ;;  %18972 = vmatprep.mubr.msk.f32.mxu0 %vm534_vm1, %v24677_v62  ;;  %v3246_v35 = vld [vmem:[#allocation2 + $0x352] sm:$0xff] }
 0x293   : > { %18196 = vmatprep.mubr.msk.f32.mxu1 %vm534_vm1, %v3219_v43  ;;  %v3247_v43 = vld [vmem:[#allocation2 + $0x35a] sm:$0xff]  ;;  %v24706_v62 = vld [vmem:[#allocation35_spill] sm:$0xff] }
 0x295   : > { %18973 = vmatmul.mubr.msk.f32.gmra.mrb[58].mxu0 %vm534_vm1, %v24678_v4  ;;  %v24708_v4 = vld [vmem:[#allocation37_spill] sm:$0xff] }
 0x296   : > { %18197 = vmatmul.mubr.msk.f32.gmra.mrb[58].mxu1 %vm534_vm1, %v3220_v17  ;;  %18975 = vmatprep.mubr.msk.f32.mxu0 %vm534_vm1, %v24679_v8  ;;  %v3249_v17 = vld [vmem:[#allocation2 + $0x372] sm:$0xff]  ;;  %v24709_v8 = vld [vmem:[#allocation38_spill] sm:$0xff] }
 0x297   : > { %18199 = vmatprep.mubr.msk.f32.mxu1 %vm534_vm1, %v3221_v0  ;;  %v3250_v0 = vld [vmem:[#allocation2 + $0x37a] sm:$0xff] }
 0x299   : > { %18976 = vmatmul.mubr.msk.f32.gmra.mrb[60].mxu0 %vm534_vm1, %v24680_v12  ;;  %v24710_v12 = vld [vmem:[#allocation39_spill] sm:$0xff] }
 0x29a   : > { %18200 = vmatmul.mubr.msk.f32.gmra.mrb[60].mxu1 %vm534_vm1, %v3222_v6  ;;  %18978 = vmatprep.mubr.msk.f32.mxu0 %vm534_vm1, %v24681_v16  ;;  %v3252_v6 = vld [vmem:[#allocation2 + $0x38a] sm:$0xff]  ;;  %v24711_v16 = vld [vmem:[#allocation40_spill] sm:$0xff] }
 0x29b   : > { %18202 = vmatprep.mubr.msk.f32.mxu1 %vm534_vm1, %v3223_v10  ;;  %v3253_v10 = vld [vmem:[#allocation2 + $0x39a] sm:$0xff] }
 0x29d   : > { %18979 = vmatmul.mubr.msk.f32.gmra.mrb[62].mxu0 %vm534_vm1, %v24682_v20  ;;  %v24712_v20 = vld [vmem:[#allocation41_spill] sm:$0xff] }
 0x29e   : > { %18203 = vmatmul.mubr.msk.f32.gmra.mrb[62].mxu1 %vm534_vm1, %v3224_v14  ;;  %18981 = vmatprep.mubr.msk.f32.mxu0 %vm534_vm1, %v24683_v24  ;;  %v3254_v14 = vld [vmem:[#allocation2 + $0x3a2] sm:$0xff] }
 0x29f   : > { %18205 = vmatprep.mubr.msk.f32.mxu1 %vm534_vm1, %v3225_v18  ;;  %v3255_v18 = vld [vmem:[#allocation2 + $0x3aa] sm:$0xff] }
 0x2a0   : > { %v24713_v24 = vld [vmem:[#allocation42_spill] sm:$0xff] }
 0x2a1   : > { %18982 = vmatmul.mubr.msk.f32.gmra.mrb[64].mxu0 %vm534_vm1, %v24684_v30  ;;  %v24714_v30 = vld [vmem:[#allocation43_spill] sm:$0xff] }
 0x2a2   : > { %18206 = vmatmul.mubr.msk.f32.gmra.mrb[64].mxu1 %vm534_vm1, %v3226_v22  ;;  %18984 = vmatprep.mubr.msk.f32.mxu0 %vm534_vm1, %v24685_v34  ;;  %v3256_v22 = vld [vmem:[#allocation2 + $0x3b2] sm:$0xff] }
 0x2a3   : > { %18208 = vmatprep.mubr.msk.f32.mxu1 %vm534_vm1, %v3227_v26  ;;  %v3257_v26 = vld [vmem:[#allocation2 + $0x3c2] sm:$0xff]  ;;  %v24715_v34 = vld [vmem:[#allocation44_spill] sm:$0xff] }
 0x2a5   : > { %18985 = vmatmul.mubr.msk.f32.gmra.mrb[66].mxu0 %vm534_vm1, %v24686_v38  ;;  %v24716_v38 = vld [vmem:[#allocation45_spill] sm:$0xff] }
 0x2a6   : > { %18209 = vmatmul.mubr.msk.f32.gmra.mrb[66].mxu1 %vm534_vm1, %v3228_v32  ;;  %18987 = vmatprep.mubr.msk.f32.mxu0 %vm534_vm1, %v24687_v42  ;;  %v3258_v32 = vld [vmem:[#allocation2 + $0x3ca] sm:$0xff] }
 0x2a7   : > { %18211 = vmatprep.mubr.msk.f32.mxu1 %vm534_vm1, %v3229_v36  ;;  %v3259_v36 = vld [vmem:[#allocation2 + $0x3d2] sm:$0xff]  ;;  %v24717_v42 = vld [vmem:[#allocation46_spill] sm:$0xff] }
 0x2a9   : > { %18988 = vmatmul.mubr.msk.f32.gmra.mrb[68].mxu0 %vm534_vm1, %v24688_v46  ;;  %v24718_v46 = vld [vmem:[#allocation47_spill] sm:$0xff] }
 0x2aa   : > { %18212 = vmatmul.mubr.msk.f32.gmra.mrb[68].mxu1 %vm534_vm1, %v3230_v40  ;;  %18990 = vmatprep.mubr.msk.f32.mxu0 %vm534_vm1, %v24689_v51  ;;  %v3260_v40 = vld [vmem:[#allocation2 + $0x3da] sm:$0xff] }
 0x2ab   : > { %18214 = vmatprep.mubr.msk.f32.mxu1 %vm534_vm1, %v3231_v44  ;;  %v3261_v44 = vld [vmem:[#allocation2 + $0x3ea] sm:$0xff]  ;;  %v24719_v51 = vld [vmem:[#allocation48_spill] sm:$0xff] }
 0x2ad   : > { %18991 = vmatmul.mubr.msk.f32.gmra.mrb[70].mxu0 %vm534_vm1, %v24690_v55  ;;  %v24720_v55 = vld [vmem:[#allocation49_spill] sm:$0xff] }
 0x2ae   : > { %18215 = vmatmul.mubr.msk.f32.gmra.mrb[70].mxu1 %vm534_vm1, %v3232_v49  ;;  %18993 = vmatprep.mubr.msk.f32.mxu0 %vm534_vm1, %v24691_v59  ;;  %v3262_v49 = vld [vmem:[#allocation2 + $0x3f2] sm:$0xff]  ;;  %v24721_v59 = vld [vmem:[#allocation50_spill] sm:$0xff] }
 0x2af   : > { %18217 = vmatprep.mubr.msk.f32.mxu1 %vm534_vm1, %v3233_v53  ;;  %v3263_v53 = vld [vmem:[#allocation2 + $0x3fa] sm:$0xff] }
 0x2b1   : > { %18994 = vmatmul.mubr.msk.f32.gmra.mrb[72].mxu0 %vm534_vm1, %v24692_v63  ;;  %v24722_v63 = vld [vmem:[#allocation51_spill] sm:$0xff] }
 0x2b2   : > { %18218 = vmatmul.mubr.msk.f32.gmra.mrb[72].mxu1 %vm534_vm1, %v3234_v57  ;;  %18996 = vmatprep.mubr.msk.f32.mxu0 %vm534_vm1, %v24693_v7  ;;  %v3264_v57 = vld [vmem:[#allocation2 + $0x402] sm:$0xff]  ;;  %v24723_v7 = vld [vmem:[#allocation52_spill] sm:$0xff] }
 0x2b3   : > { %18220 = vmatprep.mubr.msk.f32.mxu1 %vm534_vm1, %v3235_v47  ;;  %v3265_v47 = vld [vmem:[#allocation2 + $0x412] sm:$0xff] }
 0x2b5   : > { %18997 = vmatmul.mubr.msk.f32.gmra.mrb[74].mxu0 %vm534_vm1, %v24694_v15  ;;  %v24724_v15 = vld [vmem:[#allocation53_spill] sm:$0xff] }
 0x2b6   : > { %18221 = vmatmul.mubr.msk.f32.gmra.mrb[74].mxu1 %vm534_vm1, %v3236_v3  ;;  %18999 = vmatprep.mubr.msk.f32.mxu0 %vm534_vm1, %v24695_v23  ;;  %v3266_v3 = vld [vmem:[#allocation2 + $0x41a] sm:$0xff]  ;;  %v24725_v23 = vld [vmem:[#allocation54_spill] sm:$0xff] }
 0x2b7   : > { %18223 = vmatprep.mubr.msk.f32.mxu1 %vm534_vm1, %v3237_v11  ;;  %v3267_v11 = vld [vmem:[#allocation2 + $0x422] sm:$0xff] }
 0x2b9   : > { %19000 = vmatmul.mubr.msk.f32.gmra.mrb[76].mxu0 %vm534_vm1, %v24696_v33  ;;  %v24726_v33 = vld [vmem:[#allocation55_spill] sm:$0xff] }
 0x2ba   : > { %18224 = vmatmul.mubr.msk.f32.gmra.mrb[76].mxu1 %vm534_vm1, %v3238_v19  ;;  %19002 = vmatprep.mubr.msk.f32.mxu0 %vm534_vm1, %v24697_v41  ;;  %v3268_v19 = vld [vmem:[#allocation2 + $0x42a] sm:$0xff]  ;;  %v24727_v41 = vld [vmem:[#allocation56_spill] sm:$0xff] }
 0x2bb   : > { %18226 = vmatprep.mubr.msk.f32.mxu1 %vm534_vm1, %v3239_v27  ;;  %v3269_v27 = vld [vmem:[#allocation2 + $0x43a] sm:$0xff] }
 0x2bd   : > { %19003 = vmatmul.mubr.msk.f32.gmra.mrb[78].mxu0 %vm534_vm1, %v24698_v50  ;;  %v24728_v50 = vld [vmem:[#allocation57_spill] sm:$0xff] }
 0x2be   : > { %18227 = vmatmul.mubr.msk.f32.gmra.mrb[78].mxu1 %vm534_vm1, %v3240_v37  ;;  %19005 = vmatprep.mubr.msk.f32.mxu0 %vm534_vm1, %v24699_v58  ;;  %v3270_v37 = vld [vmem:[#allocation2 + $0x442] sm:$0xff] }
 0x2bf   : > { %18229 = vmatprep.mubr.msk.f32.mxu1 %vm534_vm1, %v3241_v45  ;;  %v3271_v45 = vld [vmem:[#allocation2 + $0x44a] sm:$0xff] }
 0x2c0   : > { %v24729_v58 = vld [vmem:[#allocation58_spill] sm:$0xff] }
 0x2c1   : > { %19006 = vmatmul.mubr.msk.f32.gmra.mrb[80].mxu0 %vm534_vm1, %v24700_v61  ;;  %v24730_v61 = vld [vmem:[#allocation59_spill] sm:$0xff] }
 0x2c2   : > { %18230 = vmatmul.mubr.msk.f32.gmra.mrb[80].mxu1 %vm534_vm1, %v3242_v54  ;;  %19008 = vmatprep.mubr.msk.f32.mxu0 %vm534_vm1, %v24701_v13  ;;  %v3272_v54 = vld [vmem:[#allocation2 + $0x452] sm:$0xff] }
 0x2c3   : > { %18232 = vmatprep.mubr.msk.f32.mxu1 %vm534_vm1, %v3243_v9  ;;  %v3273_v9 = vld [vmem:[#allocation2 + $0x462] sm:$0xff]  ;;  %v24731_v13 = vld [vmem:[#allocation60_spill] sm:$0xff] }
 0x2c5   : > { %19009 = vmatmul.mubr.msk.f32.gmra.mrb[82].mxu0 %vm534_vm1, %v24702_v29  ;;  %v24732_v29 = vld [vmem:[#allocation61_spill] sm:$0xff] }
 0x2c6   : > { %18233 = vmatmul.mubr.msk.f32.gmra.mrb[82].mxu1 %vm534_vm1, %v3244_v5  ;;  %19011 = vmatprep.mubr.msk.f32.mxu0 %vm534_vm1, %v24703_v60  ;;  %v3274_v5 = vld [vmem:[#allocation2 + $0x46a] sm:$0xff] }
 0x2c7   : > { %18235 = vmatprep.mubr.msk.f32.mxu1 %vm534_vm1, %v3245_v21  ;;  %v3275_v21 = vld [vmem:[#allocation2 + $0x472] sm:$0xff]  ;;  %v24733_v60 = vld [vmem:[#allocation62_spill] sm:$0xff] }
 0x2c9   : > { %19012 = vmatmul.mubr.msk.f32.gmra.mrb[84].mxu0 %vm534_vm1, %v24704_v31  ;;  %v24734_v31 = vld [vmem:[#allocation63_spill] sm:$0xff] }
 0x2ca   : > { %18236 = vmatmul.mubr.msk.f32.gmra.mrb[84].mxu1 %vm534_vm1, %v3246_v35  ;;  %19014 = vmatprep.mubr.msk.f32.mxu0 %vm534_vm1, %v24705_v56  ;;  %v3276_v35 = vld [vmem:[#allocation2 + $0x47a] sm:$0xff] }
 0x2cb   : > { %18238 = vmatprep.mubr.msk.f32.mxu1 %vm534_vm1, %v3247_v43  ;;  %v3277_v43 = vld [vmem:[#allocation2 + $0x48a] sm:$0xff]  ;;  %v24735_v56 = vld [vmem:[#allocation64_spill] sm:$0xff] }
 0x2cd   : > { %19015 = vmatmul.mubr.msk.f32.gmra.mrb[86].mxu0 %vm534_vm1, %v24706_v62  ;;  %v3280_v62 = vld [vmem:[#allocation2 + $0x4a2] sm:$0xff] }
 0x2ce   : > { %18239 = vmatmul.mubr.msk.f32.gmra.mrb[86].mxu1 %vm534_vm1, %v3248_v52  ;;  %19017 = vmatprep.mubr.msk.f32.mxu0 %vm534_vm1, %v24707_v2  ;;  %v3278_v52 = vld [vmem:[#allocation2 + $0x492] sm:$0xff]  ;;  %v8683_v2 = vld [vmem:[#allocation2 + $0x500] sm:$0xff] }
 0x2cf   : > { %18241 = vmatprep.mubr.msk.f32.mxu1 %vm534_vm1, %v3249_v17  ;;  %v3279_v17 = vld [vmem:[#allocation2 + $0x49a] sm:$0xff] }
 0x2d1   : > { %19018 = vmatmul.mubr.msk.f32.gmra.mrb[88].mxu0 %vm534_vm1, %v24708_v4  ;;  %v8684_v4 = vld [vmem:[#allocation2 + $0x508] sm:$0xff] }
 0x2d2   : > { %18242 = vmatmul.mubr.msk.f32.gmra.mrb[88].mxu1 %vm534_vm1, %v3250_v0  ;;  %19020 = vmatprep.mubr.msk.f32.mxu0 %vm534_vm1, %v24709_v8  ;;  %v3281_v0 = vld [vmem:[#allocation2 + $0x4b2] sm:$0xff] }
 0x2d3   : > { %18244 = vmatprep.mubr.msk.f32.mxu1 %vm534_vm1, %v3251_v48  ;;  %v3282_v48 = vld [vmem:[#allocation2 + $0x4ba] sm:$0xff] }
 0x2d4   : > { %v8686_v8 = vld [vmem:[#allocation2 + $0x518] sm:$0xff] }
 0x2d5   : > { %19021 = vmatmul.mubr.msk.f32.gmra.mrb[90].mxu0 %vm534_vm1, %v24710_v12  ;;  %v3286_v12 = vld [vmem:[#allocation2 + $0x4e2] sm:$0xff] }
 0x2d6   : > { %18245 = vmatmul.mubr.msk.f32.gmra.mrb[90].mxu1 %vm534_vm1, %v3252_v6  ;;  %19023 = vmatprep.mubr.msk.f32.mxu0 %vm534_vm1, %v24711_v16  ;;  %v8685_v6 = vld [vmem:[#allocation2 + $0x510] sm:$0xff] }
 0x2d7   : > { %18247 = vmatprep.mubr.msk.f32.mxu1 %vm534_vm1, %v3253_v10  ;;  %v3285_v10 = vld [vmem:[#allocation2 + $0x4da] sm:$0xff]  ;;  %v3287_v16 = vld [vmem:[#allocation2 + $0x4ea] sm:$0xff] }
 0x2d9   : > { %19024 = vmatmul.mubr.msk.f32.gmra.mrb[92].mxu0 %vm534_vm1, %v24712_v20  ;;  %v3288_v20 = vld [vmem:[#allocation2 + $0x4f2] sm:$0xff] }
 0x2da   : > { %18248 = vmatmul.mubr.msk.f32.gmra.mrb[92].mxu1 %vm534_vm1, %v3254_v14  ;;  %19026 = vmatprep.mubr.msk.f32.mxu0 %vm534_vm1, %v24713_v24  ;;  %v8688_v14 = vld [vmem:[#allocation2 + $0x530] sm:$0xff]  ;;  %v4512_v24 = vld [vmem:[#allocation2 + $0x28] sm:$0xff] }
 0x2db   : > { %18250 = vmatprep.mubr.msk.f32.mxu1 %vm534_vm1, %v3255_v18  ;;  %v8689_v18 = vld [vmem:[#allocation2 + $0x538] sm:$0xff] }
 0x2dd   : > { %19027 = vmatmul.mubr.msk.f32.gmra.mrb[94].mxu0 %vm534_vm1, %v24714_v30  ;;  %v4513_v30 = vld [vmem:[#allocation2 + $0x30] sm:$0xff] }
 0x2de   : > { %18251 = vmatmul.mubr.msk.f32.gmra.mrb[94].mxu1 %vm534_vm1, %v3256_v22  ;;  %19029 = vmatprep.mubr.msk.f32.mxu0 %vm534_vm1, %v24715_v34  ;;  %v8690_v22 = vld [vmem:[#allocation2 + $0x540] sm:$0xff]  ;;  %v4514_v34 = vld [vmem:[#allocation2 + $0x38] sm:$0xff] }
 0x2df   : > { %18253 = vmatprep.mubr.msk.f32.mxu1 %vm534_vm1, %v3257_v26  ;;  %v9913_v26 = vld [vmem:[#allocation2 + $0x51] sm:$0xff] }
 0x2e1   : > { %19030 = vmatmul.mubr.msk.f32.gmra.mrb[96].mxu0 %vm534_vm1, %v24716_v38  ;;  %v4515_v38 = vld [vmem:[#allocation2 + $0x40] sm:$0xff] }
 0x2e2   : > { %18254 = vmatmul.mubr.msk.f32.gmra.mrb[96].mxu1 %vm534_vm1, %v3258_v32  ;;  %19032 = vmatprep.mubr.msk.f32.mxu0 %vm534_vm1, %v24717_v42  ;;  %v9914_v32 = vld [vmem:[#allocation2 + $0x59] sm:$0xff]  ;;  %v4516_v42 = vld [vmem:[#allocation2 + $0x50] sm:$0xff] }
 0x2e3   : > { %18256 = vmatprep.mubr.msk.f32.mxu1 %vm534_vm1, %v3259_v36  ;;  %v9915_v36 = vld [vmem:[#allocation2 + $0x61] sm:$0xff] }
 0x2e5   : > { %19033 = vmatmul.mubr.msk.f32.gmra.mrb[98].mxu0 %vm534_vm1, %v24718_v46  ;;  %v4517_v46 = vld [vmem:[#allocation2 + $0x58] sm:$0xff] }
 0x2e6   : > { %18257 = vmatmul.mubr.msk.f32.gmra.mrb[98].mxu1 %vm534_vm1, %v3260_v40  ;;  %19035 = vmatprep.mubr.msk.f32.mxu0 %vm534_vm1, %v24719_v51  ;;  %v9916_v40 = vld [vmem:[#allocation2 + $0x69] sm:$0xff]  ;;  %v4518_v51 = vld [vmem:[#allocation2 + $0x60] sm:$0xff] }
 0x2e7   : > { %18259 = vmatprep.mubr.msk.f32.mxu1 %vm534_vm1, %v3261_v44  ;;  %v9917_v44 = vld [vmem:[#allocation2 + $0x79] sm:$0xff] }
 0x2e9   : > { %19036 = vmatmul.mubr.msk.f32.gmra.mrb[100].mxu0 %vm534_vm1, %v24720_v55  ;;  %v9920_v55 = vld [vmem:[#allocation2 + $0x91] sm:$0xff] }
 0x2ea   : > { %18260 = vmatmul.mubr.msk.f32.gmra.mrb[100].mxu1 %vm534_vm1, %v3262_v49  ;;  %19038 = vmatprep.mubr.msk.f32.mxu0 %vm534_vm1, %v24721_v59  ;;  %v9918_v49 = vld [vmem:[#allocation2 + $0x81] sm:$0xff] }
 0x2eb   : > { %18262 = vmatprep.mubr.msk.f32.mxu1 %vm534_vm1, %v3263_v53  ;;  %v9919_v53 = vld [vmem:[#allocation2 + $0x89] sm:$0xff]  ;;  %v9921_v59 = vld [vmem:[#allocation2 + $0xa1] sm:$0xff] }
 0x2ed   : > { %19039 = vmatmul.mubr.msk.f32.gmra.mrb[102].mxu0 %vm534_vm1, %v24722_v63  ;;  %v9922_v63 = vld [vmem:[#allocation2 + $0xa9] sm:$0xff] }
 0x2ee   : > { %18263 = vmatmul.mubr.msk.f32.gmra.mrb[102].mxu1 %vm534_vm1, %v3264_v57  ;;  %19041 = vmatprep.mubr.msk.f32.mxu0 %vm534_vm1, %v24723_v7  ;;  %v4520_v57 = vld [vmem:[#allocation2 + $0x78] sm:$0xff] }
 0x2ef   : > { %18265 = vmatprep.mubr.msk.f32.mxu1 %vm534_vm1, %v3265_v47  ;;  %v4521_v47 = vld [vmem:[#allocation2 + $0x80] sm:$0xff]  ;;  %v9923_v7 = vld [vmem:[#allocation2 + $0xb1] sm:$0xff] }
 0x2f1   : > { %19042 = vmatmul.mubr.msk.f32.gmra.mrb[104].mxu0 %vm534_vm1, %v24724_v15  ;;  %v9924_v15 = vld [vmem:[#allocation2 + $0xb9] sm:$0xff] }
 0x2f2   : > { %18266 = vmatmul.mubr.msk.f32.gmra.mrb[104].mxu1 %vm534_vm1, %v3266_v3  ;;  %19044 = vmatprep.mubr.msk.f32.mxu0 %vm534_vm1, %v24725_v23  ;;  %v4522_v3 = vld [vmem:[#allocation2 + $0x88] sm:$0xff] }
 0x2f3   : > { %18268 = vmatprep.mubr.msk.f32.mxu1 %vm534_vm1, %v3267_v11  ;;  %v4523_v11 = vld [vmem:[#allocation2 + $0x90] sm:$0xff] }
 0x2f4   : > { %v9925_v23 = vld [vmem:[#allocation2 + $0xc9] sm:$0xff] }
 0x2f5   : > { %19045 = vmatmul.mubr.msk.f32.gmra.mrb[106].mxu0 %vm534_vm1, %v24726_v33  ;;  %v9926_v33 = vld [vmem:[#allocation2 + $0xd1] sm:$0xff] }
 0x2f6   : > { %18269 = vmatmul.mubr.msk.f32.gmra.mrb[106].mxu1 %vm534_vm1, %v3268_v19  ;;  %19047 = vmatprep.mubr.msk.f32.mxu0 %vm534_vm1, %v24727_v41  ;;  %v4524_v19 = vld [vmem:[#allocation2 + $0xa0] sm:$0xff] }
 0x2f7   : > { %18271 = vmatprep.mubr.msk.f32.mxu1 %vm534_vm1, %v3269_v27  ;;  %v4525_v27 = vld [vmem:[#allocation2 + $0xa8] sm:$0xff]  ;;  %v9927_v41 = vld [vmem:[#allocation2 + $0xd9] sm:$0xff] }
 0x2f9   : > { %19048 = vmatmul.mubr.msk.f32.gmra.mrb[108].mxu0 %vm534_vm1, %v24728_v50  ;;  %v9928_v50 = vld [vmem:[#allocation2 + $0xe1] sm:$0xff] }
 0x2fa   : > { %18272 = vmatmul.mubr.msk.f32.gmra.mrb[108].mxu1 %vm534_vm1, %v3270_v37  ;;  %19050 = vmatprep.mubr.msk.f32.mxu0 %vm534_vm1, %v24729_v58  ;;  %v4526_v37 = vld [vmem:[#allocation2 + $0xb0] sm:$0xff] }
 0x2fb   : > { %18274 = vmatprep.mubr.msk.f32.mxu1 %vm534_vm1, %v3271_v45  ;;  %v4527_v45 = vld [vmem:[#allocation2 + $0xb8] sm:$0xff] }
 0x2fc   : > { %v9929_v58 = vld [vmem:[#allocation2 + $0xf1] sm:$0xff] }
 0x2fd   : > { %19051 = vmatmul.mubr.msk.f32.gmra.mrb[110].mxu0 %vm534_vm1, %v24730_v61  ;;  %v9930_v61 = vld [vmem:[#allocation2 + $0xf9] sm:$0xff] }
 0x2fe   : > { %18275 = vmatmul.mubr.msk.f32.gmra.mrb[110].mxu1 %vm534_vm1, %v3272_v54  ;;  %19053 = vmatprep.mubr.msk.f32.mxu0 %vm534_vm1, %v24731_v13  ;;  %v4528_v54 = vld [vmem:[#allocation2 + $0xc8] sm:$0xff] }
 0x2ff   : > { %18277 = vmatprep.mubr.msk.f32.mxu1 %vm534_vm1, %v3273_v9  ;;  %v4529_v9 = vld [vmem:[#allocation2 + $0xd0] sm:$0xff]  ;;  %v9931_v13 = vld [vmem:[#allocation2 + $0x101] sm:$0xff] }
 0x301   : > { %19054 = vmatmul.mubr.msk.f32.gmra.mrb[112].mxu0 %vm534_vm1, %v24732_v29  ;;  %v9932_v29 = vld [vmem:[#allocation2 + $0x109] sm:$0xff] }
 0x302   : > { %18278 = vmatmul.mubr.msk.f32.gmra.mrb[112].mxu1 %vm534_vm1, %v3274_v5  ;;  %19056 = vmatprep.mubr.msk.f32.mxu0 %vm534_vm1, %v24733_v60  ;;  %v4530_v5 = vld [vmem:[#allocation2 + $0xd8] sm:$0xff] }
 0x303   : > { %18280 = vmatprep.mubr.msk.f32.mxu1 %vm534_vm1, %v3275_v21  ;;  %v4531_v21 = vld [vmem:[#allocation2 + $0xe0] sm:$0xff] }
 0x304   : > { %v9933_v60 = vld [vmem:[#allocation2 + $0x119] sm:$0xff] }
 0x305   : > { %19057 = vmatmul.mubr.msk.f32.gmra.mrb[114].mxu0 %vm534_vm1, %v24734_v31  ;;  %v9934_v31 = vld [vmem:[#allocation2 + $0x121] sm:$0xff] }
 0x306   : > { %18281 = vmatmul.mubr.msk.f32.gmra.mrb[114].mxu1 %vm534_vm1, %v3276_v35  ;;  %19059 = vmatprep.mubr.msk.f32.mxu0 %vm534_vm1, %v24735_v56  ;;  %v4532_v35 = vld [vmem:[#allocation2 + $0xf0] sm:$0xff] }
 0x307   : > { %18283 = vmatprep.mubr.msk.f32.mxu1 %vm534_vm1, %v3277_v43  ;;  %v4533_v43 = vld [vmem:[#allocation2 + $0xf8] sm:$0xff]  ;;  %v9935_v56 = vld [vmem:[#allocation2 + $0x129] sm:$0xff] }
 0x309   : > { %19060 = vmatmul.mubr.msk.f32.gmra.mrb[116].mxu0 %vm534_vm1, %v22295_v25  ;;  %v3283_v25 = vld [vmem:[#allocation2 + $0x4c2] sm:$0xff] }
 0x30a   : > { %18284 = vmatmul.mubr.msk.f32.gmra.mrb[116].mxu1 %vm534_vm1, %v3278_v52  ;;  %19062 = vmatprep.mubr.msk.f32.mxu0 %vm534_vm1, %v22298_v39  ;;  %v3284_v39 = vld [vmem:[#allocation2 + $0x4ca] sm:$0xff]  ;;  %v4534_v52 = vld [vmem:[#allocation2 + $0x100] sm:$0xff] }
 0x30b   : > { %18286 = vmatprep.mubr.msk.f32.mxu1 %vm534_vm1, %v3279_v17  ;;  %v4535_v17 = vld [vmem:[#allocation2 + $0x108] sm:$0xff] }
 0x30d   : > { %19063 = vmatmul.mubr.msk.f32.gmra.mrb[118].mxu0 %vm534_vm1, %v22305_v1  ;;  %v8687_v1 = vld [vmem:[#allocation2 + $0x528] sm:$0xff] }
 0x30e   : > { %18287 = vmatmul.mubr.msk.f32.gmra.mrb[118].mxu1 %vm534_vm1, %v3280_v62  ;;  %19065 = vmatprep.mubr.msk.f32.mxu0 %vm534_vm1, %v8683_v2  ;;  %v9936_v62 = vld [vmem:[#allocation2 + $0x131] sm:$0xff]  ;;  %v9937_v2 = vld [vmem:[#allocation2 + $0x141] sm:$0xff] }
 0x30f   : > { %18289 = vmatprep.mubr.msk.f32.mxu1 %vm534_vm1, %v3281_v0  ;;  %v4536_v0 = vld [vmem:[#allocation2 + $0x118] sm:$0xff] }
 0x311   : > { %19066 = vmatmul.mubr.msk.f32.gmra.mrb[120].mxu0 %vm534_vm1, %v8684_v4  ;;  %v9938_v4 = vld [vmem:[#allocation2 + $0x149] sm:$0xff] }
 0x312   : > { %18290 = vmatmul.mubr.msk.f32.gmra.mrb[120].mxu1 %vm534_vm1, %v3282_v48  ;;  %19068 = vmatprep.mubr.msk.f32.mxu0 %vm534_vm1, %v8685_v6  ;;  %v4537_v48 = vld [vmem:[#allocation2 + $0x120] sm:$0xff]  ;;  %v9939_v6 = vld [vmem:[#allocation2 + $0x151] sm:$0xff] }
 0x313   : > { %18292 = vmatprep.mubr.msk.f32.mxu1 %vm534_vm1, %v3283_v25  ;;  %v4538_v25 = vld [vmem:[#allocation2 + $0x128] sm:$0xff] }
 0x315   : > { %19069 = vmatmul.mubr.msk.f32.gmra.mrb[122].mxu0 %vm534_vm1, %v8686_v8  ;;  %v9940_v8 = vld [vmem:[#allocation2 + $0x159] sm:$0xff] }
 0x316   : > { %18293 = vmatmul.mubr.msk.f32.gmra.mrb[122].mxu1 %vm534_vm1, %v3284_v39  ;;  %19071 = vmatprep.mubr.msk.f32.mxu0 %vm534_vm1, %v8687_v1  ;;  %v4539_v39 = vld [vmem:[#allocation2 + $0x130] sm:$0xff] }
 0x317   : > { %18295 = vmatprep.mubr.msk.f32.mxu1 %vm534_vm1, %v3285_v10  ;;  %v4540_v10 = vld [vmem:[#allocation2 + $0x140] sm:$0xff]  ;;  %v9941_v1 = vld [vmem:[#allocation2 + $0x169] sm:$0xff] }
 0x319   : > { %19072 = vmatmul.mubr.msk.f32.gmra.mrb[124].mxu0 %vm534_vm1, %v8688_v14  ;;  %v9942_v14 = vld [vmem:[#allocation2 + $0x171] sm:$0xff] }
 0x31a   : > { %18296 = vmatmul.mubr.msk.f32.gmra.mrb[124].mxu1 %vm534_vm1, %v3286_v12  ;;  %19074 = vmatprep.mubr.msk.f32.mxu0 %vm534_vm1, %v8689_v18  ;;  %v4541_v12 = vld [vmem:[#allocation2 + $0x148] sm:$0xff]  ;;  %v9943_v18 = vld [vmem:[#allocation2 + $0x179] sm:$0xff] }
 0x31b   : > { %18298 = vmatprep.mubr.msk.f32.mxu1 %vm534_vm1, %v3287_v16  ;;  %v4542_v16 = vld [vmem:[#allocation2 + $0x150] sm:$0xff] }
 0x31d   : > { %19075 = vmatmul.mubr.msk.f32.gmra.mrb[126].mxu0 %vm534_vm1, %v8690_v22  ;;  %v9944_v22 = vld [vmem:[#allocation2 + $0x181] sm:$0xff] }
 0x31e   : > { %18299 = vmatmul.mubr.msk.f32.gmra.mrb[126].mxu1 %vm534_vm1, %v3288_v20  ;;  %19079 = vmatprep.mubr.msk.f32.mxu0 %vm534_vm1, %v9913_v26  ;;  %v4543_v20 = vld [vmem:[#allocation2 + $0x158] sm:$0xff] }
 0x31f   : > { %18303 = vmatprep.mubr.msk.f32.mxu1 %vm534_vm1, %v4512_v24  ;;  %v4544_v24 = vld [vmem:[#allocation2 + $0x168] sm:$0xff]  ;;  %v9945_v26 = vld [vmem:[#allocation2 + $0x191] sm:$0xff] }
 0x321   : > { %19080 = vmatmul.mubr.msk.f32.vlgmr.msra.gmra.mrb[0].mxu0 %vm534_vm1, %v9914_v32  ;;  %v9946_v32 = vld [vmem:[#allocation2 + $0x199] sm:$0xff] }
 0x322   : > { %18304 = vmatmul.mubr.msk.f32.vlgmr.msra.gmra.mrb[0].mxu1 %vm534_vm1, %v4513_v30  ;;  %19272 = vmatpush3.msk.msra.mxu0 %vm1360_vm0, %v22524_v28  ;;  %v4519_v28 = vld [vmem:[#allocation2 + $0x68] sm:$0xff]  ;;  %v4545_v30 = vld [vmem:[#allocation2 + $0x170] sm:$0xff] }
 0x323   : > { %18306 = vmatprep.mubr.msk.f32.mxu1 %vm534_vm1, %v4514_v34  ;;  %19082 = vmatprep.mubr.msk.f32.mxu0 %vm534_vm1, %v9915_v36  ;;  %v4546_v34 = vld [vmem:[#allocation2 + $0x178] sm:$0xff]  ;;  %v9947_v36 = vld [vmem:[#allocation2 + $0x1a1] sm:$0xff] }
 0x325   : > { %19083 = vmatmul.mubr.msk.f32.gmra.mrb[2].mxu0 %vm534_vm1, %v9916_v40  ;;  %v9948_v40 = vld [vmem:[#allocation2 + $0x1a9] sm:$0xff] }
 0x326   : > { %18307 = vmatmul.mubr.msk.f32.gmra.mrb[2].mxu1 %vm534_vm1, %v4515_v38  ;;  %19085 = vmatprep.mubr.msk.f32.mxu0 %vm534_vm1, %v9917_v44  ;;  %v4547_v38 = vld [vmem:[#allocation2 + $0x180] sm:$0xff] }
 0x327   : > { %18309 = vmatprep.mubr.msk.f32.mxu1 %vm534_vm1, %v4516_v42  ;;  %v4548_v42 = vld [vmem:[#allocation2 + $0x190] sm:$0xff]  ;;  %v9949_v44 = vld [vmem:[#allocation2 + $0x1b9] sm:$0xff] }
 0x329   : > { %19086 = vmatmul.mubr.msk.f32.gmra.mrb[4].mxu0 %vm534_vm1, %v9918_v49  ;;  %v9950_v49 = vld [vmem:[#allocation2 + $0x1c1] sm:$0xff] }
 0x32a   : > { %18310 = vmatmul.mubr.msk.f32.gmra.mrb[4].mxu1 %vm534_vm1, %v4517_v46  ;;  %19088 = vmatprep.mubr.msk.f32.mxu0 %vm534_vm1, %v9919_v53  ;;  %v4549_v46 = vld [vmem:[#allocation2 + $0x198] sm:$0xff]  ;;  %v9951_v53 = vld [vmem:[#allocation2 + $0x1c9] sm:$0xff] }
 0x32b   : > { %18312 = vmatprep.mubr.msk.f32.mxu1 %vm534_vm1, %v4518_v51  ;;  %v4550_v51 = vld [vmem:[#allocation2 + $0x1a0] sm:$0xff] }
 0x32d   : > { %19089 = vmatmul.mubr.msk.f32.gmra.mrb[6].mxu0 %vm534_vm1, %v9920_v55  ;;  %v9952_v55 = vld [vmem:[#allocation2 + $0x1d1] sm:$0xff] }
 0x32e   : > { %18313 = vmatmul.mubr.msk.f32.gmra.mrb[6].mxu1 %vm534_vm1, %v4519_v28  ;;  %19091 = vmatprep.mubr.msk.f32.mxu0 %vm534_vm1, %v9921_v59  ;;  %v4551_v28 = vld [vmem:[#allocation2 + $0x1a8] sm:$0xff] }
 0x32f   : > { %18315 = vmatprep.mubr.msk.f32.mxu1 %vm534_vm1, %v4520_v57  ;;  %v4552_v57 = vld [vmem:[#allocation2 + $0x1b8] sm:$0xff]  ;;  %v9953_v59 = vld [vmem:[#allocation2 + $0x1e1] sm:$0xff] }
 0x331   : > { %19092 = vmatmul.mubr.msk.f32.gmra.mrb[8].mxu0 %vm534_vm1, %v9922_v63  ;;  %v9954_v63 = vld [vmem:[#allocation2 + $0x1e9] sm:$0xff] }
 0x332   : > { %18316 = vmatmul.mubr.msk.f32.gmra.mrb[8].mxu1 %vm534_vm1, %v4521_v47  ;;  %19094 = vmatprep.mubr.msk.f32.mxu0 %vm534_vm1, %v9923_v7  ;;  %v4553_v47 = vld [vmem:[#allocation2 + $0x1c0] sm:$0xff]  ;;  %v9955_v7 = vld [vmem:[#allocation2 + $0x1f1] sm:$0xff] }
 0x333   : > { %18318 = vmatprep.mubr.msk.f32.mxu1 %vm534_vm1, %v4522_v3  ;;  %v4554_v3 = vld [vmem:[#allocation2 + $0x1c8] sm:$0xff] }
 0x335   : > { %19095 = vmatmul.mubr.msk.f32.gmra.mrb[10].mxu0 %vm534_vm1, %v9924_v15  ;;  %v9956_v15 = vld [vmem:[#allocation2 + $0x1f9] sm:$0xff] }
 0x336   : > { %18319 = vmatmul.mubr.msk.f32.gmra.mrb[10].mxu1 %vm534_vm1, %v4523_v11  ;;  %19097 = vmatprep.mubr.msk.f32.mxu0 %vm534_vm1, %v9925_v23  ;;  %v4555_v11 = vld [vmem:[#allocation2 + $0x1d0] sm:$0xff] }
 0x337   : > { %18321 = vmatprep.mubr.msk.f32.mxu1 %vm534_vm1, %v4524_v19  ;;  %v4556_v19 = vld [vmem:[#allocation2 + $0x1e0] sm:$0xff]  ;;  %v9957_v23 = vld [vmem:[#allocation2 + $0x209] sm:$0xff] }
 0x339   : > { %19098 = vmatmul.mubr.msk.f32.gmra.mrb[12].mxu0 %vm534_vm1, %v9926_v33  ;;  %v9958_v33 = vld [vmem:[#allocation2 + $0x211] sm:$0xff] }
 0x33a   : > { %18322 = vmatmul.mubr.msk.f32.gmra.mrb[12].mxu1 %vm534_vm1, %v4525_v27  ;;  %19100 = vmatprep.mubr.msk.f32.mxu0 %vm534_vm1, %v9927_v41  ;;  %v4557_v27 = vld [vmem:[#allocation2 + $0x1e8] sm:$0xff]  ;;  %v9959_v41 = vld [vmem:[#allocation2 + $0x219] sm:$0xff] }
 0x33b   : > { %18324 = vmatprep.mubr.msk.f32.mxu1 %vm534_vm1, %v4526_v37  ;;  %v4558_v37 = vld [vmem:[#allocation2 + $0x1f0] sm:$0xff] }
 0x33d   : > { %19101 = vmatmul.mubr.msk.f32.gmra.mrb[14].mxu0 %vm534_vm1, %v9928_v50  ;;  %v9960_v50 = vld [vmem:[#allocation2 + $0x221] sm:$0xff] }
 0x33e   : > { %18325 = vmatmul.mubr.msk.f32.gmra.mrb[14].mxu1 %vm534_vm1, %v4527_v45  ;;  %19103 = vmatprep.mubr.msk.f32.mxu0 %vm534_vm1, %v9929_v58  ;;  %v4559_v45 = vld [vmem:[#allocation2 + $0x1f8] sm:$0xff] }
 0x33f   : > { %18327 = vmatprep.mubr.msk.f32.mxu1 %vm534_vm1, %v4528_v54  ;;  %v4560_v54 = vld [vmem:[#allocation2 + $0x208] sm:$0xff]  ;;  %v9961_v58 = vld [vmem:[#allocation2 + $0x231] sm:$0xff] }
 0x341   : > { %19104 = vmatmul.mubr.msk.f32.gmra.mrb[16].mxu0 %vm534_vm1, %v9930_v61  ;;  %v4561_v61 = vld [vmem:[#allocation2 + $0x210] sm:$0xff] }
 0x342   : > { %18328 = vmatmul.mubr.msk.f32.gmra.mrb[16].mxu1 %vm534_vm1, %v4529_v9  ;;  %19106 = vmatprep.mubr.msk.f32.mxu0 %vm534_vm1, %v9931_v13  ;;  %v12876_v9 = vld [vmem:[%s24547_s4] sm:$0xff]  ;;  %v4562_v13 = vld [vmem:[#allocation2 + $0x218] sm:$0xff] }
 0x343   : > { %18330 = vmatprep.mubr.msk.f32.mxu1 %vm534_vm1, %v4530_v5  ;;  %19465 = vmatprep.subr.mxu1 %v12876_v9  ;;  %v9962_v5 = vld [vmem:[#allocation2 + $0x239] sm:$0xff] }
 0x344   : > { %19466 = vmatpush3.msra.mxu1 %v12876_v9  ;;  %v4592_v9 = vld [vmem:[#allocation2 + $0x348] sm:$0xff] }
 0x345   : > { %19107 = vmatmul.mubr.msk.f32.gmra.mrb[18].mxu0 %vm534_vm1, %v9932_v29  ;;  %v4563_v29 = vld [vmem:[#allocation2 + $0x220] sm:$0xff] }
 0x346   : > { %18331 = vmatmul.mubr.msk.f32.gmra.mrb[18].mxu1 %vm534_vm1, %v4531_v21  ;;  %19109 = vmatprep.mubr.msk.f32.mxu0 %vm534_vm1, %v9933_v60  ;;  %v9963_v21 = vld [vmem:[#allocation2 + $0x241] sm:$0xff]  ;;  %v4564_v60 = vld [vmem:[#allocation2 + $0x230] sm:$0xff] }
 0x347   : > { %18333 = vmatprep.mubr.msk.f32.mxu1 %vm534_vm1, %v4532_v35  ;;  %v9964_v35 = vld [vmem:[#allocation2 + $0x249] sm:$0xff] }
 0x349   : > { %19110 = vmatmul.mubr.msk.f32.gmra.mrb[20].mxu0 %vm534_vm1, %v9934_v31  ;;  %v4565_v31 = vld [vmem:[#allocation2 + $0x238] sm:$0xff] }
 0x34a   : > { %18334 = vmatmul.mubr.msk.f32.gmra.mrb[20].mxu1 %vm534_vm1, %v4533_v43  ;;  %19112 = vmatprep.mubr.msk.f32.mxu0 %vm534_vm1, %v9935_v56  ;;  %v9965_v43 = vld [vmem:[#allocation2 + $0x259] sm:$0xff] }
 0x34b   : > { %18336 = vmatprep.mubr.msk.f32.mxu1 %vm534_vm1, %v4534_v52  ;;  %v9966_v52 = vld [vmem:[#allocation2 + $0x261] sm:$0xff] }
 0x34c   : > { %v4566_v56 = vld [vmem:[#allocation2 + $0x240] sm:$0xff] }
 0x34d   : > { %19113 = vmatmul.mubr.msk.f32.gmra.mrb[22].mxu0 %vm534_vm1, %v9936_v62  ;;  %v4567_v62 = vld [vmem:[#allocation2 + $0x248] sm:$0xff] }
 0x34e   : > { %18337 = vmatmul.mubr.msk.f32.gmra.mrb[22].mxu1 %vm534_vm1, %v4535_v17  ;;  %19115 = vmatprep.mubr.msk.f32.mxu0 %vm534_vm1, %v9937_v2  ;;  %v9967_v17 = vld [vmem:[#allocation2 + $0x269] sm:$0xff]  ;;  %v4568_v2 = vld [vmem:[#allocation2 + $0x258] sm:$0xff] }
 0x34f   : > { %18339 = vmatprep.mubr.msk.f32.mxu1 %vm534_vm1, %v4536_v0  ;;  %v9968_v0 = vld [vmem:[#allocation2 + $0x271] sm:$0xff] }
 0x351   : > { %19116 = vmatmul.mubr.msk.f32.gmra.mrb[24].mxu0 %vm534_vm1, %v9938_v4  ;;  %v4569_v4 = vld [vmem:[#allocation2 + $0x260] sm:$0xff] }
 0x352   : > { %18340 = vmatmul.mubr.msk.f32.gmra.mrb[24].mxu1 %vm534_vm1, %v4537_v48  ;;  %19118 = vmatprep.mubr.msk.f32.mxu0 %vm534_vm1, %v9939_v6  ;;  %v9969_v48 = vld [vmem:[#allocation2 + $0x281] sm:$0xff] }
 0x353   : > { %18342 = vmatprep.mubr.msk.f32.mxu1 %vm534_vm1, %v4538_v25  ;;  %v9970_v25 = vld [vmem:[#allocation2 + $0x289] sm:$0xff] }
 0x354   : > { %v4570_v6 = vld [vmem:[#allocation2 + $0x268] sm:$0xff] }
 0x355   : > { %19119 = vmatmul.mubr.msk.f32.gmra.mrb[26].mxu0 %vm534_vm1, %v9940_v8  ;;  %v4571_v8 = vld [vmem:[#allocation2 + $0x270] sm:$0xff] }
 0x356   : > { %18343 = vmatmul.mubr.msk.f32.gmra.mrb[26].mxu1 %vm534_vm1, %v4539_v39  ;;  %19121 = vmatprep.mubr.msk.f32.mxu0 %vm534_vm1, %v9941_v1  ;;  %v9971_v39 = vld [vmem:[#allocation2 + $0x291] sm:$0xff]  ;;  %v4572_v1 = vld [vmem:[#allocation2 + $0x280] sm:$0xff] }
 0x357   : > { %18345 = vmatprep.mubr.msk.f32.mxu1 %vm534_vm1, %v4540_v10  ;;  %v9972_v10 = vld [vmem:[#allocation2 + $0x299] sm:$0xff] }
 0x359   : > { %19122 = vmatmul.mubr.msk.f32.gmra.mrb[28].mxu0 %vm534_vm1, %v9942_v14  ;;  %v705_v14 = vld [vmem:[%s21520_s16 + $0x48] sm:$0x3] }
 0x35a   : > { %18346 = vmatmul.mubr.msk.f32.gmra.mrb[28].mxu1 %vm534_vm1, %v4541_v12  ;;  %19124 = vmatprep.mubr.msk.f32.mxu0 %vm534_vm1, %v9943_v18  ;;  %v9973_v12 = vld [vmem:[#allocation2 + $0x2a9] sm:$0xff]  ;;  %716 = vst.msk [vmem:[#allocation2 + $0x548] sm:$0x3] %vm539_vm2, %v705_v14  ;;  %v9974_v18 = vld [vmem:[#allocation2 + $0x2b1] sm:$0xff] }
 0x35b   : > { %18348 = vmatprep.mubr.msk.f32.mxu1 %vm534_vm1, %v4542_v16  ;;  %v4573_v16 = vld [vmem:[#allocation2 + $0x288] sm:$0xff] }
 0x35c   : > { %v10005_v14 = vld [vmem:[#allocation2 + $0x3e9] sm:$0xff] }
 0x35d   : > { %19125 = vmatmul.mubr.msk.f32.gmra.mrb[30].mxu0 %vm534_vm1, %v9944_v22  ;;  %v9975_v22 = vld [vmem:[#allocation2 + $0x2b9] sm:$0xff] }
 0x35e   : > { %18349 = vmatmul.mubr.msk.f32.gmra.mrb[30].mxu1 %vm534_vm1, %v4543_v20  ;;  %19127 = vmatprep.mubr.msk.f32.mxu0 %vm534_vm1, %v9945_v26  ;;  %v4574_v20 = vld [vmem:[#allocation2 + $0x290] sm:$0xff]  ;;  %v9976_v26 = vld [vmem:[#allocation2 + $0x2c1] sm:$0xff] }
 0x35f   : > { %18351 = vmatprep.mubr.msk.f32.mxu1 %vm534_vm1, %v4544_v24  ;;  %v4575_v24 = vld [vmem:[#allocation2 + $0x298] sm:$0xff] }
 0x361   : > { %19128 = vmatmul.mubr.msk.f32.gmra.mrb[32].mxu0 %vm534_vm1, %v9946_v32  ;;  %v9977_v32 = vld [vmem:[#allocation2 + $0x2d1] sm:$0xff] }
 0x362   : > { %18352 = vmatmul.mubr.msk.f32.gmra.mrb[32].mxu1 %vm534_vm1, %v4545_v30  ;;  %19130 = vmatprep.mubr.msk.f32.mxu0 %vm534_vm1, %v9947_v36  ;;  %v4576_v30 = vld [vmem:[#allocation2 + $0x2a8] sm:$0xff]  ;;  %v9978_v36 = vld [vmem:[#allocation2 + $0x2d9] sm:$0xff] }
 0x363   : > { %18354 = vmatprep.mubr.msk.f32.mxu1 %vm534_vm1, %v4546_v34  ;;  %v4577_v34 = vld [vmem:[#allocation2 + $0x2b0] sm:$0xff] }
 0x365   : > { %19131 = vmatmul.mubr.msk.f32.gmra.mrb[34].mxu0 %vm534_vm1, %v9948_v40  ;;  %v9979_v40 = vld [vmem:[#allocation2 + $0x2e1] sm:$0xff] }
 0x366   : > { %18355 = vmatmul.mubr.msk.f32.gmra.mrb[34].mxu1 %vm534_vm1, %v4547_v38  ;;  %19133 = vmatprep.mubr.msk.f32.mxu0 %vm534_vm1, %v9949_v44  ;;  %v4578_v38 = vld [vmem:[#allocation2 + $0x2b8] sm:$0xff]  ;;  %v9980_v44 = vld [vmem:[#allocation2 + $0x2e9] sm:$0xff] }
 0x367   : > { %18357 = vmatprep.mubr.msk.f32.mxu1 %vm534_vm1, %v4548_v42  ;;  %v4579_v42 = vld [vmem:[#allocation2 + $0x2c0] sm:$0xff] }
 0x369   : > { %19134 = vmatmul.mubr.msk.f32.gmra.mrb[36].mxu0 %vm534_vm1, %v9950_v49  ;;  %v9981_v49 = vld [vmem:[#allocation2 + $0x2f9] sm:$0xff] }
 0x36a   : > { %18358 = vmatmul.mubr.msk.f32.gmra.mrb[36].mxu1 %vm534_vm1, %v4549_v46  ;;  %19136 = vmatprep.mubr.msk.f32.mxu0 %vm534_vm1, %v9951_v53  ;;  %v4580_v46 = vld [vmem:[#allocation2 + $0x2d0] sm:$0xff]  ;;  %v9982_v53 = vld [vmem:[#allocation2 + $0x301] sm:$0xff] }
 0x36b   : > { %18360 = vmatprep.mubr.msk.f32.mxu1 %vm534_vm1, %v4550_v51  ;;  %v4581_v51 = vld [vmem:[#allocation2 + $0x2d8] sm:$0xff] }
 0x36d   : > { %19137 = vmatmul.mubr.msk.f32.gmra.mrb[38].mxu0 %vm534_vm1, %v9952_v55  ;;  %v9983_v55 = vld [vmem:[#allocation2 + $0x309] sm:$0xff] }
 0x36e   : > { %18361 = vmatmul.mubr.msk.f32.gmra.mrb[38].mxu1 %vm534_vm1, %v4551_v28  ;;  %19139 = vmatprep.mubr.msk.f32.mxu0 %vm534_vm1, %v9953_v59  ;;  %v4582_v28 = vld [vmem:[#allocation2 + $0x2e0] sm:$0xff]  ;;  %v9984_v59 = vld [vmem:[#allocation2 + $0x311] sm:$0xff] }
 0x36f   : > { %18363 = vmatprep.mubr.msk.f32.mxu1 %vm534_vm1, %v4552_v57  ;;  %v4583_v57 = vld [vmem:[#allocation2 + $0x2e8] sm:$0xff] }
 0x371   : > { %19140 = vmatmul.mubr.msk.f32.gmra.mrb[40].mxu0 %vm534_vm1, %v9954_v63  ;;  %v9985_v63 = vld [vmem:[#allocation2 + $0x321] sm:$0xff] }
 0x372   : > { %18364 = vmatmul.mubr.msk.f32.gmra.mrb[40].mxu1 %vm534_vm1, %v4553_v47  ;;  %19142 = vmatprep.mubr.msk.f32.mxu0 %vm534_vm1, %v9955_v7  ;;  %v4584_v47 = vld [vmem:[#allocation2 + $0x2f8] sm:$0xff]  ;;  %v9986_v7 = vld [vmem:[#allocation2 + $0x329] sm:$0xff] }
 0x373   : > { %18366 = vmatprep.mubr.msk.f32.mxu1 %vm534_vm1, %v4554_v3  ;;  %v4585_v3 = vld [vmem:[#allocation2 + $0x300] sm:$0xff] }
 0x375   : > { %19143 = vmatmul.mubr.msk.f32.gmra.mrb[42].mxu0 %vm534_vm1, %v9956_v15  ;;  %v9987_v15 = vld [vmem:[#allocation2 + $0x331] sm:$0xff] }
 0x376   : > { %18367 = vmatmul.mubr.msk.f32.gmra.mrb[42].mxu1 %vm534_vm1, %v4555_v11  ;;  %19145 = vmatprep.mubr.msk.f32.mxu0 %vm534_vm1, %v9957_v23  ;;  %v4586_v11 = vld [vmem:[#allocation2 + $0x308] sm:$0xff]  ;;  %v9988_v23 = vld [vmem:[#allocation2 + $0x339] sm:$0xff] }
 0x377   : > { %18369 = vmatprep.mubr.msk.f32.mxu1 %vm534_vm1, %v4556_v19  ;;  %v4587_v19 = vld [vmem:[#allocation2 + $0x310] sm:$0xff] }
 0x379   : > { %19146 = vmatmul.mubr.msk.f32.gmra.mrb[44].mxu0 %vm534_vm1, %v9958_v33  ;;  %v9989_v33 = vld [vmem:[#allocation2 + $0x349] sm:$0xff] }
 0x37a   : > { %18370 = vmatmul.mubr.msk.f32.gmra.mrb[44].mxu1 %vm534_vm1, %v4557_v27  ;;  %19148 = vmatprep.mubr.msk.f32.mxu0 %vm534_vm1, %v9959_v41  ;;  %v4588_v27 = vld [vmem:[#allocation2 + $0x320] sm:$0xff]  ;;  %v9990_v41 = vld [vmem:[#allocation2 + $0x351] sm:$0xff] }
 0x37b   : > { %18372 = vmatprep.mubr.msk.f32.mxu1 %vm534_vm1, %v4558_v37  ;;  %v4589_v37 = vld [vmem:[#allocation2 + $0x328] sm:$0xff] }
 0x37d   : > { %19149 = vmatmul.mubr.msk.f32.gmra.mrb[46].mxu0 %vm534_vm1, %v9960_v50  ;;  %v9991_v50 = vld [vmem:[#allocation2 + $0x359] sm:$0xff] }
 0x37e   : > { %18373 = vmatmul.mubr.msk.f32.gmra.mrb[46].mxu1 %vm534_vm1, %v4559_v45  ;;  %19151 = vmatprep.mubr.msk.f32.mxu0 %vm534_vm1, %v9961_v58  ;;  %v4590_v45 = vld [vmem:[#allocation2 + $0x330] sm:$0xff]  ;;  %v9992_v58 = vld [vmem:[#allocation2 + $0x361] sm:$0xff] }
 0x37f   : > { %18375 = vmatprep.mubr.msk.f32.mxu1 %vm534_vm1, %v4560_v54  ;;  %v4591_v54 = vld [vmem:[#allocation2 + $0x338] sm:$0xff] }
 0x381   : > { %19152 = vmatmul.mubr.msk.f32.gmra.mrb[48].mxu0 %vm534_vm1, %v9962_v5  ;;  %v4593_v5 = vld [vmem:[#allocation2 + $0x350] sm:$0xff] }
 0x382   : > { %18376 = vmatmul.mubr.msk.f32.gmra.mrb[48].mxu1 %vm534_vm1, %v4561_v61  ;;  %19154 = vmatprep.mubr.msk.f32.mxu0 %vm534_vm1, %v9963_v21  ;;  %v9993_v61 = vld [vmem:[#allocation2 + $0x371] sm:$0xff] }
 0x383   : > { %18378 = vmatprep.mubr.msk.f32.mxu1 %vm534_vm1, %v4562_v13  ;;  %v9994_v13 = vld [vmem:[#allocation2 + $0x379] sm:$0xff] }
 0x384   : > { %v4594_v21 = vld [vmem:[#allocation2 + $0x358] sm:$0xff] }
 0x385   : > { %19155 = vmatmul.mubr.msk.f32.gmra.mrb[50].mxu0 %vm534_vm1, %v9964_v35  ;;  %v4595_v35 = vld [vmem:[#allocation2 + $0x360] sm:$0xff] }
 0x386   : > { %18379 = vmatmul.mubr.msk.f32.gmra.mrb[50].mxu1 %vm534_vm1, %v4563_v29  ;;  %19157 = vmatprep.mubr.msk.f32.mxu0 %vm534_vm1, %v9965_v43  ;;  %v9995_v29 = vld [vmem:[#allocation2 + $0x381] sm:$0xff]  ;;  %v4596_v43 = vld [vmem:[#allocation2 + $0x370] sm:$0xff] }
 0x387   : > { %18381 = vmatprep.mubr.msk.f32.mxu1 %vm534_vm1, %v4564_v60  ;;  %v9996_v60 = vld [vmem:[#allocation2 + $0x389] sm:$0xff] }
 0x389   : > { %19158 = vmatmul.mubr.msk.f32.gmra.mrb[52].mxu0 %vm534_vm1, %v9966_v52  ;;  %v4597_v52 = vld [vmem:[#allocation2 + $0x378] sm:$0xff] }
 0x38a   : > { %18382 = vmatmul.mubr.msk.f32.gmra.mrb[52].mxu1 %vm534_vm1, %v4565_v31  ;;  %19160 = vmatprep.mubr.msk.f32.mxu0 %vm534_vm1, %v9967_v17  ;;  %v9997_v31 = vld [vmem:[#allocation2 + $0x399] sm:$0xff] }
 0x38b   : > { %18384 = vmatprep.mubr.msk.f32.mxu1 %vm534_vm1, %v4566_v56  ;;  %v9998_v56 = vld [vmem:[#allocation2 + $0x3a1] sm:$0xff] }
 0x38c   : > { %v4598_v17 = vld [vmem:[#allocation2 + $0x380] sm:$0xff] }
 0x38d   : > { %19161 = vmatmul.mubr.msk.f32.gmra.mrb[54].mxu0 %vm534_vm1, %v9968_v0  ;;  %v4599_v0 = vld [vmem:[#allocation2 + $0x388] sm:$0xff] }
 0x38e   : > { %18385 = vmatmul.mubr.msk.f32.gmra.mrb[54].mxu1 %vm534_vm1, %v4567_v62  ;;  %19163 = vmatprep.mubr.msk.f32.mxu0 %vm534_vm1, %v9969_v48  ;;  %v9999_v62 = vld [vmem:[#allocation2 + $0x3a9] sm:$0xff]  ;;  %v4600_v48 = vld [vmem:[#allocation2 + $0x398] sm:$0xff] }
 0x38f   : > { %18387 = vmatprep.mubr.msk.f32.mxu1 %vm534_vm1, %v4568_v2  ;;  %v10000_v2 = vld [vmem:[#allocation2 + $0x3b1] sm:$0xff] }
 0x391   : > { %19164 = vmatmul.mubr.msk.f32.gmra.mrb[56].mxu0 %vm534_vm1, %v9970_v25  ;;  %v4601_v25 = vld [vmem:[#allocation2 + $0x3a0] sm:$0xff] }
 0x392   : > { %18388 = vmatmul.mubr.msk.f32.gmra.mrb[56].mxu1 %vm534_vm1, %v4569_v4  ;;  %19166 = vmatprep.mubr.msk.f32.mxu0 %vm534_vm1, %v9971_v39  ;;  %v10001_v4 = vld [vmem:[#allocation2 + $0x3c1] sm:$0xff] }
 0x393   : > { %18390 = vmatprep.mubr.msk.f32.mxu1 %vm534_vm1, %v4570_v6  ;;  %v10002_v6 = vld [vmem:[#allocation2 + $0x3c9] sm:$0xff] }
 0x394   : > { %v4602_v39 = vld [vmem:[#allocation2 + $0x3a8] sm:$0xff] }
 0x395   : > { %19167 = vmatmul.mubr.msk.f32.gmra.mrb[58].mxu0 %vm534_vm1, %v9972_v10  ;;  %v4603_v10 = vld [vmem:[#allocation2 + $0x3b0] sm:$0xff] }
 0x396   : > { %18391 = vmatmul.mubr.msk.f32.gmra.mrb[58].mxu1 %vm534_vm1, %v4571_v8  ;;  %19169 = vmatprep.mubr.msk.f32.mxu0 %vm534_vm1, %v9973_v12  ;;  %v10003_v8 = vld [vmem:[#allocation2 + $0x3d1] sm:$0xff]  ;;  %v4604_v12 = vld [vmem:[#allocation2 + $0x3c0] sm:$0xff] }
 0x397   : > { %18393 = vmatprep.mubr.msk.f32.mxu1 %vm534_vm1, %v4572_v1  ;;  %v10004_v1 = vld [vmem:[#allocation2 + $0x3d9] sm:$0xff] }
 0x399   : > { %19170 = vmatmul.mubr.msk.f32.gmra.mrb[60].mxu0 %vm534_vm1, %v9974_v18  ;;  %v10006_v18 = vld [vmem:[#allocation2 + $0x3f1] sm:$0xff] }
 0x39a   : > { %18394 = vmatmul.mubr.msk.f32.gmra.mrb[60].mxu1 %vm534_vm1, %v4573_v16  ;;  %19172 = vmatprep.mubr.msk.f32.mxu0 %vm534_vm1, %v9975_v22  ;;  %v4605_v16 = vld [vmem:[#allocation2 + $0x3c8] sm:$0xff]  ;;  %v10007_v22 = vld [vmem:[#allocation2 + $0x3f9] sm:$0xff] }
 0x39b   : > { %18396 = vmatprep.mubr.msk.f32.mxu1 %vm534_vm1, %v4574_v20  ;;  %v4606_v20 = vld [vmem:[#allocation2 + $0x3d0] sm:$0xff] }
 0x39d   : > { %19173 = vmatmul.mubr.msk.f32.gmra.mrb[62].mxu0 %vm534_vm1, %v9976_v26  ;;  %v10008_v26 = vld [vmem:[#allocation2 + $0x401] sm:$0xff] }
 0x39e   : > { %18397 = vmatmul.mubr.msk.f32.gmra.mrb[62].mxu1 %vm534_vm1, %v4575_v24  ;;  %19175 = vmatprep.mubr.msk.f32.mxu0 %vm534_vm1, %v9977_v32  ;;  %v4607_v24 = vld [vmem:[#allocation2 + $0x3d8] sm:$0xff] }
 0x39f   : > { %18399 = vmatprep.mubr.msk.f32.mxu1 %vm534_vm1, %v4576_v30  ;;  %v4608_v30 = vld [vmem:[#allocation2 + $0x3e8] sm:$0xff]  ;;  %v10009_v32 = vld [vmem:[#allocation2 + $0x411] sm:$0xff] }
 0x3a1   : > { %19176 = vmatmul.mubr.msk.f32.gmra.mrb[64].mxu0 %vm534_vm1, %v9978_v36  ;;  %v10010_v36 = vld [vmem:[#allocation2 + $0x419] sm:$0xff] }
 0x3a2   : > { %18400 = vmatmul.mubr.msk.f32.gmra.mrb[64].mxu1 %vm534_vm1, %v4577_v34  ;;  %19178 = vmatprep.mubr.msk.f32.mxu0 %vm534_vm1, %v9979_v40  ;;  %v4609_v34 = vld [vmem:[#allocation2 + $0x3f0] sm:$0xff]  ;;  %v10011_v40 = vld [vmem:[#allocation2 + $0x421] sm:$0xff] }
 0x3a3   : > { %18402 = vmatprep.mubr.msk.f32.mxu1 %vm534_vm1, %v4578_v38  ;;  %v4610_v38 = vld [vmem:[#allocation2 + $0x3f8] sm:$0xff] }
 0x3a5   : > { %19179 = vmatmul.mubr.msk.f32.gmra.mrb[66].mxu0 %vm534_vm1, %v9980_v44  ;;  %v10012_v44 = vld [vmem:[#allocation2 + $0x429] sm:$0xff] }
 0x3a6   : > { %18403 = vmatmul.mubr.msk.f32.gmra.mrb[66].mxu1 %vm534_vm1, %v4579_v42  ;;  %19181 = vmatprep.mubr.msk.f32.mxu0 %vm534_vm1, %v9981_v49  ;;  %v4611_v42 = vld [vmem:[#allocation2 + $0x400] sm:$0xff] }
 0x3a7   : > { %18405 = vmatprep.mubr.msk.f32.mxu1 %vm534_vm1, %v4580_v46  ;;  %v4612_v46 = vld [vmem:[#allocation2 + $0x410] sm:$0xff]  ;;  %v10013_v49 = vld [vmem:[#allocation2 + $0x439] sm:$0xff] }
 0x3a9   : > { %19182 = vmatmul.mubr.msk.f32.gmra.mrb[68].mxu0 %vm534_vm1, %v9982_v53  ;;  %v10014_v53 = vld [vmem:[#allocation2 + $0x441] sm:$0xff] }
 0x3aa   : > { %18406 = vmatmul.mubr.msk.f32.gmra.mrb[68].mxu1 %vm534_vm1, %v4581_v51  ;;  %19184 = vmatprep.mubr.msk.f32.mxu0 %vm534_vm1, %v9983_v55  ;;  %v4613_v51 = vld [vmem:[#allocation2 + $0x418] sm:$0xff]  ;;  %v10015_v55 = vld [vmem:[#allocation2 + $0x449] sm:$0xff] }
 0x3ab   : > { %18408 = vmatprep.mubr.msk.f32.mxu1 %vm534_vm1, %v4582_v28  ;;  %v4614_v28 = vld [vmem:[#allocation2 + $0x420] sm:$0xff] }
 0x3ad   : > { %19185 = vmatmul.mubr.msk.f32.gmra.mrb[70].mxu0 %vm534_vm1, %v9984_v59  ;;  %v10016_v59 = vld [vmem:[#allocation2 + $0x451] sm:$0xff] }
 0x3ae   : > { %18409 = vmatmul.mubr.msk.f32.gmra.mrb[70].mxu1 %vm534_vm1, %v4583_v57  ;;  %19187 = vmatprep.mubr.msk.f32.mxu0 %vm534_vm1, %v9985_v63  ;;  %v4615_v57 = vld [vmem:[#allocation2 + $0x428] sm:$0xff] }
 0x3af   : > { %18411 = vmatprep.mubr.msk.f32.mxu1 %vm534_vm1, %v4584_v47  ;;  %v4616_v47 = vld [vmem:[#allocation2 + $0x438] sm:$0xff]  ;;  %v10017_v63 = vld [vmem:[#allocation2 + $0x461] sm:$0xff] }
 0x3b1   : > { %19188 = vmatmul.mubr.msk.f32.gmra.mrb[72].mxu0 %vm534_vm1, %v9986_v7  ;;  %v10018_v7 = vld [vmem:[#allocation2 + $0x469] sm:$0xff] }
 0x3b2   : > { %18412 = vmatmul.mubr.msk.f32.gmra.mrb[72].mxu1 %vm534_vm1, %v4585_v3  ;;  %19190 = vmatprep.mubr.msk.f32.mxu0 %vm534_vm1, %v9987_v15  ;;  %v4617_v3 = vld [vmem:[#allocation2 + $0x440] sm:$0xff]  ;;  %v10019_v15 = vld [vmem:[#allocation2 + $0x471] sm:$0xff] }
 0x3b3   : > { %18414 = vmatprep.mubr.msk.f32.mxu1 %vm534_vm1, %v4586_v11  ;;  %v4618_v11 = vld [vmem:[#allocation2 + $0x448] sm:$0xff] }
 0x3b5   : > { %19191 = vmatmul.mubr.msk.f32.gmra.mrb[74].mxu0 %vm534_vm1, %v9988_v23  ;;  %v10020_v23 = vld [vmem:[#allocation2 + $0x479] sm:$0xff] }
 0x3b6   : > { %18415 = vmatmul.mubr.msk.f32.gmra.mrb[74].mxu1 %vm534_vm1, %v4587_v19  ;;  %19193 = vmatprep.mubr.msk.f32.mxu0 %vm534_vm1, %v9989_v33  ;;  %v4619_v19 = vld [vmem:[#allocation2 + $0x450] sm:$0xff] }
 0x3b7   : > { %18417 = vmatprep.mubr.msk.f32.mxu1 %vm534_vm1, %v4588_v27  ;;  %v4620_v27 = vld [vmem:[#allocation2 + $0x460] sm:$0xff] }
 0x3b9   : > { %19194 = vmatmul.mubr.msk.f32.gmra.mrb[76].mxu0 %vm534_vm1, %v9990_v41 }
 0x3ba   : > { %18418 = vmatmul.mubr.msk.f32.gmra.mrb[76].mxu1 %vm534_vm1, %v4589_v37  ;;  %19196 = vmatprep.mubr.msk.f32.mxu0 %vm534_vm1, %v9991_v50  ;;  %v10021_v37 = vld [vmem:[#allocation2 + $0x489] sm:$0xff]  ;;  %v10022_v50 = vld [vmem:[#allocation2 + $0x491] sm:$0xff] }
 0x3bb   : > { %18420 = vmatprep.mubr.msk.f32.mxu1 %vm534_vm1, %v4590_v45  ;;  %v4621_v45 = vld [vmem:[#allocation2 + $0x468] sm:$0xff] }
 0x3bd   : > { %19197 = vmatmul.mubr.msk.f32.gmra.mrb[78].mxu0 %vm534_vm1, %v9992_v58 }
 0x3be   : > { %18421 = vmatmul.mubr.msk.f32.gmra.mrb[78].mxu1 %vm534_vm1, %v4591_v54  ;;  %19199 = vmatprep.mubr.msk.f32.mxu0 %vm534_vm1, %v9993_v61  ;;  %v4622_v54 = vld [vmem:[#allocation2 + $0x470] sm:$0xff] }
 0x3bf   : > { %18423 = vmatprep.mubr.msk.f32.mxu1 %vm534_vm1, %v4592_v9  ;;  %v10023_v9 = vld [vmem:[#allocation2 + $0x499] sm:$0xff] }
 0x3c1   : > { %19200 = vmatmul.mubr.msk.f32.gmra.mrb[80].mxu0 %vm534_vm1, %v9994_v13  ;;  %v10024_v13 = vld [vmem:[#allocation2 + $0x4a1] sm:$0xff] }
 0x3c2   : > { %18424 = vmatmul.mubr.msk.f32.gmra.mrb[80].mxu1 %vm534_vm1, %v4593_v5  ;;  %19202 = vmatprep.mubr.msk.f32.mxu0 %vm534_vm1, %v9995_v29  ;;  %v4623_v5 = vld [vmem:[#allocation2 + $0x478] sm:$0xff] }
 0x3c3   : > { %18426 = vmatprep.mubr.msk.f32.mxu1 %vm534_vm1, %v4594_v21  ;;  %v4624_v21 = vld [vmem:[#allocation2 + $0x488] sm:$0xff] }
 0x3c5   : > { %19203 = vmatmul.mubr.msk.f32.gmra.mrb[82].mxu0 %vm534_vm1, %v9996_v60 }
 0x3c6   : > { %18427 = vmatmul.mubr.msk.f32.gmra.mrb[82].mxu1 %vm534_vm1, %v4595_v35  ;;  %19205 = vmatprep.mubr.msk.f32.mxu0 %vm534_vm1, %v9997_v31  ;;  %v10025_v35 = vld [vmem:[#allocation2 + $0x4b1] sm:$0xff]  ;;  %v10026_v31 = vld [vmem:[#allocation2 + $0x4b9] sm:$0xff] }
 0x3c7   : > { %18429 = vmatprep.mubr.msk.f32.mxu1 %vm534_vm1, %v4596_v43  ;;  %v4625_v43 = vld [vmem:[#allocation2 + $0x490] sm:$0xff] }
 0x3c9   : > { %19206 = vmatmul.mubr.msk.f32.gmra.mrb[84].mxu0 %vm534_vm1, %v9998_v56 }
 0x3ca   : > { %18430 = vmatmul.mubr.msk.f32.gmra.mrb[84].mxu1 %vm534_vm1, %v4597_v52  ;;  %19208 = vmatprep.mubr.msk.f32.mxu0 %vm534_vm1, %v9999_v62  ;;  %v4626_v52 = vld [vmem:[#allocation2 + $0x498] sm:$0xff] }
 0x3cb   : > { %18432 = vmatprep.mubr.msk.f32.mxu1 %vm534_vm1, %v4598_v17  ;;  %v10027_v17 = vld [vmem:[#allocation2 + $0x4c1] sm:$0xff] }
 0x3cd   : > { %19209 = vmatmul.mubr.msk.f32.gmra.mrb[86].mxu0 %vm534_vm1, %v10000_v2  ;;  %v10028_v2 = vld [vmem:[#allocation2 + $0x4c9] sm:$0xff] }
 0x3ce   : > { %18433 = vmatmul.mubr.msk.f32.gmra.mrb[86].mxu1 %vm534_vm1, %v4599_v0  ;;  %19211 = vmatprep.mubr.msk.f32.mxu0 %vm534_vm1, %v10001_v4  ;;  %v4627_v0 = vld [vmem:[#allocation2 + $0x4a0] sm:$0xff] }
 0x3cf   : > { %18435 = vmatprep.mubr.msk.f32.mxu1 %vm534_vm1, %v4600_v48  ;;  %v4628_v48 = vld [vmem:[#allocation2 + $0x4b0] sm:$0xff] }
 0x3d1   : > { %19212 = vmatmul.mubr.msk.f32.gmra.mrb[88].mxu0 %vm534_vm1, %v10002_v6 }
 0x3d2   : > { %18436 = vmatmul.mubr.msk.f32.gmra.mrb[88].mxu1 %vm534_vm1, %v4601_v25  ;;  %19214 = vmatprep.mubr.msk.f32.mxu0 %vm534_vm1, %v10003_v8  ;;  %v10029_v25 = vld [vmem:[#allocation2 + $0x4d9] sm:$0xff]  ;;  %v10030_v8 = vld [vmem:[#allocation2 + $0x4e1] sm:$0xff] }
 0x3d3   : > { %18438 = vmatprep.mubr.msk.f32.mxu1 %vm534_vm1, %v4602_v39  ;;  %v4629_v39 = vld [vmem:[#allocation2 + $0x4b8] sm:$0xff] }
 0x3d5   : > { %19215 = vmatmul.mubr.msk.f32.gmra.mrb[90].mxu0 %vm534_vm1, %v10004_v1 }
 0x3d6   : > { %18439 = vmatmul.mubr.msk.f32.gmra.mrb[90].mxu1 %vm534_vm1, %v4603_v10  ;;  %19217 = vmatprep.mubr.msk.f32.mxu0 %vm534_vm1, %v10005_v14  ;;  %v4630_v10 = vld [vmem:[#allocation2 + $0x4c0] sm:$0xff] }
 0x3d7   : > { %18441 = vmatprep.mubr.msk.f32.mxu1 %vm534_vm1, %v4604_v12  ;;  %v10031_v12 = vld [vmem:[#allocation2 + $0x4e9] sm:$0xff] }
 0x3d9   : > { %19218 = vmatmul.mubr.msk.f32.gmra.mrb[92].mxu0 %vm534_vm1, %v10006_v18  ;;  %v10032_v18 = vld [vmem:[#allocation2 + $0x4f1] sm:$0xff] }
 0x3da   : > { %18442 = vmatmul.mubr.msk.f32.gmra.mrb[92].mxu1 %vm534_vm1, %v4605_v16  ;;  %19220 = vmatprep.mubr.msk.f32.mxu0 %vm534_vm1, %v10007_v22  ;;  %v4631_v16 = vld [vmem:[#allocation2 + $0x4c8] sm:$0xff] }
 0x3db   : > { %18444 = vmatprep.mubr.msk.f32.mxu1 %vm534_vm1, %v4606_v20  ;;  %v4632_v20 = vld [vmem:[#allocation2 + $0x4d8] sm:$0xff] }
 0x3dd   : > { %19221 = vmatmul.mubr.msk.f32.gmra.mrb[94].mxu0 %vm534_vm1, %v10008_v26 }
 0x3de   : > { %18445 = vmatmul.mubr.msk.f32.gmra.mrb[94].mxu1 %vm534_vm1, %v4607_v24  ;;  %19223 = vmatprep.mubr.msk.f32.mxu0 %vm534_vm1, %v10009_v32  ;;  %v10033_v24 = vld [vmem:[#allocation2 + $0x501] sm:$0xff]  ;;  %v10034_v32 = vld [vmem:[#allocation2 + $0x509] sm:$0xff] }
 0x3df   : > { %18447 = vmatprep.mubr.msk.f32.mxu1 %vm534_vm1, %v4608_v30  ;;  %v4633_v30 = vld [vmem:[#allocation2 + $0x4e0] sm:$0xff] }
 0x3e1   : > { %19224 = vmatmul.mubr.msk.f32.gmra.mrb[96].mxu0 %vm534_vm1, %v10010_v36 }
 0x3e2   : > { %18448 = vmatmul.mubr.msk.f32.gmra.mrb[96].mxu1 %vm534_vm1, %v4609_v34  ;;  %19226 = vmatprep.mubr.msk.f32.mxu0 %vm534_vm1, %v10011_v40  ;;  %v4634_v34 = vld [vmem:[#allocation2 + $0x4e8] sm:$0xff] }
 0x3e3   : > { %18450 = vmatprep.mubr.msk.f32.mxu1 %vm534_vm1, %v4610_v38  ;;  %v10035_v38 = vld [vmem:[#allocation2 + $0x511] sm:$0xff] }
 0x3e5   : > { %19227 = vmatmul.mubr.msk.f32.gmra.mrb[98].mxu0 %vm534_vm1, %v10012_v44  ;;  %v10036_v44 = vld [vmem:[#allocation2 + $0x519] sm:$0xff] }
 0x3e6   : > { %18451 = vmatmul.mubr.msk.f32.gmra.mrb[98].mxu1 %vm534_vm1, %v4611_v42  ;;  %19229 = vmatprep.mubr.msk.f32.mxu0 %vm534_vm1, %v10013_v49  ;;  %v4635_v42 = vld [vmem:[#allocation2 + $0x4f0] sm:$0xff] }
 0x3e7   : > { %18453 = vmatprep.mubr.msk.f32.mxu1 %vm534_vm1, %v4612_v46  ;;  %v4636_v46 = vld [vmem:[#allocation2 + $0x500] sm:$0xff] }
 0x3e9   : > { %19230 = vmatmul.mubr.msk.f32.gmra.mrb[100].mxu0 %vm534_vm1, %v10014_v53 }
 0x3ea   : > { %18454 = vmatmul.mubr.msk.f32.gmra.mrb[100].mxu1 %vm534_vm1, %v4613_v51  ;;  %19232 = vmatprep.mubr.msk.f32.mxu0 %vm534_vm1, %v10015_v55  ;;  %v10037_v51 = vld [vmem:[#allocation2 + $0x529] sm:$0xff]  ;;  %v10038_v55 = vld [vmem:[#allocation2 + $0x531] sm:$0xff] }
 0x3eb   : > { %18456 = vmatprep.mubr.msk.f32.mxu1 %vm534_vm1, %v4614_v28  ;;  %v4637_v28 = vld [vmem:[#allocation2 + $0x508] sm:$0xff] }
 0x3ed   : > { %19233 = vmatmul.mubr.msk.f32.gmra.mrb[102].mxu0 %vm534_vm1, %v10016_v59 }
 0x3ee   : > { %18457 = vmatmul.mubr.msk.f32.gmra.mrb[102].mxu1 %vm534_vm1, %v4615_v57  ;;  %19235 = vmatprep.mubr.msk.f32.mxu0 %vm534_vm1, %v10017_v63  ;;  %v4638_v57 = vld [vmem:[#allocation2 + $0x510] sm:$0xff] }
 0x3ef   : > { %18459 = vmatprep.mubr.msk.f32.mxu1 %vm534_vm1, %v4616_v47  ;;  %v10039_v47 = vld [vmem:[#allocation2 + $0x539] sm:$0xff] }
 0x3f1   : > { %19236 = vmatmul.mubr.msk.f32.gmra.mrb[104].mxu0 %vm534_vm1, %v10018_v7  ;;  %v10040_v7 = vld [vmem:[#allocation2 + $0x541] sm:$0xff] }
 0x3f2   : > { %18460 = vmatmul.mubr.msk.f32.gmra.mrb[104].mxu1 %vm534_vm1, %v4617_v3  ;;  %19238 = vmatprep.mubr.msk.f32.mxu0 %vm534_vm1, %v10019_v15  ;;  %v4639_v3 = vld [vmem:[#allocation2 + $0x518] sm:$0xff] }
 0x3f3   : > { %18462 = vmatprep.mubr.msk.f32.mxu1 %vm534_vm1, %v4618_v11  ;;  %v11263_v15 = vld [vmem:[#allocation2 + $0x52] sm:$0xff] }
 0x3f5   : > { %v22930_v33 = vpop.f32.mrb[0].mxu1  ;;  %19239 = vmatmul.mubr.msk.f32.gmra.mrb[106].mxu0 %vm534_vm1, %v10020_v23  ;;  %v11264_v23 = vld [vmem:[#allocation2 + $0x5a] sm:$0xff] }
 0x3f6   : > { %v22932_v41 = vpop.f32.mrb[1].mxu1  ;;  %18463 = vmatmul.mubr.msk.f32.gmra.mrb[106].mxu1 %vm534_vm1, %v4619_v19  ;;  %19241 = vmatprep.mubr.msk.f32.mxu0 %vm534_vm1, %v10021_v37  ;;  %v11265_v37 = vld [vmem:[#allocation2 + $0x62] sm:$0xff] }
 0x3f7   : > { %18465 = vmatprep.mubr.msk.f32.mxu1 %vm534_vm1, %v4620_v27 }
 0x3f9   : > { %v22938_v58 = vpop.f32.mrb[2].mxu1  ;;  %19242 = vmatmul.mubr.msk.f32.gmra.mrb[108].mxu0 %vm534_vm1, %v10022_v50  ;;  %v11266_v50 = vld [vmem:[#allocation2 + $0x6a] sm:$0xff] }
 0x3fa   : > { %v22940_v61 = vpop.f32.mrb[3].mxu1  ;;  %18466 = vmatmul.mubr.msk.f32.gmra.mrb[108].mxu1 %vm534_vm1, %v4621_v45  ;;  %19244 = vmatprep.mubr.msk.f32.mxu0 %vm534_vm1, %v10023_v9  ;;  %v11267_v9 = vld [vmem:[#allocation2 + $0x7a] sm:$0xff] }
 0x3fb   : > { %18468 = vmatprep.mubr.msk.f32.mxu1 %vm534_vm1, %v4622_v54 }
 0x3fd   : > { %v22946_v29 = vpop.f32.mrb[4].mxu1  ;;  %19245 = vmatmul.mubr.msk.f32.gmra.mrb[110].mxu0 %vm534_vm1, %v10024_v13  ;;  %v11268_v13 = vld [vmem:[#allocation2 + $0x82] sm:$0xff] }
 0x3fe   : > { %v22948_v60 = vpop.f32.mrb[5].mxu1  ;;  %18469 = vmatmul.mubr.msk.f32.gmra.mrb[110].mxu1 %vm534_vm1, %v4623_v5  ;;  %19247 = vmatprep.mubr.msk.f32.mxu0 %vm534_vm1, %v10025_v35  ;;  %v11269_v35 = vld [vmem:[#allocation2 + $0x8a] sm:$0xff] }
 0x3ff   : > { %18471 = vmatprep.mubr.msk.f32.mxu1 %vm534_vm1, %v4624_v21 }
 0x401   : > { %v22954_v56 = vpop.f32.mrb[6].mxu1  ;;  %19248 = vmatmul.mubr.msk.f32.gmra.mrb[112].mxu0 %vm534_vm1, %v10026_v31  ;;  %v11270_v31 = vld [vmem:[#allocation2 + $0x92] sm:$0xff] }
 0x402   : > { %v22956_v62 = vpop.f32.mrb[7].mxu1  ;;  %18472 = vmatmul.mubr.msk.f32.gmra.mrb[112].mxu1 %vm534_vm1, %v4625_v43  ;;  %19250 = vmatprep.mubr.msk.f32.mxu0 %vm534_vm1, %v10027_v17  ;;  %v11271_v17 = vld [vmem:[#allocation2 + $0xa2] sm:$0xff] }
 0x403   : > { %18474 = vmatprep.mubr.msk.f32.mxu1 %vm534_vm1, %v4626_v52 }
 0x405   : > { %v22962_v4 = vpop.f32.mrb[8].mxu1  ;;  %19251 = vmatmul.mubr.msk.f32.gmra.mrb[114].mxu0 %vm534_vm1, %v10028_v2  ;;  %v11272_v2 = vld [vmem:[#allocation2 + $0xaa] sm:$0xff] }
 0x406   : > { %v22964_v6 = vpop.f32.mrb[9].mxu1  ;;  %18475 = vmatmul.mubr.msk.f32.gmra.mrb[114].mxu1 %vm534_vm1, %v4627_v0  ;;  %19253 = vmatprep.mubr.msk.f32.mxu0 %vm534_vm1, %v10029_v25  ;;  %v11273_v25 = vld [vmem:[#allocation2 + $0xb2] sm:$0xff] }
 0x407   : > { %18477 = vmatprep.mubr.msk.f32.mxu1 %vm534_vm1, %v4628_v48 }
 0x409   : > { %v22970_v1 = vpop.f32.mrb[10].mxu1  ;;  %19254 = vmatmul.mubr.msk.f32.gmra.mrb[116].mxu0 %vm534_vm1, %v10030_v8  ;;  %v11274_v8 = vld [vmem:[#allocation2 + $0xba] sm:$0xff] }
 0x40a   : > { %v22972_v14 = vpop.f32.mrb[11].mxu1  ;;  %18478 = vmatmul.mubr.msk.f32.gmra.mrb[116].mxu1 %vm534_vm1, %v4629_v39  ;;  %19256 = vmatprep.mubr.msk.f32.mxu0 %vm534_vm1, %v10031_v12  ;;  %v11275_v12 = vld [vmem:[#allocation2 + $0xca] sm:$0xff] }
 0x40b   : > { %18480 = vmatprep.mubr.msk.f32.mxu1 %vm534_vm1, %v4630_v10 }
 0x40d   : > { %v22978_v22 = vpop.f32.mrb[12].mxu1  ;;  %19257 = vmatmul.mubr.msk.f32.gmra.mrb[118].mxu0 %vm534_vm1, %v10032_v18  ;;  %v11276_v18 = vld [vmem:[#allocation2 + $0xd2] sm:$0xff] }
 0x40e   : > { %v22980_v26 = vpop.f32.mrb[13].mxu1  ;;  %18481 = vmatmul.mubr.msk.f32.gmra.mrb[118].mxu1 %vm534_vm1, %v4631_v16  ;;  %19259 = vmatprep.mubr.msk.f32.mxu0 %vm534_vm1, %v10033_v24  ;;  %v11277_v24 = vld [vmem:[#allocation2 + $0xda] sm:$0xff] }
 0x40f   : > { %18483 = vmatprep.mubr.msk.f32.mxu1 %vm534_vm1, %v4632_v20 }
 0x411   : > { %v22986_v36 = vpop.f32.mrb[14].mxu1  ;;  %19260 = vmatmul.mubr.msk.f32.gmra.mrb[120].mxu0 %vm534_vm1, %v10034_v32  ;;  %v11278_v32 = vld [vmem:[#allocation2 + $0xe2] sm:$0xff] }
 0x412   : > { %v22988_v40 = vpop.f32.mrb[15].mxu1  ;;  %18484 = vmatmul.mubr.msk.f32.gmra.mrb[120].mxu1 %vm534_vm1, %v4633_v30  ;;  %19262 = vmatprep.mubr.msk.f32.mxu0 %vm534_vm1, %v10035_v38  ;;  %v11279_v38 = vld [vmem:[#allocation2 + $0xf2] sm:$0xff] }
 0x413   : > { %18486 = vmatprep.mubr.msk.f32.mxu1 %vm534_vm1, %v4634_v34 }
 0x415   : > { %v22994_v49 = vpop.f32.mrb[16].mxu1  ;;  %19263 = vmatmul.mubr.msk.f32.gmra.mrb[122].mxu0 %vm534_vm1, %v10036_v44  ;;  %v11280_v44 = vld [vmem:[#allocation2 + $0xfa] sm:$0xff] }
 0x416   : > { %v22996_v53 = vpop.f32.mrb[17].mxu1  ;;  %18487 = vmatmul.mubr.msk.f32.gmra.mrb[122].mxu1 %vm534_vm1, %v4635_v42  ;;  %19265 = vmatprep.mubr.msk.f32.mxu0 %vm534_vm1, %v10037_v51  ;;  %v11281_v51 = vld [vmem:[#allocation2 + $0x102] sm:$0xff] }
 0x417   : > { %18489 = vmatprep.mubr.msk.f32.mxu1 %vm534_vm1, %v4636_v46 }
 0x419   : > { %v23002_v59 = vpop.f32.mrb[18].mxu1  ;;  %19266 = vmatmul.mubr.msk.f32.gmra.mrb[124].mxu0 %vm534_vm1, %v10038_v55  ;;  %v11282_v55 = vld [vmem:[#allocation2 + $0x10a] sm:$0xff] }
 0x41a   : > { %v23004_v63 = vpop.f32.mrb[19].mxu1  ;;  %18490 = vmatmul.mubr.msk.f32.gmra.mrb[124].mxu1 %vm534_vm1, %v4637_v28  ;;  %19268 = vmatprep.mubr.msk.f32.mxu0 %vm534_vm1, %v10039_v47  ;;  %v11283_v47 = vld [vmem:[#allocation2 + $0x11a] sm:$0xff] }
 0x41b   : > { %18492 = vmatprep.mubr.msk.f32.mxu1 %vm534_vm1, %v4638_v57 }
 0x41d   : > { %v23010_v11 = vpop.f32.mrb[20].mxu1  ;;  %19269 = vmatmul.mubr.msk.f32.gmra.mrb[126].mxu0 %vm534_vm1, %v10040_v7  ;;  %v11284_v7 = vld [vmem:[#allocation2 + $0x122] sm:$0xff] }
 0x41e   : > { %v23012_v19 = vpop.f32.mrb[21].mxu1  ;;  %18493 = vmatmul.mubr.msk.f32.gmra.mrb[126].mxu1 %vm534_vm1, %v4639_v3  ;;  %19273 = vmatprep.mubr.msk.f32.mxu0 %vm534_vm1, %v11263_v15 }
 0x421   : > { %v23017_v27 = vpop.f32.mrb[22].mxu1  ;;  %19274 = vmatmul.mubr.msk.f32.vlgmr.msra.gmra.mrb[0].mxu0 %vm534_vm1, %v11264_v23  ;;  %v11285_v23 = vld [vmem:[#allocation2 + $0x12a] sm:$0xff] }
 0x422   : > { %v23019_v45 = vpop.f32.mrb[23].mxu1  ;;  %19276 = vmatprep.mubr.msk.f32.mxu0 %vm534_vm1, %v11265_v37 }
 0x425   : > { %v23023_v54 = vpop.f32.mrb[24].mxu1  ;;  %19277 = vmatmul.mubr.msk.f32.gmra.mrb[2].mxu0 %vm534_vm1, %v11266_v50  ;;  %v11286_v50 = vld [vmem:[#allocation2 + $0x132] sm:$0xff] }
 0x426   : > { %v23025_v5 = vpop.f32.mrb[25].mxu1  ;;  %19279 = vmatprep.mubr.msk.f32.mxu0 %vm534_vm1, %v11267_v9 }
 0x429   : > { %v23029_v21 = vpop.f32.mrb[26].mxu1  ;;  %19280 = vmatmul.mubr.msk.f32.gmra.mrb[4].mxu0 %vm534_vm1, %v11268_v13  ;;  %v11287_v13 = vld [vmem:[#allocation2 + $0x142] sm:$0xff] }
 0x42a   : > { %v23031_v43 = vpop.f32.mrb[27].mxu1  ;;  %19282 = vmatprep.mubr.msk.f32.mxu0 %vm534_vm1, %v11269_v35 }
 0x42d   : > { %v23035_v52 = vpop.f32.mrb[28].mxu1  ;;  %19283 = vmatmul.mubr.msk.f32.gmra.mrb[6].mxu0 %vm534_vm1, %v11270_v31  ;;  %v11288_v31 = vld [vmem:[#allocation2 + $0x14a] sm:$0xff] }
 0x42e   : > { %v23037_v0 = vpop.f32.mrb[29].mxu1  ;;  %19285 = vmatprep.mubr.msk.f32.mxu0 %vm534_vm1, %v11271_v17 }
 0x431   : > { %v23041_v48 = vpop.f32.mrb[30].mxu1  ;;  %19286 = vmatmul.mubr.msk.f32.gmra.mrb[8].mxu0 %vm534_vm1, %v11272_v2  ;;  %v11289_v2 = vld [vmem:[#allocation2 + $0x152] sm:$0xff] }
 0x432   : > { %v23043_v39 = vpop.f32.mrb[31].mxu1  ;;  %19288 = vmatprep.mubr.msk.f32.mxu0 %vm534_vm1, %v11273_v25 }
 0x435   : > { %v23047_v10 = vpop.f32.mrb[32].mxu1  ;;  %19289 = vmatmul.mubr.msk.f32.gmra.mrb[10].mxu0 %vm534_vm1, %v11274_v8  ;;  %v11290_v8 = vld [vmem:[#allocation2 + $0x15a] sm:$0xff] }
 0x436   : > { %v23049_v16 = vpop.f32.mrb[33].mxu1  ;;  %19291 = vmatprep.mubr.msk.f32.mxu0 %vm534_vm1, %v11275_v12 }
 0x439   : > { %v23053_v20 = vpop.f32.mrb[34].mxu1  ;;  %19292 = vmatmul.mubr.msk.f32.gmra.mrb[12].mxu0 %vm534_vm1, %v11276_v18  ;;  %v11291_v18 = vld [vmem:[#allocation2 + $0x16a] sm:$0xff] }
 0x43a   : > { %v23055_v30 = vpop.f32.mrb[35].mxu1  ;;  %19294 = vmatprep.mubr.msk.f32.mxu0 %vm534_vm1, %v11277_v24 }
 0x43d   : > { %v23059_v34 = vpop.f32.mrb[36].mxu1  ;;  %19295 = vmatmul.mubr.msk.f32.gmra.mrb[14].mxu0 %vm534_vm1, %v11278_v32  ;;  %v11292_v32 = vld [vmem:[#allocation2 + $0x172] sm:$0xff] }
 0x43e   : > { %v23061_v42 = vpop.f32.mrb[37].mxu1  ;;  %19297 = vmatprep.mubr.msk.f32.mxu0 %vm534_vm1, %v11279_v38 }
 0x441   : > { %v23065_v46 = vpop.f32.mrb[38].mxu1  ;;  %19298 = vmatmul.mubr.msk.f32.gmra.mrb[16].mxu0 %vm534_vm1, %v11280_v44  ;;  %v11293_v44 = vld [vmem:[#allocation2 + $0x17a] sm:$0xff] }
 0x442   : > { %v23067_v28 = vpop.f32.mrb[39].mxu1  ;;  %19300 = vmatprep.mubr.msk.f32.mxu0 %vm534_vm1, %v11281_v51 }
 0x445   : > { %v23071_v57 = vpop.f32.mrb[40].mxu1  ;;  %19301 = vmatmul.mubr.msk.f32.gmra.mrb[18].mxu0 %vm534_vm1, %v11282_v55  ;;  %v11294_v55 = vld [vmem:[#allocation2 + $0x182] sm:$0xff] }
 0x446   : > { %v23073_v3 = vpop.f32.mrb[41].mxu1  ;;  %19303 = vmatprep.mubr.msk.f32.mxu0 %vm534_vm1, %v11283_v47 }
 0x449   : > { %v23077_v15 = vpop.f32.mrb[42].mxu1  ;;  %19304 = vmatmul.mubr.msk.f32.gmra.mrb[20].mxu0 %vm534_vm1, %v11284_v7  ;;  %v11295_v7 = vld [vmem:[#allocation2 + $0x192] sm:$0xff] }
 0x44a   : > { %v23079_v37 = vpop.f32.mrb[43].mxu1  ;;  %19306 = vmatprep.mubr.msk.f32.mxu0 %vm534_vm1, %v11285_v23 }
 0x44d   : > { %v23083_v9 = vpop.f32.mrb[44].mxu1  ;;  %19307 = vmatmul.mubr.msk.f32.gmra.mrb[22].mxu0 %vm534_vm1, %v11286_v50  ;;  %v11296_v50 = vld [vmem:[#allocation2 + $0x19a] sm:$0xff] }
 0x44e   : > { %v23085_v35 = vpop.f32.mrb[45].mxu1  ;;  %19309 = vmatprep.mubr.msk.f32.mxu0 %vm534_vm1, %v11287_v13 }
 0x451   : > { %v23089_v17 = vpop.f32.mrb[46].mxu1  ;;  %19310 = vmatmul.mubr.msk.f32.gmra.mrb[24].mxu0 %vm534_vm1, %v11288_v31  ;;  %v11297_v31 = vld [vmem:[#allocation2 + $0x1a2] sm:$0xff] }
 0x452   : > { %v23091_v25 = vpop.f32.mrb[47].mxu1  ;;  %19312 = vmatprep.mubr.msk.f32.mxu0 %vm534_vm1, %v11289_v2 }
 0x455   : > { %v23095_v12 = vpop.f32.mrb[48].mxu1  ;;  %19313 = vmatmul.mubr.msk.f32.gmra.mrb[26].mxu0 %vm534_vm1, %v11290_v8  ;;  %v11298_v8 = vld [vmem:[#allocation2 + $0x1aa] sm:$0xff] }
 0x456   : > { %v23097_v24 = vpop.f32.mrb[49].mxu1  ;;  %19315 = vmatprep.mubr.msk.f32.mxu0 %vm534_vm1, %v11291_v18 }
 0x459   : > { %v23101_v38 = vpop.f32.mrb[50].mxu1  ;;  %19316 = vmatmul.mubr.msk.f32.gmra.mrb[28].mxu0 %vm534_vm1, %v11292_v32  ;;  %v11299_v32 = vld [vmem:[#allocation2 + $0x1ba] sm:$0xff] }
 0x45a   : > { %v23103_v51 = vpop.f32.mrb[51].mxu1  ;;  %19318 = vmatprep.mubr.msk.f32.mxu0 %vm534_vm1, %v11293_v44 }
 0x45b   : > { %24736 = vst [vmem:[#allocation3_spill] sm:$0xff] %v23103_v51 }
 0x45d   : > { %v23107_v47 = vpop.f32.mrb[52].mxu1  ;;  %19319 = vmatmul.mubr.msk.f32.gmra.mrb[30].mxu0 %vm534_vm1, %v11294_v55  ;;  %v11300_v55 = vld [vmem:[#allocation2 + $0x1c2] sm:$0xff] }
 0x45e   : > { %24737 = vst [vmem:[#allocation4_spill] sm:$0xff] %v23107_v47  ;;  %v23109_v23 = vpop.f32.mrb[53].mxu1  ;;  %19321 = vmatprep.mubr.msk.f32.mxu0 %vm534_vm1, %v11295_v7 }
 0x45f   : > { %24738 = vst [vmem:[#allocation5_spill] sm:$0xff] %v23109_v23 }
 0x461   : > { %v23113_v13 = vpop.f32.mrb[54].mxu1  ;;  %19322 = vmatmul.mubr.msk.f32.gmra.mrb[32].mxu0 %vm534_vm1, %v11296_v50  ;;  %v11302_v50 = vld [vmem:[#allocation2 + $0x1d2] sm:$0xff] }
 0x462   : > { %24739 = vst [vmem:[#allocation6_spill] sm:$0xff] %v23113_v13  ;;  %v23115_v2 = vpop.f32.mrb[55].mxu1  ;;  %19324 = vmatprep.mubr.msk.f32.mxu0 %vm534_vm1, %v11297_v31  ;;  %v11301_v13 = vld [vmem:[#allocation2 + $0x1ca] sm:$0xff] }
 0x463   : > { %24740 = vst [vmem:[#allocation7_spill] sm:$0xff] %v23115_v2 }
 0x465   : > { %v23119_v18 = vpop.f32.mrb[56].mxu1  ;;  %19325 = vmatmul.mubr.msk.f32.gmra.mrb[34].mxu0 %vm534_vm1, %v11298_v8  ;;  %v11304_v8 = vld [vmem:[#allocation2 + $0x1ea] sm:$0xff] }
 0x466   : > { %24741 = vst [vmem:[#allocation8_spill] sm:$0xff] %v23119_v18  ;;  %v23121_v44 = vpop.f32.mrb[57].mxu1  ;;  %19327 = vmatprep.mubr.msk.f32.mxu0 %vm534_vm1, %v11299_v32  ;;  %v11303_v18 = vld [vmem:[#allocation2 + $0x1e2] sm:$0xff] }
 0x467   : > { %24742 = vst [vmem:[#allocation9_spill] sm:$0xff] %v23121_v44 }
 0x469   : > { %v23125_v7 = vpop.f32.mrb[58].mxu1  ;;  %19328 = vmatmul.mubr.msk.f32.gmra.mrb[36].mxu0 %vm534_vm1, %v11300_v55 }
 0x46a   : > { %24743 = vst [vmem:[#allocation10_spill] sm:$0xff] %v23125_v7  ;;  %v23127_v23 = vpop.f32.mrb[59].mxu1  ;;  %19330 = vmatprep.mubr.msk.f32.mxu0 %vm534_vm1, %v11301_v13  ;;  %v11305_v7 = vld [vmem:[#allocation2 + $0x1f2] sm:$0xff]  ;;  %v11306_v13 = vld [vmem:[#allocation2 + $0x1fa] sm:$0xff] }
 0x46b   : > { %24744 = vst [vmem:[#allocation11_spill] sm:$0xff] %v23127_v23 }
 0x46d   : > { %v23131_v31 = vpop.f32.mrb[60].mxu1  ;;  %19331 = vmatmul.mubr.msk.f32.gmra.mrb[38].mxu0 %vm534_vm1, %v11302_v50 }
 0x46e   : > { %24745 = vst [vmem:[#allocation12_spill] sm:$0xff] %v23131_v31  ;;  %v23133_v2 = vpop.f32.mrb[61].mxu1  ;;  %19333 = vmatprep.mubr.msk.f32.mxu0 %vm534_vm1, %v11303_v18  ;;  %v11307_v31 = vld [vmem:[#allocation2 + $0x20a] sm:$0xff]  ;;  %v11308_v18 = vld [vmem:[#allocation2 + $0x212] sm:$0xff] }
 0x46f   : > { %24746 = vst [vmem:[#allocation13_spill] sm:$0xff] %v23133_v2 }
 0x471   : > { %v23137_v32 = vpop.f32.mrb[62].mxu1  ;;  %19334 = vmatmul.mubr.msk.f32.gmra.mrb[40].mxu0 %vm534_vm1, %v11304_v8 }
 0x472   : > { %24747 = vst [vmem:[#allocation14_spill] sm:$0xff] %v23137_v32  ;;  %v23139_v44 = vpop.f32.mrb[63].mxu1  ;;  %19336 = vmatprep.mubr.msk.f32.mxu0 %vm534_vm1, %v11305_v7  ;;  %v11309_v32 = vld [vmem:[#allocation2 + $0x21a] sm:$0xff]  ;;  %v11310_v7 = vld [vmem:[#allocation2 + $0x222] sm:$0xff] }
 0x473   : > { %24748 = vst [vmem:[#allocation15_spill] sm:$0xff] %v23139_v44 }
 0x475   : > { %v23143_v55 = vpop.f32.mrb[64].mxu1  ;;  %19337 = vmatmul.mubr.msk.f32.gmra.mrb[42].mxu0 %vm534_vm1, %v11306_v13 }
 0x476   : > { %24749 = vst [vmem:[#allocation16_spill] sm:$0xff] %v23143_v55  ;;  %v23145_v23 = vpop.f32.mrb[65].mxu1  ;;  %19339 = vmatprep.mubr.msk.f32.mxu0 %vm534_vm1, %v11307_v31  ;;  %v11311_v55 = vld [vmem:[#allocation2 + $0x232] sm:$0xff]  ;;  %v11312_v31 = vld [vmem:[#allocation2 + $0x23a] sm:$0xff] }
 0x477   : > { %24750 = vst [vmem:[#allocation17_spill] sm:$0xff] %v23145_v23 }
 0x479   : > { %v23149_v50 = vpop.f32.mrb[66].mxu1  ;;  %19340 = vmatmul.mubr.msk.f32.gmra.mrb[44].mxu0 %vm534_vm1, %v11308_v18 }
 0x47a   : > { %24751 = vst [vmem:[#allocation18_spill] sm:$0xff] %v23149_v50  ;;  %v23151_v2 = vpop.f32.mrb[67].mxu1  ;;  %19342 = vmatprep.mubr.msk.f32.mxu0 %vm534_vm1, %v11309_v32  ;;  %v11313_v50 = vld [vmem:[#allocation2 + $0x242] sm:$0xff]  ;;  %v11314_v32 = vld [vmem:[#allocation2 + $0x24a] sm:$0xff] }
 0x47b   : > { %24752 = vst [vmem:[#allocation19_spill] sm:$0xff] %v23151_v2 }
 0x47d   : > { %v23155_v8 = vpop.f32.mrb[68].mxu1  ;;  %19343 = vmatmul.mubr.msk.f32.gmra.mrb[46].mxu0 %vm534_vm1, %v11310_v7 }
 0x47e   : > { %24753 = vst [vmem:[#allocation20_spill] sm:$0xff] %v23155_v8  ;;  %v23157_v44 = vpop.f32.mrb[69].mxu1  ;;  %19345 = vmatprep.mubr.msk.f32.mxu0 %vm534_vm1, %v11311_v55  ;;  %v11315_v8 = vld [vmem:[#allocation2 + $0x25a] sm:$0xff]  ;;  %v11316_v55 = vld [vmem:[#allocation2 + $0x262] sm:$0xff] }
 0x47f   : > { %24754 = vst [vmem:[#allocation21_spill] sm:$0xff] %v23157_v44 }
 0x481   : > { %v23161_v13 = vpop.f32.mrb[70].mxu1  ;;  %19346 = vmatmul.mubr.msk.f32.gmra.mrb[48].mxu0 %vm534_vm1, %v11312_v31 }
 0x482   : > { %24755 = vst [vmem:[#allocation22_spill] sm:$0xff] %v23161_v13  ;;  %v23163_v23 = vpop.f32.mrb[71].mxu1  ;;  %19348 = vmatprep.mubr.msk.f32.mxu0 %vm534_vm1, %v11313_v50  ;;  %v11317_v13 = vld [vmem:[#allocation2 + $0x26a] sm:$0xff]  ;;  %v11318_v50 = vld [vmem:[#allocation2 + $0x272] sm:$0xff] }
 0x483   : > { %24756 = vst [vmem:[#allocation23_spill] sm:$0xff] %v23163_v23 }
 0x485   : > { %v23167_v18 = vpop.f32.mrb[72].mxu1  ;;  %19349 = vmatmul.mubr.msk.f32.gmra.mrb[50].mxu0 %vm534_vm1, %v11314_v32 }
 0x486   : > { %24757 = vst [vmem:[#allocation24_spill] sm:$0xff] %v23167_v18  ;;  %v23169_v2 = vpop.f32.mrb[73].mxu1  ;;  %19351 = vmatprep.mubr.msk.f32.mxu0 %vm534_vm1, %v11315_v8  ;;  %v11319_v18 = vld [vmem:[#allocation2 + $0x282] sm:$0xff]  ;;  %v11320_v8 = vld [vmem:[#allocation2 + $0x28a] sm:$0xff] }
 0x487   : > { %24758 = vst [vmem:[#allocation25_spill] sm:$0xff] %v23169_v2 }
 0x489   : > { %v23173_v7 = vpop.f32.mrb[74].mxu1  ;;  %19352 = vmatmul.mubr.msk.f32.gmra.mrb[52].mxu0 %vm534_vm1, %v11316_v55 }
 0x48a   : > { %24759 = vst [vmem:[#allocation26_spill] sm:$0xff] %v23173_v7  ;;  %v23175_v44 = vpop.f32.mrb[75].mxu1  ;;  %19354 = vmatprep.mubr.msk.f32.mxu0 %vm534_vm1, %v11317_v13  ;;  %v11321_v7 = vld [vmem:[#allocation2 + $0x292] sm:$0xff]  ;;  %v11322_v13 = vld [vmem:[#allocation2 + $0x29a] sm:$0xff] }
 0x48b   : > { %24760 = vst [vmem:[#allocation27_spill] sm:$0xff] %v23175_v44 }
 0x48d   : > { %v23179_v31 = vpop.f32.mrb[76].mxu1  ;;  %19355 = vmatmul.mubr.msk.f32.gmra.mrb[54].mxu0 %vm534_vm1, %v11318_v50 }
 0x48e   : > { %24761 = vst [vmem:[#allocation28_spill] sm:$0xff] %v23179_v31  ;;  %v23181_v23 = vpop.f32.mrb[77].mxu1  ;;  %19357 = vmatprep.mubr.msk.f32.mxu0 %vm534_vm1, %v11319_v18  ;;  %v11323_v31 = vld [vmem:[#allocation2 + $0x2aa] sm:$0xff]  ;;  %v11324_v18 = vld [vmem:[#allocation2 + $0x2b2] sm:$0xff] }
 0x48f   : > { %24762 = vst [vmem:[#allocation29_spill] sm:$0xff] %v23181_v23 }
 0x491   : > { %v23185_v32 = vpop.f32.mrb[78].mxu1  ;;  %19358 = vmatmul.mubr.msk.f32.gmra.mrb[56].mxu0 %vm534_vm1, %v11320_v8 }
 0x492   : > { %24763 = vst [vmem:[#allocation30_spill] sm:$0xff] %v23185_v32  ;;  %v23187_v2 = vpop.f32.mrb[79].mxu1  ;;  %19360 = vmatprep.mubr.msk.f32.mxu0 %vm534_vm1, %v11321_v7  ;;  %v11325_v32 = vld [vmem:[#allocation2 + $0x2ba] sm:$0xff]  ;;  %v11326_v7 = vld [vmem:[#allocation2 + $0x2c2] sm:$0xff] }
 0x493   : > { %24764 = vst [vmem:[#allocation31_spill] sm:$0xff] %v23187_v2 }
 0x495   : > { %v23191_v55 = vpop.f32.mrb[80].mxu1  ;;  %19361 = vmatmul.mubr.msk.f32.gmra.mrb[58].mxu0 %vm534_vm1, %v11322_v13 }
 0x496   : > { %24765 = vst [vmem:[#allocation32_spill] sm:$0xff] %v23191_v55  ;;  %v23193_v44 = vpop.f32.mrb[81].mxu1  ;;  %19363 = vmatprep.mubr.msk.f32.mxu0 %vm534_vm1, %v11323_v31  ;;  %v11327_v55 = vld [vmem:[#allocation2 + $0x2d2] sm:$0xff]  ;;  %v11328_v31 = vld [vmem:[#allocation2 + $0x2da] sm:$0xff] }
 0x497   : > { %24766 = vst [vmem:[#allocation33_spill] sm:$0xff] %v23193_v44 }
 0x499   : > { %v23197_v50 = vpop.f32.mrb[82].mxu1  ;;  %19364 = vmatmul.mubr.msk.f32.gmra.mrb[60].mxu0 %vm534_vm1, %v11324_v18 }
 0x49a   : > { %24767 = vst [vmem:[#allocation34_spill] sm:$0xff] %v23197_v50  ;;  %v23199_v23 = vpop.f32.mrb[83].mxu1  ;;  %19366 = vmatprep.mubr.msk.f32.mxu0 %vm534_vm1, %v11325_v32  ;;  %v11329_v50 = vld [vmem:[#allocation2 + $0x2e2] sm:$0xff]  ;;  %v11330_v32 = vld [vmem:[#allocation2 + $0x2ea] sm:$0xff] }
 0x49b   : > { %24768 = vst [vmem:[#allocation35_spill] sm:$0xff] %v23199_v23 }
 0x49d   : > { %v23203_v8 = vpop.f32.mrb[84].mxu1  ;;  %19367 = vmatmul.mubr.msk.f32.gmra.mrb[62].mxu0 %vm534_vm1, %v11326_v7 }
 0x49e   : > { %24769 = vst [vmem:[#allocation36_spill] sm:$0xff] %v23203_v8  ;;  %v23205_v2 = vpop.f32.mrb[85].mxu1  ;;  %19369 = vmatprep.mubr.msk.f32.mxu0 %vm534_vm1, %v11327_v55  ;;  %v11331_v8 = vld [vmem:[#allocation2 + $0x2fa] sm:$0xff]  ;;  %v11332_v55 = vld [vmem:[#allocation2 + $0x302] sm:$0xff] }
 0x49f   : > { %24770 = vst [vmem:[#allocation37_spill] sm:$0xff] %v23205_v2 }
 0x4a1   : > { %v23209_v13 = vpop.f32.mrb[86].mxu1  ;;  %19370 = vmatmul.mubr.msk.f32.gmra.mrb[64].mxu0 %vm534_vm1, %v11328_v31 }
 0x4a2   : > { %24771 = vst [vmem:[#allocation38_spill] sm:$0xff] %v23209_v13  ;;  %v23211_v44 = vpop.f32.mrb[87].mxu1  ;;  %19372 = vmatprep.mubr.msk.f32.mxu0 %vm534_vm1, %v11329_v50  ;;  %v11333_v13 = vld [vmem:[#allocation2 + $0x30a] sm:$0xff]  ;;  %v11334_v50 = vld [vmem:[#allocation2 + $0x312] sm:$0xff] }
 0x4a3   : > { %24772 = vst [vmem:[#allocation39_spill] sm:$0xff] %v23211_v44 }
 0x4a5   : > { %v23215_v18 = vpop.f32.mrb[88].mxu1  ;;  %19373 = vmatmul.mubr.msk.f32.gmra.mrb[66].mxu0 %vm534_vm1, %v11330_v32 }
 0x4a6   : > { %24773 = vst [vmem:[#allocation40_spill] sm:$0xff] %v23215_v18  ;;  %v23217_v23 = vpop.f32.mrb[89].mxu1  ;;  %19375 = vmatprep.mubr.msk.f32.mxu0 %vm534_vm1, %v11331_v8  ;;  %v11335_v18 = vld [vmem:[#allocation2 + $0x322] sm:$0xff]  ;;  %v11336_v8 = vld [vmem:[#allocation2 + $0x32a] sm:$0xff] }
 0x4a7   : > { %24774 = vst [vmem:[#allocation41_spill] sm:$0xff] %v23217_v23 }
 0x4a9   : > { %v23221_v7 = vpop.f32.mrb[90].mxu1  ;;  %19376 = vmatmul.mubr.msk.f32.gmra.mrb[68].mxu0 %vm534_vm1, %v11332_v55 }
 0x4aa   : > { %24775 = vst [vmem:[#allocation42_spill] sm:$0xff] %v23221_v7  ;;  %v23223_v2 = vpop.f32.mrb[91].mxu1  ;;  %19378 = vmatprep.mubr.msk.f32.mxu0 %vm534_vm1, %v11333_v13  ;;  %v11337_v7 = vld [vmem:[#allocation2 + $0x332] sm:$0xff]  ;;  %v11338_v13 = vld [vmem:[#allocation2 + $0x33a] sm:$0xff] }
 0x4ab   : > { %24776 = vst [vmem:[#allocation43_spill] sm:$0xff] %v23223_v2 }
 0x4ad   : > { %v23227_v31 = vpop.f32.mrb[92].mxu1  ;;  %19379 = vmatmul.mubr.msk.f32.gmra.mrb[70].mxu0 %vm534_vm1, %v11334_v50 }
 0x4ae   : > { %24777 = vst [vmem:[#allocation44_spill] sm:$0xff] %v23227_v31  ;;  %v23229_v44 = vpop.f32.mrb[93].mxu1  ;;  %19381 = vmatprep.mubr.msk.f32.mxu0 %vm534_vm1, %v11335_v18  ;;  %v11339_v31 = vld [vmem:[#allocation2 + $0x34a] sm:$0xff]  ;;  %v11340_v18 = vld [vmem:[#allocation2 + $0x352] sm:$0xff] }
 0x4af   : > { %24778 = vst [vmem:[#allocation45_spill] sm:$0xff] %v23229_v44 }
 0x4b1   : > { %v23233_v32 = vpop.f32.mrb[94].mxu1  ;;  %19382 = vmatmul.mubr.msk.f32.gmra.mrb[72].mxu0 %vm534_vm1, %v11336_v8 }
 0x4b2   : > { %24779 = vst [vmem:[#allocation46_spill] sm:$0xff] %v23233_v32  ;;  %v23235_v23 = vpop.f32.mrb[95].mxu1  ;;  %19384 = vmatprep.mubr.msk.f32.mxu0 %vm534_vm1, %v11337_v7  ;;  %v11341_v32 = vld [vmem:[#allocation2 + $0x35a] sm:$0xff]  ;;  %v11342_v7 = vld [vmem:[#allocation2 + $0x362] sm:$0xff] }
 0x4b3   : > { %24780 = vst [vmem:[#allocation47_spill] sm:$0xff] %v23235_v23 }
 0x4b5   : > { %v23239_v55 = vpop.f32.mrb[96].mxu1  ;;  %19385 = vmatmul.mubr.msk.f32.gmra.mrb[74].mxu0 %vm534_vm1, %v11338_v13 }
 0x4b6   : > { %24781 = vst [vmem:[#allocation48_spill] sm:$0xff] %v23239_v55  ;;  %v23241_v2 = vpop.f32.mrb[97].mxu1  ;;  %19387 = vmatprep.mubr.msk.f32.mxu0 %vm534_vm1, %v11339_v31  ;;  %v11343_v55 = vld [vmem:[#allocation2 + $0x372] sm:$0xff]  ;;  %v11344_v31 = vld [vmem:[#allocation2 + $0x37a] sm:$0xff] }
 0x4b7   : > { %24782 = vst [vmem:[#allocation49_spill] sm:$0xff] %v23241_v2 }
 0x4b9   : > { %v23245_v50 = vpop.f32.mrb[98].mxu1  ;;  %19388 = vmatmul.mubr.msk.f32.gmra.mrb[76].mxu0 %vm534_vm1, %v11340_v18 }
 0x4ba   : > { %24783 = vst [vmem:[#allocation50_spill] sm:$0xff] %v23245_v50  ;;  %v23247_v44 = vpop.f32.mrb[99].mxu1  ;;  %19390 = vmatprep.mubr.msk.f32.mxu0 %vm534_vm1, %v11341_v32  ;;  %v11345_v50 = vld [vmem:[#allocation2 + $0x382] sm:$0xff]  ;;  %v11346_v32 = vld [vmem:[#allocation2 + $0x38a] sm:$0xff] }
 0x4bb   : > { %24784 = vst [vmem:[#allocation51_spill] sm:$0xff] %v23247_v44 }
 0x4bd   : > { %v23251_v8 = vpop.f32.mrb[100].mxu1  ;;  %19391 = vmatmul.mubr.msk.f32.gmra.mrb[78].mxu0 %vm534_vm1, %v11342_v7 }
 0x4be   : > { %24785 = vst [vmem:[#allocation52_spill] sm:$0xff] %v23251_v8  ;;  %v23253_v23 = vpop.f32.mrb[101].mxu1  ;;  %19393 = vmatprep.mubr.msk.f32.mxu0 %vm534_vm1, %v11343_v55  ;;  %v11347_v8 = vld [vmem:[#allocation2 + $0x39a] sm:$0xff]  ;;  %v11348_v55 = vld [vmem:[#allocation2 + $0x3a2] sm:$0xff] }
 0x4bf   : > { %24786 = vst [vmem:[#allocation53_spill] sm:$0xff] %v23253_v23 }
 0x4c1   : > { %v23257_v13 = vpop.f32.mrb[102].mxu1  ;;  %19394 = vmatmul.mubr.msk.f32.gmra.mrb[80].mxu0 %vm534_vm1, %v11344_v31 }
 0x4c2   : > { %24787 = vst [vmem:[#allocation54_spill] sm:$0xff] %v23257_v13  ;;  %v23259_v2 = vpop.f32.mrb[103].mxu1  ;;  %19396 = vmatprep.mubr.msk.f32.mxu0 %vm534_vm1, %v11345_v50  ;;  %v11349_v13 = vld [vmem:[#allocation2 + $0x3aa] sm:$0xff]  ;;  %v11350_v50 = vld [vmem:[#allocation2 + $0x3b2] sm:$0xff] }
 0x4c3   : > { %24788 = vst [vmem:[#allocation55_spill] sm:$0xff] %v23259_v2 }
 0x4c5   : > { %v23263_v18 = vpop.f32.mrb[104].mxu1  ;;  %19397 = vmatmul.mubr.msk.f32.gmra.mrb[82].mxu0 %vm534_vm1, %v11346_v32 }
 0x4c6   : > { %24789 = vst [vmem:[#allocation56_spill] sm:$0xff] %v23263_v18  ;;  %v23265_v44 = vpop.f32.mrb[105].mxu1  ;;  %19399 = vmatprep.mubr.msk.f32.mxu0 %vm534_vm1, %v11347_v8  ;;  %v11351_v18 = vld [vmem:[#allocation2 + $0x3c2] sm:$0xff]  ;;  %v11352_v8 = vld [vmem:[#allocation2 + $0x3ca] sm:$0xff] }
 0x4c7   : > { %24790 = vst [vmem:[#allocation57_spill] sm:$0xff] %v23265_v44 }
 0x4c9   : > { %v23269_v7 = vpop.f32.mrb[106].mxu1  ;;  %19400 = vmatmul.mubr.msk.f32.gmra.mrb[84].mxu0 %vm534_vm1, %v11348_v55 }
 0x4ca   : > { %24791 = vst [vmem:[#allocation58_spill] sm:$0xff] %v23269_v7  ;;  %v23271_v23 = vpop.f32.mrb[107].mxu1  ;;  %19402 = vmatprep.mubr.msk.f32.mxu0 %vm534_vm1, %v11349_v13  ;;  %v11353_v7 = vld [vmem:[#allocation2 + $0x3d2] sm:$0xff]  ;;  %v11354_v13 = vld [vmem:[#allocation2 + $0x3da] sm:$0xff] }
 0x4cb   : > { %24792 = vst [vmem:[#allocation59_spill] sm:$0xff] %v23271_v23 }
 0x4cd   : > { %v23275_v31 = vpop.f32.mrb[108].mxu1  ;;  %19403 = vmatmul.mubr.msk.f32.gmra.mrb[86].mxu0 %vm534_vm1, %v11350_v50 }
 0x4ce   : > { %24793 = vst [vmem:[#allocation60_spill] sm:$0xff] %v23275_v31  ;;  %v23277_v2 = vpop.f32.mrb[109].mxu1  ;;  %19405 = vmatprep.mubr.msk.f32.mxu0 %vm534_vm1, %v11351_v18  ;;  %v11355_v31 = vld [vmem:[#allocation2 + $0x3ea] sm:$0xff]  ;;  %v11356_v18 = vld [vmem:[#allocation2 + $0x3f2] sm:$0xff] }
 0x4cf   : > { %24794 = vst [vmem:[#allocation61_spill] sm:$0xff] %v23277_v2 }
 0x4d1   : > { %v23281_v32 = vpop.f32.mrb[110].mxu1  ;;  %19406 = vmatmul.mubr.msk.f32.gmra.mrb[88].mxu0 %vm534_vm1, %v11352_v8 }
 0x4d2   : > { %24795 = vst [vmem:[#allocation62_spill] sm:$0xff] %v23281_v32  ;;  %v23283_v44 = vpop.f32.mrb[111].mxu1  ;;  %19408 = vmatprep.mubr.msk.f32.mxu0 %vm534_vm1, %v11353_v7  ;;  %v11357_v32 = vld [vmem:[#allocation2 + $0x3fa] sm:$0xff]  ;;  %v11358_v7 = vld [vmem:[#allocation2 + $0x402] sm:$0xff] }
 0x4d3   : > { %24796 = vst [vmem:[#allocation63_spill] sm:$0xff] %v23283_v44 }
 0x4d5   : > { %v23287_v55 = vpop.f32.mrb[112].mxu1  ;;  %19409 = vmatmul.mubr.msk.f32.gmra.mrb[90].mxu0 %vm534_vm1, %v11354_v13 }
 0x4d6   : > { %24797 = vst [vmem:[#allocation64_spill] sm:$0xff] %v23287_v55  ;;  %v23289_v23 = vpop.f32.mrb[113].mxu1  ;;  %19411 = vmatprep.mubr.msk.f32.mxu0 %vm534_vm1, %v11355_v31  ;;  %v11359_v55 = vld [vmem:[#allocation2 + $0x412] sm:$0xff]  ;;  %v11360_v31 = vld [vmem:[#allocation2 + $0x41a] sm:$0xff] }
 0x4d7   : > { %24798 = vst [vmem:[#allocation65_spill] sm:$0xff] %v23289_v23 }
 0x4d9   : > { %v23293_v50 = vpop.f32.mrb[114].mxu1  ;;  %19412 = vmatmul.mubr.msk.f32.gmra.mrb[92].mxu0 %vm534_vm1, %v11356_v18 }
 0x4da   : > { %24799 = vst [vmem:[#allocation66_spill] sm:$0xff] %v23293_v50  ;;  %v23295_v2 = vpop.f32.mrb[115].mxu1  ;;  %19414 = vmatprep.mubr.msk.f32.mxu0 %vm534_vm1, %v11357_v32  ;;  %v11361_v50 = vld [vmem:[#allocation2 + $0x422] sm:$0xff]  ;;  %v11362_v32 = vld [vmem:[#allocation2 + $0x42a] sm:$0xff] }
 0x4db   : > { %24800 = vst [vmem:[#allocation67_spill] sm:$0xff] %v23295_v2 }
 0x4dd   : > { %v23299_v8 = vpop.f32.mrb[116].mxu1  ;;  %19415 = vmatmul.mubr.msk.f32.gmra.mrb[94].mxu0 %vm534_vm1, %v11358_v7 }
 0x4de   : > { %24801 = vst [vmem:[#allocation68_spill] sm:$0xff] %v23299_v8  ;;  %v23301_v44 = vpop.f32.mrb[117].mxu1  ;;  %19417 = vmatprep.mubr.msk.f32.mxu0 %vm534_vm1, %v11359_v55  ;;  %v11363_v8 = vld [vmem:[#allocation2 + $0x43a] sm:$0xff]  ;;  %v11364_v55 = vld [vmem:[#allocation2 + $0x442] sm:$0xff] }
 0x4df   : > { %24802 = vst [vmem:[#allocation69_spill] sm:$0xff] %v23301_v44 }
 0x4e1   : > { %v23305_v13 = vpop.f32.mrb[118].mxu1  ;;  %19418 = vmatmul.mubr.msk.f32.gmra.mrb[96].mxu0 %vm534_vm1, %v11360_v31 }
 0x4e2   : > { %24803 = vst [vmem:[#allocation70_spill] sm:$0xff] %v23305_v13  ;;  %v23307_v23 = vpop.f32.mrb[119].mxu1  ;;  %19420 = vmatprep.mubr.msk.f32.mxu0 %vm534_vm1, %v11361_v50  ;;  %v11365_v13 = vld [vmem:[#allocation2 + $0x44a] sm:$0xff]  ;;  %v11366_v50 = vld [vmem:[#allocation2 + $0x452] sm:$0xff] }
 0x4e3   : > { %24804 = vst [vmem:[#allocation71_spill] sm:$0xff] %v23307_v23 }
 0x4e5   : > { %v23311_v18 = vpop.f32.mrb[120].mxu1  ;;  %19421 = vmatmul.mubr.msk.f32.gmra.mrb[98].mxu0 %vm534_vm1, %v11362_v32 }
 0x4e6   : > { %24805 = vst [vmem:[#allocation72_spill] sm:$0xff] %v23311_v18  ;;  %v23313_v2 = vpop.f32.mrb[121].mxu1  ;;  %19423 = vmatprep.mubr.msk.f32.mxu0 %vm534_vm1, %v11363_v8  ;;  %v11367_v18 = vld [vmem:[#allocation2 + $0x462] sm:$0xff]  ;;  %v11368_v8 = vld [vmem:[#allocation2 + $0x46a] sm:$0xff] }
 0x4e7   : > { %24806 = vst [vmem:[#allocation73_spill] sm:$0xff] %v23313_v2 }
 0x4e9   : > { %v23317_v7 = vpop.f32.mrb[122].mxu1  ;;  %19424 = vmatmul.mubr.msk.f32.gmra.mrb[100].mxu0 %vm534_vm1, %v11364_v55  ;;  %v11371_v55 = vld [vmem:[#allocation2 + $0x48a] sm:$0xff] }
 0x4ea   : > { %24807 = vst [vmem:[#allocation74_spill] sm:$0xff] %v23317_v7  ;;  %v23319_v44 = vpop.f32.mrb[123].mxu1  ;;  %19426 = vmatprep.mubr.msk.f32.mxu0 %vm534_vm1, %v11365_v13  ;;  %v11369_v7 = vld [vmem:[#allocation2 + $0x472] sm:$0xff]  ;;  %v11370_v13 = vld [vmem:[#allocation2 + $0x47a] sm:$0xff] }
 0x4eb   : > { %24808 = vst [vmem:[#allocation75_spill] sm:$0xff] %v23319_v44 }
 0x4ed   : > { %v23323_v31 = vpop.f32.mrb[124].mxu1  ;;  %19427 = vmatmul.mubr.msk.f32.gmra.mrb[102].mxu0 %vm534_vm1, %v11366_v50 }
 0x4ee   : > { %24809 = vst [vmem:[#allocation76_spill] sm:$0xff] %v23323_v31  ;;  %v23325_v2 = vpop.f32.mrb[125].mxu1  ;;  %19429 = vmatprep.mubr.msk.f32.mxu0 %vm534_vm1, %v11367_v18 }
 0x4ef   : > { %24810 = vst [vmem:[#allocation77_spill] sm:$0xff] %v23325_v2  ;;  %v23338_v2 = vld [vmem:[%s24546_s3] ss:$0 sm:$0xff] }
 0x4f1   : > { %v23329_v32 = vpop.f32.mrb[126].mxu1  ;;  %19430 = vmatmul.mubr.msk.f32.gmra.mrb[104].mxu0 %vm534_vm1, %v11368_v8  ;;  %v11372_v8 = vld [vmem:[#allocation2 + $0x492] sm:$0xff] }
 0x4f2   : > { %24811 = vst [vmem:[#allocation78_spill] sm:$0xff] %v23329_v32  ;;  %v23331_v44 = vpop.f32.mrb[127].mxu1  ;;  %19432 = vmatprep.mubr.msk.f32.mxu0 %vm534_vm1, %v11369_v7  ;;  %v11373_v32 = vld [vmem:[#allocation2 + $0x49a] sm:$0xff] }
 0x4f3   : > { %24812 = vst [vmem:[#allocation79_spill] sm:$0xff] %v23331_v44 }
 0x4f4   : > { %v19275_v31 = vpop.f32.mrb[0].mxu0 }
 0x4f5   : > { %v19659_v18 = vadd.f32 %v19275_v31, %v22930_v33  ;;  %v11846_v50 = vpop.f32.mrb[1].mxu0  ;;  %19433 = vmatmul.mubr.msk.f32.gmra.mrb[106].mxu0 %vm534_vm1, %v11370_v13 }
 0x4f6   : > { %v19660_v44 = vadd.f32 %v11846_v50, %v22932_v41  ;;  %19435 = vmatprep.mubr.msk.f32.mxu0 %vm534_vm1, %v11371_v55  ;;  %v11374_v50 = vld [vmem:[#allocation2 + $0x4a2] sm:$0xff] }
 0x4f7   : > { %v12621_v7 = vadd.f32 %v19659_v18, %v23338_v2 }
 0x4f8   : > { %v12620_v23 = vadd.f32 %v19660_v44, %v23338_v2  ;;  %v19278_v33 = vpop.f32.mrb[2].mxu0  ;;  %v11375_v44 = vld [vmem:[#allocation2 + $0x4b2] sm:$0xff] }
 0x4f9   : > { %v12749_v31 = vmax.f32 %v12621_v7, 0.0  ;;  %v19661_v41 = vadd.f32 %v19278_v33, %v22938_v58  ;;  %v11856_v13 = vpop.f32.mrb[3].mxu0  ;;  %19436 = vmatmul.mubr.msk.f32.gmra.mrb[108].mxu0 %vm534_vm1, %v11372_v8  ;;  %v11376_v33 = vld [vmem:[#allocation2 + $0x4ba] sm:$0xff] }
 0x4fa   : > { %v12748_v55 = vmax.f32 %v12620_v23, 0.0  ;;  %v19662_v18 = vadd.f32 %v11856_v13, %v22940_v61  ;;  %19438 = vmatprep.mubr.msk.f32.mxu0 %vm534_vm1, %v11373_v32  ;;  %v11377_v13 = vld [vmem:[#allocation2 + $0x4c2] sm:$0xff] }
 0x4fb   : > { %v12623_v47 = vadd.f32 %v19661_v41, %v23338_v2  ;;  %14231 = vst.msk [vmem:[%s23349_s14 + $0x8] sm:$0xff] %vm12884_vm3, %v12749_v31 }
 0x4fc   : > { %v12622_v51 = vadd.f32 %v19662_v18, %v23338_v2  ;;  %v19281_v7 = vpop.f32.mrb[4].mxu0  ;;  %19467 = vmatprep.mubr.msk.f32.mxu1 %vm12884_vm3, %v12748_v55  ;;  %14230 = vst.msk [vmem:[%s23349_s14] sm:$0xff] %vm12884_vm3, %v12748_v55 }
 0x4fd   : > { %v12751_v58 = vmax.f32 %v12623_v47, 0.0  ;;  %v19663_v61 = vadd.f32 %v19281_v7, %v22946_v29  ;;  %v11866_v23 = vpop.f32.mrb[5].mxu0  ;;  %19439 = vmatmul.mubr.msk.f32.gmra.mrb[110].mxu0 %vm534_vm1, %v11374_v50  ;;  %19468 = vmatmul.mubr.msk.f32.vlgmr.msra.gmra.mrb[128].mxu1 %vm12884_vm3, %v12749_v31  ;;  %v11378_v50 = vld [vmem:[#allocation2 + $0x4ca] sm:$0xff]  ;;  %v11379_v7 = vld [vmem:[#allocation2 + $0x4da] sm:$0xff] }
 0x4fe   : > { %v12750_v32 = vmax.f32 %v12622_v51, 0.0  ;;  %v19664_v8 = vadd.f32 %v11866_v23, %v22948_v60  ;;  %19441 = vmatprep.mubr.msk.f32.mxu0 %vm534_vm1, %v11375_v44 }
 0x4ff   : > { %v12625_v41 = vadd.f32 %v19663_v61, %v23338_v2  ;;  %14233 = vst.msk [vmem:[%s23349_s14 + $0x18] sm:$0xff] %vm12884_vm3, %v12751_v58 }
 0x500   : > { %14232 = vst.msk [vmem:[%s23349_s14 + $0x10] sm:$0xff] %vm12884_vm3, %v12750_v32  ;;  %v12624_v29 = vadd.f32 %v19664_v8, %v23338_v2  ;;  %v19284_v47 = vpop.f32.mrb[6].mxu0  ;;  %19470 = vmatprep.mubr.msk.f32.mxu1 %vm12884_vm3, %v12750_v32 }
 0x501   : > { %v12753_v51 = vmax.f32 %v12625_v41, 0.0  ;;  %v19665_v60 = vadd.f32 %v19284_v47, %v22954_v56  ;;  %v11876_v31 = vpop.f32.mrb[7].mxu0  ;;  %19442 = vmatmul.mubr.msk.f32.gmra.mrb[112].mxu0 %vm534_vm1, %v11376_v33  ;;  %19471 = vmatmul.mubr.msk.f32.gmra.mrb[130].mxu1 %vm12884_vm3, %v12751_v58  ;;  %v11380_v33 = vld [vmem:[#allocation2 + $0x4e2] sm:$0xff] }
 0x502   : > { %v12752_v55 = vmax.f32 %v12624_v29, 0.0  ;;  %v19666_v18 = vadd.f32 %v11876_v31, %v22956_v62  ;;  %19444 = vmatprep.mubr.msk.f32.mxu0 %vm534_vm1, %v11377_v13  ;;  %v11381_v13 = vld [vmem:[#allocation2 + $0x4ea] sm:$0xff] }
 0x503   : > { %14235 = vst.msk [vmem:[%s23349_s14 + $0x28] sm:$0xff] %vm12884_vm3, %v12753_v51  ;;  %v12627_v44 = vadd.f32 %v19665_v60, %v23338_v2 }
 0x504   : > { %14234 = vst.msk [vmem:[%s23349_s14 + $0x20] sm:$0xff] %vm12884_vm3, %v12752_v55  ;;  %v12626_v56 = vadd.f32 %v19666_v18, %v23338_v2  ;;  %v19287_v61 = vpop.f32.mrb[8].mxu0  ;;  %19473 = vmatprep.mubr.msk.f32.mxu1 %vm12884_vm3, %v12752_v55  ;;  %v11382_v55 = vld [vmem:[#allocation2 + $0x4f2] sm:$0xff] }
 0x505   : > { %v12755_v58 = vmax.f32 %v12627_v44, 0.0  ;;  %v19667_v62 = vadd.f32 %v19287_v61, %v22962_v4  ;;  %v11886_v23 = vpop.f32.mrb[9].mxu0  ;;  %19445 = vmatmul.mubr.msk.f32.gmra.mrb[114].mxu0 %vm534_vm1, %v11378_v50  ;;  %19474 = vmatmul.mubr.msk.f32.gmra.mrb[132].mxu1 %vm12884_vm3, %v12753_v51  ;;  %v11383_v50 = vld [vmem:[#allocation2 + $0x502] sm:$0xff] }
 0x506   : > { %v12754_v32 = vmax.f32 %v12626_v56, 0.0  ;;  %v19668_v8 = vadd.f32 %v11886_v23, %v22964_v6  ;;  %19447 = vmatprep.mubr.msk.f32.mxu0 %vm534_vm1, %v11379_v7 }
 0x507   : > { %14237 = vst.msk [vmem:[%s23349_s14 + $0x38] sm:$0xff] %vm12884_vm3, %v12755_v58  ;;  %v12629_v41 = vadd.f32 %v19667_v62, %v23338_v2  ;;  %v11384_v62 = vld [vmem:[#allocation2 + $0x50a] sm:$0xff] }
 0x508   : > { %14236 = vst.msk [vmem:[%s23349_s14 + $0x30] sm:$0xff] %vm12884_vm3, %v12754_v32  ;;  %v12628_v4 = vadd.f32 %v19668_v8, %v23338_v2  ;;  %v19290_v29 = vpop.f32.mrb[10].mxu0  ;;  %19476 = vmatprep.mubr.msk.f32.mxu1 %vm12884_vm3, %v12754_v32  ;;  %v11385_v32 = vld [vmem:[#allocation2 + $0x512] sm:$0xff] }
 0x509   : > { %v12757_v47 = vmax.f32 %v12629_v41, 0.0  ;;  %v19669_v6 = vadd.f32 %v19290_v29, %v22970_v1  ;;  %v11896_v51 = vpop.f32.mrb[11].mxu0  ;;  %19448 = vmatmul.mubr.msk.f32.gmra.mrb[116].mxu0 %vm534_vm1, %v11380_v33  ;;  %19477 = vmatmul.mubr.msk.f32.gmra.mrb[134].mxu1 %vm12884_vm3, %v12755_v58  ;;  %v11386_v29 = vld [vmem:[#allocation2 + $0x51a] sm:$0xff] }
 0x50a   : > { %v12756_v60 = vmax.f32 %v12628_v4, 0.0  ;;  %v19670_v31 = vadd.f32 %v11896_v51, %v22972_v14  ;;  %19450 = vmatprep.mubr.msk.f32.mxu0 %vm534_vm1, %v11381_v13 }
 0x50b   : > { %14239 = vst.msk [vmem:[%s23349_s14 + $0x48] sm:$0xff] %vm12884_vm3, %v12757_v47  ;;  %v12631_v18 = vadd.f32 %v19669_v6, %v23338_v2  ;;  %v11387_v6 = vld [vmem:[#allocation2 + $0x52a] sm:$0xff] }
 0x50c   : > { %14238 = vst.msk [vmem:[%s23349_s14 + $0x40] sm:$0xff] %vm12884_vm3, %v12756_v60  ;;  %v12630_v1 = vadd.f32 %v19670_v31, %v23338_v2  ;;  %v19293_v44 = vpop.f32.mrb[12].mxu0  ;;  %19479 = vmatprep.mubr.msk.f32.mxu1 %vm12884_vm3, %v12756_v60 }
 0x50d   : > { %v12759_v7 = vmax.f32 %v12631_v18, 0.0  ;;  %v19671_v14 = vadd.f32 %v19293_v44, %v22978_v22  ;;  %v11906_v56 = vpop.f32.mrb[13].mxu0  ;;  %19451 = vmatmul.mubr.msk.f32.gmra.mrb[118].mxu0 %vm534_vm1, %v11382_v55  ;;  %19480 = vmatmul.mubr.msk.f32.gmra.mrb[136].mxu1 %vm12884_vm3, %v12757_v47  ;;  %v11389_v44 = vld [vmem:[#allocation2 + $0x53a] sm:$0xff] }
 0x50e   : > { %v12758_v61 = vmax.f32 %v12630_v1, 0.0  ;;  %v19672_v58 = vadd.f32 %v11906_v56, %v22980_v26  ;;  %19453 = vmatprep.mubr.msk.f32.mxu0 %vm534_vm1, %v11383_v50  ;;  %v11388_v50 = vld [vmem:[#allocation2 + $0x532] sm:$0xff] }
 0x50f   : > { %14241 = vst.msk [vmem:[%s23349_s14 + $0x58] sm:$0xff] %vm12884_vm3, %v12759_v7  ;;  %v12633_v23 = vadd.f32 %v19671_v14, %v23338_v2 }
 0x510   : > { %14240 = vst.msk [vmem:[%s23349_s14 + $0x50] sm:$0xff] %vm12884_vm3, %v12758_v61  ;;  %v12632_v22 = vadd.f32 %v19672_v58, %v23338_v2  ;;  %v19296_v8 = vpop.f32.mrb[14].mxu0  ;;  %19482 = vmatprep.mubr.msk.f32.mxu1 %vm12884_vm3, %v12758_v61 }
 0x511   : > { %v12761_v33 = vmax.f32 %v12633_v23, 0.0  ;;  %v19673_v26 = vadd.f32 %v19296_v8, %v22986_v36  ;;  %v11916_v41 = vpop.f32.mrb[15].mxu0  ;;  %19454 = vmatmul.mubr.msk.f32.gmra.mrb[120].mxu0 %vm534_vm1, %v11384_v62  ;;  %19483 = vmatmul.mubr.msk.f32.gmra.mrb[138].mxu1 %vm12884_vm3, %v12759_v7  ;;  %v11390_v62 = vld [vmem:[#allocation2 + $0x542] sm:$0xff] }
 0x512   : > { %v12760_v13 = vmax.f32 %v12632_v22, 0.0  ;;  %v19674_v4 = vadd.f32 %v11916_v41, %v22988_v40  ;;  %19456 = vmatprep.mubr.msk.f32.mxu0 %vm534_vm1, %v11385_v32 }
 0x513   : > { %14243 = vst.msk [vmem:[%s23349_s14 + $0x68] sm:$0xff] %vm12884_vm3, %v12761_v33  ;;  %v12635_v47 = vadd.f32 %v19673_v26, %v23338_v2 }
 0x514   : > { %14242 = vst.msk [vmem:[%s23349_s14 + $0x60] sm:$0xff] %vm12884_vm3, %v12760_v13  ;;  %v12634_v36 = vadd.f32 %v19674_v4, %v23338_v2  ;;  %v19299_v51 = vpop.f32.mrb[16].mxu0  ;;  %19485 = vmatprep.mubr.msk.f32.mxu1 %vm12884_vm3, %v12760_v13 }
 0x515   : > { %v12763_v60 = vmax.f32 %v12635_v47, 0.0  ;;  %v19675_v40 = vadd.f32 %v19299_v51, %v22994_v49  ;;  %v11926_v31 = vpop.f32.mrb[17].mxu0  ;;  %19457 = vmatmul.mubr.msk.f32.gmra.mrb[122].mxu0 %vm534_vm1, %v11386_v29  ;;  %19486 = vmatmul.mubr.msk.f32.gmra.mrb[140].mxu1 %vm12884_vm3, %v12761_v33 }
 0x516   : > { %v12762_v55 = vmax.f32 %v12634_v36, 0.0  ;;  %v19676_v18 = vadd.f32 %v11926_v31, %v22996_v53  ;;  %19459 = vmatprep.mubr.msk.f32.mxu0 %vm534_vm1, %v11387_v6 }
 0x517   : > { %14245 = vst.msk [vmem:[%s23349_s14 + $0x78] sm:$0xff] %vm12884_vm3, %v12763_v60  ;;  %v12637_v1 = vadd.f32 %v19675_v40, %v23338_v2 }
 0x518   : > { %14244 = vst.msk [vmem:[%s23349_s14 + $0x70] sm:$0xff] %vm12884_vm3, %v12762_v55  ;;  %v12636_v49 = vadd.f32 %v19676_v18, %v23338_v2  ;;  %v19302_v7 = vpop.f32.mrb[18].mxu0  ;;  %19488 = vmatprep.mubr.msk.f32.mxu1 %vm12884_vm3, %v12762_v55 }
 0x519   : > { %v12765_v14 = vmax.f32 %v12637_v1, 0.0  ;;  %v19677_v53 = vadd.f32 %v19302_v7, %v23002_v59  ;;  %v11936_v56 = vpop.f32.mrb[19].mxu0  ;;  %19460 = vmatmul.mubr.msk.f32.gmra.mrb[124].mxu0 %vm534_vm1, %v11388_v50  ;;  %19489 = vmatmul.mubr.msk.f32.gmra.mrb[142].mxu1 %vm12884_vm3, %v12763_v60 }
 0x51a   : > { %v12764_v61 = vmax.f32 %v12636_v49, 0.0  ;;  %v19678_v58 = vadd.f32 %v11936_v56, %v23004_v63  ;;  %19462 = vmatprep.mubr.msk.f32.mxu0 %vm534_vm1, %v11389_v44 }
 0x51b   : > { %14247 = vst.msk [vmem:[%s23349_s14 + $0x88] sm:$0xff] %vm12884_vm3, %v12765_v14  ;;  %v12639_v23 = vadd.f32 %v19677_v53, %v23338_v2 }
 0x51c   : > { %14246 = vst.msk [vmem:[%s23349_s14 + $0x80] sm:$0xff] %vm12884_vm3, %v12764_v61  ;;  %v12638_v59 = vadd.f32 %v19678_v58, %v23338_v2  ;;  %v19305_v32 = vpop.f32.mrb[20].mxu0  ;;  %19491 = vmatprep.mubr.msk.f32.mxu1 %vm12884_vm3, %v12764_v61 }
 0x51d   : > { %v12767_v22 = vmax.f32 %v12639_v23, 0.0  ;;  %v19679_v8 = vadd.f32 %v19305_v32, %v23010_v11  ;;  %v11946_v63 = vpop.f32.mrb[21].mxu0  ;;  %19463 = vmatmul.mubr.msk.f32.gmra.mrb[126].mxu0 %vm534_vm1, %v11390_v62  ;;  %19492 = vmatmul.mubr.msk.f32.gmra.mrb[144].mxu1 %vm12884_vm3, %v12765_v14 }
 0x51e   : > { %v12766_v33 = vmax.f32 %v12638_v59, 0.0  ;;  %v19680_v26 = vadd.f32 %v11946_v63, %v23012_v19 }
 0x51f   : > { %14249 = vst.msk [vmem:[%s23349_s14 + $0x98] sm:$0xff] %vm12884_vm3, %v12767_v22  ;;  %v12641_v41 = vadd.f32 %v19679_v8, %v23338_v2 }
 0x520   : > { %14248 = vst.msk [vmem:[%s23349_s14 + $0x90] sm:$0xff] %vm12884_vm3, %v12766_v33  ;;  %v12640_v13 = vadd.f32 %v19680_v26, %v23338_v2  ;;  %v19308_v4 = vpop.f32.mrb[22].mxu0  ;;  %19494 = vmatprep.mubr.msk.f32.mxu1 %vm12884_vm3, %v12766_v33 }
 0x521   : > { %v12769_v11 = vmax.f32 %v12641_v41, 0.0  ;;  %v19681_v29 = vadd.f32 %v19308_v4, %v23017_v27  ;;  %v11956_v47 = vpop.f32.mrb[23].mxu0  ;;  %19495 = vmatmul.mubr.msk.f32.gmra.mrb[146].mxu1 %vm12884_vm3, %v12767_v22 }
 0x522   : > { %v12768_v6 = vmax.f32 %v12640_v13, 0.0  ;;  %v19682_v19 = vadd.f32 %v11956_v47, %v23019_v45 }
 0x523   : > { %14251 = vst.msk [vmem:[%s23349_s14 + $0xa8] sm:$0xff] %vm12884_vm3, %v12769_v11  ;;  %v12643_v36 = vadd.f32 %v19681_v29, %v23338_v2 }
 0x524   : > { %14250 = vst.msk [vmem:[%s23349_s14 + $0xa0] sm:$0xff] %vm12884_vm3, %v12768_v6  ;;  %v12642_v51 = vadd.f32 %v19682_v19, %v23338_v2  ;;  %v19311_v60 = vpop.f32.mrb[24].mxu0  ;;  %19497 = vmatprep.mubr.msk.f32.mxu1 %vm12884_vm3, %v12768_v6 }
 0x525   : > { %v12771_v27 = vmax.f32 %v12643_v36, 0.0  ;;  %v19683_v40 = vadd.f32 %v19311_v60, %v23023_v54  ;;  %v11966_v31 = vpop.f32.mrb[25].mxu0  ;;  %19498 = vmatmul.mubr.msk.f32.gmra.mrb[148].mxu1 %vm12884_vm3, %v12769_v11 }
 0x526   : > { %v12770_v55 = vmax.f32 %v12642_v51, 0.0  ;;  %v19684_v45 = vadd.f32 %v11966_v31, %v23025_v5 }
 0x527   : > { %14253 = vst.msk [vmem:[%s23349_s14 + $0xb8] sm:$0xff] %vm12884_vm3, %v12771_v27  ;;  %v12645_v18 = vadd.f32 %v19683_v40, %v23338_v2 }
 0x528   : > { %14252 = vst.msk [vmem:[%s23349_s14 + $0xb0] sm:$0xff] %vm12884_vm3, %v12770_v55  ;;  %v12644_v50 = vadd.f32 %v19684_v45, %v23338_v2  ;;  %v19314_v1 = vpop.f32.mrb[26].mxu0  ;;  %19500 = vmatprep.mubr.msk.f32.mxu1 %vm12884_vm3, %v12770_v55 }
 0x529   : > { %v12773_v54 = vmax.f32 %v12645_v18, 0.0  ;;  %v19685_v44 = vadd.f32 %v19314_v1, %v23029_v21  ;;  %v11976_v49 = vpop.f32.mrb[27].mxu0  ;;  %19501 = vmatmul.mubr.msk.f32.gmra.mrb[150].mxu1 %vm12884_vm3, %v12771_v27 }
 0x52a   : > { %v12772_v7 = vmax.f32 %v12644_v50, 0.0  ;;  %v19686_v5 = vadd.f32 %v11976_v49, %v23031_v43 }
 0x52b   : > { %14255 = vst.msk [vmem:[%s23349_s14 + $0xc8] sm:$0xff] %vm12884_vm3, %v12773_v54  ;;  %v12647_v14 = vadd.f32 %v19685_v44, %v23338_v2 }
 0x52c   : > { %14254 = vst.msk [vmem:[%s23349_s14 + $0xc0] sm:$0xff] %vm12884_vm3, %v12772_v7  ;;  %v12646_v53 = vadd.f32 %v19686_v5, %v23338_v2  ;;  %v19317_v56 = vpop.f32.mrb[28].mxu0  ;;  %19503 = vmatprep.mubr.msk.f32.mxu1 %vm12884_vm3, %v12772_v7 }
 0x52d   : > { %v12775_v21 = vmax.f32 %v12647_v14, 0.0  ;;  %v19687_v61 = vadd.f32 %v19317_v56, %v23035_v52  ;;  %v11986_v58 = vpop.f32.mrb[29].mxu0  ;;  %19504 = vmatmul.mubr.msk.f32.gmra.mrb[152].mxu1 %vm12884_vm3, %v12773_v54 }
 0x52e   : > { %v12774_v62 = vmax.f32 %v12646_v53, 0.0  ;;  %v19688_v43 = vadd.f32 %v11986_v58, %v23037_v0 }
 0x52f   : > { %14257 = vst.msk [vmem:[%s23349_s14 + $0xd8] sm:$0xff] %vm12884_vm3, %v12775_v21  ;;  %v12649_v23 = vadd.f32 %v19687_v61, %v23338_v2 }
 0x530   : > { %14256 = vst.msk [vmem:[%s23349_s14 + $0xd0] sm:$0xff] %vm12884_vm3, %v12774_v62  ;;  %v12648_v59 = vadd.f32 %v19688_v43, %v23338_v2  ;;  %v19320_v32 = vpop.f32.mrb[30].mxu0  ;;  %19506 = vmatprep.mubr.msk.f32.mxu1 %vm12884_vm3, %v12774_v62 }
 0x531   : > { %v12777_v52 = vmax.f32 %v12649_v23, 0.0  ;;  %v19689_v22 = vadd.f32 %v19320_v32, %v23041_v48  ;;  %v11996_v8 = vpop.f32.mrb[31].mxu0  ;;  %19507 = vmatmul.mubr.msk.f32.gmra.mrb[154].mxu1 %vm12884_vm3, %v12775_v21 }
 0x532   : > { %v12776_v63 = vmax.f32 %v12648_v59, 0.0  ;;  %v19690_v0 = vadd.f32 %v11996_v8, %v23043_v39 }
 0x533   : > { %14259 = vst.msk [vmem:[%s23349_s14 + $0xe8] sm:$0xff] %vm12884_vm3, %v12777_v52  ;;  %v12651_v33 = vadd.f32 %v19689_v22, %v23338_v2 }
 0x534   : > { %14258 = vst.msk [vmem:[%s23349_s14 + $0xe0] sm:$0xff] %vm12884_vm3, %v12776_v63  ;;  %v12650_v26 = vadd.f32 %v19690_v0, %v23338_v2  ;;  %v19323_v41 = vpop.f32.mrb[32].mxu0  ;;  %19509 = vmatprep.mubr.msk.f32.mxu1 %vm12884_vm3, %v12776_v63 }
 0x535   : > { %v12779_v48 = vmax.f32 %v12651_v33, 0.0  ;;  %v19691_v13 = vadd.f32 %v19323_v41, %v23047_v10  ;;  %v12006_v4 = vpop.f32.mrb[33].mxu0  ;;  %19510 = vmatmul.mubr.msk.f32.gmra.mrb[156].mxu1 %vm12884_vm3, %v12777_v52 }
 0x536   : > { %v12778_v11 = vmax.f32 %v12650_v26, 0.0  ;;  %v19692_v39 = vadd.f32 %v12006_v4, %v23049_v16 }
 0x537   : > { %14261 = vst.msk [vmem:[%s23349_s14 + $0xf8] sm:$0xff] %vm12884_vm3, %v12779_v48  ;;  %v12653_v29 = vadd.f32 %v19691_v13, %v23338_v2 }
 0x538   : > { %14260 = vst.msk [vmem:[%s23349_s14 + $0xf0] sm:$0xff] %vm12884_vm3, %v12778_v11  ;;  %v12652_v47 = vadd.f32 %v19692_v39, %v23338_v2  ;;  %v19326_v6 = vpop.f32.mrb[34].mxu0  ;;  %19512 = vmatprep.mubr.msk.f32.mxu1 %vm12884_vm3, %v12778_v11 }
 0x539   : > { %v12781_v10 = vmax.f32 %v12653_v29, 0.0  ;;  %v19693_v19 = vadd.f32 %v19326_v6, %v23053_v20  ;;  %v12016_v36 = vpop.f32.mrb[35].mxu0  ;;  %19513 = vmatmul.mubr.msk.f32.gmra.mrb[158].mxu1 %vm12884_vm3, %v12779_v48 }
 0x53a   : > { %v12780_v51 = vmax.f32 %v12652_v47, 0.0  ;;  %v19694_v16 = vadd.f32 %v12016_v36, %v23055_v30 }
 0x53b   : > { %14263 = vst.msk [vmem:[%s23349_s14 + $0x108] sm:$0xff] %vm12884_vm3, %v12781_v10  ;;  %v12655_v60 = vadd.f32 %v19693_v19, %v23338_v2 }
 0x53c   : > { %14262 = vst.msk [vmem:[%s23349_s14 + $0x100] sm:$0xff] %vm12884_vm3, %v12780_v51  ;;  %v12654_v27 = vadd.f32 %v19694_v16, %v23338_v2  ;;  %v19329_v40 = vpop.f32.mrb[36].mxu0  ;;  %19515 = vmatprep.mubr.msk.f32.mxu1 %vm12884_vm3, %v12780_v51 }
 0x53d   : > { %v12783_v20 = vmax.f32 %v12655_v60, 0.0  ;;  %v19695_v31 = vadd.f32 %v19329_v40, %v23059_v34  ;;  %v12026_v55 = vpop.f32.mrb[37].mxu0  ;;  %19516 = vmatmul.mubr.msk.f32.gmra.mrb[160].mxu1 %vm12884_vm3, %v12781_v10 }
 0x53e   : > { %v12782_v45 = vmax.f32 %v12654_v27, 0.0  ;;  %v19696_v30 = vadd.f32 %v12026_v55, %v23061_v42 }
 0x53f   : > { %14265 = vst.msk [vmem:[%s23349_s14 + $0x118] sm:$0xff] %vm12884_vm3, %v12783_v20  ;;  %v12657_v18 = vadd.f32 %v19695_v31, %v23338_v2 }
 0x540   : > { %14264 = vst.msk [vmem:[%s23349_s14 + $0x110] sm:$0xff] %vm12884_vm3, %v12782_v45  ;;  %v12656_v50 = vadd.f32 %v19696_v30, %v23338_v2  ;;  %v19332_v1 = vpop.f32.mrb[38].mxu0  ;;  %19518 = vmatprep.mubr.msk.f32.mxu1 %vm12884_vm3, %v12782_v45  ;;  %v24814_v45 = vld [vmem:[#allocation4_spill] sm:$0xff] }
 0x541   : > { %v12785_v34 = vmax.f32 %v12657_v18, 0.0  ;;  %v19697_v54 = vadd.f32 %v19332_v1, %v23065_v46  ;;  %v12036_v44 = vpop.f32.mrb[39].mxu0  ;;  %19519 = vmatmul.mubr.msk.f32.gmra.mrb[162].mxu1 %vm12884_vm3, %v12783_v20  ;;  %v24815_v1 = vld [vmem:[#allocation5_spill] sm:$0xff] }
 0x542   : > { %v12784_v49 = vmax.f32 %v12656_v50, 0.0  ;;  %v19698_v42 = vadd.f32 %v12036_v44, %v23067_v28 }
 0x543   : > { %14267 = vst.msk [vmem:[%s23349_s14 + $0x128] sm:$0xff] %vm12884_vm3, %v12785_v34  ;;  %v12659_v7 = vadd.f32 %v19697_v54, %v23338_v2 }
 0x544   : > { %14266 = vst.msk [vmem:[%s23349_s14 + $0x120] sm:$0xff] %vm12884_vm3, %v12784_v49  ;;  %v12658_v5 = vadd.f32 %v19698_v42, %v23338_v2  ;;  %v19335_v14 = vpop.f32.mrb[40].mxu0  ;;  %19521 = vmatprep.mubr.msk.f32.mxu1 %vm12884_vm3, %v12784_v49 }
 0x545   : > { %v12787_v46 = vmax.f32 %v12659_v7, 0.0  ;;  %v19699_v53 = vadd.f32 %v19335_v14, %v23071_v57  ;;  %v12046_v56 = vpop.f32.mrb[41].mxu0  ;;  %19522 = vmatmul.mubr.msk.f32.gmra.mrb[164].mxu1 %vm12884_vm3, %v12785_v34  ;;  %v24816_v7 = vld [vmem:[#allocation6_spill] sm:$0xff] }
 0x546   : > { %v12786_v21 = vmax.f32 %v12658_v5, 0.0  ;;  %v19700_v28 = vadd.f32 %v12046_v56, %v23073_v3 }
 0x547   : > { %14269 = vst.msk [vmem:[%s23349_s14 + $0x138] sm:$0xff] %vm12884_vm3, %v12787_v46  ;;  %v12661_v61 = vadd.f32 %v19699_v53, %v23338_v2  ;;  %v24817_v53 = vld [vmem:[#allocation7_spill] sm:$0xff] }
 0x548   : > { %14268 = vst.msk [vmem:[%s23349_s14 + $0x130] sm:$0xff] %vm12884_vm3, %v12786_v21  ;;  %v12660_v58 = vadd.f32 %v19700_v28, %v23338_v2  ;;  %v19338_v62 = vpop.f32.mrb[42].mxu0  ;;  %19524 = vmatprep.mubr.msk.f32.mxu1 %vm12884_vm3, %v12786_v21 }
 0x549   : > { %v12789_v57 = vmax.f32 %v12661_v61, 0.0  ;;  %v19701_v43 = vadd.f32 %v19338_v62, %v23077_v15  ;;  %v12056_v23 = vpop.f32.mrb[43].mxu0  ;;  %19525 = vmatmul.mubr.msk.f32.gmra.mrb[166].mxu1 %vm12884_vm3, %v12787_v46  ;;  %v24818_v62 = vld [vmem:[#allocation8_spill] sm:$0xff] }
 0x54a   : > { %v12788_v59 = vmax.f32 %v12660_v58, 0.0  ;;  %v19702_v3 = vadd.f32 %v12056_v23, %v23079_v37 }
 0x54b   : > { %14271 = vst.msk [vmem:[%s23349_s14 + $0x148] sm:$0xff] %vm12884_vm3, %v12789_v57  ;;  %v12663_v32 = vadd.f32 %v19701_v43, %v23338_v2 }
 0x54c   : > { %14270 = vst.msk [vmem:[%s23349_s14 + $0x140] sm:$0xff] %vm12884_vm3, %v12788_v59  ;;  %v12662_v52 = vadd.f32 %v19702_v3, %v23338_v2  ;;  %v19341_v22 = vpop.f32.mrb[44].mxu0  ;;  %19527 = vmatprep.mubr.msk.f32.mxu1 %vm12884_vm3, %v12788_v59  ;;  %v24819_v59 = vld [vmem:[#allocation9_spill] sm:$0xff] }
 0x54d   : > { %v12791_v15 = vmax.f32 %v12663_v32, 0.0  ;;  %v19703_v8 = vadd.f32 %v19341_v22, %v23083_v9  ;;  %v12066_v63 = vpop.f32.mrb[45].mxu0  ;;  %19528 = vmatmul.mubr.msk.f32.gmra.mrb[168].mxu1 %vm12884_vm3, %v12789_v57 }
 0x54e   : > { %v12790_v0 = vmax.f32 %v12662_v52, 0.0  ;;  %v19704_v37 = vadd.f32 %v12066_v63, %v23085_v35 }
 0x54f   : > { %14273 = vst.msk [vmem:[%s23349_s14 + $0x158] sm:$0xff] %vm12884_vm3, %v12791_v15  ;;  %v12665_v33 = vadd.f32 %v19703_v8, %v23338_v2  ;;  %v24820_v8 = vld [vmem:[#allocation10_spill] sm:$0xff] }
 0x550   : > { %14272 = vst.msk [vmem:[%s23349_s14 + $0x150] sm:$0xff] %vm12884_vm3, %v12790_v0  ;;  %v12664_v26 = vadd.f32 %v19704_v37, %v23338_v2  ;;  %v19344_v41 = vpop.f32.mrb[46].mxu0  ;;  %19530 = vmatprep.mubr.msk.f32.mxu1 %vm12884_vm3, %v12790_v0 }
 0x551   : > { %v12793_v9 = vmax.f32 %v12665_v33, 0.0  ;;  %v19705_v48 = vadd.f32 %v19344_v41, %v23089_v17  ;;  %v12076_v13 = vpop.f32.mrb[47].mxu0  ;;  %19531 = vmatmul.mubr.msk.f32.gmra.mrb[170].mxu1 %vm12884_vm3, %v12791_v15  ;;  %v24821_v33 = vld [vmem:[#allocation11_spill] sm:$0xff] }
 0x552   : > { %v12792_v4 = vmax.f32 %v12664_v26, 0.0  ;;  %v19706_v35 = vadd.f32 %v12076_v13, %v23091_v25 }
 0x553   : > { %14275 = vst.msk [vmem:[%s23349_s14 + $0x168] sm:$0xff] %vm12884_vm3, %v12793_v9  ;;  %v12667_v11 = vadd.f32 %v19705_v48, %v23338_v2 }
 0x554   : > { %14274 = vst.msk [vmem:[%s23349_s14 + $0x160] sm:$0xff] %vm12884_vm3, %v12792_v4  ;;  %v12666_v39 = vadd.f32 %v19706_v35, %v23338_v2  ;;  %v19347_v29 = vpop.f32.mrb[48].mxu0  ;;  %19533 = vmatprep.mubr.msk.f32.mxu1 %vm12884_vm3, %v12792_v4  ;;  %v24822_v4 = vld [vmem:[#allocation12_spill] sm:$0xff] }
 0x555   : > { %v12795_v17 = vmax.f32 %v12667_v11, 0.0  ;;  %v19707_v47 = vadd.f32 %v19347_v29, %v23095_v12  ;;  %v12086_v6 = vpop.f32.mrb[49].mxu0  ;;  %19534 = vmatmul.mubr.msk.f32.gmra.mrb[172].mxu1 %vm12884_vm3, %v12793_v9  ;;  %v24823_v29 = vld [vmem:[#allocation13_spill] sm:$0xff] }
 0x556   : > { %v12794_v10 = vmax.f32 %v12666_v39, 0.0  ;;  %v19708_v25 = vadd.f32 %v12086_v6, %v23097_v24  ;;  %v24813_v24 = vld [vmem:[#allocation3_spill] sm:$0xff] }
 0x557   : > { %14277 = vst.msk [vmem:[%s23349_s14 + $0x178] sm:$0xff] %vm12884_vm3, %v12795_v17  ;;  %v12669_v19 = vadd.f32 %v19707_v47, %v23338_v2 }
 0x558   : > { %14276 = vst.msk [vmem:[%s23349_s14 + $0x170] sm:$0xff] %vm12884_vm3, %v12794_v10  ;;  %v12668_v36 = vadd.f32 %v19708_v25, %v23338_v2  ;;  %v19350_v51 = vpop.f32.mrb[50].mxu0  ;;  %19536 = vmatprep.mubr.msk.f32.mxu1 %vm12884_vm3, %v12794_v10 }
 0x559   : > { %v12797_v12 = vmax.f32 %v12669_v19, 0.0  ;;  %v19709_v16 = vadd.f32 %v19350_v51, %v23101_v38  ;;  %v12096_v60 = vpop.f32.mrb[51].mxu0  ;;  %19537 = vmatmul.mubr.msk.f32.gmra.mrb[174].mxu1 %vm12884_vm3, %v12795_v17  ;;  %v24824_v19 = vld [vmem:[#allocation14_spill] sm:$0xff] }
 0x55a   : > { %v12796_v27 = vmax.f32 %v12668_v36, 0.0  ;;  %v19710_v40 = vadd.f32 %v12096_v60, %v24813_v24 }
 0x55b   : > { %14279 = vst.msk [vmem:[%s23349_s14 + $0x188] sm:$0xff] %vm12884_vm3, %v12797_v12  ;;  %v12671_v20 = vadd.f32 %v19709_v16, %v23338_v2  ;;  %v24825_v16 = vld [vmem:[#allocation15_spill] sm:$0xff] }
 0x55c   : > { %14278 = vst.msk [vmem:[%s23349_s14 + $0x180] sm:$0xff] %vm12884_vm3, %v12796_v27  ;;  %v12670_v31 = vadd.f32 %v19710_v40, %v23338_v2  ;;  %v19353_v55 = vpop.f32.mrb[52].mxu0  ;;  %19539 = vmatprep.mubr.msk.f32.mxu1 %vm12884_vm3, %v12796_v27 }
 0x55d   : > { %v12799_v38 = vmax.f32 %v12671_v20, 0.0  ;;  %v19711_v30 = vadd.f32 %v19353_v55, %v24814_v45  ;;  %v12106_v18 = vpop.f32.mrb[53].mxu0  ;;  %19540 = vmatmul.mubr.msk.f32.gmra.mrb[176].mxu1 %vm12884_vm3, %v12797_v12 }
 0x55e   : > { %v12798_v50 = vmax.f32 %v12670_v31, 0.0  ;;  %v19712_v34 = vadd.f32 %v12106_v18, %v24815_v1  ;;  %v24826_v31 = vld [vmem:[#allocation16_spill] sm:$0xff] }
 0x55f   : > { %14281 = vst.msk [vmem:[%s23349_s14 + $0x198] sm:$0xff] %vm12884_vm3, %v12799_v38  ;;  %v12673_v54 = vadd.f32 %v19711_v30, %v23338_v2  ;;  %v24827_v30 = vld [vmem:[#allocation17_spill] sm:$0xff] }
 0x560   : > { %14280 = vst.msk [vmem:[%s23349_s14 + $0x190] sm:$0xff] %vm12884_vm3, %v12798_v50  ;;  %v12672_v44 = vadd.f32 %v19712_v34, %v23338_v2  ;;  %v19356_v49 = vpop.f32.mrb[54].mxu0  ;;  %19542 = vmatprep.mubr.msk.f32.mxu1 %vm12884_vm3, %v12798_v50 }
 0x561   : > { %v12801_v42 = vmax.f32 %v12673_v54, 0.0  ;;  %v19713_v5 = vadd.f32 %v19356_v49, %v24816_v7  ;;  %v12116_v14 = vpop.f32.mrb[55].mxu0  ;;  %19543 = vmatmul.mubr.msk.f32.gmra.mrb[178].mxu1 %vm12884_vm3, %v12799_v38 }
 0x562   : > { %v12800_v46 = vmax.f32 %v12672_v44, 0.0  ;;  %v19714_v56 = vadd.f32 %v12116_v14, %v24817_v53  ;;  %v24828_v44 = vld [vmem:[#allocation18_spill] sm:$0xff] }
 0x563   : > { %14283 = vst.msk [vmem:[%s23349_s14 + $0x1a8] sm:$0xff] %vm12884_vm3, %v12801_v42  ;;  %v12675_v21 = vadd.f32 %v19713_v5, %v23338_v2  ;;  %v24829_v5 = vld [vmem:[#allocation19_spill] sm:$0xff] }
 0x564   : > { %14282 = vst.msk [vmem:[%s23349_s14 + $0x1a0] sm:$0xff] %vm12884_vm3, %v12800_v46  ;;  %v12674_v28 = vadd.f32 %v19714_v56, %v23338_v2  ;;  %v19359_v61 = vpop.f32.mrb[56].mxu0  ;;  %19545 = vmatprep.mubr.msk.f32.mxu1 %vm12884_vm3, %v12800_v46 }
 0x565   : > { %v12803_v58 = vmax.f32 %v12675_v21, 0.0  ;;  %v19715_v57 = vadd.f32 %v19359_v61, %v24818_v62  ;;  %v12126_v43 = vpop.f32.mrb[57].mxu0  ;;  %19546 = vmatmul.mubr.msk.f32.gmra.mrb[180].mxu1 %vm12884_vm3, %v12801_v42 }
 0x566   : > { %v12802_v23 = vmax.f32 %v12674_v28, 0.0  ;;  %v19716_v3 = vadd.f32 %v12126_v43, %v24819_v59  ;;  %v24830_v28 = vld [vmem:[#allocation20_spill] sm:$0xff] }
 0x567   : > { %14285 = vst.msk [vmem:[%s23349_s14 + $0x1b8] sm:$0xff] %vm12884_vm3, %v12803_v58  ;;  %v12677_v32 = vadd.f32 %v19715_v57, %v23338_v2  ;;  %v24831_v57 = vld [vmem:[#allocation21_spill] sm:$0xff] }
 0x568   : > { %14284 = vst.msk [vmem:[%s23349_s14 + $0x1b0] sm:$0xff] %vm12884_vm3, %v12802_v23  ;;  %v12676_v52 = vadd.f32 %v19716_v3, %v23338_v2  ;;  %v19362_v22 = vpop.f32.mrb[58].mxu0  ;;  %19548 = vmatprep.mubr.msk.f32.mxu1 %vm12884_vm3, %v12802_v23 }
 0x569   : > { %v12805_v15 = vmax.f32 %v12677_v32, 0.0  ;;  %v19717_v63 = vadd.f32 %v19362_v22, %v24820_v8  ;;  %v12136_v0 = vpop.f32.mrb[59].mxu0  ;;  %19549 = vmatmul.mubr.msk.f32.gmra.mrb[182].mxu1 %vm12884_vm3, %v12803_v58 }
 0x56a   : > { %v12804_v37 = vmax.f32 %v12676_v52, 0.0  ;;  %v19718_v26 = vadd.f32 %v12136_v0, %v24821_v33  ;;  %v24832_v52 = vld [vmem:[#allocation22_spill] sm:$0xff] }
 0x56b   : > { %14287 = vst.msk [vmem:[%s23349_s14 + $0x1c8] sm:$0xff] %vm12884_vm3, %v12805_v15  ;;  %v12679_v41 = vadd.f32 %v19717_v63, %v23338_v2  ;;  %v24833_v63 = vld [vmem:[#allocation23_spill] sm:$0xff] }
 0x56c   : > { %14286 = vst.msk [vmem:[%s23349_s14 + $0x1c0] sm:$0xff] %vm12884_vm3, %v12804_v37  ;;  %v12678_v9 = vadd.f32 %v19718_v26, %v23338_v2  ;;  %v19365_v48 = vpop.f32.mrb[60].mxu0  ;;  %19551 = vmatprep.mubr.msk.f32.mxu1 %vm12884_vm3, %v12804_v37 }
 0x56d   : > { %v12807_v13 = vmax.f32 %v12679_v41, 0.0  ;;  %v19719_v35 = vadd.f32 %v19365_v48, %v24822_v4  ;;  %v12146_v11 = vpop.f32.mrb[61].mxu0  ;;  %19552 = vmatmul.mubr.msk.f32.gmra.mrb[184].mxu1 %vm12884_vm3, %v12805_v15 }
 0x56e   : > { %v12806_v39 = vmax.f32 %v12678_v9, 0.0  ;;  %v19720_v17 = vadd.f32 %v12146_v11, %v24823_v29  ;;  %v24834_v9 = vld [vmem:[#allocation24_spill] sm:$0xff] }
 0x56f   : > { %14289 = vst.msk [vmem:[%s23349_s14 + $0x1d8] sm:$0xff] %vm12884_vm3, %v12807_v13  ;;  %v12681_v47 = vadd.f32 %v19719_v35, %v23338_v2  ;;  %v24835_v35 = vld [vmem:[#allocation25_spill] sm:$0xff] }
 0x570   : > { %14288 = vst.msk [vmem:[%s23349_s14 + $0x1d0] sm:$0xff] %vm12884_vm3, %v12806_v39  ;;  %v12680_v6 = vadd.f32 %v19720_v17, %v23338_v2  ;;  %v19368_v10 = vpop.f32.mrb[62].mxu0  ;;  %19554 = vmatprep.mubr.msk.f32.mxu1 %vm12884_vm3, %v12806_v39 }
 0x571   : > { %v12809_v25 = vmax.f32 %v12681_v47, 0.0  ;;  %v19721_v36 = vadd.f32 %v19368_v10, %v24824_v19  ;;  %v12156_v51 = vpop.f32.mrb[63].mxu0  ;;  %19555 = vmatmul.mubr.msk.f32.gmra.mrb[186].mxu1 %vm12884_vm3, %v12807_v13 }
 0x572   : > { %v12808_v12 = vmax.f32 %v12680_v6, 0.0  ;;  %v19722_v60 = vadd.f32 %v12156_v51, %v24825_v16  ;;  %v24836_v6 = vld [vmem:[#allocation26_spill] sm:$0xff] }
 0x573   : > { %14291 = vst.msk [vmem:[%s23349_s14 + $0x1e8] sm:$0xff] %vm12884_vm3, %v12809_v25  ;;  %v12683_v27 = vadd.f32 %v19721_v36, %v23338_v2  ;;  %v24837_v36 = vld [vmem:[#allocation27_spill] sm:$0xff] }
 0x574   : > { %14290 = vst.msk [vmem:[%s23349_s14 + $0x1e0] sm:$0xff] %vm12884_vm3, %v12808_v12  ;;  %v12682_v24 = vadd.f32 %v19722_v60, %v23338_v2  ;;  %v19371_v40 = vpop.f32.mrb[64].mxu0  ;;  %19557 = vmatprep.mubr.msk.f32.mxu1 %vm12884_vm3, %v12808_v12 }
 0x575   : > { %v12811_v20 = vmax.f32 %v12683_v27, 0.0  ;;  %v19723_v55 = vadd.f32 %v19371_v40, %v24826_v31  ;;  %v12166_v38 = vpop.f32.mrb[65].mxu0  ;;  %19558 = vmatmul.mubr.msk.f32.gmra.mrb[188].mxu1 %vm12884_vm3, %v12809_v25 }
 0x576   : > { %v12810_v45 = vmax.f32 %v12682_v24, 0.0  ;;  %v19724_v18 = vadd.f32 %v12166_v38, %v24827_v30  ;;  %v24838_v24 = vld [vmem:[#allocation28_spill] sm:$0xff] }
 0x577   : > { %14293 = vst.msk [vmem:[%s23349_s14 + $0x1f8] sm:$0xff] %vm12884_vm3, %v12811_v20  ;;  %v12685_v50 = vadd.f32 %v19723_v55, %v23338_v2  ;;  %v24839_v55 = vld [vmem:[#allocation29_spill] sm:$0xff] }
 0x578   : > { %14292 = vst.msk [vmem:[%s23349_s14 + $0x1f0] sm:$0xff] %vm12884_vm3, %v12810_v45  ;;  %v12684_v1 = vadd.f32 %v19724_v18, %v23338_v2  ;;  %v19374_v34 = vpop.f32.mrb[66].mxu0  ;;  %19560 = vmatprep.mubr.msk.f32.mxu1 %vm12884_vm3, %v12810_v45 }
 0x579   : > { %v12813_v54 = vmax.f32 %v12685_v50, 0.0  ;;  %v19725_v49 = vadd.f32 %v19374_v34, %v24828_v44  ;;  %v12176_v42 = vpop.f32.mrb[67].mxu0  ;;  %19561 = vmatmul.mubr.msk.f32.gmra.mrb[190].mxu1 %vm12884_vm3, %v12811_v20 }
 0x57a   : > { %v12812_v7 = vmax.f32 %v12684_v1, 0.0  ;;  %v19726_v14 = vadd.f32 %v12176_v42, %v24829_v5  ;;  %v24840_v1 = vld [vmem:[#allocation30_spill] sm:$0xff] }
 0x57b   : > { %14295 = vst.msk [vmem:[%s23349_s14 + $0x208] sm:$0xff] %vm12884_vm3, %v12813_v54  ;;  %v12687_v46 = vadd.f32 %v19725_v49, %v23338_v2  ;;  %v24841_v49 = vld [vmem:[#allocation31_spill] sm:$0xff] }
 0x57c   : > { %14294 = vst.msk [vmem:[%s23349_s14 + $0x200] sm:$0xff] %vm12884_vm3, %v12812_v7  ;;  %v12686_v53 = vadd.f32 %v19726_v14, %v23338_v2  ;;  %v19377_v56 = vpop.f32.mrb[68].mxu0  ;;  %19563 = vmatprep.mubr.msk.f32.mxu1 %vm12884_vm3, %v12812_v7 }
 0x57d   : > { %v12815_v21 = vmax.f32 %v12687_v46, 0.0  ;;  %v19727_v61 = vadd.f32 %v19377_v56, %v24830_v28  ;;  %v12186_v58 = vpop.f32.mrb[69].mxu0  ;;  %19564 = vmatmul.mubr.msk.f32.gmra.mrb[192].mxu1 %vm12884_vm3, %v12813_v54 }
 0x57e   : > { %v12814_v62 = vmax.f32 %v12686_v53, 0.0  ;;  %v19728_v43 = vadd.f32 %v12186_v58, %v24831_v57  ;;  %v24842_v53 = vld [vmem:[#allocation32_spill] sm:$0xff] }
 0x57f   : > { %14297 = vst.msk [vmem:[%s23349_s14 + $0x218] sm:$0xff] %vm12884_vm3, %v12815_v21  ;;  %v12689_v23 = vadd.f32 %v19727_v61, %v23338_v2  ;;  %v24843_v61 = vld [vmem:[#allocation33_spill] sm:$0xff] }
 0x580   : > { %14296 = vst.msk [vmem:[%s23349_s14 + $0x210] sm:$0xff] %vm12884_vm3, %v12814_v62  ;;  %v12688_v59 = vadd.f32 %v19728_v43, %v23338_v2  ;;  %v19380_v3 = vpop.f32.mrb[70].mxu0  ;;  %19566 = vmatprep.mubr.msk.f32.mxu1 %vm12884_vm3, %v12814_v62 }
 0x581   : > { %v12817_v32 = vmax.f32 %v12689_v23, 0.0  ;;  %v19729_v22 = vadd.f32 %v19380_v3, %v24832_v52  ;;  %v12196_v15 = vpop.f32.mrb[71].mxu0  ;;  %19567 = vmatmul.mubr.msk.f32.gmra.mrb[194].mxu1 %vm12884_vm3, %v12815_v21 }
 0x582   : > { %v12816_v8 = vmax.f32 %v12688_v59, 0.0  ;;  %v19730_v0 = vadd.f32 %v12196_v15, %v24833_v63  ;;  %v24844_v59 = vld [vmem:[#allocation34_spill] sm:$0xff] }
 0x583   : > { %14299 = vst.msk [vmem:[%s23349_s14 + $0x228] sm:$0xff] %vm12884_vm3, %v12817_v32  ;;  %v12691_v37 = vadd.f32 %v19729_v22, %v23338_v2  ;;  %v24845_v22 = vld [vmem:[#allocation35_spill] sm:$0xff] }
 0x584   : > { %14298 = vst.msk [vmem:[%s23349_s14 + $0x220] sm:$0xff] %vm12884_vm3, %v12816_v8  ;;  %v12690_v33 = vadd.f32 %v19730_v0, %v23338_v2  ;;  %v19383_v26 = vpop.f32.mrb[72].mxu0  ;;  %19569 = vmatprep.mubr.msk.f32.mxu1 %vm12884_vm3, %v12816_v8 }
 0x585   : > { %v12819_v41 = vmax.f32 %v12691_v37, 0.0  ;;  %v19731_v48 = vadd.f32 %v19383_v26, %v24834_v9  ;;  %v12206_v13 = vpop.f32.mrb[73].mxu0  ;;  %19570 = vmatmul.mubr.msk.f32.gmra.mrb[196].mxu1 %vm12884_vm3, %v12817_v32 }
 0x586   : > { %v12818_v4 = vmax.f32 %v12690_v33, 0.0  ;;  %v19732_v11 = vadd.f32 %v12206_v13, %v24835_v35  ;;  %v24846_v33 = vld [vmem:[#allocation36_spill] sm:$0xff] }
 0x587   : > { %14301 = vst.msk [vmem:[%s23349_s14 + $0x238] sm:$0xff] %vm12884_vm3, %v12819_v41  ;;  %v12693_v39 = vadd.f32 %v19731_v48, %v23338_v2  ;;  %v24847_v48 = vld [vmem:[#allocation37_spill] sm:$0xff] }
 0x588   : > { %14300 = vst.msk [vmem:[%s23349_s14 + $0x230] sm:$0xff] %vm12884_vm3, %v12818_v4  ;;  %v12692_v29 = vadd.f32 %v19732_v11, %v23338_v2  ;;  %v19386_v17 = vpop.f32.mrb[74].mxu0  ;;  %19572 = vmatprep.mubr.msk.f32.mxu1 %vm12884_vm3, %v12818_v4 }
 0x589   : > { %v12821_v47 = vmax.f32 %v12693_v39, 0.0  ;;  %v19733_v10 = vadd.f32 %v19386_v17, %v24836_v6  ;;  %v12216_v25 = vpop.f32.mrb[75].mxu0  ;;  %19573 = vmatmul.mubr.msk.f32.gmra.mrb[198].mxu1 %vm12884_vm3, %v12819_v41 }
 0x58a   : > { %v12820_v19 = vmax.f32 %v12692_v29, 0.0  ;;  %v19734_v51 = vadd.f32 %v12216_v25, %v24837_v36  ;;  %v24848_v29 = vld [vmem:[#allocation38_spill] sm:$0xff] }
 0x58b   : > { %14303 = vst.msk [vmem:[%s23349_s14 + $0x248] sm:$0xff] %vm12884_vm3, %v12821_v47  ;;  %v12695_v12 = vadd.f32 %v19733_v10, %v23338_v2  ;;  %v24849_v10 = vld [vmem:[#allocation39_spill] sm:$0xff] }
 0x58c   : > { %14302 = vst.msk [vmem:[%s23349_s14 + $0x240] sm:$0xff] %vm12884_vm3, %v12820_v19  ;;  %v12694_v16 = vadd.f32 %v19734_v51, %v23338_v2  ;;  %v19389_v60 = vpop.f32.mrb[76].mxu0  ;;  %19575 = vmatprep.mubr.msk.f32.mxu1 %vm12884_vm3, %v12820_v19 }
 0x58d   : > { %v12823_v27 = vmax.f32 %v12695_v12, 0.0  ;;  %v19735_v40 = vadd.f32 %v19389_v60, %v24838_v24  ;;  %v12226_v20 = vpop.f32.mrb[77].mxu0  ;;  %19576 = vmatmul.mubr.msk.f32.gmra.mrb[200].mxu1 %vm12884_vm3, %v12821_v47 }
 0x58e   : > { %v12822_v31 = vmax.f32 %v12694_v16, 0.0  ;;  %v19736_v38 = vadd.f32 %v12226_v20, %v24839_v55  ;;  %v24850_v16 = vld [vmem:[#allocation40_spill] sm:$0xff] }
 0x58f   : > { %14305 = vst.msk [vmem:[%s23349_s14 + $0x258] sm:$0xff] %vm12884_vm3, %v12823_v27  ;;  %v12697_v45 = vadd.f32 %v19735_v40, %v23338_v2  ;;  %v24851_v40 = vld [vmem:[#allocation41_spill] sm:$0xff] }
 0x590   : > { %14304 = vst.msk [vmem:[%s23349_s14 + $0x250] sm:$0xff] %vm12884_vm3, %v12822_v31  ;;  %v12696_v30 = vadd.f32 %v19736_v38, %v23338_v2  ;;  %v19392_v18 = vpop.f32.mrb[78].mxu0  ;;  %19578 = vmatprep.mubr.msk.f32.mxu1 %vm12884_vm3, %v12822_v31  ;;  %v23758_v2 = vld [vmem:[%s24546_s3] ss:$0 sm:$0xff] }
 0x591   : > { %v12825_v50 = vmax.f32 %v12697_v45, 0.0  ;;  %v19737_v34 = vadd.f32 %v19392_v18, %v24840_v1  ;;  %v12236_v54 = vpop.f32.mrb[79].mxu0  ;;  %19579 = vmatmul.mubr.msk.f32.gmra.mrb[202].mxu1 %vm12884_vm3, %v12823_v27 }
 0x592   : > { %v12824_v44 = vmax.f32 %v12696_v30, 0.0  ;;  %v19738_v42 = vadd.f32 %v12236_v54, %v24841_v49  ;;  %v24852_v30 = vld [vmem:[#allocation42_spill] sm:$0xff] }
 0x593   : > { %14307 = vst.msk [vmem:[%s23349_s14 + $0x268] sm:$0xff] %vm12884_vm3, %v12825_v50  ;;  %v12699_v7 = vadd.f32 %v23758_v2, %v19737_v34  ;;  %v24853_v34 = vld [vmem:[#allocation43_spill] sm:$0xff] }
 0x594   : > { %14306 = vst.msk [vmem:[%s23349_s14 + $0x260] sm:$0xff] %vm12884_vm3, %v12824_v44  ;;  %v12698_v5 = vadd.f32 %v23758_v2, %v19738_v42  ;;  %v19395_v14 = vpop.f32.mrb[80].mxu0  ;;  %19581 = vmatprep.mubr.msk.f32.mxu1 %vm12884_vm3, %v12824_v44 }
 0x595   : > { %v12827_v46 = vmax.f32 %v12699_v7, 0.0  ;;  %v19739_v56 = vadd.f32 %v19395_v14, %v24842_v53  ;;  %v12246_v21 = vpop.f32.mrb[81].mxu0  ;;  %19582 = vmatmul.mubr.msk.f32.gmra.mrb[204].mxu1 %vm12884_vm3, %v12825_v50 }
 0x596   : > { %v12826_v28 = vmax.f32 %v12698_v5, 0.0  ;;  %v19740_v58 = vadd.f32 %v12246_v21, %v24843_v61  ;;  %v24854_v5 = vld [vmem:[#allocation44_spill] sm:$0xff] }
 0x597   : > { %14309 = vst.msk [vmem:[%s23349_s14 + $0x278] sm:$0xff] %vm12884_vm3, %v12827_v46  ;;  %v12701_v62 = vadd.f32 %v23758_v2, %v19739_v56  ;;  %v24855_v56 = vld [vmem:[#allocation45_spill] sm:$0xff] }
 0x598   : > { %14308 = vst.msk [vmem:[%s23349_s14 + $0x270] sm:$0xff] %vm12884_vm3, %v12826_v28  ;;  %v12700_v57 = vadd.f32 %v23758_v2, %v19740_v58  ;;  %v19398_v43 = vpop.f32.mrb[82].mxu0  ;;  %19584 = vmatprep.mubr.msk.f32.mxu1 %vm12884_vm3, %v12826_v28 }
 0x599   : > { %v12829_v23 = vmax.f32 %v12701_v62, 0.0  ;;  %v19741_v3 = vadd.f32 %v19398_v43, %v24844_v59  ;;  %v12256_v32 = vpop.f32.mrb[83].mxu0  ;;  %19585 = vmatmul.mubr.msk.f32.gmra.mrb[206].mxu1 %vm12884_vm3, %v12827_v46 }
 0x59a   : > { %v12828_v52 = vmax.f32 %v12700_v57, 0.0  ;;  %v19742_v15 = vadd.f32 %v12256_v32, %v24845_v22  ;;  %v24856_v57 = vld [vmem:[#allocation46_spill] sm:$0xff] }
 0x59b   : > { %14311 = vst.msk [vmem:[%s23349_s14 + $0x288] sm:$0xff] %vm12884_vm3, %v12829_v23  ;;  %v12703_v8 = vadd.f32 %v23758_v2, %v19741_v3  ;;  %v24857_v3 = vld [vmem:[#allocation47_spill] sm:$0xff] }
 0x59c   : > { %14310 = vst.msk [vmem:[%s23349_s14 + $0x280] sm:$0xff] %vm12884_vm3, %v12828_v52  ;;  %v12702_v63 = vadd.f32 %v23758_v2, %v19742_v15  ;;  %v19401_v0 = vpop.f32.mrb[84].mxu0  ;;  %19587 = vmatprep.mubr.msk.f32.mxu1 %vm12884_vm3, %v12828_v52 }
 0x59d   : > { %v12831_v37 = vmax.f32 %v12703_v8, 0.0  ;;  %v19743_v26 = vadd.f32 %v19401_v0, %v24846_v33  ;;  %v12266_v41 = vpop.f32.mrb[85].mxu0  ;;  %19588 = vmatmul.mubr.msk.f32.gmra.mrb[208].mxu1 %vm12884_vm3, %v12829_v23 }
 0x59e   : > { %v12830_v9 = vmax.f32 %v12702_v63, 0.0  ;;  %v19744_v13 = vadd.f32 %v12266_v41, %v24847_v48  ;;  %v24858_v63 = vld [vmem:[#allocation48_spill] sm:$0xff] }
 0x59f   : > { %14313 = vst.msk [vmem:[%s23349_s14 + $0x298] sm:$0xff] %vm12884_vm3, %v12831_v37  ;;  %v12705_v4 = vadd.f32 %v23758_v2, %v19743_v26  ;;  %v24859_v26 = vld [vmem:[#allocation49_spill] sm:$0xff] }
 0x5a0   : > { %14312 = vst.msk [vmem:[%s23349_s14 + $0x290] sm:$0xff] %vm12884_vm3, %v12830_v9  ;;  %v12704_v35 = vadd.f32 %v23758_v2, %v19744_v13  ;;  %v19404_v11 = vpop.f32.mrb[86].mxu0  ;;  %19590 = vmatprep.mubr.msk.f32.mxu1 %vm12884_vm3, %v12830_v9 }
 0x5a1   : > { %v12833_v39 = vmax.f32 %v12705_v4, 0.0  ;;  %v19745_v17 = vadd.f32 %v19404_v11, %v24848_v29  ;;  %v12276_v47 = vpop.f32.mrb[87].mxu0  ;;  %19591 = vmatmul.mubr.msk.f32.gmra.mrb[210].mxu1 %vm12884_vm3, %v12831_v37 }
 0x5a2   : > { %v12832_v6 = vmax.f32 %v12704_v35, 0.0  ;;  %v19746_v25 = vadd.f32 %v12276_v47, %v24849_v10  ;;  %v24860_v35 = vld [vmem:[#allocation50_spill] sm:$0xff] }
 0x5a3   : > { %14315 = vst.msk [vmem:[%s23349_s14 + $0x2a8] sm:$0xff] %vm12884_vm3, %v12833_v39  ;;  %v12707_v19 = vadd.f32 %v23758_v2, %v19745_v17  ;;  %v24861_v17 = vld [vmem:[#allocation51_spill] sm:$0xff] }
 0x5a4   : > { %14314 = vst.msk [vmem:[%s23349_s14 + $0x2a0] sm:$0xff] %vm12884_vm3, %v12832_v6  ;;  %v12706_v36 = vadd.f32 %v23758_v2, %v19746_v25  ;;  %v19407_v51 = vpop.f32.mrb[88].mxu0  ;;  %19593 = vmatprep.mubr.msk.f32.mxu1 %vm12884_vm3, %v12832_v6 }
 0x5a5   : > { %v12835_v12 = vmax.f32 %v12707_v19, 0.0  ;;  %v19747_v60 = vadd.f32 %v19407_v51, %v24850_v16  ;;  %v12286_v27 = vpop.f32.mrb[89].mxu0  ;;  %19594 = vmatmul.mubr.msk.f32.gmra.mrb[212].mxu1 %vm12884_vm3, %v12833_v39 }
 0x5a6   : > { %v12834_v24 = vmax.f32 %v12706_v36, 0.0  ;;  %v19748_v20 = vadd.f32 %v12286_v27, %v24851_v40  ;;  %v24862_v36 = vld [vmem:[#allocation52_spill] sm:$0xff] }
 0x5a7   : > { %14317 = vst.msk [vmem:[%s23349_s14 + $0x2b8] sm:$0xff] %vm12884_vm3, %v12835_v12  ;;  %v12709_v31 = vadd.f32 %v23758_v2, %v19747_v60  ;;  %v24863_v60 = vld [vmem:[#allocation53_spill] sm:$0xff] }
 0x5a8   : > { %14316 = vst.msk [vmem:[%s23349_s14 + $0x2b0] sm:$0xff] %vm12884_vm3, %v12834_v24  ;;  %v12708_v55 = vadd.f32 %v23758_v2, %v19748_v20  ;;  %v19410_v38 = vpop.f32.mrb[90].mxu0  ;;  %19596 = vmatprep.mubr.msk.f32.mxu1 %vm12884_vm3, %v12834_v24 }
 0x5a9   : > { %v12837_v45 = vmax.f32 %v12709_v31, 0.0  ;;  %v19749_v18 = vadd.f32 %v19410_v38, %v24852_v30  ;;  %v12296_v50 = vpop.f32.mrb[91].mxu0  ;;  %19597 = vmatmul.mubr.msk.f32.gmra.mrb[214].mxu1 %vm12884_vm3, %v12835_v12 }
 0x5aa   : > { %v12836_v1 = vmax.f32 %v12708_v55, 0.0  ;;  %v19750_v54 = vadd.f32 %v12296_v50, %v24853_v34  ;;  %v24864_v55 = vld [vmem:[#allocation54_spill] sm:$0xff] }
 0x5ab   : > { %14319 = vst.msk [vmem:[%s23349_s14 + $0x2c8] sm:$0xff] %vm12884_vm3, %v12837_v45  ;;  %v12711_v44 = vadd.f32 %v23758_v2, %v19749_v18  ;;  %v24865_v18 = vld [vmem:[#allocation55_spill] sm:$0xff] }
 0x5ac   : > { %14318 = vst.msk [vmem:[%s23349_s14 + $0x2c0] sm:$0xff] %vm12884_vm3, %v12836_v1  ;;  %v12710_v49 = vadd.f32 %v23758_v2, %v19750_v54  ;;  %v19413_v42 = vpop.f32.mrb[92].mxu0  ;;  %19599 = vmatprep.mubr.msk.f32.mxu1 %vm12884_vm3, %v12836_v1 }
 0x5ad   : > { %v12839_v7 = vmax.f32 %v12711_v44, 0.0  ;;  %v19751_v14 = vadd.f32 %v19413_v42, %v24854_v5  ;;  %v12306_v46 = vpop.f32.mrb[93].mxu0  ;;  %19600 = vmatmul.mubr.msk.f32.gmra.mrb[216].mxu1 %vm12884_vm3, %v12837_v45 }
 0x5ae   : > { %v12838_v53 = vmax.f32 %v12710_v49, 0.0  ;;  %v19752_v21 = vadd.f32 %v12306_v46, %v24855_v56  ;;  %v24866_v49 = vld [vmem:[#allocation56_spill] sm:$0xff] }
 0x5af   : > { %14321 = vst.msk [vmem:[%s23349_s14 + $0x2d8] sm:$0xff] %vm12884_vm3, %v12839_v7  ;;  %v12713_v28 = vadd.f32 %v23758_v2, %v19751_v14  ;;  %v24867_v14 = vld [vmem:[#allocation57_spill] sm:$0xff] }
 0x5b0   : > { %14320 = vst.msk [vmem:[%s23349_s14 + $0x2d0] sm:$0xff] %vm12884_vm3, %v12838_v53  ;;  %v12712_v61 = vadd.f32 %v23758_v2, %v19752_v21  ;;  %v19416_v58 = vpop.f32.mrb[94].mxu0  ;;  %19602 = vmatprep.mubr.msk.f32.mxu1 %vm12884_vm3, %v12838_v53 }
 0x5b1   : > { %v12841_v62 = vmax.f32 %v12713_v28, 0.0  ;;  %v19753_v43 = vadd.f32 %v19416_v58, %v24856_v57  ;;  %v12316_v23 = vpop.f32.mrb[95].mxu0  ;;  %19603 = vmatmul.mubr.msk.f32.gmra.mrb[218].mxu1 %vm12884_vm3, %v12839_v7 }
 0x5b2   : > { %v12840_v59 = vmax.f32 %v12712_v61, 0.0  ;;  %v19754_v32 = vadd.f32 %v12316_v23, %v24857_v3  ;;  %v24868_v61 = vld [vmem:[#allocation58_spill] sm:$0xff] }
 0x5b3   : > { %14323 = vst.msk [vmem:[%s23349_s14 + $0x2e8] sm:$0xff] %vm12884_vm3, %v12841_v62  ;;  %v12715_v52 = vadd.f32 %v23758_v2, %v19753_v43  ;;  %v24869_v43 = vld [vmem:[#allocation59_spill] sm:$0xff] }
 0x5b4   : > { %14322 = vst.msk [vmem:[%s23349_s14 + $0x2e0] sm:$0xff] %vm12884_vm3, %v12840_v59  ;;  %v12714_v22 = vadd.f32 %v23758_v2, %v19754_v32  ;;  %v19419_v15 = vpop.f32.mrb[96].mxu0  ;;  %19605 = vmatprep.mubr.msk.f32.mxu1 %vm12884_vm3, %v12840_v59 }
 0x5b5   : > { %v12843_v8 = vmax.f32 %v12715_v52, 0.0  ;;  %v19755_v0 = vadd.f32 %v19419_v15, %v24858_v63  ;;  %v12326_v37 = vpop.f32.mrb[97].mxu0  ;;  %19606 = vmatmul.mubr.msk.f32.gmra.mrb[220].mxu1 %vm12884_vm3, %v12841_v62 }
 0x5b6   : > { %v12842_v33 = vmax.f32 %v12714_v22, 0.0  ;;  %v19756_v41 = vadd.f32 %v12326_v37, %v24859_v26  ;;  %v24870_v22 = vld [vmem:[#allocation60_spill] sm:$0xff] }
 0x5b7   : > { %14325 = vst.msk [vmem:[%s23349_s14 + $0x2f8] sm:$0xff] %vm12884_vm3, %v12843_v8  ;;  %v12717_v9 = vadd.f32 %v23758_v2, %v19755_v0  ;;  %v24871_v0 = vld [vmem:[#allocation61_spill] sm:$0xff] }
 0x5b8   : > { %14324 = vst.msk [vmem:[%s23349_s14 + $0x2f0] sm:$0xff] %vm12884_vm3, %v12842_v33  ;;  %v12716_v48 = vadd.f32 %v23758_v2, %v19756_v41  ;;  %v19422_v13 = vpop.f32.mrb[98].mxu0  ;;  %19608 = vmatprep.mubr.msk.f32.mxu1 %vm12884_vm3, %v12842_v33  ;;  %v23911_v33 = vld [vmem:[%s24548_s5] ss:$0 sm:$0xff] }
 0x5b9   : > { %v12845_v4 = vmax.f32 %v12717_v9, 0.0  ;;  %v19757_v11 = vadd.f32 %v19422_v13, %v24860_v35  ;;  %v12336_v39 = vpop.f32.mrb[99].mxu0  ;;  %19609 = vmatmul.mubr.msk.f32.gmra.mrb[222].mxu1 %vm12884_vm3, %v12843_v8 }
 0x5ba   : > { %v12844_v29 = vmax.f32 %v12716_v48, 0.0  ;;  %v19758_v47 = vadd.f32 %v12336_v39, %v24861_v17 }
 0x5bb   : > { %14327 = vst.msk [vmem:[%s23349_s14 + $0x308] sm:$0xff] %vm12884_vm3, %v12845_v4  ;;  %v12719_v6 = vadd.f32 %v23758_v2, %v19757_v11 }
 0x5bc   : > { %14326 = vst.msk [vmem:[%s23349_s14 + $0x300] sm:$0xff] %vm12884_vm3, %v12844_v29  ;;  %v12718_v10 = vadd.f32 %v23758_v2, %v19758_v47  ;;  %v19425_v25 = vpop.f32.mrb[100].mxu0  ;;  %19611 = vmatprep.mubr.msk.f32.mxu1 %vm12884_vm3, %v12844_v29  ;;  %v24873_v47 = vld [vmem:[#allocation63_spill] sm:$0xff] }
 0x5bd   : > { %v12847_v19 = vmax.f32 %v12719_v6, 0.0  ;;  %v19759_v51 = vadd.f32 %v19425_v25, %v24862_v36  ;;  %v12346_v12 = vpop.f32.mrb[101].mxu0  ;;  %19612 = vmatmul.mubr.msk.f32.gmra.mrb[224].mxu1 %vm12884_vm3, %v12845_v4  ;;  %v24872_v4 = vld [vmem:[#allocation62_spill] sm:$0xff] }
 0x5be   : > { %v12846_v16 = vmax.f32 %v12718_v10, 0.0  ;;  %v19760_v27 = vadd.f32 %v12346_v12, %v24863_v60 }
 0x5bf   : > { %14329 = vst.msk [vmem:[%s23349_s14 + $0x318] sm:$0xff] %vm12884_vm3, %v12847_v19  ;;  %v12721_v24 = vadd.f32 %v23758_v2, %v19759_v51 }
 0x5c0   : > { %14328 = vst.msk [vmem:[%s23349_s14 + $0x310] sm:$0xff] %vm12884_vm3, %v12846_v16  ;;  %v12720_v40 = vadd.f32 %v23758_v2, %v19760_v27  ;;  %v19428_v20 = vpop.f32.mrb[102].mxu0  ;;  %19614 = vmatprep.mubr.msk.f32.mxu1 %vm12884_vm3, %v12846_v16  ;;  %v24874_v16 = vld [vmem:[#allocation64_spill] sm:$0xff] }
 0x5c1   : > { %v12849_v31 = vmax.f32 %v12721_v24, 0.0  ;;  %v19761_v38 = vadd.f32 %v19428_v20, %v24864_v55  ;;  %v12356_v45 = vpop.f32.mrb[103].mxu0  ;;  %19615 = vmatmul.mubr.msk.f32.gmra.mrb[226].mxu1 %vm12884_vm3, %v12847_v19 }
 0x5c2   : > { %v12848_v30 = vmax.f32 %v12720_v40, 0.0  ;;  %v19762_v50 = vadd.f32 %v12356_v45, %v24865_v18 }
 0x5c3   : > { %14331 = vst.msk [vmem:[%s23349_s14 + $0x328] sm:$0xff] %vm12884_vm3, %v12849_v31  ;;  %v12723_v1 = vadd.f32 %v23758_v2, %v19761_v38 }
 0x5c4   : > { %14330 = vst.msk [vmem:[%s23349_s14 + $0x320] sm:$0xff] %vm12884_vm3, %v12848_v30  ;;  %v12722_v34 = vadd.f32 %v23758_v2, %v19762_v50  ;;  %v19431_v54 = vpop.f32.mrb[104].mxu0  ;;  %19617 = vmatprep.mubr.msk.f32.mxu1 %vm12884_vm3, %v12848_v30 }
 0x5c5   : > { %v12851_v44 = vmax.f32 %v12723_v1, 0.0  ;;  %v19763_v42 = vadd.f32 %v19431_v54, %v24866_v49  ;;  %v12366_v7 = vpop.f32.mrb[105].mxu0  ;;  %19618 = vmatmul.mubr.msk.f32.gmra.mrb[228].mxu1 %vm12884_vm3, %v12849_v31  ;;  %v24875_v31 = vld [vmem:[#allocation65_spill] sm:$0xff] }
 0x5c6   : > { %v12850_v5 = vmax.f32 %v12722_v34, 0.0  ;;  %v19764_v46 = vadd.f32 %v12366_v7, %v24867_v14  ;;  %v24876_v34 = vld [vmem:[#allocation66_spill] sm:$0xff] }
 0x5c7   : > { %14333 = vst.msk [vmem:[%s23349_s14 + $0x338] sm:$0xff] %vm12884_vm3, %v12851_v44  ;;  %v12725_v53 = vadd.f32 %v23758_v2, %v19763_v42 }
 0x5c8   : > { %14332 = vst.msk [vmem:[%s23349_s14 + $0x330] sm:$0xff] %vm12884_vm3, %v12850_v5  ;;  %v12724_v56 = vadd.f32 %v23758_v2, %v19764_v46  ;;  %v19434_v21 = vpop.f32.mrb[106].mxu0  ;;  %19620 = vmatprep.mubr.msk.f32.mxu1 %vm12884_vm3, %v12850_v5  ;;  %v24877_v5 = vld [vmem:[#allocation67_spill] sm:$0xff] }
 0x5c9   : > { %v12853_v28 = vmax.f32 %v12725_v53, 0.0  ;;  %v19765_v58 = vadd.f32 %v19434_v21, %v24868_v61  ;;  %v12376_v62 = vpop.f32.mrb[107].mxu0  ;;  %19621 = vmatmul.mubr.msk.f32.gmra.mrb[230].mxu1 %vm12884_vm3, %v12851_v44 }
 0x5ca   : > { %v12852_v57 = vmax.f32 %v12724_v56, 0.0  ;;  %v19766_v23 = vadd.f32 %v12376_v62, %v24869_v43  ;;  %v24878_v62 = vld [vmem:[#allocation68_spill] sm:$0xff] }
 0x5cb   : > { %14335 = vst.msk [vmem:[%s23349_s14 + $0x348] sm:$0xff] %vm12884_vm3, %v12853_v28  ;;  %v12727_v59 = vadd.f32 %v23758_v2, %v19765_v58 }
 0x5cc   : > { %14334 = vst.msk [vmem:[%s23349_s14 + $0x340] sm:$0xff] %vm12884_vm3, %v12852_v57  ;;  %v12726_v3 = vadd.f32 %v23758_v2, %v19766_v23  ;;  %v19437_v32 = vpop.f32.mrb[108].mxu0  ;;  %19623 = vmatprep.mubr.msk.f32.mxu1 %vm12884_vm3, %v12852_v57 }
 0x5cd   : > { %v12855_v52 = vmax.f32 %v12727_v59, 0.0  ;;  %v19767_v15 = vadd.f32 %v19437_v32, %v24870_v22  ;;  %v12386_v8 = vpop.f32.mrb[109].mxu0  ;;  %19624 = vmatmul.mubr.msk.f32.gmra.mrb[232].mxu1 %vm12884_vm3, %v12853_v28  ;;  %v24879_v32 = vld [vmem:[#allocation69_spill] sm:$0xff] }
 0x5ce   : > { %v12854_v63 = vmax.f32 %v12726_v3, 0.0  ;;  %v19768_v37 = vadd.f32 %v12386_v8, %v24871_v0 }
 0x5cf   : > { %14337 = vst.msk [vmem:[%s23349_s14 + $0x358] sm:$0xff] %vm12884_vm3, %v12855_v52  ;;  %v12729_v26 = vadd.f32 %v23758_v2, %v19767_v15 }
 0x5d0   : > { %14336 = vst.msk [vmem:[%s23349_s14 + $0x350] sm:$0xff] %vm12884_vm3, %v12854_v63  ;;  %v12728_v41 = vadd.f32 %v23758_v2, %v19768_v37  ;;  %v19440_v9 = vpop.f32.mrb[110].mxu0  ;;  %v19469_v48 = vpop.f32.mrb[128].mxu1  ;;  %19626 = vmatprep.mubr.msk.f32.mxu1 %vm12884_vm3, %v12854_v63 }
 0x5d1   : > { %v12857_v13 = vmax.f32 %v12729_v26, 0.0  ;;  %v19769_v35 = vadd.f32 %v19440_v9, %v24872_v4  ;;  %v13341_v11 = vadd.f32 %v19469_v48, %v23911_v33  ;;  %v12396_v39 = vpop.f32.mrb[111].mxu0  ;;  %v13335_v29 = vpop.f32.mrb[129].mxu1  ;;  %19627 = vmatmul.mubr.msk.f32.gmra.mrb[234].mxu1 %vm12884_vm3, %v12855_v52  ;;  %v24880_v48 = vld [vmem:[#allocation70_spill] sm:$0xff] }
 0x5d2   : > { %v12856_v17 = vmax.f32 %v12728_v41, 0.0  ;;  %v19770_v6 = vadd.f32 %v12396_v39, %v24873_v47  ;;  %v13336_v10 = vadd.f32 %v23911_v33, %v13335_v29  ;;  %v24881_v29 = vld [vmem:[#allocation71_spill] sm:$0xff] }
 0x5d3   : > { %14339 = vst.msk [vmem:[%s23349_s14 + $0x368] sm:$0xff] %vm12884_vm3, %v12857_v13  ;;  %v12731_v25 = vadd.f32 %v23758_v2, %v19769_v35  ;;  %20711 = vtanh.f32 %v13341_v11 }
 0x5d4   : > { %14338 = vst.msk [vmem:[%s23349_s14 + $0x360] sm:$0xff] %vm12884_vm3, %v12856_v17  ;;  %v12730_v19 = vadd.f32 %v23758_v2, %v19770_v6  ;;  %v19443_v36 = vpop.f32.mrb[112].mxu0  ;;  %v19472_v51 = vpop.f32.mrb[130].mxu1  ;;  %19629 = vmatprep.mubr.msk.f32.mxu1 %vm12884_vm3, %v12856_v17  ;;  %20713 = vtanh.f32 %v13336_v10 }
 0x5d5   : > { %v12859_v12 = vmax.f32 %v12731_v25, 0.0  ;;  %v19771_v60 = vadd.f32 %v19443_v36, %v24874_v16  ;;  %v13351_v27 = vadd.f32 %v19472_v51, %v23911_v33  ;;  %v12406_v24 = vpop.f32.mrb[113].mxu0  ;;  %v13345_v40 = vpop.f32.mrb[131].mxu1  ;;  %19630 = vmatmul.mubr.msk.f32.gmra.mrb[236].mxu1 %vm12884_vm3, %v12857_v13 }
 0x5d6   : > { %v12858_v20 = vmax.f32 %v12730_v19, 0.0  ;;  %v19772_v55 = vadd.f32 %v12406_v24, %v24875_v31  ;;  %v13346_v38 = vadd.f32 %v23911_v33, %v13345_v40 }
 0x5d7   : > { %14341 = vst.msk [vmem:[%s23349_s14 + $0x378] sm:$0xff] %vm12884_vm3, %v12859_v12  ;;  %v12733_v45 = vadd.f32 %v23758_v2, %v19771_v60  ;;  %20715 = vtanh.f32 %v13351_v27  ;;  %v24882_v60 = vld [vmem:[#allocation72_spill] sm:$0xff] }
 0x5d8   : > { %14340 = vst.msk [vmem:[%s23349_s14 + $0x370] sm:$0xff] %vm12884_vm3, %v12858_v20  ;;  %v12732_v30 = vadd.f32 %v23758_v2, %v19772_v55  ;;  %v19446_v18 = vpop.f32.mrb[114].mxu0  ;;  %v19475_v50 = vpop.f32.mrb[132].mxu1  ;;  %19632 = vmatprep.mubr.msk.f32.mxu1 %vm12884_vm3, %v12858_v20  ;;  %20717 = vtanh.f32 %v13346_v38 }
 0x5d9   : > { %v12861_v1 = vmax.f32 %v12733_v45, 0.0  ;;  %v19773_v54 = vadd.f32 %v19446_v18, %v24876_v34  ;;  %v13361_v44 = vadd.f32 %v19475_v50, %v23911_v33  ;;  %v12416_v49 = vpop.f32.mrb[115].mxu0  ;;  %v13355_v42 = vpop.f32.mrb[133].mxu1  ;;  %19633 = vmatmul.mubr.msk.f32.gmra.mrb[238].mxu1 %vm12884_vm3, %v12859_v12  ;;  %v24883_v45 = vld [vmem:[#allocation73_spill] sm:$0xff] }
 0x5da   : > { %v12860_v7 = vmax.f32 %v12732_v30, 0.0  ;;  %v19774_v14 = vadd.f32 %v12416_v49, %v24877_v5  ;;  %v13356_v46 = vadd.f32 %v23911_v33, %v13355_v42 }
 0x5db   : > { %14343 = vst.msk [vmem:[%s23349_s14 + $0x388] sm:$0xff] %vm12884_vm3, %v12861_v1  ;;  %v12735_v53 = vadd.f32 %v23758_v2, %v19773_v54 }
 0x5dc   : > { %14342 = vst.msk [vmem:[%s23349_s14 + $0x380] sm:$0xff] %vm12884_vm3, %v12860_v7  ;;  %v12734_v56 = vadd.f32 %v23758_v2, %v19774_v14  ;;  %20719 = vtanh.f32 %v13356_v46  ;;  %v19449_v21 = vpop.f32.mrb[116].mxu0  ;;  %v19478_v28 = vpop.f32.mrb[134].mxu1  ;;  %19635 = vmatprep.mubr.msk.f32.mxu1 %vm12884_vm3, %v12860_v7  ;;  %v24884_v7 = vld [vmem:[#allocation74_spill] sm:$0xff] }
 0x5dd   : > { %v20712_v61 = vpop.eup %20711  ;;  %v12863_v58 = vmax.f32 %v12735_v53, 0.0  ;;  %20721 = vtanh.f32 %v13361_v44  ;;  %v19775_v57 = vadd.f32 %v19449_v21, %v24878_v62  ;;  %v13371_v43 = vadd.f32 %v19478_v28, %v23911_v33  ;;  %v12426_v23 = vpop.f32.mrb[117].mxu0  ;;  %19636 = vmatmul.mubr.msk.f32.gmra.mrb[240].mxu1 %vm12884_vm3, %v12861_v1 }
 0x5de   : > { %v13365_v59 = vpop.f32.mrb[135].mxu1  ;;  %v12862_v3 = vmax.f32 %v12734_v56, 0.0  ;;  %v19776_v52 = vadd.f32 %v12426_v23, %v24879_v32  ;;  %v14103_v15 = vmul.f32 256.0, %v20712_v61  ;;  %v20714_v63 = vpop.eup %20713  ;;  %v24885_v61 = vld [vmem:[#allocation75_spill] sm:$0xff] }
 0x5df   : > { %v13366_v22 = vadd.f32 %v23911_v33, %v13365_v59  ;;  %14345 = vst.msk [vmem:[%s23349_s14 + $0x398] sm:$0xff] %vm12884_vm3, %v12863_v58  ;;  %v12737_v8 = vadd.f32 %v23758_v2, %v19775_v57  ;;  %v14102_v25 = vmul.f32 256.0, %v20714_v63 }
 0x5e0   : > { %14344 = vst.msk [vmem:[%s23349_s14 + $0x390] sm:$0xff] %vm12884_vm3, %v12862_v3  ;;  %v12736_v0 = vadd.f32 %v23758_v2, %v19776_v52  ;;  %v19452_v37 = vpop.f32.mrb[118].mxu0  ;;  %19638 = vmatprep.mubr.msk.f32.mxu1 %vm12884_vm3, %v12862_v3  ;;  %14488 = vrot.lane.b32.xlu0 %v14103_v15, %s20993_s18  ;;  %v19481_v26 = vpop.f32.mrb[136].mxu1 }
 0x5e1   : > { %20723 = vtanh.f32 %v13366_v22  ;;  %v20716_v41 = vpop.eup %20715  ;;  %v12865_v9 = vmax.f32 %v12737_v8, 0.0  ;;  %v19777_v13 = vadd.f32 %v19452_v37, %v24880_v48  ;;  %v13381_v4 = vadd.f32 %v19481_v26, %v23911_v33  ;;  %v12436_v35 = vpop.f32.mrb[119].mxu0  ;;  %19639 = vmatmul.mubr.msk.f32.gmra.mrb[242].mxu1 %vm12884_vm3, %v12863_v58  ;;  %v24886_v22 = vld [vmem:[#allocation76_spill] sm:$0xff] }
 0x5e2   : > { %20725 = vtanh.f32 %v13371_v43  ;;  %v13375_v11 = vpop.f32.mrb[137].mxu1  ;;  %v12864_v39 = vmax.f32 %v12736_v0, 0.0  ;;  %v19778_v17 = vadd.f32 %v12436_v35, %v24881_v29  ;;  %v14105_v6 = vmul.f32 256.0, %v20716_v41  ;;  %v20718_v10 = vpop.eup %20717 }
 0x5e3   : > { %v13376_v47 = vadd.f32 %v23911_v33, %v13375_v11  ;;  %14347 = vst.msk [vmem:[%s23349_s14 + $0x3a8] sm:$0xff] %vm12884_vm3, %v12865_v9  ;;  %v12739_v19 = vadd.f32 %v23758_v2, %v19777_v13  ;;  %v14104_v55 = vmul.f32 256.0, %v20718_v10 }
 0x5e4   : > { %14346 = vst.msk [vmem:[%s23349_s14 + $0x3a0] sm:$0xff] %vm12884_vm3, %v12864_v39  ;;  %v12738_v36 = vadd.f32 %v23758_v2, %v19778_v17  ;;  %v19455_v51 = vpop.f32.mrb[120].mxu0  ;;  %19641 = vmatprep.mubr.msk.f32.mxu1 %vm12884_vm3, %v12864_v39  ;;  %14492 = vrot.lane.b32.xlu1 %v14105_v6, %s20993_s18  ;;  %v19484_v12 = vpop.f32.mrb[138].mxu1  ;;  %v24888_v6 = vld [vmem:[#allocation78_spill] sm:$0xff] }
 0x5e5   : > { %20727 = vtanh.f32 %v13376_v47  ;;  %v12867_v16 = vmax.f32 %v12739_v19, 0.0  ;;  %v19779_v27 = vadd.f32 %v19455_v51, %v24882_v60  ;;  %v13391_v24 = vadd.f32 %v19484_v12, %v23911_v33  ;;  %14486 = vrot.lane.b32.xlu0 %v14102_v25, %s20993_s18  ;;  %v12446_v40 = vpop.f32.mrb[121].mxu0  ;;  %v13385_v20 = vpop.f32.mrb[139].mxu1  ;;  %19642 = vmatmul.mubr.msk.f32.gmra.mrb[244].mxu1 %vm12884_vm3, %v12865_v9  ;;  %v24887_v9 = vld [vmem:[#allocation77_spill] sm:$0xff]  ;;  %v24889_v60 = vld [vmem:[#allocation79_spill] sm:$0xff] }
 0x5e6   : > { %20729 = vtanh.f32 %v13381_v4  ;;  %v20720_v31 = vpop.eup %20719  ;;  %v12866_v38 = vmax.f32 %v12738_v36, 0.0  ;;  %v19780_v30 = vadd.f32 %v12446_v40, %v24883_v45  ;;  %v13386_v18 = vadd.f32 %v23911_v33, %v13385_v20 }
 0x5e7   : > { %v20722_v50 = vpop.eup %20721  ;;  %v14106_v1 = vmul.f32 256.0, %v20720_v31  ;;  %14349 = vst.msk [vmem:[%s23349_s14 + $0x3b8] sm:$0xff] %vm12884_vm3, %v12867_v16  ;;  %v12741_v34 = vadd.f32 %v23758_v2, %v19779_v27 }
 0x5e8   : > { %14348 = vst.msk [vmem:[%s23349_s14 + $0x3b0] sm:$0xff] %vm12884_vm3, %v12866_v38  ;;  %v12740_v54 = vadd.f32 %v23758_v2, %v19780_v30  ;;  %20731 = vtanh.f32 %v13386_v18  ;;  %v19458_v44 = vpop.f32.mrb[122].mxu0  ;;  %v19487_v49 = vpop.f32.mrb[140].mxu1  ;;  %19644 = vmatprep.mubr.msk.f32.mxu1 %vm12884_vm3, %v12866_v38  ;;  %14490 = vrot.lane.b32.xlu1 %v14104_v55, %s20993_s18  ;;  %v14107_v21 = vmul.f32 256.0, %v20722_v50 }
 0x5e9   : > { %v12869_v42 = vmax.f32 %v12741_v34, 0.0  ;;  %20733 = vtanh.f32 %v13391_v24  ;;  %v19781_v5 = vadd.f32 %v19458_v44, %v24884_v7  ;;  %v13401_v14 = vadd.f32 %v19487_v49, %v23911_v33  ;;  %v12456_v46 = vpop.f32.mrb[123].mxu0  ;;  %v13395_v53 = vpop.f32.mrb[141].mxu1  ;;  %19645 = vmatmul.mubr.msk.f32.gmra.mrb[246].mxu1 %vm12884_vm3, %v12867_v16  ;;  %14494 = vrot.lane.b32.xlu0 %v14106_v1, %s20993_s18 }
 0x5ea   : > { %v12868_v28 = vmax.f32 %v12740_v54, 0.0  ;;  %v19782_v58 = vadd.f32 %v12456_v46, %v24885_v61  ;;  %v13396_v62 = vadd.f32 %v23911_v33, %v13395_v53 }
 0x5eb   : > { %v20724_v56 = vpop.eup %20723  ;;  %14351 = vst.msk [vmem:[%s23349_s14 + $0x3c8] sm:$0xff] %vm12884_vm3, %v12869_v42  ;;  %v12743_v23 = vadd.f32 %v23758_v2, %v19781_v5 }
 0x5ec   : > { %v20726_v57 = vpop.eup %20725  ;;  %v14108_v43 = vmul.f32 256.0, %v20724_v56  ;;  %14350 = vst.msk [vmem:[%s23349_s14 + $0x3c0] sm:$0xff] %vm12884_vm3, %v12868_v28  ;;  %v12742_v59 = vadd.f32 %v23758_v2, %v19782_v58  ;;  %20735 = vtanh.f32 %v13396_v62  ;;  %v19461_v3 = vpop.f32.mrb[124].mxu0  ;;  %19647 = vmatprep.mubr.msk.f32.mxu1 %vm12884_vm3, %v12868_v28  ;;  %14496 = vrot.lane.b32.xlu1 %v14107_v21, %s20993_s18 }
 0x5ed   : > { %v19490_v32 = vpop.f32.mrb[142].mxu1  ;;  %v12871_v52 = vmax.f32 %v12743_v23, 0.0  ;;  %20737 = vtanh.f32 %v13401_v14  ;;  %v19783_v15 = vadd.f32 %v19461_v3, %v24886_v22  ;;  %v12466_v63 = vpop.f32.mrb[125].mxu0  ;;  %19648 = vmatmul.mubr.msk.f32.gmra.mrb[248].mxu1 %vm12884_vm3, %v12869_v42  ;;  %v14109_v26 = vmul.f32 256.0, %v20726_v57 }
 0x5ee   : > { %v13411_v8 = vadd.f32 %v19490_v32, %v23911_v33  ;;  %v13405_v0 = vpop.f32.mrb[143].mxu1  ;;  %14498 = vrot.lane.b32.xlu0 %v14108_v43, %s20993_s18  ;;  %v12870_v41 = vmax.f32 %v12742_v59, 0.0  ;;  %v19784_v48 = vadd.f32 %v12466_v63, %v24887_v9 }
 0x5ef   : > { %v20728_v37 = vpop.eup %20727  ;;  %v13406_v13 = vadd.f32 %v23911_v33, %v13405_v0  ;;  %14353 = vst.msk [vmem:[%s23349_s14 + $0x3d8] sm:$0xff] %vm12884_vm3, %v12871_v52  ;;  %v12745_v11 = vadd.f32 %v23758_v2, %v19783_v15 }
 0x5f0   : > { %v20730_v4 = vpop.eup %20729  ;;  %v14110_v35 = vmul.f32 256.0, %v20728_v37  ;;  %14352 = vst.msk [vmem:[%s23349_s14 + $0x3d0] sm:$0xff] %vm12884_vm3, %v12870_v41  ;;  %v12744_v39 = vadd.f32 %v23758_v2, %v19784_v48  ;;  %v19464_v29 = vpop.f32.mrb[126].mxu0  ;;  %19650 = vmatprep.mubr.msk.f32.mxu1 %vm12884_vm3, %v12870_v41  ;;  %14500 = vrot.lane.b32.xlu1 %v14109_v26, %s20993_s18 }
 0x5f1   : > { %20739 = vtanh.f32 %v13406_v13  ;;  %v19493_v17 = vpop.f32.mrb[144].mxu1  ;;  %v12873_v47 = vmax.f32 %v12745_v11, 0.0  ;;  %v19785_v10 = vadd.f32 %v19464_v29, %v24888_v6  ;;  %v12476_v19 = vpop.f32.mrb[127].mxu0  ;;  %19651 = vmatmul.mubr.msk.f32.gmra.mrb[250].mxu1 %vm12884_vm3, %v12871_v52  ;;  %v14111_v12 = vmul.f32 256.0, %v20730_v4 }
 0x5f2   : > { %20741 = vtanh.f32 %v13411_v8  ;;  %v13421_v25 = vadd.f32 %v19493_v17, %v23911_v33  ;;  %v13415_v36 = vpop.f32.mrb[145].mxu1  ;;  %14502 = vrot.lane.b32.xlu0 %v14110_v35, %s20993_s18  ;;  %v20732_v51 = vpop.eup %20731  ;;  %v12872_v16 = vmax.f32 %v12744_v39, 0.0  ;;  %v19786_v27 = vadd.f32 %v12476_v19, %v24889_v60 }
 0x5f3   : > { %v13416_v24 = vadd.f32 %v23911_v33, %v13415_v36  ;;  %v20734_v40 = vpop.eup %20733  ;;  %v14112_v20 = vmul.f32 256.0, %v20732_v51  ;;  %14355 = vst.msk [vmem:[%s23349_s14 + $0x3e8] sm:$0xff] %vm12884_vm3, %v12873_v47  ;;  %v12747_v31 = vadd.f32 %v23758_v2, %v19785_v10 }
 0x5f4   : > { %14354 = vst.msk [vmem:[%s23349_s14 + $0x3e0] sm:$0xff] %vm12884_vm3, %v12872_v16  ;;  %v12746_v55 = vadd.f32 %v23758_v2, %v19786_v27  ;;  %v19496_v38 = vpop.f32.mrb[146].mxu1  ;;  %19653 = vmatprep.mubr.msk.f32.mxu1 %vm12884_vm3, %v12872_v16  ;;  %14504 = vrot.lane.b32.xlu1 %v14111_v12, %s20993_s18  ;;  %v14113_v1 = vmul.f32 256.0, %v20734_v40 }
 0x5f5   : > { %20743 = vtanh.f32 %v13416_v24  ;;  %v12875_v45 = vmax.f32 %v12747_v31, 0.0  ;;  %v13431_v30 = vadd.f32 %v19496_v38, %v23911_v33  ;;  %v13425_v18 = vpop.f32.mrb[147].mxu1  ;;  %19654 = vmatmul.mubr.msk.f32.gmra.mrb[252].mxu1 %vm12884_vm3, %v12873_v47 }
 0x5f6   : > { %20745 = vtanh.f32 %v13421_v25  ;;  %14506 = vrot.lane.b32.xlu0 %v14112_v20, %s20993_s18  ;;  %v20736_v50 = vpop.eup %20735  ;;  %v12874_v2 = vmax.f32 %v12746_v55, 0.0  ;;  %v13426_v34 = vadd.f32 %v23911_v33, %v13425_v18 }
 0x5f7   : > { %v20738_v54 = vpop.eup %20737  ;;  %v14114_v44 = vmul.f32 256.0, %v20736_v50  ;;  %14357 = vst.msk [vmem:[%s23349_s14 + $0x3f8] sm:$0xff] %vm12884_vm3, %v12875_v45 }
 0x5f8   : > { %14356 = vst.msk [vmem:[%s23349_s14 + $0x3f0] sm:$0xff] %vm12884_vm3, %v12874_v2  ;;  %20747 = vtanh.f32 %v13426_v34  ;;  %v19499_v49 = vpop.f32.mrb[148].mxu1  ;;  %14508 = vrot.lane.b32.xlu1 %v14113_v1, %s20993_s18  ;;  %19656 = vmatprep.mubr.msk.f32.mxu1 %vm12884_vm3, %v12874_v2  ;;  %v14115_v14 = vmul.f32 256.0, %v20738_v54 }
 0x5f9   : > { %20749 = vtanh.f32 %v13431_v30  ;;  %v13441_v42 = vadd.f32 %v19499_v49, %v23911_v33  ;;  %v13435_v7 = vpop.f32.mrb[149].mxu1  ;;  %19657 = vmatmul.mubr.msk.f32.gmra.mrb[254].mxu1 %vm12884_vm3, %v12875_v45 }
 0x5fa   : > { %14510 = vrot.lane.b32.xlu0 %v14114_v44, %s20993_s18  ;;  %v13436_v46 = vadd.f32 %v23911_v33, %v13435_v7 }
 0x5fb   : > { %v20740_v5 = vpop.eup %20739 }
 0x5fc   : > { %v20742_v53 = vpop.eup %20741  ;;  %v14116_v56 = vmul.f32 256.0, %v20740_v5  ;;  %20751 = vtanh.f32 %v13436_v46  ;;  %v19502_v21 = vpop.f32.mrb[150].mxu1  ;;  %14512 = vrot.lane.b32.xlu1 %v14115_v14, %s20993_s18 }
 0x5fd   : > { %20753 = vtanh.f32 %v13441_v42  ;;  %v13451_v28 = vadd.f32 %v19502_v21, %v23911_v33  ;;  %v13445_v61 = vpop.f32.mrb[151].mxu1  ;;  %v14117_v62 = vmul.f32 256.0, %v20742_v53 }
 0x5fe   : > { %14514 = vrot.lane.b32.xlu0 %v14116_v56, %s20993_s18  ;;  %v13446_v57 = vadd.f32 %v23911_v33, %v13445_v61 }
 0x5ff   : > { %v20744_v58 = vpop.eup %20743 }
 0x600   : > { %v20746_v43 = vpop.eup %20745  ;;  %v14118_v23 = vmul.f32 256.0, %v20744_v58  ;;  %20755 = vtanh.f32 %v13446_v57  ;;  %v19505_v59 = vpop.f32.mrb[152].mxu1  ;;  %14516 = vrot.lane.b32.xlu1 %v14117_v62, %s20993_s18 }
 0x601   : > { %20757 = vtanh.f32 %v13451_v28  ;;  %v13461_v3 = vadd.f32 %v19505_v59, %v23911_v33  ;;  %v13455_v32 = vpop.f32.mrb[153].mxu1  ;;  %v14119_v22 = vmul.f32 256.0, %v20746_v43 }
 0x602   : > { %14518 = vrot.lane.b32.xlu0 %v14118_v23, %s20993_s18  ;;  %v20748_v52 = vpop.eup %20747  ;;  %v13456_v15 = vadd.f32 %v23911_v33, %v13455_v32 }
 0x603   : > { %v20750_v8 = vpop.eup %20749  ;;  %v14120_v63 = vmul.f32 256.0, %v20748_v52 }
 0x604   : > { %20759 = vtanh.f32 %v13456_v15  ;;  %v19508_v0 = vpop.f32.mrb[154].mxu1  ;;  %14520 = vrot.lane.b32.xlu1 %v14119_v22, %s20993_s18  ;;  %v14121_v9 = vmul.f32 256.0, %v20750_v8 }
 0x605   : > { %20761 = vtanh.f32 %v13461_v3  ;;  %v13471_v37 = vadd.f32 %v19508_v0, %v23911_v33  ;;  %v13465_v26 = vpop.f32.mrb[155].mxu1 }
 0x606   : > { %14522 = vrot.lane.b32.xlu0 %v14120_v63, %s20993_s18  ;;  %v20752_v41 = vpop.eup %20751  ;;  %v13466_v48 = vadd.f32 %v23911_v33, %v13465_v26 }
 0x607   : > { %v20754_v13 = vpop.eup %20753  ;;  %v14122_v4 = vmul.f32 256.0, %v20752_v41 }
 0x608   : > { %20763 = vtanh.f32 %v13466_v48  ;;  %v19511_v35 = vpop.f32.mrb[156].mxu1  ;;  %14524 = vrot.lane.b32.xlu1 %v14121_v9, %s20993_s18  ;;  %v14123_v17 = vmul.f32 256.0, %v20754_v13 }
 0x609   : > { %20765 = vtanh.f32 %v13471_v37  ;;  %v13481_v11 = vadd.f32 %v19511_v35, %v23911_v33  ;;  %v13475_v39 = vpop.f32.mrb[157].mxu1 }
 0x60a   : > { %14526 = vrot.lane.b32.xlu0 %v14122_v4, %s20993_s18  ;;  %v20756_v29 = vpop.eup %20755  ;;  %v13476_v47 = vadd.f32 %v23911_v33, %v13475_v39 }
 0x60b   : > { %v20758_v6 = vpop.eup %20757  ;;  %v14124_v10 = vmul.f32 256.0, %v20756_v29 }
 0x60c   : > { %20767 = vtanh.f32 %v13476_v47  ;;  %v19514_v25 = vpop.f32.mrb[158].mxu1  ;;  %14528 = vrot.lane.b32.xlu1 %v14123_v17, %s20993_s18  ;;  %v14125_v12 = vmul.f32 256.0, %v20758_v6 }
 0x60d   : > { %20769 = vtanh.f32 %v13481_v11  ;;  %v13491_v19 = vadd.f32 %v19514_v25, %v23911_v33  ;;  %v13485_v36 = vpop.f32.mrb[159].mxu1 }
 0x60e   : > { %14530 = vrot.lane.b32.xlu0 %v14124_v10, %s20993_s18  ;;  %v20760_v51 = vpop.eup %20759  ;;  %v13486_v16 = vadd.f32 %v23911_v33, %v13485_v36 }
 0x60f   : > { %v20762_v60 = vpop.eup %20761  ;;  %v14126_v27 = vmul.f32 256.0, %v20760_v51 }
 0x610   : > { %20771 = vtanh.f32 %v13486_v16  ;;  %v19517_v24 = vpop.f32.mrb[160].mxu1  ;;  %14532 = vrot.lane.b32.xlu1 %v14125_v12, %s20993_s18  ;;  %v14127_v55 = vmul.f32 256.0, %v20762_v60 }
 0x611   : > { %20773 = vtanh.f32 %v13491_v19  ;;  %v13501_v40 = vadd.f32 %v19517_v24, %v23911_v33  ;;  %v13495_v20 = vpop.f32.mrb[161].mxu1 }
 0x612   : > { %14534 = vrot.lane.b32.xlu0 %v14126_v27, %s20993_s18  ;;  %v20764_v31 = vpop.eup %20763  ;;  %v13496_v38 = vadd.f32 %v23911_v33, %v13495_v20 }
 0x613   : > { %v20766_v45 = vpop.eup %20765  ;;  %v14128_v30 = vmul.f32 256.0, %v20764_v31 }
 0x614   : > { %20775 = vtanh.f32 %v13496_v38  ;;  %v19520_v18 = vpop.f32.mrb[162].mxu1  ;;  %14536 = vrot.lane.b32.xlu1 %v14127_v55, %s20993_s18  ;;  %v14129_v34 = vmul.f32 256.0, %v20766_v45 }
 0x615   : > { %20777 = vtanh.f32 %v13501_v40  ;;  %v13511_v50 = vadd.f32 %v19520_v18, %v23911_v33  ;;  %v13505_v1 = vpop.f32.mrb[163].mxu1 }
 0x616   : > { %14538 = vrot.lane.b32.xlu0 %v14128_v30, %s20993_s18  ;;  %v20768_v2 = vpop.eup %20767  ;;  %v13506_v54 = vadd.f32 %v23911_v33, %v13505_v1 }
 0x617   : > { %v20770_v44 = vpop.eup %20769  ;;  %v14130_v49 = vmul.f32 256.0, %v20768_v2 }
 0x618   : > { %20779 = vtanh.f32 %v13506_v54  ;;  %v19523_v42 = vpop.f32.mrb[164].mxu1  ;;  %14540 = vrot.lane.b32.xlu1 %v14129_v34, %s20993_s18  ;;  %v14131_v46 = vmul.f32 256.0, %v20770_v44 }
 0x619   : > { %20781 = vtanh.f32 %v13511_v50  ;;  %v13521_v7 = vadd.f32 %v19523_v42, %v23911_v33  ;;  %v13515_v5 = vpop.f32.mrb[165].mxu1 }
 0x61a   : > { %14542 = vrot.lane.b32.xlu0 %v14130_v49, %s20993_s18  ;;  %v20772_v14 = vpop.eup %20771  ;;  %v13516_v53 = vadd.f32 %v23911_v33, %v13515_v5 }
 0x61b   : > { %v20774_v56 = vpop.eup %20773  ;;  %v14132_v21 = vmul.f32 256.0, %v20772_v14 }
 0x61c   : > { %20783 = vtanh.f32 %v13516_v53  ;;  %v19526_v28 = vpop.f32.mrb[166].mxu1  ;;  %14544 = vrot.lane.b32.xlu1 %v14131_v46, %s20993_s18  ;;  %v14133_v57 = vmul.f32 256.0, %v20774_v56 }
 0x61d   : > { %20785 = vtanh.f32 %v13521_v7  ;;  %v13531_v61 = vadd.f32 %v19526_v28, %v23911_v33  ;;  %v13525_v58 = vpop.f32.mrb[167].mxu1 }
 0x61e   : > { %14546 = vrot.lane.b32.xlu0 %v14132_v21, %s20993_s18  ;;  %v20776_v62 = vpop.eup %20775  ;;  %v13526_v43 = vadd.f32 %v23911_v33, %v13525_v58 }
 0x61f   : > { %v20778_v23 = vpop.eup %20777  ;;  %v14134_v59 = vmul.f32 256.0, %v20776_v62 }
 0x620   : > { %20787 = vtanh.f32 %v13526_v43  ;;  %v19529_v3 = vpop.f32.mrb[168].mxu1  ;;  %14548 = vrot.lane.b32.xlu1 %v14133_v57, %s20993_s18  ;;  %v14135_v15 = vmul.f32 256.0, %v20778_v23 }
 0x621   : > { %20789 = vtanh.f32 %v13531_v61  ;;  %v13541_v32 = vadd.f32 %v19529_v3, %v23911_v33  ;;  %v13535_v52 = vpop.f32.mrb[169].mxu1 }
 0x622   : > { %14550 = vrot.lane.b32.xlu0 %v14134_v59, %s20993_s18  ;;  %v20780_v22 = vpop.eup %20779  ;;  %v13536_v8 = vadd.f32 %v23911_v33, %v13535_v52 }
 0x623   : > { %v20782_v63 = vpop.eup %20781  ;;  %v14136_v0 = vmul.f32 256.0, %v20780_v22 }
 0x624   : > { %20791 = vtanh.f32 %v13536_v8  ;;  %v19532_v37 = vpop.f32.mrb[170].mxu1  ;;  %14552 = vrot.lane.b32.xlu1 %v14135_v15, %s20993_s18  ;;  %v14137_v48 = vmul.f32 256.0, %v20782_v63 }
 0x625   : > { %20793 = vtanh.f32 %v13541_v32  ;;  %v13551_v26 = vadd.f32 %v19532_v37, %v23911_v33  ;;  %v13545_v41 = vpop.f32.mrb[171].mxu1 }
 0x626   : > { %14554 = vrot.lane.b32.xlu0 %v14136_v0, %s20993_s18  ;;  %v20784_v9 = vpop.eup %20783  ;;  %v13546_v13 = vadd.f32 %v23911_v33, %v13545_v41 }
 0x627   : > { %v20786_v4 = vpop.eup %20785  ;;  %v14138_v35 = vmul.f32 256.0, %v20784_v9 }
 0x628   : > { %20795 = vtanh.f32 %v13546_v13  ;;  %v19535_v11 = vpop.f32.mrb[172].mxu1  ;;  %14556 = vrot.lane.b32.xlu1 %v14137_v48, %s20993_s18  ;;  %v14139_v47 = vmul.f32 256.0, %v20786_v4 }
 0x629   : > { %20797 = vtanh.f32 %v13551_v26  ;;  %v13561_v39 = vadd.f32 %v19535_v11, %v23911_v33  ;;  %v13555_v29 = vpop.f32.mrb[173].mxu1 }
 0x62a   : > { %14558 = vrot.lane.b32.xlu0 %v14138_v35, %s20993_s18  ;;  %v20788_v17 = vpop.eup %20787  ;;  %v13556_v6 = vadd.f32 %v23911_v33, %v13555_v29 }
 0x62b   : > { %v20790_v10 = vpop.eup %20789  ;;  %v14140_v25 = vmul.f32 256.0, %v20788_v17 }
 0x62c   : > { %20799 = vtanh.f32 %v13556_v6  ;;  %v19538_v19 = vpop.f32.mrb[174].mxu1  ;;  %14560 = vrot.lane.b32.xlu1 %v14139_v47, %s20993_s18  ;;  %v14141_v16 = vmul.f32 256.0, %v20790_v10 }
 0x62d   : > { %20801 = vtanh.f32 %v13561_v39  ;;  %v13571_v36 = vadd.f32 %v19538_v19, %v23911_v33  ;;  %v13565_v51 = vpop.f32.mrb[175].mxu1 }
 0x62e   : > { %14562 = vrot.lane.b32.xlu0 %v14140_v25, %s20993_s18  ;;  %v20792_v12 = vpop.eup %20791  ;;  %v13566_v60 = vadd.f32 %v23911_v33, %v13565_v51 }
 0x62f   : > { %v20794_v27 = vpop.eup %20793  ;;  %v14142_v24 = vmul.f32 256.0, %v20792_v12 }
 0x630   : > { %20803 = vtanh.f32 %v13566_v60  ;;  %v19541_v40 = vpop.f32.mrb[176].mxu1  ;;  %14564 = vrot.lane.b32.xlu1 %v14141_v16, %s20993_s18  ;;  %v14143_v38 = vmul.f32 256.0, %v20794_v27 }
 0x631   : > { %20805 = vtanh.f32 %v13571_v36  ;;  %v13581_v20 = vadd.f32 %v19541_v40, %v23911_v33  ;;  %v13575_v31 = vpop.f32.mrb[177].mxu1 }
 0x632   : > { %14566 = vrot.lane.b32.xlu0 %v14142_v24, %s20993_s18  ;;  %v20796_v55 = vpop.eup %20795  ;;  %v13576_v45 = vadd.f32 %v23911_v33, %v13575_v31 }
 0x633   : > { %v20798_v30 = vpop.eup %20797  ;;  %v14144_v18 = vmul.f32 256.0, %v20796_v55 }
 0x634   : > { %20807 = vtanh.f32 %v13576_v45  ;;  %v19544_v50 = vpop.f32.mrb[178].mxu1  ;;  %14568 = vrot.lane.b32.xlu1 %v14143_v38, %s20993_s18  ;;  %v14145_v54 = vmul.f32 256.0, %v20798_v30 }
 0x635   : > { %20809 = vtanh.f32 %v13581_v20  ;;  %v13591_v1 = vadd.f32 %v19544_v50, %v23911_v33  ;;  %v13585_v2 = vpop.f32.mrb[179].mxu1 }
 0x636   : > { %14570 = vrot.lane.b32.xlu0 %v14144_v18, %s20993_s18  ;;  %v20800_v34 = vpop.eup %20799  ;;  %v13586_v44 = vadd.f32 %v23911_v33, %v13585_v2 }
 0x637   : > { %v20802_v49 = vpop.eup %20801  ;;  %v14146_v42 = vmul.f32 256.0, %v20800_v34 }
 0x638   : > { %20811 = vtanh.f32 %v13586_v44  ;;  %v19547_v7 = vpop.f32.mrb[180].mxu1  ;;  %14572 = vrot.lane.b32.xlu1 %v14145_v54, %s20993_s18  ;;  %v14147_v53 = vmul.f32 256.0, %v20802_v49 }
 0x639   : > { %20813 = vtanh.f32 %v13591_v1  ;;  %v13601_v5 = vadd.f32 %v19547_v7, %v23911_v33  ;;  %v13595_v14 = vpop.f32.mrb[181].mxu1 }
 0x63a   : > { %14574 = vrot.lane.b32.xlu0 %v14146_v42, %s20993_s18  ;;  %v20804_v46 = vpop.eup %20803  ;;  %v13596_v56 = vadd.f32 %v23911_v33, %v13595_v14 }
 0x63b   : > { %v20806_v21 = vpop.eup %20805  ;;  %v14148_v28 = vmul.f32 256.0, %v20804_v46 }
 0x63c   : > { %20815 = vtanh.f32 %v13596_v56  ;;  %v19550_v61 = vpop.f32.mrb[182].mxu1  ;;  %14576 = vrot.lane.b32.xlu1 %v14147_v53, %s20993_s18  ;;  %v14149_v43 = vmul.f32 256.0, %v20806_v21  ;;  %v24154_v56 = vld [vmem:[%s24548_s5] ss:$0 sm:$0xff] }
 0x63d   : > { %20817 = vtanh.f32 %v13601_v5  ;;  %v13611_v58 = vadd.f32 %v19550_v61, %v23911_v33  ;;  %v13605_v62 = vpop.f32.mrb[183].mxu1 }
 0x63e   : > { %14578 = vrot.lane.b32.xlu0 %v14148_v28, %s20993_s18  ;;  %v20808_v57 = vpop.eup %20807  ;;  %v13606_v23 = vadd.f32 %v23911_v33, %v13605_v62 }
 0x63f   : > { %v20810_v59 = vpop.eup %20809  ;;  %v14150_v3 = vmul.f32 256.0, %v20808_v57 }
 0x640   : > { %20819 = vtanh.f32 %v13606_v23  ;;  %v19553_v32 = vpop.f32.mrb[184].mxu1  ;;  %14580 = vrot.lane.b32.xlu1 %v14149_v43, %s20993_s18  ;;  %v14151_v8 = vmul.f32 256.0, %v20810_v59 }
 0x641   : > { %20821 = vtanh.f32 %v13611_v58  ;;  %v13621_v52 = vadd.f32 %v19553_v32, %v23911_v33  ;;  %v13615_v22 = vpop.f32.mrb[185].mxu1 }
 0x642   : > { %14582 = vrot.lane.b32.xlu0 %v14150_v3, %s20993_s18  ;;  %v20812_v15 = vpop.eup %20811  ;;  %v13616_v63 = vadd.f32 %v23911_v33, %v13615_v22 }
 0x643   : > { %v20814_v0 = vpop.eup %20813  ;;  %v14152_v37 = vmul.f32 256.0, %v20812_v15 }
 0x644   : > { %20823 = vtanh.f32 %v13616_v63  ;;  %v19556_v26 = vpop.f32.mrb[186].mxu1  ;;  %14584 = vrot.lane.b32.xlu1 %v14151_v8, %s20993_s18  ;;  %v14153_v13 = vmul.f32 256.0, %v20814_v0 }
 0x645   : > { %20825 = vtanh.f32 %v13621_v52  ;;  %v13631_v41 = vadd.f32 %v19556_v26, %v23911_v33  ;;  %v13625_v9 = vpop.f32.mrb[187].mxu1 }
 0x646   : > { %14586 = vrot.lane.b32.xlu0 %v14152_v37, %s20993_s18  ;;  %v20816_v48 = vpop.eup %20815  ;;  %v13626_v4 = vadd.f32 %v23911_v33, %v13625_v9 }
 0x647   : > { %v20818_v35 = vpop.eup %20817  ;;  %v14154_v11 = vmul.f32 256.0, %v20816_v48 }
 0x648   : > { %20827 = vtanh.f32 %v13626_v4  ;;  %v19559_v39 = vpop.f32.mrb[188].mxu1  ;;  %14588 = vrot.lane.b32.xlu1 %v14153_v13, %s20993_s18  ;;  %v14155_v6 = vmul.f32 256.0, %v20818_v35 }
 0x649   : > { %20829 = vtanh.f32 %v13631_v41  ;;  %v13641_v29 = vadd.f32 %v19559_v39, %v23911_v33  ;;  %v13635_v17 = vpop.f32.mrb[189].mxu1 }
 0x64a   : > { %14590 = vrot.lane.b32.xlu0 %v14154_v11, %s20993_s18  ;;  %v20820_v47 = vpop.eup %20819  ;;  %v13636_v10 = vadd.f32 %v23911_v33, %v13635_v17 }
 0x64b   : > { %v20822_v25 = vpop.eup %20821  ;;  %v14156_v19 = vmul.f32 256.0, %v20820_v47 }
 0x64c   : > { %20831 = vtanh.f32 %v13636_v10  ;;  %v19562_v36 = vpop.f32.mrb[190].mxu1  ;;  %14592 = vrot.lane.b32.xlu1 %v14155_v6, %s20993_s18  ;;  %v14157_v60 = vmul.f32 256.0, %v20822_v25 }
 0x64d   : > { %20833 = vtanh.f32 %v13641_v29  ;;  %v13651_v51 = vadd.f32 %v19562_v36, %v23911_v33  ;;  %v13645_v12 = vpop.f32.mrb[191].mxu1 }
 0x64e   : > { %14594 = vrot.lane.b32.xlu0 %v14156_v19, %s20993_s18  ;;  %v20824_v16 = vpop.eup %20823  ;;  %v13646_v27 = vadd.f32 %v23911_v33, %v13645_v12 }
 0x64f   : > { %v20826_v24 = vpop.eup %20825  ;;  %v14158_v40 = vmul.f32 256.0, %v20824_v16 }
 0x650   : > { %20835 = vtanh.f32 %v13646_v27  ;;  %v19565_v20 = vpop.f32.mrb[192].mxu1  ;;  %14596 = vrot.lane.b32.xlu1 %v14157_v60, %s20993_s18  ;;  %v14159_v45 = vmul.f32 256.0, %v20826_v24 }
 0x651   : > { %20837 = vtanh.f32 %v13651_v51  ;;  %v13661_v31 = vadd.f32 %v19565_v20, %v23911_v33  ;;  %v13655_v55 = vpop.f32.mrb[193].mxu1 }
 0x652   : > { %14598 = vrot.lane.b32.xlu0 %v14158_v40, %s20993_s18  ;;  %v20828_v38 = vpop.eup %20827  ;;  %v13656_v30 = vadd.f32 %v23911_v33, %v13655_v55  ;;  %v14489_v18 = vpop.permute.xlu0 %14488 }
 0x653   : > { %v20830_v50 = vpop.eup %20829  ;;  %v14160_v1 = vmul.f32 256.0, %v20828_v38  ;;  %14872 = vst.msk [vmem:[%s23349_s14 + $0x8] sm:$0xff] %vm14870_vm4, %v14489_v18 }
 0x654   : > { %20839 = vtanh.f32 %v13656_v30  ;;  %v19568_v2 = vpop.f32.mrb[194].mxu1  ;;  %14600 = vrot.lane.b32.xlu1 %v14159_v45, %s20993_s18  ;;  %v14161_v49 = vmul.f32 256.0, %v20830_v50 }
 0x655   : > { %20841 = vtanh.f32 %v13661_v31  ;;  %v13671_v34 = vadd.f32 %v19568_v2, %v23911_v33  ;;  %v13665_v54 = vpop.f32.mrb[195].mxu1 }
 0x656   : > { %14602 = vrot.lane.b32.xlu0 %v14160_v1, %s20993_s18  ;;  %v20832_v44 = vpop.eup %20831  ;;  %v13666_v42 = vadd.f32 %v23911_v33, %v13665_v54  ;;  %v14493_v7 = vpop.permute.xlu1 %14492 }
 0x657   : > { %v20834_v5 = vpop.eup %20833  ;;  %v14162_v14 = vmul.f32 256.0, %v20832_v44  ;;  %14874 = vst.msk [vmem:[%s23349_s14 + $0x18] sm:$0xff] %vm14870_vm4, %v14493_v7  ;;  %v14487_v46 = vpop.permute.xlu0 %14486 }
 0x658   : > { %20843 = vtanh.f32 %v13666_v42  ;;  %14871 = vst.msk [vmem:[%s23349_s14] sm:$0xff] %vm14870_vm4, %v14487_v46  ;;  %v19571_v53 = vpop.f32.mrb[196].mxu1  ;;  %14604 = vrot.lane.b32.xlu1 %v14161_v49, %s20993_s18  ;;  %v14163_v61 = vmul.f32 256.0, %v20834_v5 }
 0x659   : > { %20845 = vtanh.f32 %v13671_v34  ;;  %v13681_v33 = vadd.f32 %v24154_v56, %v19571_v53  ;;  %v13675_v21 = vpop.f32.mrb[197].mxu1 }
 0x65a   : > { %14606 = vrot.lane.b32.xlu0 %v14162_v14, %s20993_s18  ;;  %v20836_v28 = vpop.eup %20835  ;;  %v13676_v58 = vadd.f32 %v24154_v56, %v13675_v21  ;;  %v14491_v62 = vpop.permute.xlu1 %14490 }
 0x65b   : > { %v20838_v57 = vpop.eup %20837  ;;  %v14164_v43 = vmul.f32 256.0, %v20836_v28  ;;  %14873 = vst.msk [vmem:[%s23349_s14 + $0x10] sm:$0xff] %vm14870_vm4, %v14491_v62  ;;  %v14495_v23 = vpop.permute.xlu0 %14494 }
 0x65c   : > { %20847 = vtanh.f32 %v13676_v58  ;;  %14875 = vst.msk [vmem:[%s23349_s14 + $0x20] sm:$0xff] %vm14870_vm4, %v14495_v23  ;;  %v19574_v59 = vpop.f32.mrb[198].mxu1  ;;  %14608 = vrot.lane.b32.xlu1 %v14163_v61, %s20993_s18  ;;  %v14165_v22 = vmul.f32 256.0, %v20838_v57 }
 0x65d   : > { %20849 = vtanh.f32 %v13681_v33  ;;  %v13691_v3 = vadd.f32 %v24154_v56, %v19574_v59  ;;  %v13685_v32 = vpop.f32.mrb[199].mxu1 }
 0x65e   : > { %14610 = vrot.lane.b32.xlu0 %v14164_v43, %s20993_s18  ;;  %v20840_v52 = vpop.eup %20839  ;;  %v13686_v15 = vadd.f32 %v24154_v56, %v13685_v32  ;;  %v14497_v8 = vpop.permute.xlu1 %14496 }
 0x65f   : > { %v20842_v63 = vpop.eup %20841  ;;  %v14166_v0 = vmul.f32 256.0, %v20840_v52  ;;  %14876 = vst.msk [vmem:[%s23349_s14 + $0x28] sm:$0xff] %vm14870_vm4, %v14497_v8 }
 0x660   : > { %v14499_v37 = vpop.permute.xlu0 %14498  ;;  %20851 = vtanh.f32 %v13686_v15  ;;  %v19577_v26 = vpop.f32.mrb[200].mxu1  ;;  %14612 = vrot.lane.b32.xlu1 %v14165_v22, %s20993_s18  ;;  %v14167_v13 = vmul.f32 256.0, %v20842_v63 }
 0x661   : > { %14877 = vst.msk [vmem:[%s23349_s14 + $0x30] sm:$0xff] %vm14870_vm4, %v14499_v37  ;;  %20853 = vtanh.f32 %v13691_v3  ;;  %v13701_v41 = vadd.f32 %v24154_v56, %v19577_v26  ;;  %v13695_v9 = vpop.f32.mrb[201].mxu1 }
 0x662   : > { %14614 = vrot.lane.b32.xlu0 %v14166_v0, %s20993_s18  ;;  %v20844_v48 = vpop.eup %20843  ;;  %v13696_v4 = vadd.f32 %v24154_v56, %v13695_v9  ;;  %v14501_v35 = vpop.permute.xlu1 %14500 }
 0x663   : > { %v20846_v11 = vpop.eup %20845  ;;  %v14168_v39 = vmul.f32 256.0, %v20844_v48  ;;  %14878 = vst.msk [vmem:[%s23349_s14 + $0x38] sm:$0xff] %vm14870_vm4, %v14501_v35 }
 0x664   : > { %v14503_v29 = vpop.permute.xlu0 %14502  ;;  %20855 = vtanh.f32 %v13696_v4  ;;  %v19580_v17 = vpop.f32.mrb[202].mxu1  ;;  %14616 = vrot.lane.b32.xlu1 %v14167_v13, %s20993_s18  ;;  %v14169_v25 = vmul.f32 256.0, %v20846_v11 }
 0x665   : > { %14879 = vst.msk [vmem:[%s23349_s14 + $0x40] sm:$0xff] %vm14870_vm4, %v14503_v29  ;;  %20857 = vtanh.f32 %v13701_v41  ;;  %v13711_v47 = vadd.f32 %v24154_v56, %v19580_v17  ;;  %v13705_v6 = vpop.f32.mrb[203].mxu1 }
 0x666   : > { %14618 = vrot.lane.b32.xlu0 %v14168_v39, %s20993_s18  ;;  %v20848_v10 = vpop.eup %20847  ;;  %v13706_v19 = vadd.f32 %v24154_v56, %v13705_v6  ;;  %v14505_v36 = vpop.permute.xlu1 %14504 }
 0x667   : > { %v20850_v51 = vpop.eup %20849  ;;  %v14170_v12 = vmul.f32 256.0, %v20848_v10  ;;  %14880 = vst.msk [vmem:[%s23349_s14 + $0x48] sm:$0xff] %vm14870_vm4, %v14505_v36 }
 0x668   : > { %v14507_v16 = vpop.permute.xlu0 %14506  ;;  %20859 = vtanh.f32 %v13706_v19  ;;  %v19583_v60 = vpop.f32.mrb[204].mxu1  ;;  %14620 = vrot.lane.b32.xlu1 %v14169_v25, %s20993_s18  ;;  %v14171_v20 = vmul.f32 256.0, %v20850_v51 }
 0x669   : > { %14881 = vst.msk [vmem:[%s23349_s14 + $0x50] sm:$0xff] %vm14870_vm4, %v14507_v16  ;;  %20861 = vtanh.f32 %v13711_v47  ;;  %v13721_v27 = vadd.f32 %v24154_v56, %v19583_v60  ;;  %v13715_v24 = vpop.f32.mrb[205].mxu1 }
 0x66a   : > { %14622 = vrot.lane.b32.xlu0 %v14170_v12, %s20993_s18  ;;  %v20852_v40 = vpop.eup %20851  ;;  %v13716_v31 = vadd.f32 %v24154_v56, %v13715_v24  ;;  %v14509_v55 = vpop.permute.xlu1 %14508 }
 0x66b   : > { %v20854_v38 = vpop.eup %20853  ;;  %v14172_v45 = vmul.f32 256.0, %v20852_v40  ;;  %14882 = vst.msk [vmem:[%s23349_s14 + $0x58] sm:$0xff] %vm14870_vm4, %v14509_v55 }
 0x66c   : > { %v14511_v30 = vpop.permute.xlu0 %14510  ;;  %20863 = vtanh.f32 %v13716_v31  ;;  %v19586_v18 = vpop.f32.mrb[206].mxu1  ;;  %14624 = vrot.lane.b32.xlu1 %v14171_v20, %s20993_s18  ;;  %v14173_v34 = vmul.f32 256.0, %v20854_v38 }
 0x66d   : > { %14883 = vst.msk [vmem:[%s23349_s14 + $0x60] sm:$0xff] %vm14870_vm4, %v14511_v30  ;;  %20865 = vtanh.f32 %v13721_v27  ;;  %v13731_v50 = vadd.f32 %v24154_v56, %v19586_v18  ;;  %v13725_v1 = vpop.f32.mrb[207].mxu1 }
 0x66e   : > { %14626 = vrot.lane.b32.xlu0 %v14172_v45, %s20993_s18  ;;  %v20856_v2 = vpop.eup %20855  ;;  %v13726_v54 = vadd.f32 %v24154_v56, %v13725_v1  ;;  %v14513_v44 = vpop.permute.xlu1 %14512 }
 0x66f   : > { %v20858_v49 = vpop.eup %20857  ;;  %v14174_v42 = vmul.f32 256.0, %v20856_v2  ;;  %14884 = vst.msk [vmem:[%s23349_s14 + $0x68] sm:$0xff] %vm14870_vm4, %v14513_v44 }
 0x670   : > { %v14515_v7 = vpop.permute.xlu0 %14514  ;;  %20867 = vtanh.f32 %v13726_v54  ;;  %v19589_v5 = vpop.f32.mrb[208].mxu1  ;;  %14628 = vrot.lane.b32.xlu1 %v14173_v34, %s20993_s18  ;;  %v14175_v33 = vmul.f32 256.0, %v20858_v49 }
 0x671   : > { %14885 = vst.msk [vmem:[%s23349_s14 + $0x70] sm:$0xff] %vm14870_vm4, %v14515_v7  ;;  %20869 = vtanh.f32 %v13731_v50  ;;  %v13741_v14 = vadd.f32 %v24154_v56, %v19589_v5  ;;  %v13735_v46 = vpop.f32.mrb[209].mxu1 }
 0x672   : > { %14630 = vrot.lane.b32.xlu0 %v14174_v42, %s20993_s18  ;;  %v20860_v53 = vpop.eup %20859  ;;  %v13736_v21 = vadd.f32 %v24154_v56, %v13735_v46  ;;  %v14517_v28 = vpop.permute.xlu1 %14516 }
 0x673   : > { %v20862_v61 = vpop.eup %20861  ;;  %v14176_v58 = vmul.f32 256.0, %v20860_v53  ;;  %14886 = vst.msk [vmem:[%s23349_s14 + $0x78] sm:$0xff] %vm14870_vm4, %v14517_v28 }
 0x674   : > { %v14519_v62 = vpop.permute.xlu0 %14518  ;;  %20871 = vtanh.f32 %v13736_v21  ;;  %v19592_v57 = vpop.f32.mrb[210].mxu1  ;;  %14632 = vrot.lane.b32.xlu1 %v14175_v33, %s20993_s18  ;;  %v14177_v3 = vmul.f32 256.0, %v20862_v61 }
 0x675   : > { %14887 = vst.msk [vmem:[%s23349_s14 + $0x80] sm:$0xff] %vm14870_vm4, %v14519_v62  ;;  %20873 = vtanh.f32 %v13741_v14  ;;  %v13751_v43 = vadd.f32 %v24154_v56, %v19592_v57  ;;  %v13745_v23 = vpop.f32.mrb[211].mxu1 }
 0x676   : > { %14634 = vrot.lane.b32.xlu0 %v14176_v58, %s20993_s18  ;;  %v20864_v59 = vpop.eup %20863  ;;  %v13746_v32 = vadd.f32 %v24154_v56, %v13745_v23  ;;  %v14521_v52 = vpop.permute.xlu1 %14520 }
 0x677   : > { %v20866_v22 = vpop.eup %20865  ;;  %v14178_v15 = vmul.f32 256.0, %v20864_v59  ;;  %14888 = vst.msk [vmem:[%s23349_s14 + $0x88] sm:$0xff] %vm14870_vm4, %v14521_v52 }
 0x678   : > { %v14523_v8 = vpop.permute.xlu0 %14522  ;;  %20875 = vtanh.f32 %v13746_v32  ;;  %v19595_v63 = vpop.f32.mrb[212].mxu1  ;;  %14636 = vrot.lane.b32.xlu1 %v14177_v3, %s20993_s18  ;;  %v14179_v41 = vmul.f32 256.0, %v20866_v22 }
 0x679   : > { %14889 = vst.msk [vmem:[%s23349_s14 + $0x90] sm:$0xff] %vm14870_vm4, %v14523_v8  ;;  %20877 = vtanh.f32 %v13751_v43  ;;  %v13761_v0 = vadd.f32 %v24154_v56, %v19595_v63  ;;  %v13755_v37 = vpop.f32.mrb[213].mxu1 }
 0x67a   : > { %14638 = vrot.lane.b32.xlu0 %v14178_v15, %s20993_s18  ;;  %v20868_v26 = vpop.eup %20867  ;;  %v13756_v9 = vadd.f32 %v24154_v56, %v13755_v37  ;;  %v14525_v48 = vpop.permute.xlu1 %14524 }
 0x67b   : > { %v20870_v13 = vpop.eup %20869  ;;  %v14180_v4 = vmul.f32 256.0, %v20868_v26  ;;  %14890 = vst.msk [vmem:[%s23349_s14 + $0x98] sm:$0xff] %vm14870_vm4, %v14525_v48 }
 0x67c   : > { %v14527_v35 = vpop.permute.xlu0 %14526  ;;  %20879 = vtanh.f32 %v13756_v9  ;;  %v19598_v11 = vpop.f32.mrb[214].mxu1  ;;  %14640 = vrot.lane.b32.xlu1 %v14179_v41, %s20993_s18  ;;  %v14181_v47 = vmul.f32 256.0, %v20870_v13 }
 0x67d   : > { %14891 = vst.msk [vmem:[%s23349_s14 + $0xa0] sm:$0xff] %vm14870_vm4, %v14527_v35  ;;  %20881 = vtanh.f32 %v13761_v0  ;;  %v13771_v39 = vadd.f32 %v24154_v56, %v19598_v11  ;;  %v13765_v29 = vpop.f32.mrb[215].mxu1 }
 0x67e   : > { %14642 = vrot.lane.b32.xlu0 %v14180_v4, %s20993_s18  ;;  %v20872_v17 = vpop.eup %20871  ;;  %v13766_v6 = vadd.f32 %v24154_v56, %v13765_v29  ;;  %v14529_v10 = vpop.permute.xlu1 %14528 }
 0x67f   : > { %v20874_v25 = vpop.eup %20873  ;;  %v14182_v19 = vmul.f32 256.0, %v20872_v17  ;;  %14892 = vst.msk [vmem:[%s23349_s14 + $0xa8] sm:$0xff] %vm14870_vm4, %v14529_v10 }
 0x680   : > { %v14531_v36 = vpop.permute.xlu0 %14530  ;;  %20883 = vtanh.f32 %v13766_v6  ;;  %v19601_v51 = vpop.f32.mrb[216].mxu1  ;;  %14644 = vrot.lane.b32.xlu1 %v14181_v47, %s20993_s18  ;;  %v14183_v27 = vmul.f32 256.0, %v20874_v25 }
 0x681   : > { %14893 = vst.msk [vmem:[%s23349_s14 + $0xb0] sm:$0xff] %vm14870_vm4, %v14531_v36  ;;  %20885 = vtanh.f32 %v13771_v39  ;;  %v13781_v12 = vadd.f32 %v24154_v56, %v19601_v51  ;;  %v13775_v16 = vpop.f32.mrb[217].mxu1 }
 0x682   : > { %14646 = vrot.lane.b32.xlu0 %v14182_v19, %s20993_s18  ;;  %v20876_v60 = vpop.eup %20875  ;;  %v13776_v24 = vadd.f32 %v24154_v56, %v13775_v16  ;;  %v14533_v40 = vpop.permute.xlu1 %14532 }
 0x683   : > { %v20878_v20 = vpop.eup %20877  ;;  %v14184_v31 = vmul.f32 256.0, %v20876_v60  ;;  %14894 = vst.msk [vmem:[%s23349_s14 + $0xb8] sm:$0xff] %vm14870_vm4, %v14533_v40 }
 0x684   : > { %v14535_v55 = vpop.permute.xlu0 %14534  ;;  %20887 = vtanh.f32 %v13776_v24  ;;  %v19604_v38 = vpop.f32.mrb[218].mxu1  ;;  %14648 = vrot.lane.b32.xlu1 %v14183_v27, %s20993_s18  ;;  %v14185_v50 = vmul.f32 256.0, %v20878_v20 }
 0x685   : > { %14895 = vst.msk [vmem:[%s23349_s14 + $0xc0] sm:$0xff] %vm14870_vm4, %v14535_v55  ;;  %20889 = vtanh.f32 %v13781_v12  ;;  %v13791_v45 = vadd.f32 %v24154_v56, %v19604_v38  ;;  %v13785_v30 = vpop.f32.mrb[219].mxu1 }
 0x686   : > { %14650 = vrot.lane.b32.xlu0 %v14184_v31, %s20993_s18  ;;  %v20880_v18 = vpop.eup %20879  ;;  %v13786_v1 = vadd.f32 %v24154_v56, %v13785_v30  ;;  %v14537_v2 = vpop.permute.xlu1 %14536 }
 0x687   : > { %v20882_v34 = vpop.eup %20881  ;;  %v14186_v54 = vmul.f32 256.0, %v20880_v18  ;;  %14896 = vst.msk [vmem:[%s23349_s14 + $0xc8] sm:$0xff] %vm14870_vm4, %v14537_v2 }
 0x688   : > { %v14539_v44 = vpop.permute.xlu0 %14538  ;;  %20891 = vtanh.f32 %v13786_v1  ;;  %v19607_v49 = vpop.f32.mrb[220].mxu1  ;;  %14652 = vrot.lane.b32.xlu1 %v14185_v50, %s20993_s18  ;;  %v14187_v14 = vmul.f32 256.0, %v20882_v34 }
 0x689   : > { %14897 = vst.msk [vmem:[%s23349_s14 + $0xd0] sm:$0xff] %vm14870_vm4, %v14539_v44  ;;  %20893 = vtanh.f32 %v13791_v45  ;;  %v13801_v42 = vadd.f32 %v24154_v56, %v19607_v49  ;;  %v13795_v7 = vpop.f32.mrb[221].mxu1 }
 0x68a   : > { %14654 = vrot.lane.b32.xlu0 %v14186_v54, %s20993_s18  ;;  %v20884_v5 = vpop.eup %20883  ;;  %v13796_v46 = vadd.f32 %v24154_v56, %v13795_v7  ;;  %v14541_v53 = vpop.permute.xlu1 %14540 }
 0x68b   : > { %v20886_v33 = vpop.eup %20885  ;;  %v14188_v21 = vmul.f32 256.0, %v20884_v5  ;;  %14898 = vst.msk [vmem:[%s23349_s14 + $0xd8] sm:$0xff] %vm14870_vm4, %v14541_v53 }
 0x68c   : > { %v14543_v28 = vpop.permute.xlu0 %14542  ;;  %20895 = vtanh.f32 %v13796_v46  ;;  %v19610_v61 = vpop.f32.mrb[222].mxu1  ;;  %14656 = vrot.lane.b32.xlu1 %v14187_v14, %s20993_s18  ;;  %v14189_v43 = vmul.f32 256.0, %v20886_v33 }
 0x68d   : > { %14899 = vst.msk [vmem:[%s23349_s14 + $0xe0] sm:$0xff] %vm14870_vm4, %v14543_v28  ;;  %20897 = vtanh.f32 %v13801_v42  ;;  %v13811_v58 = vadd.f32 %v24154_v56, %v19610_v61  ;;  %v13805_v62 = vpop.f32.mrb[223].mxu1 }
 0x68e   : > { %14658 = vrot.lane.b32.xlu0 %v14188_v21, %s20993_s18  ;;  %v20888_v57 = vpop.eup %20887  ;;  %v13806_v23 = vadd.f32 %v24154_v56, %v13805_v62  ;;  %v14545_v59 = vpop.permute.xlu1 %14544 }
 0x68f   : > { %v20890_v3 = vpop.eup %20889  ;;  %v14190_v32 = vmul.f32 256.0, %v20888_v57  ;;  %14900 = vst.msk [vmem:[%s23349_s14 + $0xe8] sm:$0xff] %vm14870_vm4, %v14545_v59 }
 0x690   : > { %v14547_v52 = vpop.permute.xlu0 %14546  ;;  %20899 = vtanh.f32 %v13806_v23  ;;  %v19613_v22 = vpop.f32.mrb[224].mxu1  ;;  %14660 = vrot.lane.b32.xlu1 %v14189_v43, %s20993_s18  ;;  %v14191_v0 = vmul.f32 256.0, %v20890_v3 }
 0x691   : > { %14901 = vst.msk [vmem:[%s23349_s14 + $0xf0] sm:$0xff] %vm14870_vm4, %v14547_v52  ;;  %20901 = vtanh.f32 %v13811_v58  ;;  %v13821_v15 = vadd.f32 %v24154_v56, %v19613_v22  ;;  %v13815_v8 = vpop.f32.mrb[225].mxu1 }
 0x692   : > { %14662 = vrot.lane.b32.xlu0 %v14190_v32, %s20993_s18  ;;  %v20892_v63 = vpop.eup %20891  ;;  %v13816_v37 = vadd.f32 %v24154_v56, %v13815_v8  ;;  %v14549_v26 = vpop.permute.xlu1 %14548 }
 0x693   : > { %v20894_v41 = vpop.eup %20893  ;;  %v14192_v9 = vmul.f32 256.0, %v20892_v63  ;;  %14902 = vst.msk [vmem:[%s23349_s14 + $0xf8] sm:$0xff] %vm14870_vm4, %v14549_v26 }
 0x694   : > { %v14551_v48 = vpop.permute.xlu0 %14550  ;;  %20903 = vtanh.f32 %v13816_v37  ;;  %v19616_v13 = vpop.f32.mrb[226].mxu1  ;;  %14664 = vrot.lane.b32.xlu1 %v14191_v0, %s20993_s18  ;;  %v14193_v39 = vmul.f32 256.0, %v20894_v41 }
 0x695   : > { %14903 = vst.msk [vmem:[%s23349_s14 + $0x100] sm:$0xff] %vm14870_vm4, %v14551_v48  ;;  %20905 = vtanh.f32 %v13821_v15  ;;  %v13831_v4 = vadd.f32 %v24154_v56, %v19616_v13  ;;  %v13825_v35 = vpop.f32.mrb[227].mxu1 }
 0x696   : > { %14666 = vrot.lane.b32.xlu0 %v14192_v9, %s20993_s18  ;;  %v20896_v11 = vpop.eup %20895  ;;  %v13826_v29 = vadd.f32 %v24154_v56, %v13825_v35  ;;  %v14553_v17 = vpop.permute.xlu1 %14552 }
 0x697   : > { %v20898_v47 = vpop.eup %20897  ;;  %v14194_v6 = vmul.f32 256.0, %v20896_v11  ;;  %14904 = vst.msk [vmem:[%s23349_s14 + $0x108] sm:$0xff] %vm14870_vm4, %v14553_v17 }
 0x698   : > { %v14555_v10 = vpop.permute.xlu0 %14554  ;;  %20907 = vtanh.f32 %v13826_v29  ;;  %v19619_v25 = vpop.f32.mrb[228].mxu1  ;;  %14668 = vrot.lane.b32.xlu1 %v14193_v39, %s20993_s18  ;;  %v14195_v12 = vmul.f32 256.0, %v20898_v47 }
 0x699   : > { %14905 = vst.msk [vmem:[%s23349_s14 + $0x110] sm:$0xff] %vm14870_vm4, %v14555_v10  ;;  %20909 = vtanh.f32 %v13831_v4  ;;  %v13841_v19 = vadd.f32 %v24154_v56, %v19619_v25  ;;  %v13835_v36 = vpop.f32.mrb[229].mxu1 }
 0x69a   : > { %14670 = vrot.lane.b32.xlu0 %v14194_v6, %s20993_s18  ;;  %v20900_v51 = vpop.eup %20899  ;;  %v13836_v16 = vadd.f32 %v24154_v56, %v13835_v36  ;;  %v14557_v60 = vpop.permute.xlu1 %14556 }
 0x69b   : > { %v20902_v27 = vpop.eup %20901  ;;  %v14196_v24 = vmul.f32 256.0, %v20900_v51  ;;  %14906 = vst.msk [vmem:[%s23349_s14 + $0x118] sm:$0xff] %vm14870_vm4, %v14557_v60 }
 0x69c   : > { %v14559_v40 = vpop.permute.xlu0 %14558  ;;  %20911 = vtanh.f32 %v13836_v16  ;;  %v19622_v20 = vpop.f32.mrb[230].mxu1  ;;  %14672 = vrot.lane.b32.xlu1 %v14195_v12, %s20993_s18  ;;  %v14197_v45 = vmul.f32 256.0, %v20902_v27 }
 0x69d   : > { %14907 = vst.msk [vmem:[%s23349_s14 + $0x120] sm:$0xff] %vm14870_vm4, %v14559_v40  ;;  %20913 = vtanh.f32 %v13841_v19  ;;  %v13851_v31 = vadd.f32 %v24154_v56, %v19622_v20  ;;  %v13845_v55 = vpop.f32.mrb[231].mxu1 }
 0x69e   : > { %14674 = vrot.lane.b32.xlu0 %v14196_v24, %s20993_s18  ;;  %v20904_v38 = vpop.eup %20903  ;;  %v13846_v30 = vadd.f32 %v24154_v56, %v13845_v55  ;;  %v14561_v18 = vpop.permute.xlu1 %14560 }
 0x69f   : > { %v20906_v50 = vpop.eup %20905  ;;  %v14198_v1 = vmul.f32 256.0, %v20904_v38  ;;  %14908 = vst.msk [vmem:[%s23349_s14 + $0x128] sm:$0xff] %vm14870_vm4, %v14561_v18 }
 0x6a0   : > { %v14563_v2 = vpop.permute.xlu0 %14562  ;;  %20915 = vtanh.f32 %v13846_v30  ;;  %v19625_v34 = vpop.f32.mrb[232].mxu1  ;;  %14676 = vrot.lane.b32.xlu1 %v14197_v45, %s20993_s18  ;;  %v14199_v42 = vmul.f32 256.0, %v20906_v50 }
 0x6a1   : > { %14909 = vst.msk [vmem:[%s23349_s14 + $0x130] sm:$0xff] %vm14870_vm4, %v14563_v2  ;;  %20917 = vtanh.f32 %v13851_v31  ;;  %v13861_v54 = vadd.f32 %v24154_v56, %v19625_v34  ;;  %v13855_v44 = vpop.f32.mrb[233].mxu1 }
 0x6a2   : > { %14678 = vrot.lane.b32.xlu0 %v14198_v1, %s20993_s18  ;;  %v20908_v49 = vpop.eup %20907  ;;  %v13856_v7 = vadd.f32 %v24154_v56, %v13855_v44  ;;  %v14565_v5 = vpop.permute.xlu1 %14564 }
 0x6a3   : > { %v20910_v14 = vpop.eup %20909  ;;  %v14200_v46 = vmul.f32 256.0, %v20908_v49  ;;  %14910 = vst.msk [vmem:[%s23349_s14 + $0x138] sm:$0xff] %vm14870_vm4, %v14565_v5 }
 0x6a4   : > { %v14567_v53 = vpop.permute.xlu0 %14566  ;;  %20919 = vtanh.f32 %v13856_v7  ;;  %v19628_v33 = vpop.f32.mrb[234].mxu1  ;;  %14680 = vrot.lane.b32.xlu1 %v14199_v42, %s20993_s18  ;;  %v14201_v58 = vmul.f32 256.0, %v20910_v14 }
 0x6a5   : > { %14911 = vst.msk [vmem:[%s23349_s14 + $0x140] sm:$0xff] %vm14870_vm4, %v14567_v53  ;;  %20921 = vtanh.f32 %v13861_v54  ;;  %v13871_v21 = vadd.f32 %v24154_v56, %v19628_v33  ;;  %v13865_v28 = vpop.f32.mrb[235].mxu1 }
 0x6a6   : > { %14682 = vrot.lane.b32.xlu0 %v14200_v46, %s20993_s18  ;;  %v20912_v61 = vpop.eup %20911  ;;  %v13866_v62 = vadd.f32 %v24154_v56, %v13865_v28  ;;  %v14569_v57 = vpop.permute.xlu1 %14568 }
 0x6a7   : > { %v20914_v43 = vpop.eup %20913  ;;  %v14202_v23 = vmul.f32 256.0, %v20912_v61  ;;  %14912 = vst.msk [vmem:[%s23349_s14 + $0x148] sm:$0xff] %vm14870_vm4, %v14569_v57 }
 0x6a8   : > { %v14571_v59 = vpop.permute.xlu0 %14570  ;;  %20923 = vtanh.f32 %v13866_v62  ;;  %v19631_v3 = vpop.f32.mrb[236].mxu1  ;;  %14684 = vrot.lane.b32.xlu1 %v14201_v58, %s20993_s18  ;;  %v14203_v15 = vmul.f32 256.0, %v20914_v43 }
 0x6a9   : > { %14913 = vst.msk [vmem:[%s23349_s14 + $0x150] sm:$0xff] %vm14870_vm4, %v14571_v59  ;;  %20925 = vtanh.f32 %v13871_v21  ;;  %v13881_v32 = vadd.f32 %v24154_v56, %v19631_v3  ;;  %v13875_v52 = vpop.f32.mrb[237].mxu1 }
 0x6aa   : > { %14686 = vrot.lane.b32.xlu0 %v14202_v23, %s20993_s18  ;;  %v20916_v22 = vpop.eup %20915  ;;  %v13876_v8 = vadd.f32 %v24154_v56, %v13875_v52  ;;  %v14573_v63 = vpop.permute.xlu1 %14572 }
 0x6ab   : > { %v20918_v0 = vpop.eup %20917  ;;  %v14204_v37 = vmul.f32 256.0, %v20916_v22  ;;  %14914 = vst.msk [vmem:[%s23349_s14 + $0x158] sm:$0xff] %vm14870_vm4, %v14573_v63 }
 0x6ac   : > { %v14575_v26 = vpop.permute.xlu0 %14574  ;;  %20927 = vtanh.f32 %v13876_v8  ;;  %v19634_v41 = vpop.f32.mrb[238].mxu1  ;;  %14688 = vrot.lane.b32.xlu1 %v14203_v15, %s20993_s18  ;;  %v14205_v4 = vmul.f32 256.0, %v20918_v0 }
 0x6ad   : > { %14915 = vst.msk [vmem:[%s23349_s14 + $0x160] sm:$0xff] %vm14870_vm4, %v14575_v26  ;;  %20929 = vtanh.f32 %v13881_v32  ;;  %v13891_v9 = vadd.f32 %v24154_v56, %v19634_v41  ;;  %v13885_v48 = vpop.f32.mrb[239].mxu1 }
 0x6ae   : > { %14690 = vrot.lane.b32.xlu0 %v14204_v37, %s20993_s18  ;;  %v20920_v13 = vpop.eup %20919  ;;  %v13886_v35 = vadd.f32 %v24154_v56, %v13885_v48  ;;  %v14577_v11 = vpop.permute.xlu1 %14576 }
 0x6af   : > { %v20922_v39 = vpop.eup %20921  ;;  %v14206_v29 = vmul.f32 256.0, %v20920_v13  ;;  %14916 = vst.msk [vmem:[%s23349_s14 + $0x168] sm:$0xff] %vm14870_vm4, %v14577_v11 }
 0x6b0   : > { %v14579_v17 = vpop.permute.xlu0 %14578  ;;  %20931 = vtanh.f32 %v13886_v35  ;;  %v19637_v47 = vpop.f32.mrb[240].mxu1  ;;  %14692 = vrot.lane.b32.xlu1 %v14205_v4, %s20993_s18  ;;  %v14207_v19 = vmul.f32 256.0, %v20922_v39 }
 0x6b1   : > { %14917 = vst.msk [vmem:[%s23349_s14 + $0x170] sm:$0xff] %vm14870_vm4, %v14579_v17  ;;  %20933 = vtanh.f32 %v13891_v9  ;;  %v13901_v6 = vadd.f32 %v24154_v56, %v19637_v47  ;;  %v13895_v10 = vpop.f32.mrb[241].mxu1 }
 0x6b2   : > { %14694 = vrot.lane.b32.xlu0 %v14206_v29, %s20993_s18  ;;  %v20924_v25 = vpop.eup %20923  ;;  %v13896_v36 = vadd.f32 %v24154_v56, %v13895_v10  ;;  %v14581_v51 = vpop.permute.xlu1 %14580 }
 0x6b3   : > { %v20926_v12 = vpop.eup %20925  ;;  %v14208_v16 = vmul.f32 256.0, %v20924_v25  ;;  %14918 = vst.msk [vmem:[%s23349_s14 + $0x178] sm:$0xff] %vm14870_vm4, %v14581_v51 }
 0x6b4   : > { %v14583_v60 = vpop.permute.xlu0 %14582  ;;  %20935 = vtanh.f32 %v13896_v36  ;;  %v19640_v27 = vpop.f32.mrb[242].mxu1  ;;  %14696 = vrot.lane.b32.xlu1 %v14207_v19, %s20993_s18  ;;  %v14209_v31 = vmul.f32 256.0, %v20926_v12 }
 0x6b5   : > { %14919 = vst.msk [vmem:[%s23349_s14 + $0x180] sm:$0xff] %vm14870_vm4, %v14583_v60  ;;  %20937 = vtanh.f32 %v13901_v6  ;;  %v13911_v24 = vadd.f32 %v24154_v56, %v19640_v27  ;;  %v13905_v40 = vpop.f32.mrb[243].mxu1 }
 0x6b6   : > { %14698 = vrot.lane.b32.xlu0 %v14208_v16, %s20993_s18  ;;  %v20928_v20 = vpop.eup %20927  ;;  %v13906_v55 = vadd.f32 %v24154_v56, %v13905_v40  ;;  %v14585_v38 = vpop.permute.xlu1 %14584 }
 0x6b7   : > { %v20930_v45 = vpop.eup %20929  ;;  %v14210_v30 = vmul.f32 256.0, %v20928_v20  ;;  %14920 = vst.msk [vmem:[%s23349_s14 + $0x188] sm:$0xff] %vm14870_vm4, %v14585_v38 }
 0x6b8   : > { %v14587_v18 = vpop.permute.xlu0 %14586  ;;  %20939 = vtanh.f32 %v13906_v55  ;;  %v19643_v50 = vpop.f32.mrb[244].mxu1  ;;  %14700 = vrot.lane.b32.xlu1 %v14209_v31, %s20993_s18  ;;  %v14211_v54 = vmul.f32 256.0, %v20930_v45 }
 0x6b9   : > { %14921 = vst.msk [vmem:[%s23349_s14 + $0x190] sm:$0xff] %vm14870_vm4, %v14587_v18  ;;  %20941 = vtanh.f32 %v13911_v24  ;;  %v13921_v1 = vadd.f32 %v24154_v56, %v19643_v50  ;;  %v13915_v2 = vpop.f32.mrb[245].mxu1 }
 0x6ba   : > { %14702 = vrot.lane.b32.xlu0 %v14210_v30, %s20993_s18  ;;  %v20932_v34 = vpop.eup %20931  ;;  %v13916_v44 = vadd.f32 %v24154_v56, %v13915_v2  ;;  %v14589_v49 = vpop.permute.xlu1 %14588 }
 0x6bb   : > { %v20934_v42 = vpop.eup %20933  ;;  %v14212_v7 = vmul.f32 256.0, %v20932_v34  ;;  %14922 = vst.msk [vmem:[%s23349_s14 + $0x198] sm:$0xff] %vm14870_vm4, %v14589_v49 }
 0x6bc   : > { %v14591_v5 = vpop.permute.xlu0 %14590  ;;  %20943 = vtanh.f32 %v13916_v44  ;;  %v19646_v14 = vpop.f32.mrb[246].mxu1  ;;  %14704 = vrot.lane.b32.xlu1 %v14211_v54, %s20993_s18  ;;  %v14213_v21 = vmul.f32 256.0, %v20934_v42 }
 0x6bd   : > { %14923 = vst.msk [vmem:[%s23349_s14 + $0x1a0] sm:$0xff] %vm14870_vm4, %v14591_v5  ;;  %20945 = vtanh.f32 %v13921_v1  ;;  %v13931_v46 = vadd.f32 %v24154_v56, %v19646_v14  ;;  %v13925_v53 = vpop.f32.mrb[247].mxu1 }
 0x6be   : > { %14706 = vrot.lane.b32.xlu0 %v14212_v7, %s20993_s18  ;;  %v20936_v33 = vpop.eup %20935  ;;  %v13926_v28 = vadd.f32 %v24154_v56, %v13925_v53  ;;  %v14593_v61 = vpop.permute.xlu1 %14592 }
 0x6bf   : > { %v20938_v58 = vpop.eup %20937  ;;  %v14214_v62 = vmul.f32 256.0, %v20936_v33  ;;  %14924 = vst.msk [vmem:[%s23349_s14 + $0x1a8] sm:$0xff] %vm14870_vm4, %v14593_v61 }
 0x6c0   : > { %v14595_v57 = vpop.permute.xlu0 %14594  ;;  %20947 = vtanh.f32 %v13926_v28  ;;  %v19649_v43 = vpop.f32.mrb[248].mxu1  ;;  %14708 = vrot.lane.b32.xlu1 %v14213_v21, %s20993_s18  ;;  %v14215_v32 = vmul.f32 256.0, %v20938_v58 }
 0x6c1   : > { %14925 = vst.msk [vmem:[%s23349_s14 + $0x1b0] sm:$0xff] %vm14870_vm4, %v14595_v57  ;;  %20949 = vtanh.f32 %v13931_v46  ;;  %v13941_v23 = vadd.f32 %v24154_v56, %v19649_v43  ;;  %v13935_v59 = vpop.f32.mrb[249].mxu1 }
 0x6c2   : > { %14710 = vrot.lane.b32.xlu0 %v14214_v62, %s20993_s18  ;;  %v20940_v3 = vpop.eup %20939  ;;  %v13936_v52 = vadd.f32 %v24154_v56, %v13935_v59  ;;  %v14597_v22 = vpop.permute.xlu1 %14596 }
 0x6c3   : > { %v20942_v15 = vpop.eup %20941  ;;  %v14216_v8 = vmul.f32 256.0, %v20940_v3  ;;  %14926 = vst.msk [vmem:[%s23349_s14 + $0x1b8] sm:$0xff] %vm14870_vm4, %v14597_v22 }
 0x6c4   : > { %v14599_v63 = vpop.permute.xlu0 %14598  ;;  %20951 = vtanh.f32 %v13936_v52  ;;  %v19652_v0 = vpop.f32.mrb[250].mxu1  ;;  %14712 = vrot.lane.b32.xlu1 %v14215_v32, %s20993_s18  ;;  %v14217_v9 = vmul.f32 256.0, %v20942_v15 }
 0x6c5   : > { %14927 = vst.msk [vmem:[%s23349_s14 + $0x1c0] sm:$0xff] %vm14870_vm4, %v14599_v63  ;;  %20953 = vtanh.f32 %v13941_v23  ;;  %v13951_v37 = vadd.f32 %v24154_v56, %v19652_v0  ;;  %v13945_v26 = vpop.f32.mrb[251].mxu1 }
 0x6c6   : > { %14714 = vrot.lane.b32.xlu0 %v14216_v8, %s20993_s18  ;;  %v20944_v41 = vpop.eup %20943  ;;  %v13946_v48 = vadd.f32 %v24154_v56, %v13945_v26  ;;  %v14601_v13 = vpop.permute.xlu1 %14600 }
 0x6c7   : > { %v20946_v4 = vpop.eup %20945  ;;  %v14218_v35 = vmul.f32 256.0, %v20944_v41  ;;  %14928 = vst.msk [vmem:[%s23349_s14 + $0x1c8] sm:$0xff] %vm14870_vm4, %v14601_v13 }
 0x6c8   : > { %v14603_v11 = vpop.permute.xlu0 %14602  ;;  %20955 = vtanh.f32 %v13946_v48  ;;  %v19655_v39 = vpop.f32.mrb[252].mxu1  ;;  %14716 = vrot.lane.b32.xlu1 %v14217_v9, %s20993_s18  ;;  %v14219_v6 = vmul.f32 256.0, %v20946_v4 }
 0x6c9   : > { %14929 = vst.msk [vmem:[%s23349_s14 + $0x1d0] sm:$0xff] %vm14870_vm4, %v14603_v11  ;;  %20957 = vtanh.f32 %v13951_v37  ;;  %v13961_v29 = vadd.f32 %v24154_v56, %v19655_v39  ;;  %v13955_v17 = vpop.f32.mrb[253].mxu1 }
 0x6ca   : > { %14718 = vrot.lane.b32.xlu0 %v14218_v35, %s20993_s18  ;;  %v20948_v47 = vpop.eup %20947  ;;  %v13956_v10 = vadd.f32 %v24154_v56, %v13955_v17  ;;  %v14605_v25 = vpop.permute.xlu1 %14604 }
 0x6cb   : > { %v20950_v19 = vpop.eup %20949  ;;  %v14220_v36 = vmul.f32 256.0, %v20948_v47  ;;  %14930 = vst.msk [vmem:[%s23349_s14 + $0x1d8] sm:$0xff] %vm14870_vm4, %v14605_v25 }
 0x6cc   : > { %v14607_v51 = vpop.permute.xlu0 %14606  ;;  %20959 = vtanh.f32 %v13956_v10  ;;  %14720 = vrot.lane.b32.xlu1 %v14219_v6, %s20993_s18  ;;  %v19658_v12 = vpop.f32.mrb[254].mxu1  ;;  %v14221_v24 = vmul.f32 256.0, %v20950_v19 }
 0x6cd   : > { %14931 = vst.msk [vmem:[%s23349_s14 + $0x1e0] sm:$0xff] %vm14870_vm4, %v14607_v51  ;;  %20961 = vtanh.f32 %v13961_v29  ;;  %v13971_v16 = vadd.f32 %v24154_v56, %v19658_v12  ;;  %v13965_v60 = vpop.f32.mrb[255].mxu1 }
 0x6ce   : > { %14722 = vrot.lane.b32.xlu0 %v14220_v36, %s20993_s18  ;;  %v20952_v27 = vpop.eup %20951  ;;  %v13966_v40 = vadd.f32 %v24154_v56, %v13965_v60  ;;  %v14609_v20 = vpop.permute.xlu1 %14608 }
 0x6cf   : > { %v20954_v31 = vpop.eup %20953  ;;  %v14222_v55 = vmul.f32 256.0, %v20952_v27  ;;  %14932 = vst.msk [vmem:[%s23349_s14 + $0x1e8] sm:$0xff] %vm14870_vm4, %v14609_v20 }
 0x6d0   : > { %v14611_v38 = vpop.permute.xlu0 %14610  ;;  %20963 = vtanh.f32 %v13966_v40  ;;  %14724 = vrot.lane.b32.xlu1 %v14221_v24, %s20993_s18  ;;  %v14223_v30 = vmul.f32 256.0, %v20954_v31 }
 0x6d1   : > { %14933 = vst.msk [vmem:[%s23349_s14 + $0x1f0] sm:$0xff] %vm14870_vm4, %v14611_v38  ;;  %20965 = vtanh.f32 %v13971_v16 }
 0x6d2   : > { %14726 = vrot.lane.b32.xlu0 %v14222_v55, %s20993_s18  ;;  %v20956_v45 = vpop.eup %20955  ;;  %v14613_v56 = vpop.permute.xlu1 %14612 }
 0x6d3   : > { %v20958_v18 = vpop.eup %20957  ;;  %v14224_v50 = vmul.f32 256.0, %v20956_v45  ;;  %14934 = vst.msk [vmem:[%s23349_s14 + $0x1f8] sm:$0xff] %vm14870_vm4, %v14613_v56 }
 0x6d4   : > { %v14615_v1 = vpop.permute.xlu0 %14614  ;;  %14728 = vrot.lane.b32.xlu1 %v14223_v30, %s20993_s18  ;;  %v14225_v34 = vmul.f32 256.0, %v20958_v18 }
 0x6d5   : > { %14935 = vst.msk [vmem:[%s23349_s14 + $0x200] sm:$0xff] %vm14870_vm4, %v14615_v1 }
 0x6d6   : > { %14730 = vrot.lane.b32.xlu0 %v14224_v50, %s20993_s18  ;;  %v20960_v2 = vpop.eup %20959  ;;  %v14617_v54 = vpop.permute.xlu1 %14616 }
 0x6d7   : > { %v20962_v44 = vpop.eup %20961  ;;  %v14226_v49 = vmul.f32 256.0, %v20960_v2  ;;  %14936 = vst.msk [vmem:[%s23349_s14 + $0x208] sm:$0xff] %vm14870_vm4, %v14617_v54 }
 0x6d8   : > { %v14619_v42 = vpop.permute.xlu0 %14618  ;;  %14732 = vrot.lane.b32.xlu1 %v14225_v34, %s20993_s18  ;;  %v14227_v5 = vmul.f32 256.0, %v20962_v44 }
 0x6d9   : > { %14937 = vst.msk [vmem:[%s23349_s14 + $0x210] sm:$0xff] %vm14870_vm4, %v14619_v42 }
 0x6da   : > { %14734 = vrot.lane.b32.xlu0 %v14226_v49, %s20993_s18  ;;  %v20964_v7 = vpop.eup %20963  ;;  %v14621_v14 = vpop.permute.xlu1 %14620 }
 0x6db   : > { %v20966_v46 = vpop.eup %20965  ;;  %v14228_v53 = vmul.f32 256.0, %v20964_v7  ;;  %14938 = vst.msk [vmem:[%s23349_s14 + $0x218] sm:$0xff] %vm14870_vm4, %v14621_v14 }
 0x6dc   : > { %v14623_v33 = vpop.permute.xlu0 %14622  ;;  %14736 = vrot.lane.b32.xlu1 %v14227_v5, %s20993_s18  ;;  %v14229_v21 = vmul.f32 256.0, %v20966_v46 }
 0x6dd   : > { %14939 = vst.msk [vmem:[%s23349_s14 + $0x220] sm:$0xff] %vm14870_vm4, %v14623_v33 }
 0x6de   : > { %14738 = vrot.lane.b32.xlu0 %v14228_v53, %s20993_s18  ;;  %v14625_v28 = vpop.permute.xlu1 %14624 }
 0x6df   : > { %14940 = vst.msk [vmem:[%s23349_s14 + $0x228] sm:$0xff] %vm14870_vm4, %v14625_v28 }
 0x6e0   : > { %v14627_v61 = vpop.permute.xlu0 %14626  ;;  %14740 = vrot.lane.b32.xlu1 %v14229_v21, %s20993_s18 }
 0x6e1   : > { %14941 = vst.msk [vmem:[%s23349_s14 + $0x230] sm:$0xff] %vm14870_vm4, %v14627_v61 }
 0x6e2   : > { %v14629_v58 = vpop.permute.xlu1 %14628 }
 0x6e3   : > { %14942 = vst.msk [vmem:[%s23349_s14 + $0x238] sm:$0xff] %vm14870_vm4, %v14629_v58 }
 0x6e4   : > { %v14631_v62 = vpop.permute.xlu0 %14630 }
 0x6e5   : > { %14943 = vst.msk [vmem:[%s23349_s14 + $0x240] sm:$0xff] %vm14870_vm4, %v14631_v62 }
 0x6e6   : > { %v14633_v57 = vpop.permute.xlu1 %14632 }
 0x6e7   : > { %14944 = vst.msk [vmem:[%s23349_s14 + $0x248] sm:$0xff] %vm14870_vm4, %v14633_v57 }
 0x6e8   : > { %v14635_v43 = vpop.permute.xlu0 %14634 }
 0x6e9   : > { %14945 = vst.msk [vmem:[%s23349_s14 + $0x250] sm:$0xff] %vm14870_vm4, %v14635_v43 }
 0x6ea   : > { %v14637_v23 = vpop.permute.xlu1 %14636 }
 0x6eb   : > { %14946 = vst.msk [vmem:[%s23349_s14 + $0x258] sm:$0xff] %vm14870_vm4, %v14637_v23 }
 0x6ec   : > { %v14639_v59 = vpop.permute.xlu0 %14638 }
 0x6ed   : > { %14947 = vst.msk [vmem:[%s23349_s14 + $0x260] sm:$0xff] %vm14870_vm4, %v14639_v59 }
 0x6ee   : > { %v14641_v3 = vpop.permute.xlu1 %14640 }
 0x6ef   : > { %14948 = vst.msk [vmem:[%s23349_s14 + $0x268] sm:$0xff] %vm14870_vm4, %v14641_v3 }
 0x6f0   : > { %v14643_v32 = vpop.permute.xlu0 %14642 }
 0x6f1   : > { %14949 = vst.msk [vmem:[%s23349_s14 + $0x270] sm:$0xff] %vm14870_vm4, %v14643_v32 }
 0x6f2   : > { %v14645_v52 = vpop.permute.xlu1 %14644 }
 0x6f3   : > { %14950 = vst.msk [vmem:[%s23349_s14 + $0x278] sm:$0xff] %vm14870_vm4, %v14645_v52 }
 0x6f4   : > { %v14647_v22 = vpop.permute.xlu0 %14646 }
 0x6f5   : > { %14951 = vst.msk [vmem:[%s23349_s14 + $0x280] sm:$0xff] %vm14870_vm4, %v14647_v22 }
 0x6f6   : > { %v14649_v15 = vpop.permute.xlu1 %14648 }
 0x6f7   : > { %14952 = vst.msk [vmem:[%s23349_s14 + $0x288] sm:$0xff] %vm14870_vm4, %v14649_v15 }
 0x6f8   : > { %v14651_v8 = vpop.permute.xlu0 %14650 }
 0x6f9   : > { %14953 = vst.msk [vmem:[%s23349_s14 + $0x290] sm:$0xff] %vm14870_vm4, %v14651_v8 }
 0x6fa   : > { %v14653_v63 = vpop.permute.xlu1 %14652 }
 0x6fb   : > { %14954 = vst.msk [vmem:[%s23349_s14 + $0x298] sm:$0xff] %vm14870_vm4, %v14653_v63 }
 0x6fc   : > { %v14655_v0 = vpop.permute.xlu0 %14654 }
 0x6fd   : > { %14955 = vst.msk [vmem:[%s23349_s14 + $0x2a0] sm:$0xff] %vm14870_vm4, %v14655_v0 }
 0x6fe   : > { %v14657_v37 = vpop.permute.xlu1 %14656 }
 0x6ff   : > { %14956 = vst.msk [vmem:[%s23349_s14 + $0x2a8] sm:$0xff] %vm14870_vm4, %v14657_v37 }
 0x700   : > { %v14659_v26 = vpop.permute.xlu0 %14658 }
 0x701   : > { %14957 = vst.msk [vmem:[%s23349_s14 + $0x2b0] sm:$0xff] %vm14870_vm4, %v14659_v26 }
 0x702   : > { %v14661_v41 = vpop.permute.xlu1 %14660 }
 0x703   : > { %14958 = vst.msk [vmem:[%s23349_s14 + $0x2b8] sm:$0xff] %vm14870_vm4, %v14661_v41 }
 0x704   : > { %v14663_v9 = vpop.permute.xlu0 %14662 }
 0x705   : > { %14959 = vst.msk [vmem:[%s23349_s14 + $0x2c0] sm:$0xff] %vm14870_vm4, %v14663_v9 }
 0x706   : > { %v14665_v48 = vpop.permute.xlu1 %14664 }
 0x707   : > { %14960 = vst.msk [vmem:[%s23349_s14 + $0x2c8] sm:$0xff] %vm14870_vm4, %v14665_v48 }
 0x708   : > { %v14667_v13 = vpop.permute.xlu0 %14666 }
 0x709   : > { %14961 = vst.msk [vmem:[%s23349_s14 + $0x2d0] sm:$0xff] %vm14870_vm4, %v14667_v13 }
 0x70a   : > { %v14669_v4 = vpop.permute.xlu1 %14668 }
 0x70b   : > { %14962 = vst.msk [vmem:[%s23349_s14 + $0x2d8] sm:$0xff] %vm14870_vm4, %v14669_v4 }
 0x70c   : > { %v14671_v35 = vpop.permute.xlu0 %14670 }
 0x70d   : > { %14963 = vst.msk [vmem:[%s23349_s14 + $0x2e0] sm:$0xff] %vm14870_vm4, %v14671_v35 }
 0x70e   : > { %v14673_v11 = vpop.permute.xlu1 %14672 }
 0x70f   : > { %14964 = vst.msk [vmem:[%s23349_s14 + $0x2e8] sm:$0xff] %vm14870_vm4, %v14673_v11 }
 0x710   : > { %v14675_v39 = vpop.permute.xlu0 %14674 }
 0x711   : > { %14965 = vst.msk [vmem:[%s23349_s14 + $0x2f0] sm:$0xff] %vm14870_vm4, %v14675_v39 }
 0x712   : > { %v14677_v29 = vpop.permute.xlu1 %14676 }
 0x713   : > { %14966 = vst.msk [vmem:[%s23349_s14 + $0x2f8] sm:$0xff] %vm14870_vm4, %v14677_v29 }
 0x714   : > { %v14679_v17 = vpop.permute.xlu0 %14678 }
 0x715   : > { %14967 = vst.msk [vmem:[%s23349_s14 + $0x300] sm:$0xff] %vm14870_vm4, %v14679_v17 }
 0x716   : > { %v14681_v47 = vpop.permute.xlu1 %14680 }
 0x717   : > { %14968 = vst.msk [vmem:[%s23349_s14 + $0x308] sm:$0xff] %vm14870_vm4, %v14681_v47 }
 0x718   : > { %v14683_v6 = vpop.permute.xlu0 %14682 }
 0x719   : > { %14969 = vst.msk [vmem:[%s23349_s14 + $0x310] sm:$0xff] %vm14870_vm4, %v14683_v6 }
 0x71a   : > { %v14685_v10 = vpop.permute.xlu1 %14684 }
 0x71b   : > { %14970 = vst.msk [vmem:[%s23349_s14 + $0x318] sm:$0xff] %vm14870_vm4, %v14685_v10 }
 0x71c   : > { %v14687_v25 = vpop.permute.xlu0 %14686 }
 0x71d   : > { %14971 = vst.msk [vmem:[%s23349_s14 + $0x320] sm:$0xff] %vm14870_vm4, %v14687_v25 }
 0x71e   : > { %v14689_v19 = vpop.permute.xlu1 %14688 }
 0x71f   : > { %14972 = vst.msk [vmem:[%s23349_s14 + $0x328] sm:$0xff] %vm14870_vm4, %v14689_v19 }
 0x720   : > { %v14691_v36 = vpop.permute.xlu0 %14690 }
 0x721   : > { %14973 = vst.msk [vmem:[%s23349_s14 + $0x330] sm:$0xff] %vm14870_vm4, %v14691_v36 }
 0x722   : > { %v14693_v51 = vpop.permute.xlu1 %14692 }
 0x723   : > { %14974 = vst.msk [vmem:[%s23349_s14 + $0x338] sm:$0xff] %vm14870_vm4, %v14693_v51 }
 0x724   : > { %v14695_v12 = vpop.permute.xlu0 %14694 }
 0x725   : > { %14975 = vst.msk [vmem:[%s23349_s14 + $0x340] sm:$0xff] %vm14870_vm4, %v14695_v12 }
 0x726   : > { %v14697_v16 = vpop.permute.xlu1 %14696 }
 0x727   : > { %14976 = vst.msk [vmem:[%s23349_s14 + $0x348] sm:$0xff] %vm14870_vm4, %v14697_v16 }
 0x728   : > { %v14699_v60 = vpop.permute.xlu0 %14698 }
 0x729   : > { %14977 = vst.msk [vmem:[%s23349_s14 + $0x350] sm:$0xff] %vm14870_vm4, %v14699_v60 }
 0x72a   : > { %v14701_v27 = vpop.permute.xlu1 %14700 }
 0x72b   : > { %14978 = vst.msk [vmem:[%s23349_s14 + $0x358] sm:$0xff] %vm14870_vm4, %v14701_v27 }
 0x72c   : > { %v14703_v24 = vpop.permute.xlu0 %14702 }
 0x72d   : > { %14979 = vst.msk [vmem:[%s23349_s14 + $0x360] sm:$0xff] %vm14870_vm4, %v14703_v24 }
 0x72e   : > { %v14705_v40 = vpop.permute.xlu1 %14704 }
 0x72f   : > { %14980 = vst.msk [vmem:[%s23349_s14 + $0x368] sm:$0xff] %vm14870_vm4, %v14705_v40 }
 0x730   : > { %v14707_v20 = vpop.permute.xlu0 %14706 }
 0x731   : > { %14981 = vst.msk [vmem:[%s23349_s14 + $0x370] sm:$0xff] %vm14870_vm4, %v14707_v20 }
 0x732   : > { %v14709_v31 = vpop.permute.xlu1 %14708 }
 0x733   : > { %14982 = vst.msk [vmem:[%s23349_s14 + $0x378] sm:$0xff] %vm14870_vm4, %v14709_v31 }
 0x734   : > { %v14711_v55 = vpop.permute.xlu0 %14710 }
 0x735   : > { %14983 = vst.msk [vmem:[%s23349_s14 + $0x380] sm:$0xff] %vm14870_vm4, %v14711_v55 }
 0x736   : > { %v14713_v38 = vpop.permute.xlu1 %14712 }
 0x737   : > { %14984 = vst.msk [vmem:[%s23349_s14 + $0x388] sm:$0xff] %vm14870_vm4, %v14713_v38 }
 0x738   : > { %v14715_v45 = vpop.permute.xlu0 %14714 }
 0x739   : > { %14985 = vst.msk [vmem:[%s23349_s14 + $0x390] sm:$0xff] %vm14870_vm4, %v14715_v45 }
 0x73a   : > { %v14717_v30 = vpop.permute.xlu1 %14716 }
 0x73b   : > { %14986 = vst.msk [vmem:[%s23349_s14 + $0x398] sm:$0xff] %vm14870_vm4, %v14717_v30 }
 0x73c   : > { %v14719_v56 = vpop.permute.xlu0 %14718 }
 0x73d   : > { %14987 = vst.msk [vmem:[%s23349_s14 + $0x3a0] sm:$0xff] %vm14870_vm4, %v14719_v56 }
 0x73e   : > { %v14721_v18 = vpop.permute.xlu1 %14720 }
 0x73f   : > { %14988 = vst.msk [vmem:[%s23349_s14 + $0x3a8] sm:$0xff] %vm14870_vm4, %v14721_v18 }
 0x740   : > { %v14723_v50 = vpop.permute.xlu0 %14722 }
 0x741   : > { %14989 = vst.msk [vmem:[%s23349_s14 + $0x3b0] sm:$0xff] %vm14870_vm4, %v14723_v50 }
 0x742   : > { %v14725_v1 = vpop.permute.xlu1 %14724 }
 0x743   : > { %14990 = vst.msk [vmem:[%s23349_s14 + $0x3b8] sm:$0xff] %vm14870_vm4, %v14725_v1 }
 0x744   : > { %v14727_v2 = vpop.permute.xlu0 %14726 }
 0x745   : > { %14991 = vst.msk [vmem:[%s23349_s14 + $0x3c0] sm:$0xff] %vm14870_vm4, %v14727_v2 }
 0x746   : > { %v14729_v34 = vpop.permute.xlu1 %14728 }
 0x747   : > { %14992 = vst.msk [vmem:[%s23349_s14 + $0x3c8] sm:$0xff] %vm14870_vm4, %v14729_v34 }
 0x748   : > { %v14731_v54 = vpop.permute.xlu0 %14730 }
 0x749   : > { %14993 = vst.msk [vmem:[%s23349_s14 + $0x3d0] sm:$0xff] %vm14870_vm4, %v14731_v54 }
 0x74a   : > { %v14733_v44 = vpop.permute.xlu1 %14732 }
 0x74b   : > { %14994 = vst.msk [vmem:[%s23349_s14 + $0x3d8] sm:$0xff] %vm14870_vm4, %v14733_v44 }
 0x74c   : > { %v14735_v49 = vpop.permute.xlu0 %14734 }
 0x74d   : > { %14995 = vst.msk [vmem:[%s23349_s14 + $0x3e0] sm:$0xff] %vm14870_vm4, %v14735_v49 }
 0x74e   : > { %v14737_v42 = vpop.permute.xlu1 %14736 }
 0x74f   : > { %14996 = vst.msk [vmem:[%s23349_s14 + $0x3e8] sm:$0xff] %vm14870_vm4, %v14737_v42 }
 0x750   : > { %v14739_v7 = vpop.permute.xlu0 %14738 }
 0x751   : > { %14997 = vst.msk [vmem:[%s23349_s14 + $0x3f0] sm:$0xff] %vm14870_vm4, %v14739_v7 }
 0x752   : > { %v14741_v5 = vpop.permute.xlu1 %14740 }
 0x753   : > { %14998 = vst.msk [vmem:[%s23349_s14 + $0x3f8] sm:$0xff] %vm14870_vm4, %v14741_v5 }
 0x754 PF: > { %s16_s23 = sadd.s32 1, %s20991_s23   ;;  %s24890_s21 = smov %s20987_s22 }
 0x755   : > { %p13_p5 = scmp.ge.s32.totalorder %s16_s23, 4   ;;  %s24891_s22 = smov %s24893_s24 }
 0x757   :  { %15 = sbr.rel (!%p13_p5) target bundleno = 2 (0x2), region = 88 }

</bundles_post_ra>
